<compile_context>
chip_gen: v7x
topology: tpu7x:2x2x1
jax: 0.10.0
libtpu: 0.0.40
codegen_flags: <defaults>
</compile_context>

<pallas_src>
import functools

import jax
import jax.numpy as jnp
from jax import lax
from jax.experimental import pallas as pl
from jax.experimental.pallas import tpu as pltpu

NEG_SLOPE = 0.01   # nn.LeakyReLU default negative_slope
BN_EPS = 1e-5      # nn.BatchNorm3d default eps


def _round_up(x, m):
    return (x + m - 1) // m * m


def _pick_dblk(d):
    """Largest divisor of d that is <= 8 (bounds the per-step VMEM footprint)."""
    for c in (8, 7, 6, 5, 4, 3, 2, 1):
        if c <= d and d % c == 0:
            return c
    return 1


# ----------------------------------------------------------------------------
# The single fused spatial kernel.
#
# Input xfb is the (already width-folded, depth-windowed) activation:
#   (G, Dblk + kd - 1, Rin, Cf)   with Rin = (Ho + kh - 1) * Wq, Cf = kw_fold*C.
# For output plane d and tap (t, h) the needed rows are the *contiguous*,
# sublane-aligned window [h*Wq, h*Wq + Ho*Wq) of plane d + t.
# Epilogue (whole-plane, one store per output):
#   BN2 + LReLU  [-> 1x1 c3 + BN3 -> +residual -> LReLU]
#   [-> final 1x1 projection]   and/or   [-> next block's c1 + BN1 + LReLU].
# ----------------------------------------------------------------------------
def _spatial_fused_kernel(x_ref, w_ref, s2_ref, b2_ref, *rest,
                          kd, kh, Wq, Ho, Dblk,
                          has_res, has_next, has_final):
    idx = 0
    if has_res:
        w3_ref, s3_ref, b3_ref, r_ref = rest[idx:idx + 4]
        idx += 4
    if has_next:
        wn_ref, sn_ref, bn_ref = rest[idx:idx + 3]
        idx += 3
    if has_final:
        wf_ref, bf_ref = rest[idx:idx + 2]
        idx += 2
    o_ref = rest[idx]
    h1_ref = rest[idx + 1] if has_next else None

    rows = Ho * Wq                       # flattened (h, w) rows incl. junk columns

    for d in range(Dblk):                # static unroll over output depth planes
        # --- local f32 tap accumulation (no accumulator-ref RMW traffic) ------
        acc = None
        for t in range(kd):
            for h in range(kh):
                xt = x_ref[0, d + t, h * Wq:h * Wq + rows, :]   # aligned free view
                part = jnp.dot(xt, w_ref[t * kh + h],
                               preferred_element_type=jnp.float32)
                acc = part if acc is None else acc + part

        y = acc * s2_ref[...] + b2_ref[...]            # folded conv-bias + BN (f32)
        y = jnp.where(y >= 0.0, y, NEG_SLOPE * y)      # LeakyReLU

        if has_res:                                    # fused c3(1x1)+BN3 + skip + lrelu
            z = jnp.dot(y.astype(w3_ref.dtype), w3_ref[...],
                        preferred_element_type=jnp.float32)
            z = z * s3_ref[...] + b3_ref[...]
            z = z + r_ref[0, d].astype(jnp.float32)
            z = jnp.where(z >= 0.0, z, NEG_SLOPE * z)
        else:
            z = y

        if has_final:                                  # fused final 1x1 projection
            f = jnp.dot(z.astype(wf_ref.dtype), wf_ref[...],
                        preferred_element_type=jnp.float32) + bf_ref[...]
            o_ref[0, d] = f.astype(o_ref.dtype)
        else:
            o_ref[0, d] = z.astype(o_ref.dtype)

        if has_next:                                   # fused next-block c1 + BN + lrelu
            hn = jnp.dot(z.astype(wn_ref.dtype), wn_ref[...],
                         preferred_element_type=jnp.float32)
            hn = hn * sn_ref[...] + bn_ref[...]
            hn = jnp.where(hn >= 0.0, hn, NEG_SLOPE * hn)
            h1_ref[0, d] = hn.astype(h1_ref.dtype)


def spatial_fused_conv(xfb, w_taps, s2, b2, *, kd, kh, Wq, Ho, Dblk,
                       res=None, nxt=None, final=None, out_dtype=jnp.bfloat16):
    """One pallas_call per network stage.

    xfb    : (G, Dblk + kd - 1, Rin, Cf) bf16 folded/windowed activation.
    w_taps : (kd*kh, Cf, C2) bf16.   s2/b2: (1, C2) f32 folded BN.
    res    : optional (w3 (C2,C3) bf16, s3, b3 (1,C3) f32, residual (G,Dblk,Rout,C3) bf16).
    nxt    : optional (wn (C,Cn) bf16, sn, bn (1,Cn) f32) -> second output h1_next.
    final  : optional (wf (C,P) bf16, bf (1,P) f32) fused final projection.
    """
    G, Dwin, Rin, Cf = xfb.shape
    ntap, _, C2 = w_taps.shape
    assert ntap == kd * kh and Dwin == Dblk + kd - 1
    Rout = Ho * Wq

    in_specs = [pl.BlockSpec((1, Dwin, Rin, Cf), lambda i: (i, 0, 0, 0)),
                pl.BlockSpec(w_taps.shape, lambda i: (0, 0, 0)),     # resident
                pl.BlockSpec((1, C2), lambda i: (0, 0)),
                pl.BlockSpec((1, C2), lambda i: (0, 0))]
    args = [xfb, w_taps, s2, b2]
    cmain = C2
    if res is not None:
        w3, s3, b3, r = res
        C3 = w3.shape[1]
        in_specs += [pl.BlockSpec(w3.shape, lambda i: (0, 0)),
                     pl.BlockSpec((1, C3), lambda i: (0, 0)),
                     pl.BlockSpec((1, C3), lambda i: (0, 0)),
                     pl.BlockSpec((1, Dblk, Rout, C3), lambda i: (i, 0, 0, 0))]
        args += [w3, s3, b3, r]
        cmain = C3
    if nxt is not None:
        wn, sn, bn = nxt
        Cn = wn.shape[1]
        in_specs += [pl.BlockSpec(wn.shape, lambda i: (0, 0)),
                     pl.BlockSpec((1, Cn), lambda i: (0, 0)),
                     pl.BlockSpec((1, Cn), lambda i: (0, 0))]
        args += [wn, sn, bn]
    if final is not None:
        wf, bf = final
        P = wf.shape[1]
        in_specs += [pl.BlockSpec(wf.shape, lambda i: (0, 0)),
                     pl.BlockSpec((1, P), lambda i: (0, 0))]
        args += [wf, bf]
        cmain = P

    out_shapes = [jax.ShapeDtypeStruct((G, Dblk, Rout, cmain), out_dtype)]
    out_specs = [pl.BlockSpec((1, Dblk, Rout, cmain), lambda i: (i, 0, 0, 0))]
    if nxt is not None:
        Cn = nxt[0].shape[1]
        out_shapes.append(jax.ShapeDtypeStruct((G, Dblk, Rout, Cn), jnp.bfloat16))
        out_specs.append(pl.BlockSpec((1, Dblk, Rout, Cn), lambda i: (i, 0, 0, 0)))

    kern = functools.partial(_spatial_fused_kernel, kd=kd, kh=kh, Wq=Wq, Ho=Ho,
                             Dblk=Dblk, has_res=res is not None,
                             has_next=nxt is not None, has_final=final is not None)
    outs = pl.pallas_call(
        kern,
        out_shape=tuple(out_shapes),
        grid=(G,),
        in_specs=in_specs,
        out_specs=tuple(out_specs),
        compiler_params=pltpu.CompilerParams(
            dimension_semantics=("parallel",),
            vmem_limit_bytes=32 * 1024 * 1024),
    )(*args)
    if nxt is not None:
        return outs[0], outs[1]
    return outs[0]


# ----------------------------------------------------------------------------
# Plain-JAX glue: BN folding, weight rearrangement, input prep (pad + width
# fold + overlapped depth windows) -- one fused XLA pass per kernel input.
# ----------------------------------------------------------------------------
def _fold_bn(p):
    inv = p["gamma"] / jnp.sqrt(p["var"] + BN_EPS)
    scale = inv
    bias = inv * (p["b"] - p["mean"]) + p["beta"]
    C = scale.shape[0]
    return (scale.reshape(1, C).astype(jnp.float32),
            bias.reshape(1, C).astype(jnp.float32))


def _pw_weight(w):
    """(Cout, Cin, 1, 1, 1) -> (Cin, Cout) bf16."""
    Cout, Cin = w.shape[0], w.shape[1]
    return w.reshape(Cout, Cin).T.astype(jnp.bfloat16)


def _c2_weight(w):
    """(Cout, Cin, 3, 3, 3) -> (kd*kh = 9, kw*Cin = 3*Cin, Cout) bf16 (kw folded)."""
    Cout, Cin = w.shape[0], w.shape[1]
    wt = jnp.transpose(w, (2, 3, 4, 1, 0))                  # (kd, kh, kw, ci, co)
    return wt.reshape(9, 3 * Cin, Cout).astype(jnp.bfloat16)


def _down_weight(w):
    """(Cout, Cin, 4, 4, 4) stride-2 kernel -> (td*th = 4, tw*pd*ph*pw*ci = 16*Cin, Cout)."""
    Cout, Cin = w.shape[0], w.shape[1]
    w8 = w.reshape(Cout, Cin, 2, 2, 2, 2, 2, 2)             # (co, ci, td, pd, th, ph, tw, pw)
    w8 = jnp.transpose(w8, (2, 4, 6, 3, 5, 7, 1, 0))        # (td, th, tw, pd, ph, pw, ci, co)
    return w8.reshape(4, 16 * Cin, Cout).astype(jnp.bfloat16)


def _depth_windows(xf, Dblk, win, nDb):
    """(N, Dp, R, C) -> overlapped depth windows (N*nDb, win, R, C)."""
    N, _, R, C = xf.shape
    parts = [xf[:, j * Dblk:j * Dblk + win] for j in range(nDb)]
    return jnp.stack(parts, axis=1).reshape(N * nDb, win, R, C)


def prep_down(x, Dblk, nDb, Wq):
    """Raw (N, D, H, W, Cin) input -> folded/windowed input of the 2^3 phase conv."""
    N, D, H, W, Cin = x.shape
    Dd, Hd, Wd = D // 2, H // 2, W // 2
    xb = x.astype(jnp.bfloat16)
    xp = jnp.pad(xb, ((0, 0), (1, 1), (1, 1), (1, 1), (0, 0)))       # conv pad=1
    xg = xp.reshape(N, Dd + 1, 2, Hd + 1, 2, Wd + 1, 2, Cin)         # space-to-depth
    xg = jnp.transpose(xg, (0, 1, 3, 5, 2, 4, 6, 7))
    xg = xg.reshape(N, Dd + 1, Hd + 1, Wd + 1, 8 * Cin)
    xg = jnp.pad(xg, ((0, 0), (0, 0), (0, 0), (0, Wq - Wd), (0, 0)))  # junk cols
    xf = jnp.concatenate([xg[..., 0:Wq, :], xg[..., 1:Wq + 1, :]], axis=-1)  # fold tw
    xf = xf.reshape(N, Dd + 1, (Hd + 1) * Wq, 16 * Cin)
    return _depth_windows(xf, Dblk, Dblk + 1, nDb)


def prep_block(h1, N, Dd, Hd, Wd, Wq, Dblk, nDb):
    """Row-flat h1 (G, Dblk, Hd*Wq, C) -> folded/windowed input of the 3^3 conv."""
    C = h1.shape[-1]
    h = h1.reshape(N, Dd, Hd, Wq, C)[:, :, :, :Wd, :]                 # drop junk cols
    hp = jnp.pad(h, ((0, 0), (1, 1), (1, 1), (1, Wq - Wd + 1), (0, 0)))
    xf = jnp.concatenate([hp[..., 0:Wq, :], hp[..., 1:Wq + 1, :],
                          hp[..., 2:Wq + 2, :]], axis=-1)             # fold kw
    xf = xf.reshape(N, Dd + 2, (Hd + 2) * Wq, 3 * C)
    return _depth_windows(xf, Dblk, Dblk + 2, nDb)


def resnet3d_forward(x, params):
    """x: (N, D, H, W, Cin) channels-last f32. Returns (N, D/2, H/2, W/2, pred_dim) f32."""
    N, D, H, W, _ = x.shape
    assert D % 2 == 0 and H % 2 == 0 and W % 2 == 0, "even spatial dims required"
    Dd, Hd, Wd = D // 2, H // 2, W // 2
    Wq = _round_up(Wd, 8)            # junk-column pad -> sublane-aligned tap slices
    Dblk = _pick_dblk(Dd)
    nDb = Dd // Dblk
    pred_dim = params["final"]["w"].shape[0]

    def c1_pack(p):
        s, b = _fold_bn(p)
        return (_pw_weight(p["w"]), s, b)

    # Down-sampler (4^3/s2 conv == 2^3/s1 conv on the space-to-depth input),
    # with res_block1's c1 fused into its epilogue.
    sd, bd = _fold_bn(params["down"])
    feat, h1 = spatial_fused_conv(
        prep_down(x, Dblk, nDb, Wq), _down_weight(params["down"]["w"]), sd, bd,
        kd=2, kh=2, Wq=Wq, Ho=Hd, Dblk=Dblk, nxt=c1_pack(params["rb1"]["c1"]))

    # Residual blocks: one fused pallas_call each (c2 taps + BN + lrelu ->
    # c3 + BN -> +skip -> lrelu -> [next c1 | final projection]).
    names = ("rb1", "rb2", "rb3")
    out = None
    for i, name in enumerate(names):
        p = params[name]
        xfb = prep_block(h1, N, Dd, Hd, Wd, Wq, Dblk, nDb)
        s2, b2 = _fold_bn(p["c2"])
        s3, b3 = _fold_bn(p["c3"])
        res = (_pw_weight(p["c3"]["w"]), s3, b3, feat)
        if name != "rb3":
            feat, h1 = spatial_fused_conv(
                xfb, _c2_weight(p["c2"]["w"]), s2, b2,
                kd=3, kh=3, Wq=Wq, Ho=Hd, Dblk=Dblk, res=res,
                nxt=c1_pack(params[names[i + 1]]["c1"]))
        else:
            wf = _pw_weight(params["final"]["w"])
            bf = params["final"]["b"].reshape(1, -1).astype(jnp.float32)
            out = spatial_fused_conv(
                xfb, _c2_weight(p["c2"]["w"]), s2, b2,
                kd=3, kh=3, Wq=Wq, Ho=Hd, Dblk=Dblk, res=res,
                final=(wf, bf), out_dtype=jnp.float32)

    return out.reshape(N, Dd, Hd, Wq, pred_dim)[:, :, :, :Wd, :]


# ----------------------------------------------------------------------------
# Deterministic parameter init (shapes from ResNet3D.__init__)
# ----------------------------------------------------------------------------
def init_params(key, in_channel, pred_dim, chans):
    keys = iter(jax.random.split(key, 128))

    def conv_p(cin, cout, k, with_bn=True):
        d = {
            "w": 0.05 * jax.random.normal(next(keys), (cout, cin, k, k, k), jnp.float32),
            "b": 0.05 * jax.random.normal(next(keys), (cout,), jnp.float32),
        }
        if with_bn:
            d["gamma"] = 1.0 + 0.1 * jax.random.normal(next(keys), (cout,), jnp.float32)
            d["beta"] = 0.1 * jax.random.normal(next(keys), (cout,), jnp.float32)
            d["mean"] = 0.1 * jax.random.normal(next(keys), (cout,), jnp.float32)
            d["var"] = jnp.abs(1.0 + 0.1 * jax.random.normal(next(keys), (cout,), jnp.float32))
        return d

    def block_p():
        return {
            "c1": conv_p(chans, chans, 1),
            "c2": conv_p(chans, chans, 3),
            "c3": conv_p(chans, chans, 1),
        }

    return {
        "down": conv_p(in_channel, chans, 4),
        "rb1": block_p(),
        "rb2": block_p(),
        "rb3": block_p(),
        "final": conv_p(chans, pred_dim, 1, with_bn=False),
    }


# ----------------------------------------------------------------------------
# Pure-JAX reference (f32, eval-mode BN) for a loose sanity check
# ----------------------------------------------------------------------------
def _ref_forward(x, params):
    def conv(x, p, stride, pad):
        w = jnp.transpose(p["w"], (2, 3, 4, 1, 0))            # DHWIO
        y = lax.conv_general_dilated(
            x, w, (stride,) * 3, [(pad, pad)] * 3,
            dimension_numbers=("NDHWC", "DHWIO", "NDHWC"))
        return y + p["b"]

    def bn(x, p):
        inv = p["gamma"] / jnp.sqrt(p["var"] + BN_EPS)
        return (x - p["mean"]) * inv + p["beta"]

    def lrelu(x):
        return jnp.where(x >= 0, x, NEG_SLOPE * x)

    feat = lrelu(bn(conv(x, params["down"], 2, 1), params["down"]))
    for name in ("rb1", "rb2", "rb3"):
        p = params[name]
        h = lrelu(bn(conv(feat, p["c1"], 1, 0), p["c1"]))
        h = lrelu(bn(conv(h, p["c2"], 1, 1), p["c2"]))
        h = bn(conv(h, p["c3"], 1, 0), p["c3"])
        feat = lrelu(feat + h)
    return conv(feat, params["final"], 1, 0)


if __name__ == "__main__":
    key = jax.random.PRNGKey(0)
    kx, kp = jax.random.split(key)

    # Small shapes: batch=2, in_channel=4, spatial=8, chans=32, pred_dim=8
    N, Cin, D, H, W = 2, 4, 8, 8, 8
    chans, pred_dim = 32, 8

    x_ncdhw = jax.random.normal(kx, (N, Cin, D, H, W), jnp.float32)   # PyTorch layout
    x = jnp.transpose(x_ncdhw, (0, 2, 3, 4, 1))                       # -> NDHWC

    params = init_params(kp, Cin, pred_dim, chans)

    fwd = jax.jit(resnet3d_forward)
    out = jax.block_until_ready(fwd(x, params))

    assert out.shape == (N, D // 2, H // 2, W // 2, pred_dim), out.shape
    assert out.dtype == jnp.float32
    assert bool(jnp.all(jnp.isfinite(out)))

    # Loose tolerance: weights/activations travel in bf16, epilogue math in f32.
    ref = _ref_forward(x, params)
    err = float(jnp.max(jnp.abs(out - ref)))
    scale = float(jnp.max(jnp.abs(ref)))
    assert err <= 0.12 * scale + 0.08, (err, scale)

    print("KERNEL_OK")
</pallas_src>

<mosaic_0001>
module attributes {stable_mosaic.version = 11 : i64} {
  func.func @_spatial_fused_kernel(%arg0: i32, %arg1: memref<1x5x40x64xbf16, #tpu.memory_space<vmem>>, %arg2: memref<4x64x32xbf16, #tpu.memory_space<vmem>>, %arg3: memref<1x32xf32, #tpu.memory_space<vmem>>, %arg4: memref<1x32xf32, #tpu.memory_space<vmem>>, %arg5: memref<32x32xbf16, #tpu.memory_space<vmem>>, %arg6: memref<1x32xf32, #tpu.memory_space<vmem>>, %arg7: memref<1x32xf32, #tpu.memory_space<vmem>>, %arg8: memref<1x4x32x32xbf16, #tpu.memory_space<vmem>>, %arg9: memref<1x4x32x32xbf16, #tpu.memory_space<vmem>>) attributes {dimension_semantics = [#tpu.dimension_semantics<parallel>], iteration_bounds = array<i64: 2>, scalar_prefetch = 0 : i64, scratch_operands = 0 : i64, tpu.core_type = #tpu.core_type<tc>, window_params = [{transform_indices = @transform_0, window_bounds = array<i64: 1, 5, 40, 64>}, {pipeline_mode = #tpu.pipeline_mode<synchronous>, transform_indices = @transform_1, window_bounds = array<i64: 4, 64, 32>}, {pipeline_mode = #tpu.pipeline_mode<synchronous>, transform_indices = @transform_2, window_bounds = array<i64: 1, 32>}, {pipeline_mode = #tpu.pipeline_mode<synchronous>, transform_indices = @transform_3, window_bounds = array<i64: 1, 32>}, {pipeline_mode = #tpu.pipeline_mode<synchronous>, transform_indices = @transform_4, window_bounds = array<i64: 32, 32>}, {pipeline_mode = #tpu.pipeline_mode<synchronous>, transform_indices = @transform_5, window_bounds = array<i64: 1, 32>}, {pipeline_mode = #tpu.pipeline_mode<synchronous>, transform_indices = @transform_6, window_bounds = array<i64: 1, 32>}, {transform_indices = @transform_7, window_bounds = array<i64: 1, 4, 32, 32>}, {transform_indices = @transform_8, window_bounds = array<i64: 1, 4, 32, 32>}]} {
    %c0 = arith.constant 0 : index
    %c0_0 = arith.constant 0 : index
    %c0_1 = arith.constant 0 : index
    %c0_2 = arith.constant 0 : index
    %0 = vector.load %arg1[%c0, %c0_0, %c0_1, %c0_2] : memref<1x5x40x64xbf16, #tpu.memory_space<vmem>>, vector<1x1x32x64xbf16>
    %1 = vector.shape_cast %0 : vector<1x1x32x64xbf16> to vector<32x64xbf16>
    %c0_3 = arith.constant 0 : index
    %c0_4 = arith.constant 0 : index
    %c0_5 = arith.constant 0 : index
    %2 = vector.load %arg2[%c0_3, %c0_4, %c0_5] : memref<4x64x32xbf16, #tpu.memory_space<vmem>>, vector<1x64x32xbf16>
    %3 = vector.shape_cast %2 : vector<1x64x32xbf16> to vector<64x32xbf16>
    %cst = arith.constant dense<0.000000e+00> : vector<32x32xf32>
    %4 = tpu.matmul %1, %3, %cst {dimension_numbers = #tpu.dot_dimension_numbers<[1], [0], [0], [1], [0, 0, 1, 1], [], []>} : vector<32x64xbf16>, vector<64x32xbf16>, vector<32x32xf32> -> vector<32x32xf32>
    %c0_6 = arith.constant 0 : index
    %c0_7 = arith.constant 0 : index
    %c8 = arith.constant 8 : index
    %c0_8 = arith.constant 0 : index
    %5 = vector.load %arg1[%c0_6, %c0_7, %c8, %c0_8] : memref<1x5x40x64xbf16, #tpu.memory_space<vmem>>, vector<1x1x32x64xbf16>
    %6 = vector.shape_cast %5 : vector<1x1x32x64xbf16> to vector<32x64xbf16>
    %c1 = arith.constant 1 : index
    %c0_9 = arith.constant 0 : index
    %c0_10 = arith.constant 0 : index
    %7 = vector.load %arg2[%c1, %c0_9, %c0_10] : memref<4x64x32xbf16, #tpu.memory_space<vmem>>, vector<1x64x32xbf16>
    %8 = vector.shape_cast %7 : vector<1x64x32xbf16> to vector<64x32xbf16>
    %cst_11 = arith.constant dense<0.000000e+00> : vector<32x32xf32>
    %9 = tpu.matmul %6, %8, %cst_11 {dimension_numbers = #tpu.dot_dimension_numbers<[1], [0], [0], [1], [0, 0, 1, 1], [], []>} : vector<32x64xbf16>, vector<64x32xbf16>, vector<32x32xf32> -> vector<32x32xf32>
    %10 = arith.addf %4, %9 : vector<32x32xf32>
    %c0_12 = arith.constant 0 : index
    %c1_13 = arith.constant 1 : index
    %c0_14 = arith.constant 0 : index
    %c0_15 = arith.constant 0 : index
    %11 = vector.load %arg1[%c0_12, %c1_13, %c0_14, %c0_15] : memref<1x5x40x64xbf16, #tpu.memory_space<vmem>>, vector<1x1x32x64xbf16>
    %12 = vector.shape_cast %11 : vector<1x1x32x64xbf16> to vector<32x64xbf16>
    %c2 = arith.constant 2 : index
    %c0_16 = arith.constant 0 : index
    %c0_17 = arith.constant 0 : index
    %13 = vector.load %arg2[%c2, %c0_16, %c0_17] : memref<4x64x32xbf16, #tpu.memory_space<vmem>>, vector<1x64x32xbf16>
    %14 = vector.shape_cast %13 : vector<1x64x32xbf16> to vector<64x32xbf16>
    %cst_18 = arith.constant dense<0.000000e+00> : vector<32x32xf32>
    %15 = tpu.matmul %12, %14, %cst_18 {dimension_numbers = #tpu.dot_dimension_numbers<[1], [0], [0], [1], [0, 0, 1, 1], [], []>} : vector<32x64xbf16>, vector<64x32xbf16>, vector<32x32xf32> -> vector<32x32xf32>
    %16 = arith.addf %10, %15 : vector<32x32xf32>
    %c0_19 = arith.constant 0 : index
    %c1_20 = arith.constant 1 : index
    %c8_21 = arith.constant 8 : index
    %c0_22 = arith.constant 0 : index
    %17 = vector.load %arg1[%c0_19, %c1_20, %c8_21, %c0_22] : memref<1x5x40x64xbf16, #tpu.memory_space<vmem>>, vector<1x1x32x64xbf16>
    %18 = vector.shape_cast %17 : vector<1x1x32x64xbf16> to vector<32x64xbf16>
    %c3 = arith.constant 3 : index
    %c0_23 = arith.constant 0 : index
    %c0_24 = arith.constant 0 : index
    %19 = vector.load %arg2[%c3, %c0_23, %c0_24] : memref<4x64x32xbf16, #tpu.memory_space<vmem>>, vector<1x64x32xbf16>
    %20 = vector.shape_cast %19 : vector<1x64x32xbf16> to vector<64x32xbf16>
    %cst_25 = arith.constant dense<0.000000e+00> : vector<32x32xf32>
    %21 = tpu.matmul %18, %20, %cst_25 {dimension_numbers = #tpu.dot_dimension_numbers<[1], [0], [0], [1], [0, 0, 1, 1], [], []>} : vector<32x64xbf16>, vector<64x32xbf16>, vector<32x32xf32> -> vector<32x32xf32>
    %22 = arith.addf %16, %21 : vector<32x32xf32>
    %c0_26 = arith.constant 0 : index
    %c0_27 = arith.constant 0 : index
    %23 = vector.load %arg3[%c0_26, %c0_27] : memref<1x32xf32, #tpu.memory_space<vmem>>, vector<1x32xf32>
    %24 = vector.broadcast %23 : vector<1x32xf32> to vector<32x32xf32>
    %25 = arith.mulf %22, %24 : vector<32x32xf32>
    %c0_28 = arith.constant 0 : index
    %c0_29 = arith.constant 0 : index
    %26 = vector.load %arg4[%c0_28, %c0_29] : memref<1x32xf32, #tpu.memory_space<vmem>>, vector<1x32xf32>
    %27 = vector.broadcast %26 : vector<1x32xf32> to vector<32x32xf32>
    %28 = arith.addf %25, %27 : vector<32x32xf32>
    %cst_30 = arith.constant 0.000000e+00 : f32
    %29 = vector.broadcast %cst_30 : f32 to vector<32x32xf32>
    %30 = arith.cmpf oge, %28, %29 : vector<32x32xf32>
    %cst_31 = arith.constant 0.00999999977 : f32
    %31 = vector.broadcast %cst_31 : f32 to vector<32x32xf32>
    %32 = arith.mulf %31, %28 : vector<32x32xf32>
    %33 = arith.select %30, %28, %32 : vector<32x32xi1>, vector<32x32xf32>
    %34 = arith.truncf %33 : vector<32x32xf32> to vector<32x32xbf16>
    %c0_32 = arith.constant 0 : index
    %c0_33 = arith.constant 0 : index
    %c0_34 = arith.constant 0 : index
    %c0_35 = arith.constant 0 : index
    %35 = vector.load %arg8[%c0_32, %c0_33, %c0_34, %c0_35] : memref<1x4x32x32xbf16, #tpu.memory_space<vmem>>, vector<1x1x32x32xbf16>
    %36 = vector.shape_cast %35 : vector<1x1x32x32xbf16> to vector<32x32xbf16>
    %37 = vector.shape_cast %34 : vector<32x32xbf16> to vector<1x1x32x32xbf16>
    tpu.vector_store %arg8[%c0_32, %c0_33, %c0_34, %c0_35], %37 {strides = array<i32>} : memref<1x4x32x32xbf16, #tpu.memory_space<vmem>>, vector<1x1x32x32xbf16>,
    %38 = arith.truncf %33 : vector<32x32xf32> to vector<32x32xbf16>
    %c0_36 = arith.constant 0 : index
    %c0_37 = arith.constant 0 : index
    %39 = vector.load %arg5[%c0_36, %c0_37] : memref<32x32xbf16, #tpu.memory_space<vmem>>, vector<32x32xbf16>
    %cst_38 = arith.constant dense<0.000000e+00> : vector<32x32xf32>
    %40 = tpu.matmul %38, %39, %cst_38 {dimension_numbers = #tpu.dot_dimension_numbers<[1], [0], [0], [1], [0, 0, 1, 1], [], []>} : vector<32x32xbf16>, vector<32x32xbf16>, vector<32x32xf32> -> vector<32x32xf32>
    %c0_39 = arith.constant 0 : index
    %c0_40 = arith.constant 0 : index
    %41 = vector.load %arg6[%c0_39, %c0_40] : memref<1x32xf32, #tpu.memory_space<vmem>>, vector<1x32xf32>
    %42 = vector.broadcast %41 : vector<1x32xf32> to vector<32x32xf32>
    %43 = arith.mulf %40, %42 : vector<32x32xf32>
    %c0_41 = arith.constant 0 : index
    %c0_42 = arith.constant 0 : index
    %44 = vector.load %arg7[%c0_41, %c0_42] : memref<1x32xf32, #tpu.memory_space<vmem>>, vector<1x32xf32>
    %45 = vector.broadcast %44 : vector<1x32xf32> to vector<32x32xf32>
    %46 = arith.addf %43, %45 : vector<32x32xf32>
    %cst_43 = arith.constant 0.000000e+00 : f32
    %47 = vector.broadcast %cst_43 : f32 to vector<32x32xf32>
    %48 = arith.cmpf oge, %46, %47 : vector<32x32xf32>
    %cst_44 = arith.constant 0.00999999977 : f32
    %49 = vector.broadcast %cst_44 : f32 to vector<32x32xf32>
    %50 = arith.mulf %49, %46 : vector<32x32xf32>
    %51 = arith.select %48, %46, %50 : vector<32x32xi1>, vector<32x32xf32>
    %52 = arith.truncf %51 : vector<32x32xf32> to vector<32x32xbf16>
    %c0_45 = arith.constant 0 : index
    %c0_46 = arith.constant 0 : index
    %c0_47 = arith.constant 0 : index
    %c0_48 = arith.constant 0 : index
    %53 = vector.load %arg9[%c0_45, %c0_46, %c0_47, %c0_48] : memref<1x4x32x32xbf16, #tpu.memory_space<vmem>>, vector<1x1x32x32xbf16>
    %54 = vector.shape_cast %53 : vector<1x1x32x32xbf16> to vector<32x32xbf16>
    %55 = vector.shape_cast %52 : vector<32x32xbf16> to vector<1x1x32x32xbf16>
    tpu.vector_store %arg9[%c0_45, %c0_46, %c0_47, %c0_48], %55 {strides = array<i32>} : memref<1x4x32x32xbf16, #tpu.memory_space<vmem>>, vector<1x1x32x32xbf16>,
    %c0_49 = arith.constant 0 : index
    %c1_50 = arith.constant 1 : index
    %c0_51 = arith.constant 0 : index
    %c0_52 = arith.constant 0 : index
    %56 = vector.load %arg1[%c0_49, %c1_50, %c0_51, %c0_52] : memref<1x5x40x64xbf16, #tpu.memory_space<vmem>>, vector<1x1x32x64xbf16>
    %57 = vector.shape_cast %56 : vector<1x1x32x64xbf16> to vector<32x64xbf16>
    %c0_53 = arith.constant 0 : index
    %c0_54 = arith.constant 0 : index
    %c0_55 = arith.constant 0 : index
    %58 = vector.load %arg2[%c0_53, %c0_54, %c0_55] : memref<4x64x32xbf16, #tpu.memory_space<vmem>>, vector<1x64x32xbf16>
    %59 = vector.shape_cast %58 : vector<1x64x32xbf16> to vector<64x32xbf16>
    %cst_56 = arith.constant dense<0.000000e+00> : vector<32x32xf32>
    %60 = tpu.matmul %57, %59, %cst_56 {dimension_numbers = #tpu.dot_dimension_numbers<[1], [0], [0], [1], [0, 0, 1, 1], [], []>} : vector<32x64xbf16>, vector<64x32xbf16>, vector<32x32xf32> -> vector<32x32xf32>
    %c0_57 = arith.constant 0 : index
    %c1_58 = arith.constant 1 : index
    %c8_59 = arith.constant 8 : index
    %c0_60 = arith.constant 0 : index
    %61 = vector.load %arg1[%c0_57, %c1_58, %c8_59, %c0_60] : memref<1x5x40x64xbf16, #tpu.memory_space<vmem>>, vector<1x1x32x64xbf16>
    %62 = vector.shape_cast %61 : vector<1x1x32x64xbf16> to vector<32x64xbf16>
    %c1_61 = arith.constant 1 : index
    %c0_62 = arith.constant 0 : index
    %c0_63 = arith.constant 0 : index
    %63 = vector.load %arg2[%c1_61, %c0_62, %c0_63] : memref<4x64x32xbf16, #tpu.memory_space<vmem>>, vector<1x64x32xbf16>
    %64 = vector.shape_cast %63 : vector<1x64x32xbf16> to vector<64x32xbf16>
    %cst_64 = arith.constant dense<0.000000e+00> : vector<32x32xf32>
    %65 = tpu.matmul %62, %64, %cst_64 {dimension_numbers = #tpu.dot_dimension_numbers<[1], [0], [0], [1], [0, 0, 1, 1], [], []>} : vector<32x64xbf16>, vector<64x32xbf16>, vector<32x32xf32> -> vector<32x32xf32>
    %66 = arith.addf %60, %65 : vector<32x32xf32>
    %c0_65 = arith.constant 0 : index
    %c2_66 = arith.constant 2 : index
    %c0_67 = arith.constant 0 : index
    %c0_68 = arith.constant 0 : index
    %67 = vector.load %arg1[%c0_65, %c2_66, %c0_67, %c0_68] : memref<1x5x40x64xbf16, #tpu.memory_space<vmem>>, vector<1x1x32x64xbf16>
    %68 = vector.shape_cast %67 : vector<1x1x32x64xbf16> to vector<32x64xbf16>
    %c2_69 = arith.constant 2 : index
    %c0_70 = arith.constant 0 : index
    %c0_71 = arith.constant 0 : index
    %69 = vector.load %arg2[%c2_69, %c0_70, %c0_71] : memref<4x64x32xbf16, #tpu.memory_space<vmem>>, vector<1x64x32xbf16>
    %70 = vector.shape_cast %69 : vector<1x64x32xbf16> to vector<64x32xbf16>
    %cst_72 = arith.constant dense<0.000000e+00> : vector<32x32xf32>
    %71 = tpu.matmul %68, %70, %cst_72 {dimension_numbers = #tpu.dot_dimension_numbers<[1], [0], [0], [1], [0, 0, 1, 1], [], []>} : vector<32x64xbf16>, vector<64x32xbf16>, vector<32x32xf32> -> vector<32x32xf32>
    %72 = arith.addf %66, %71 : vector<32x32xf32>
    %c0_73 = arith.constant 0 : index
    %c2_74 = arith.constant 2 : index
    %c8_75 = arith.constant 8 : index
    %c0_76 = arith.constant 0 : index
    %73 = vector.load %arg1[%c0_73, %c2_74, %c8_75, %c0_76] : memref<1x5x40x64xbf16, #tpu.memory_space<vmem>>, vector<1x1x32x64xbf16>
    %74 = vector.shape_cast %73 : vector<1x1x32x64xbf16> to vector<32x64xbf16>
    %c3_77 = arith.constant 3 : index
    %c0_78 = arith.constant 0 : index
    %c0_79 = arith.constant 0 : index
    %75 = vector.load %arg2[%c3_77, %c0_78, %c0_79] : memref<4x64x32xbf16, #tpu.memory_space<vmem>>, vector<1x64x32xbf16>
    %76 = vector.shape_cast %75 : vector<1x64x32xbf16> to vector<64x32xbf16>
    %cst_80 = arith.constant dense<0.000000e+00> : vector<32x32xf32>
    %77 = tpu.matmul %74, %76, %cst_80 {dimension_numbers = #tpu.dot_dimension_numbers<[1], [0], [0], [1], [0, 0, 1, 1], [], []>} : vector<32x64xbf16>, vector<64x32xbf16>, vector<32x32xf32> -> vector<32x32xf32>
    %78 = arith.addf %72, %77 : vector<32x32xf32>
    %c0_81 = arith.constant 0 : index
    %c0_82 = arith.constant 0 : index
    %79 = vector.load %arg3[%c0_81, %c0_82] : memref<1x32xf32, #tpu.memory_space<vmem>>, vector<1x32xf32>
    %80 = vector.broadcast %79 : vector<1x32xf32> to vector<32x32xf32>
    %81 = arith.mulf %78, %80 : vector<32x32xf32>
    %c0_83 = arith.constant 0 : index
    %c0_84 = arith.constant 0 : index
    %82 = vector.load %arg4[%c0_83, %c0_84] : memref<1x32xf32, #tpu.memory_space<vmem>>, vector<1x32xf32>
    %83 = vector.broadcast %82 : vector<1x32xf32> to vector<32x32xf32>
    %84 = arith.addf %81, %83 : vector<32x32xf32>
    %cst_85 = arith.constant 0.000000e+00 : f32
    %85 = vector.broadcast %cst_85 : f32 to vector<32x32xf32>
    %86 = arith.cmpf oge, %84, %85 : vector<32x32xf32>
    %cst_86 = arith.constant 0.00999999977 : f32
    %87 = vector.broadcast %cst_86 : f32 to vector<32x32xf32>
    %88 = arith.mulf %87, %84 : vector<32x32xf32>
    %89 = arith.select %86, %84, %88 : vector<32x32xi1>, vector<32x32xf32>
    %90 = arith.truncf %89 : vector<32x32xf32> to vector<32x32xbf16>
    %c0_87 = arith.constant 0 : index
    %c1_88 = arith.constant 1 : index
    %c0_89 = arith.constant 0 : index
    %c0_90 = arith.constant 0 : index
    %91 = vector.load %arg8[%c0_87, %c1_88, %c0_89, %c0_90] : memref<1x4x32x32xbf16, #tpu.memory_space<vmem>>, vector<1x1x32x32xbf16>
    %92 = vector.shape_cast %91 : vector<1x1x32x32xbf16> to vector<32x32xbf16>
    %93 = vector.shape_cast %90 : vector<32x32xbf16> to vector<1x1x32x32xbf16>
    tpu.vector_store %arg8[%c0_87, %c1_88, %c0_89, %c0_90], %93 {strides = array<i32>} : memref<1x4x32x32xbf16, #tpu.memory_space<vmem>>, vector<1x1x32x32xbf16>,
    %94 = arith.truncf %89 : vector<32x32xf32> to vector<32x32xbf16>
    %c0_91 = arith.constant 0 : index
    %c0_92 = arith.constant 0 : index
    %95 = vector.load %arg5[%c0_91, %c0_92] : memref<32x32xbf16, #tpu.memory_space<vmem>>, vector<32x32xbf16>
    %cst_93 = arith.constant dense<0.000000e+00> : vector<32x32xf32>
    %96 = tpu.matmul %94, %95, %cst_93 {dimension_numbers = #tpu.dot_dimension_numbers<[1], [0], [0], [1], [0, 0, 1, 1], [], []>} : vector<32x32xbf16>, vector<32x32xbf16>, vector<32x32xf32> -> vector<32x32xf32>
    %c0_94 = arith.constant 0 : index
    %c0_95 = arith.constant 0 : index
    %97 = vector.load %arg6[%c0_94, %c0_95] : memref<1x32xf32, #tpu.memory_space<vmem>>, vector<1x32xf32>
    %98 = vector.broadcast %97 : vector<1x32xf32> to vector<32x32xf32>
    %99 = arith.mulf %96, %98 : vector<32x32xf32>
    %c0_96 = arith.constant 0 : index
    %c0_97 = arith.constant 0 : index
    %100 = vector.load %arg7[%c0_96, %c0_97] : memref<1x32xf32, #tpu.memory_space<vmem>>, vector<1x32xf32>
    %101 = vector.broadcast %100 : vector<1x32xf32> to vector<32x32xf32>
    %102 = arith.addf %99, %101 : vector<32x32xf32>
    %cst_98 = arith.constant 0.000000e+00 : f32
    %103 = vector.broadcast %cst_98 : f32 to vector<32x32xf32>
    %104 = arith.cmpf oge, %102, %103 : vector<32x32xf32>
    %cst_99 = arith.constant 0.00999999977 : f32
    %105 = vector.broadcast %cst_99 : f32 to vector<32x32xf32>
    %106 = arith.mulf %105, %102 : vector<32x32xf32>
    %107 = arith.select %104, %102, %106 : vector<32x32xi1>, vector<32x32xf32>
    %108 = arith.truncf %107 : vector<32x32xf32> to vector<32x32xbf16>
    %c0_100 = arith.constant 0 : index
    %c1_101 = arith.constant 1 : index
    %c0_102 = arith.constant 0 : index
    %c0_103 = arith.constant 0 : index
    %109 = vector.load %arg9[%c0_100, %c1_101, %c0_102, %c0_103] : memref<1x4x32x32xbf16, #tpu.memory_space<vmem>>, vector<1x1x32x32xbf16>
    %110 = vector.shape_cast %109 : vector<1x1x32x32xbf16> to vector<32x32xbf16>
    %111 = vector.shape_cast %108 : vector<32x32xbf16> to vector<1x1x32x32xbf16>
    tpu.vector_store %arg9[%c0_100, %c1_101, %c0_102, %c0_103], %111 {strides = array<i32>} : memref<1x4x32x32xbf16, #tpu.memory_space<vmem>>, vector<1x1x32x32xbf16>,
    %c0_104 = arith.constant 0 : index
    %c2_105 = arith.constant 2 : index
    %c0_106 = arith.constant 0 : index
    %c0_107 = arith.constant 0 : index
    %112 = vector.load %arg1[%c0_104, %c2_105, %c0_106, %c0_107] : memref<1x5x40x64xbf16, #tpu.memory_space<vmem>>, vector<1x1x32x64xbf16>
    %113 = vector.shape_cast %112 : vector<1x1x32x64xbf16> to vector<32x64xbf16>
    %c0_108 = arith.constant 0 : index
    %c0_109 = arith.constant 0 : index
    %c0_110 = arith.constant 0 : index
    %114 = vector.load %arg2[%c0_108, %c0_109, %c0_110] : memref<4x64x32xbf16, #tpu.memory_space<vmem>>, vector<1x64x32xbf16>
    %115 = vector.shape_cast %114 : vector<1x64x32xbf16> to vector<64x32xbf16>
    %cst_111 = arith.constant dense<0.000000e+00> : vector<32x32xf32>
    %116 = tpu.matmul %113, %115, %cst_111 {dimension_numbers = #tpu.dot_dimension_numbers<[1], [0], [0], [1], [0, 0, 1, 1], [], []>} : vector<32x64xbf16>, vector<64x32xbf16>, vector<32x32xf32> -> vector<32x32xf32>
    %c0_112 = arith.constant 0 : index
    %c2_113 = arith.constant 2 : index
    %c8_114 = arith.constant 8 : index
    %c0_115 = arith.constant 0 : index
    %117 = vector.load %arg1[%c0_112, %c2_113, %c8_114, %c0_115] : memref<1x5x40x64xbf16, #tpu.memory_space<vmem>>, vector<1x1x32x64xbf16>
    %118 = vector.shape_cast %117 : vector<1x1x32x64xbf16> to vector<32x64xbf16>
    %c1_116 = arith.constant 1 : index
    %c0_117 = arith.constant 0 : index
    %c0_118 = arith.constant 0 : index
    %119 = vector.load %arg2[%c1_116, %c0_117, %c0_118] : memref<4x64x32xbf16, #tpu.memory_space<vmem>>, vector<1x64x32xbf16>
    %120 = vector.shape_cast %119 : vector<1x64x32xbf16> to vector<64x32xbf16>
    %cst_119 = arith.constant dense<0.000000e+00> : vector<32x32xf32>
    %121 = tpu.matmul %118, %120, %cst_119 {dimension_numbers = #tpu.dot_dimension_numbers<[1], [0], [0], [1], [0, 0, 1, 1], [], []>} : vector<32x64xbf16>, vector<64x32xbf16>, vector<32x32xf32> -> vector<32x32xf32>
    %122 = arith.addf %116, %121 : vector<32x32xf32>
    %c0_120 = arith.constant 0 : index
    %c3_121 = arith.constant 3 : index
    %c0_122 = arith.constant 0 : index
    %c0_123 = arith.constant 0 : index
    %123 = vector.load %arg1[%c0_120, %c3_121, %c0_122, %c0_123] : memref<1x5x40x64xbf16, #tpu.memory_space<vmem>>, vector<1x1x32x64xbf16>
    %124 = vector.shape_cast %123 : vector<1x1x32x64xbf16> to vector<32x64xbf16>
    %c2_124 = arith.constant 2 : index
    %c0_125 = arith.constant 0 : index
    %c0_126 = arith.constant 0 : index
    %125 = vector.load %arg2[%c2_124, %c0_125, %c0_126] : memref<4x64x32xbf16, #tpu.memory_space<vmem>>, vector<1x64x32xbf16>
    %126 = vector.shape_cast %125 : vector<1x64x32xbf16> to vector<64x32xbf16>
    %cst_127 = arith.constant dense<0.000000e+00> : vector<32x32xf32>
    %127 = tpu.matmul %124, %126, %cst_127 {dimension_numbers = #tpu.dot_dimension_numbers<[1], [0], [0], [1], [0, 0, 1, 1], [], []>} : vector<32x64xbf16>, vector<64x32xbf16>, vector<32x32xf32> -> vector<32x32xf32>
    %128 = arith.addf %122, %127 : vector<32x32xf32>
    %c0_128 = arith.constant 0 : index
    %c3_129 = arith.constant 3 : index
    %c8_130 = arith.constant 8 : index
    %c0_131 = arith.constant 0 : index
    %129 = vector.load %arg1[%c0_128, %c3_129, %c8_130, %c0_131] : memref<1x5x40x64xbf16, #tpu.memory_space<vmem>>, vector<1x1x32x64xbf16>
    %130 = vector.shape_cast %129 : vector<1x1x32x64xbf16> to vector<32x64xbf16>
    %c3_132 = arith.constant 3 : index
    %c0_133 = arith.constant 0 : index
    %c0_134 = arith.constant 0 : index
    %131 = vector.load %arg2[%c3_132, %c0_133, %c0_134] : memref<4x64x32xbf16, #tpu.memory_space<vmem>>, vector<1x64x32xbf16>
    %132 = vector.shape_cast %131 : vector<1x64x32xbf16> to vector<64x32xbf16>
    %cst_135 = arith.constant dense<0.000000e+00> : vector<32x32xf32>
    %133 = tpu.matmul %130, %132, %cst_135 {dimension_numbers = #tpu.dot_dimension_numbers<[1], [0], [0], [1], [0, 0, 1, 1], [], []>} : vector<32x64xbf16>, vector<64x32xbf16>, vector<32x32xf32> -> vector<32x32xf32>
    %134 = arith.addf %128, %133 : vector<32x32xf32>
    %c0_136 = arith.constant 0 : index
    %c0_137 = arith.constant 0 : index
    %135 = vector.load %arg3[%c0_136, %c0_137] : memref<1x32xf32, #tpu.memory_space<vmem>>, vector<1x32xf32>
    %136 = vector.broadcast %135 : vector<1x32xf32> to vector<32x32xf32>
    %137 = arith.mulf %134, %136 : vector<32x32xf32>
    %c0_138 = arith.constant 0 : index
    %c0_139 = arith.constant 0 : index
    %138 = vector.load %arg4[%c0_138, %c0_139] : memref<1x32xf32, #tpu.memory_space<vmem>>, vector<1x32xf32>
    %139 = vector.broadcast %138 : vector<1x32xf32> to vector<32x32xf32>
    %140 = arith.addf %137, %139 : vector<32x32xf32>
    %cst_140 = arith.constant 0.000000e+00 : f32
    %141 = vector.broadcast %cst_140 : f32 to vector<32x32xf32>
    %142 = arith.cmpf oge, %140, %141 : vector<32x32xf32>
    %cst_141 = arith.constant 0.00999999977 : f32
    %143 = vector.broadcast %cst_141 : f32 to vector<32x32xf32>
    %144 = arith.mulf %143, %140 : vector<32x32xf32>
    %145 = arith.select %142, %140, %144 : vector<32x32xi1>, vector<32x32xf32>
    %146 = arith.truncf %145 : vector<32x32xf32> to vector<32x32xbf16>
    %c0_142 = arith.constant 0 : index
    %c2_143 = arith.constant 2 : index
    %c0_144 = arith.constant 0 : index
    %c0_145 = arith.constant 0 : index
    %147 = vector.load %arg8[%c0_142, %c2_143, %c0_144, %c0_145] : memref<1x4x32x32xbf16, #tpu.memory_space<vmem>>, vector<1x1x32x32xbf16>
    %148 = vector.shape_cast %147 : vector<1x1x32x32xbf16> to vector<32x32xbf16>
    %149 = vector.shape_cast %146 : vector<32x32xbf16> to vector<1x1x32x32xbf16>
    tpu.vector_store %arg8[%c0_142, %c2_143, %c0_144, %c0_145], %149 {strides = array<i32>} : memref<1x4x32x32xbf16, #tpu.memory_space<vmem>>, vector<1x1x32x32xbf16>,
    %150 = arith.truncf %145 : vector<32x32xf32> to vector<32x32xbf16>
    %c0_146 = arith.constant 0 : index
    %c0_147 = arith.constant 0 : index
    %151 = vector.load %arg5[%c0_146, %c0_147] : memref<32x32xbf16, #tpu.memory_space<vmem>>, vector<32x32xbf16>
    %cst_148 = arith.constant dense<0.000000e+00> : vector<32x32xf32>
    %152 = tpu.matmul %150, %151, %cst_148 {dimension_numbers = #tpu.dot_dimension_numbers<[1], [0], [0], [1], [0, 0, 1, 1], [], []>} : vector<32x32xbf16>, vector<32x32xbf16>, vector<32x32xf32> -> vector<32x32xf32>
    %c0_149 = arith.constant 0 : index
    %c0_150 = arith.constant 0 : index
    %153 = vector.load %arg6[%c0_149, %c0_150] : memref<1x32xf32, #tpu.memory_space<vmem>>, vector<1x32xf32>
    %154 = vector.broadcast %153 : vector<1x32xf32> to vector<32x32xf32>
    %155 = arith.mulf %152, %154 : vector<32x32xf32>
    %c0_151 = arith.constant 0 : index
    %c0_152 = arith.constant 0 : index
    %156 = vector.load %arg7[%c0_151, %c0_152] : memref<1x32xf32, #tpu.memory_space<vmem>>, vector<1x32xf32>
    %157 = vector.broadcast %156 : vector<1x32xf32> to vector<32x32xf32>
    %158 = arith.addf %155, %157 : vector<32x32xf32>
    %cst_153 = arith.constant 0.000000e+00 : f32
    %159 = vector.broadcast %cst_153 : f32 to vector<32x32xf32>
    %160 = arith.cmpf oge, %158, %159 : vector<32x32xf32>
    %cst_154 = arith.constant 0.00999999977 : f32
    %161 = vector.broadcast %cst_154 : f32 to vector<32x32xf32>
    %162 = arith.mulf %161, %158 : vector<32x32xf32>
    %163 = arith.select %160, %158, %162 : vector<32x32xi1>, vector<32x32xf32>
    %164 = arith.truncf %163 : vector<32x32xf32> to vector<32x32xbf16>
    %c0_155 = arith.constant 0 : index
    %c2_156 = arith.constant 2 : index
    %c0_157 = arith.constant 0 : index
    %c0_158 = arith.constant 0 : index
    %165 = vector.load %arg9[%c0_155, %c2_156, %c0_157, %c0_158] : memref<1x4x32x32xbf16, #tpu.memory_space<vmem>>, vector<1x1x32x32xbf16>
    %166 = vector.shape_cast %165 : vector<1x1x32x32xbf16> to vector<32x32xbf16>
    %167 = vector.shape_cast %164 : vector<32x32xbf16> to vector<1x1x32x32xbf16>
    tpu.vector_store %arg9[%c0_155, %c2_156, %c0_157, %c0_158], %167 {strides = array<i32>} : memref<1x4x32x32xbf16, #tpu.memory_space<vmem>>, vector<1x1x32x32xbf16>,
    %c0_159 = arith.constant 0 : index
    %c3_160 = arith.constant 3 : index
    %c0_161 = arith.constant 0 : index
    %c0_162 = arith.constant 0 : index
    %168 = vector.load %arg1[%c0_159, %c3_160, %c0_161, %c0_162] : memref<1x5x40x64xbf16, #tpu.memory_space<vmem>>, vector<1x1x32x64xbf16>
    %169 = vector.shape_cast %168 : vector<1x1x32x64xbf16> to vector<32x64xbf16>
    %c0_163 = arith.constant 0 : index
    %c0_164 = arith.constant 0 : index
    %c0_165 = arith.constant 0 : index
    %170 = vector.load %arg2[%c0_163, %c0_164, %c0_165] : memref<4x64x32xbf16, #tpu.memory_space<vmem>>, vector<1x64x32xbf16>
    %171 = vector.shape_cast %170 : vector<1x64x32xbf16> to vector<64x32xbf16>
    %cst_166 = arith.constant dense<0.000000e+00> : vector<32x32xf32>
    %172 = tpu.matmul %169, %171, %cst_166 {dimension_numbers = #tpu.dot_dimension_numbers<[1], [0], [0], [1], [0, 0, 1, 1], [], []>} : vector<32x64xbf16>, vector<64x32xbf16>, vector<32x32xf32> -> vector<32x32xf32>
    %c0_167 = arith.constant 0 : index
    %c3_168 = arith.constant 3 : index
    %c8_169 = arith.constant 8 : index
    %c0_170 = arith.constant 0 : index
    %173 = vector.load %arg1[%c0_167, %c3_168, %c8_169, %c0_170] : memref<1x5x40x64xbf16, #tpu.memory_space<vmem>>, vector<1x1x32x64xbf16>
    %174 = vector.shape_cast %173 : vector<1x1x32x64xbf16> to vector<32x64xbf16>
    %c1_171 = arith.constant 1 : index
    %c0_172 = arith.constant 0 : index
    %c0_173 = arith.constant 0 : index
    %175 = vector.load %arg2[%c1_171, %c0_172, %c0_173] : memref<4x64x32xbf16, #tpu.memory_space<vmem>>, vector<1x64x32xbf16>
    %176 = vector.shape_cast %175 : vector<1x64x32xbf16> to vector<64x32xbf16>
    %cst_174 = arith.constant dense<0.000000e+00> : vector<32x32xf32>
    %177 = tpu.matmul %174, %176, %cst_174 {dimension_numbers = #tpu.dot_dimension_numbers<[1], [0], [0], [1], [0, 0, 1, 1], [], []>} : vector<32x64xbf16>, vector<64x32xbf16>, vector<32x32xf32> -> vector<32x32xf32>
    %178 = arith.addf %172, %177 : vector<32x32xf32>
    %c0_175 = arith.constant 0 : index
    %c4 = arith.constant 4 : index
    %c0_176 = arith.constant 0 : index
    %c0_177 = arith.constant 0 : index
    %179 = vector.load %arg1[%c0_175, %c4, %c0_176, %c0_177] : memref<1x5x40x64xbf16, #tpu.memory_space<vmem>>, vector<1x1x32x64xbf16>
    %180 = vector.shape_cast %179 : vector<1x1x32x64xbf16> to vector<32x64xbf16>
    %c2_178 = arith.constant 2 : index
    %c0_179 = arith.constant 0 : index
    %c0_180 = arith.constant 0 : index
    %181 = vector.load %arg2[%c2_178, %c0_179, %c0_180] : memref<4x64x32xbf16, #tpu.memory_space<vmem>>, vector<1x64x32xbf16>
    %182 = vector.shape_cast %181 : vector<1x64x32xbf16> to vector<64x32xbf16>
    %cst_181 = arith.constant dense<0.000000e+00> : vector<32x32xf32>
    %183 = tpu.matmul %180, %182, %cst_181 {dimension_numbers = #tpu.dot_dimension_numbers<[1], [0], [0], [1], [0, 0, 1, 1], [], []>} : vector<32x64xbf16>, vector<64x32xbf16>, vector<32x32xf32> -> vector<32x32xf32>
    %184 = arith.addf %178, %183 : vector<32x32xf32>
    %c0_182 = arith.constant 0 : index
    %c4_183 = arith.constant 4 : index
    %c8_184 = arith.constant 8 : index
    %c0_185 = arith.constant 0 : index
    %185 = vector.load %arg1[%c0_182, %c4_183, %c8_184, %c0_185] : memref<1x5x40x64xbf16, #tpu.memory_space<vmem>>, vector<1x1x32x64xbf16>
    %186 = vector.shape_cast %185 : vector<1x1x32x64xbf16> to vector<32x64xbf16>
    %c3_186 = arith.constant 3 : index
    %c0_187 = arith.constant 0 : index
    %c0_188 = arith.constant 0 : index
    %187 = vector.load %arg2[%c3_186, %c0_187, %c0_188] : memref<4x64x32xbf16, #tpu.memory_space<vmem>>, vector<1x64x32xbf16>
    %188 = vector.shape_cast %187 : vector<1x64x32xbf16> to vector<64x32xbf16>
    %cst_189 = arith.constant dense<0.000000e+00> : vector<32x32xf32>
    %189 = tpu.matmul %186, %188, %cst_189 {dimension_numbers = #tpu.dot_dimension_numbers<[1], [0], [0], [1], [0, 0, 1, 1], [], []>} : vector<32x64xbf16>, vector<64x32xbf16>, vector<32x32xf32> -> vector<32x32xf32>
    %190 = arith.addf %184, %189 : vector<32x32xf32>
    %c0_190 = arith.constant 0 : index
    %c0_191 = arith.constant 0 : index
    %191 = vector.load %arg3[%c0_190, %c0_191] : memref<1x32xf32, #tpu.memory_space<vmem>>, vector<1x32xf32>
    %192 = vector.broadcast %191 : vector<1x32xf32> to vector<32x32xf32>
    %193 = arith.mulf %190, %192 : vector<32x32xf32>
    %c0_192 = arith.constant 0 : index
    %c0_193 = arith.constant 0 : index
    %194 = vector.load %arg4[%c0_192, %c0_193] : memref<1x32xf32, #tpu.memory_space<vmem>>, vector<1x32xf32>
    %195 = vector.broadcast %194 : vector<1x32xf32> to vector<32x32xf32>
    %196 = arith.addf %193, %195 : vector<32x32xf32>
    %cst_194 = arith.constant 0.000000e+00 : f32
    %197 = vector.broadcast %cst_194 : f32 to vector<32x32xf32>
    %198 = arith.cmpf oge, %196, %197 : vector<32x32xf32>
    %cst_195 = arith.constant 0.00999999977 : f32
    %199 = vector.broadcast %cst_195 : f32 to vector<32x32xf32>
    %200 = arith.mulf %199, %196 : vector<32x32xf32>
    %201 = arith.select %198, %196, %200 : vector<32x32xi1>, vector<32x32xf32>
    %202 = arith.truncf %201 : vector<32x32xf32> to vector<32x32xbf16>
    %c0_196 = arith.constant 0 : index
    %c3_197 = arith.constant 3 : index
    %c0_198 = arith.constant 0 : index
    %c0_199 = arith.constant 0 : index
    %203 = vector.load %arg8[%c0_196, %c3_197, %c0_198, %c0_199] : memref<1x4x32x32xbf16, #tpu.memory_space<vmem>>, vector<1x1x32x32xbf16>
    %204 = vector.shape_cast %203 : vector<1x1x32x32xbf16> to vector<32x32xbf16>
    %205 = vector.shape_cast %202 : vector<32x32xbf16> to vector<1x1x32x32xbf16>
    tpu.vector_store %arg8[%c0_196, %c3_197, %c0_198, %c0_199], %205 {strides = array<i32>} : memref<1x4x32x32xbf16, #tpu.memory_space<vmem>>, vector<1x1x32x32xbf16>,
    %206 = arith.truncf %201 : vector<32x32xf32> to vector<32x32xbf16>
    %c0_200 = arith.constant 0 : index
    %c0_201 = arith.constant 0 : index
    %207 = vector.load %arg5[%c0_200, %c0_201] : memref<32x32xbf16, #tpu.memory_space<vmem>>, vector<32x32xbf16>
    %cst_202 = arith.constant dense<0.000000e+00> : vector<32x32xf32>
    %208 = tpu.matmul %206, %207, %cst_202 {dimension_numbers = #tpu.dot_dimension_numbers<[1], [0], [0], [1], [0, 0, 1, 1], [], []>} : vector<32x32xbf16>, vector<32x32xbf16>, vector<32x32xf32> -> vector<32x32xf32>
    %c0_203 = arith.constant 0 : index
    %c0_204 = arith.constant 0 : index
    %209 = vector.load %arg6[%c0_203, %c0_204] : memref<1x32xf32, #tpu.memory_space<vmem>>, vector<1x32xf32>
    %210 = vector.broadcast %209 : vector<1x32xf32> to vector<32x32xf32>
    %211 = arith.mulf %208, %210 : vector<32x32xf32>
    %c0_205 = arith.constant 0 : index
    %c0_206 = arith.constant 0 : index
    %212 = vector.load %arg7[%c0_205, %c0_206] : memref<1x32xf32, #tpu.memory_space<vmem>>, vector<1x32xf32>
    %213 = vector.broadcast %212 : vector<1x32xf32> to vector<32x32xf32>
    %214 = arith.addf %211, %213 : vector<32x32xf32>
    %cst_207 = arith.constant 0.000000e+00 : f32
    %215 = vector.broadcast %cst_207 : f32 to vector<32x32xf32>
    %216 = arith.cmpf oge, %214, %215 : vector<32x32xf32>
    %cst_208 = arith.constant 0.00999999977 : f32
    %217 = vector.broadcast %cst_208 : f32 to vector<32x32xf32>
    %218 = arith.mulf %217, %214 : vector<32x32xf32>
    %219 = arith.select %216, %214, %218 : vector<32x32xi1>, vector<32x32xf32>
    %220 = arith.truncf %219 : vector<32x32xf32> to vector<32x32xbf16>
    %c0_209 = arith.constant 0 : index
    %c3_210 = arith.constant 3 : index
    %c0_211 = arith.constant 0 : index
    %c0_212 = arith.constant 0 : index
    %221 = vector.load %arg9[%c0_209, %c3_210, %c0_211, %c0_212] : memref<1x4x32x32xbf16, #tpu.memory_space<vmem>>, vector<1x1x32x32xbf16>
    %222 = vector.shape_cast %221 : vector<1x1x32x32xbf16> to vector<32x32xbf16>
    %223 = vector.shape_cast %220 : vector<32x32xbf16> to vector<1x1x32x32xbf16>
    tpu.vector_store %arg9[%c0_209, %c3_210, %c0_211, %c0_212], %223 {strides = array<i32>} : memref<1x4x32x32xbf16, #tpu.memory_space<vmem>>, vector<1x1x32x32xbf16>,
    return
  }
  func.func @transform_0(%arg0: i32) -> (i32, i32, i32, i32) {
    %c0_i32 = arith.constant 0 : i32
    %c0_i32_0 = arith.constant 0 : i32
    %c0_i32_1 = arith.constant 0 : i32
    %c0_i32_2 = arith.constant 0 : i32
    return %arg0, %c0_i32, %c0_i32_0, %c0_i32_1 : i32, i32, i32, i32
  }
  func.func @transform_1(%arg0: i32) -> (i32, i32, i32) {
    %c0_i32 = arith.constant 0 : i32
    %c0_i32_0 = arith.constant 0 : i32
    %c0_i32_1 = arith.constant 0 : i32
    %c0_i32_2 = arith.constant 0 : i32
    return %c0_i32, %c0_i32_0, %c0_i32_1 : i32, i32, i32
  }
  func.func @transform_2(%arg0: i32) -> (i32, i32) {
    %c0_i32 = arith.constant 0 : i32
    %c0_i32_0 = arith.constant 0 : i32
    %c0_i32_1 = arith.constant 0 : i32
    return %c0_i32, %c0_i32_0 : i32, i32
  }
  func.func @transform_3(%arg0: i32) -> (i32, i32) {
    %c0_i32 = arith.constant 0 : i32
    %c0_i32_0 = arith.constant 0 : i32
    %c0_i32_1 = arith.constant 0 : i32
    return %c0_i32, %c0_i32_0 : i32, i32
  }
  func.func @transform_4(%arg0: i32) -> (i32, i32) {
    %c0_i32 = arith.constant 0 : i32
    %c0_i32_0 = arith.constant 0 : i32
    %c0_i32_1 = arith.constant 0 : i32
    return %c0_i32, %c0_i32_0 : i32, i32
  }
  func.func @transform_5(%arg0: i32) -> (i32, i32) {
    %c0_i32 = arith.constant 0 : i32
    %c0_i32_0 = arith.constant 0 : i32
    %c0_i32_1 = arith.constant 0 : i32
    return %c0_i32, %c0_i32_0 : i32, i32
  }
  func.func @transform_6(%arg0: i32) -> (i32, i32) {
    %c0_i32 = arith.constant 0 : i32
    %c0_i32_0 = arith.constant 0 : i32
    %c0_i32_1 = arith.constant 0 : i32
    return %c0_i32, %c0_i32_0 : i32, i32
  }
  func.func @transform_7(%arg0: i32) -> (i32, i32, i32, i32) {
    %c0_i32 = arith.constant 0 : i32
    %c0_i32_0 = arith.constant 0 : i32
    %c0_i32_1 = arith.constant 0 : i32
    %c0_i32_2 = arith.constant 0 : i32
    return %arg0, %c0_i32, %c0_i32_0, %c0_i32_1 : i32, i32, i32, i32
  }
  func.func @transform_8(%arg0: i32) -> (i32, i32, i32, i32) {
    %c0_i32 = arith.constant 0 : i32
    %c0_i32_0 = arith.constant 0 : i32
    %c0_i32_1 = arith.constant 0 : i32
    %c0_i32_2 = arith.constant 0 : i32
    return %arg0, %c0_i32, %c0_i32_0, %c0_i32_1 : i32, i32, i32, i32
  }
}

module attributes {stable_mosaic.version = 11 : i64} {
  func.func @_spatial_fused_kernel(%arg0: i32, %arg1: memref<1x6x48x96xbf16, #tpu.memory_space<vmem>>, %arg2: memref<9x96x32xbf16, #tpu.memory_space<vmem>>, %arg3: memref<1x32xf32, #tpu.memory_space<vmem>>, %arg4: memref<1x32xf32, #tpu.memory_space<vmem>>, %arg5: memref<32x32xbf16, #tpu.memory_space<vmem>>, %arg6: memref<1x32xf32, #tpu.memory_space<vmem>>, %arg7: memref<1x32xf32, #tpu.memory_space<vmem>>, %arg8: memref<1x4x32x32xbf16, #tpu.memory_space<vmem>>, %arg9: memref<32x8xbf16, #tpu.memory_space<vmem>>, %arg10: memref<1x8xf32, #tpu.memory_space<vmem>>, %arg11: memref<1x4x32x8xf32, #tpu.memory_space<vmem>>) attributes {dimension_semantics = [#tpu.dimension_semantics<parallel>], iteration_bounds = array<i64: 2>, scalar_prefetch = 0 : i64, scratch_operands = 0 : i64, tpu.core_type = #tpu.core_type<tc>, window_params = [{transform_indices = @transform_0, window_bounds = array<i64: 1, 6, 48, 96>}, {pipeline_mode = #tpu.pipeline_mode<synchronous>, transform_indices = @transform_1, window_bounds = array<i64: 9, 96, 32>}, {pipeline_mode = #tpu.pipeline_mode<synchronous>, transform_indices = @transform_2, window_bounds = array<i64: 1, 32>}, {pipeline_mode = #tpu.pipeline_mode<synchronous>, transform_indices = @transform_3, window_bounds = array<i64: 1, 32>}, {pipeline_mode = #tpu.pipeline_mode<synchronous>, transform_indices = @transform_4, window_bounds = array<i64: 32, 32>}, {pipeline_mode = #tpu.pipeline_mode<synchronous>, transform_indices = @transform_5, window_bounds = array<i64: 1, 32>}, {pipeline_mode = #tpu.pipeline_mode<synchronous>, transform_indices = @transform_6, window_bounds = array<i64: 1, 32>}, {transform_indices = @transform_7, window_bounds = array<i64: 1, 4, 32, 32>}, {pipeline_mode = #tpu.pipeline_mode<synchronous>, transform_indices = @transform_8, window_bounds = array<i64: 32, 8>}, {pipeline_mode = #tpu.pipeline_mode<synchronous>, transform_indices = @transform_9, window_bounds = array<i64: 1, 8>}, {transform_indices = @transform_10, window_bounds = array<i64: 1, 4, 32, 8>}]} {
    %c0 = arith.constant 0 : index
    %c0_0 = arith.constant 0 : index
    %c0_1 = arith.constant 0 : index
    %c0_2 = arith.constant 0 : index
    %0 = vector.load %arg1[%c0, %c0_0, %c0_1, %c0_2] : memref<1x6x48x96xbf16, #tpu.memory_space<vmem>>, vector<1x1x32x96xbf16>
    %1 = vector.shape_cast %0 : vector<1x1x32x96xbf16> to vector<32x96xbf16>
    %c0_3 = arith.constant 0 : index
    %c0_4 = arith.constant 0 : index
    %c0_5 = arith.constant 0 : index
    %2 = vector.load %arg2[%c0_3, %c0_4, %c0_5] : memref<9x96x32xbf16, #tpu.memory_space<vmem>>, vector<1x96x32xbf16>
    %3 = vector.shape_cast %2 : vector<1x96x32xbf16> to vector<96x32xbf16>
    %cst = arith.constant dense<0.000000e+00> : vector<32x32xf32>
    %4 = tpu.matmul %1, %3, %cst {dimension_numbers = #tpu.dot_dimension_numbers<[1], [0], [0], [1], [0, 0, 1, 1], [], []>} : vector<32x96xbf16>, vector<96x32xbf16>, vector<32x32xf32> -> vector<32x32xf32>
    %c0_6 = arith.constant 0 : index
    %c0_7 = arith.constant 0 : index
    %c8 = arith.constant 8 : index
    %c0_8 = arith.constant 0 : index
    %5 = vector.load %arg1[%c0_6, %c0_7, %c8, %c0_8] : memref<1x6x48x96xbf16, #tpu.memory_space<vmem>>, vector<1x1x32x96xbf16>
    %6 = vector.shape_cast %5 : vector<1x1x32x96xbf16> to vector<32x96xbf16>
    %c1 = arith.constant 1 : index
    %c0_9 = arith.constant 0 : index
    %c0_10 = arith.constant 0 : index
    %7 = vector.load %arg2[%c1, %c0_9, %c0_10] : memref<9x96x32xbf16, #tpu.memory_space<vmem>>, vector<1x96x32xbf16>
    %8 = vector.shape_cast %7 : vector<1x96x32xbf16> to vector<96x32xbf16>
    %cst_11 = arith.constant dense<0.000000e+00> : vector<32x32xf32>
    %9 = tpu.matmul %6, %8, %cst_11 {dimension_numbers = #tpu.dot_dimension_numbers<[1], [0], [0], [1], [0, 0, 1, 1], [], []>} : vector<32x96xbf16>, vector<96x32xbf16>, vector<32x32xf32> -> vector<32x32xf32>
    %10 = arith.addf %4, %9 : vector<32x32xf32>
    %c0_12 = arith.constant 0 : index
    %c0_13 = arith.constant 0 : index
    %c16 = arith.constant 16 : index
    %c0_14 = arith.constant 0 : index
    %11 = vector.load %arg1[%c0_12, %c0_13, %c16, %c0_14] : memref<1x6x48x96xbf16, #tpu.memory_space<vmem>>, vector<1x1x32x96xbf16>
    %12 = vector.shape_cast %11 : vector<1x1x32x96xbf16> to vector<32x96xbf16>
    %c2 = arith.constant 2 : index
    %c0_15 = arith.constant 0 : index
    %c0_16 = arith.constant 0 : index
    %13 = vector.load %arg2[%c2, %c0_15, %c0_16] : memref<9x96x32xbf16, #tpu.memory_space<vmem>>, vector<1x96x32xbf16>
    %14 = vector.shape_cast %13 : vector<1x96x32xbf16> to vector<96x32xbf16>
    %cst_17 = arith.constant dense<0.000000e+00> : vector<32x32xf32>
    %15 = tpu.matmul %12, %14, %cst_17 {dimension_numbers = #tpu.dot_dimension_numbers<[1], [0], [0], [1], [0, 0, 1, 1], [], []>} : vector<32x96xbf16>, vector<96x32xbf16>, vector<32x32xf32> -> vector<32x32xf32>
    %16 = arith.addf %10, %15 : vector<32x32xf32>
    %c0_18 = arith.constant 0 : index
    %c1_19 = arith.constant 1 : index
    %c0_20 = arith.constant 0 : index
    %c0_21 = arith.constant 0 : index
    %17 = vector.load %arg1[%c0_18, %c1_19, %c0_20, %c0_21] : memref<1x6x48x96xbf16, #tpu.memory_space<vmem>>, vector<1x1x32x96xbf16>
    %18 = vector.shape_cast %17 : vector<1x1x32x96xbf16> to vector<32x96xbf16>
    %c3 = arith.constant 3 : index
    %c0_22 = arith.constant 0 : index
    %c0_23 = arith.constant 0 : index
    %19 = vector.load %arg2[%c3, %c0_22, %c0_23] : memref<9x96x32xbf16, #tpu.memory_space<vmem>>, vector<1x96x32xbf16>
    %20 = vector.shape_cast %19 : vector<1x96x32xbf16> to vector<96x32xbf16>
    %cst_24 = arith.constant dense<0.000000e+00> : vector<32x32xf32>
    %21 = tpu.matmul %18, %20, %cst_24 {dimension_numbers = #tpu.dot_dimension_numbers<[1], [0], [0], [1], [0, 0, 1, 1], [], []>} : vector<32x96xbf16>, vector<96x32xbf16>, vector<32x32xf32> -> vector<32x32xf32>
    %22 = arith.addf %16, %21 : vector<32x32xf32>
    %c0_25 = arith.constant 0 : index
    %c1_26 = arith.constant 1 : index
    %c8_27 = arith.constant 8 : index
    %c0_28 = arith.constant 0 : index
    %23 = vector.load %arg1[%c0_25, %c1_26, %c8_27, %c0_28] : memref<1x6x48x96xbf16, #tpu.memory_space<vmem>>, vector<1x1x32x96xbf16>
    %24 = vector.shape_cast %23 : vector<1x1x32x96xbf16> to vector<32x96xbf16>
    %c4 = arith.constant 4 : index
    %c0_29 = arith.constant 0 : index
    %c0_30 = arith.constant 0 : index
    %25 = vector.load %arg2[%c4, %c0_29, %c0_30] : memref<9x96x32xbf16, #tpu.memory_space<vmem>>, vector<1x96x32xbf16>
    %26 = vector.shape_cast %25 : vector<1x96x32xbf16> to vector<96x32xbf16>
    %cst_31 = arith.constant dense<0.000000e+00> : vector<32x32xf32>
    %27 = tpu.matmul %24, %26, %cst_31 {dimension_numbers = #tpu.dot_dimension_numbers<[1], [0], [0], [1], [0, 0, 1, 1], [], []>} : vector<32x96xbf16>, vector<96x32xbf16>, vector<32x32xf32> -> vector<32x32xf32>
    %28 = arith.addf %22, %27 : vector<32x32xf32>
    %c0_32 = arith.constant 0 : index
    %c1_33 = arith.constant 1 : index
    %c16_34 = arith.constant 16 : index
    %c0_35 = arith.constant 0 : index
    %29 = vector.load %arg1[%c0_32, %c1_33, %c16_34, %c0_35] : memref<1x6x48x96xbf16, #tpu.memory_space<vmem>>, vector<1x1x32x96xbf16>
    %30 = vector.shape_cast %29 : vector<1x1x32x96xbf16> to vector<32x96xbf16>
    %c5 = arith.constant 5 : index
    %c0_36 = arith.constant 0 : index
    %c0_37 = arith.constant 0 : index
    %31 = vector.load %arg2[%c5, %c0_36, %c0_37] : memref<9x96x32xbf16, #tpu.memory_space<vmem>>, vector<1x96x32xbf16>
    %32 = vector.shape_cast %31 : vector<1x96x32xbf16> to vector<96x32xbf16>
    %cst_38 = arith.constant dense<0.000000e+00> : vector<32x32xf32>
    %33 = tpu.matmul %30, %32, %cst_38 {dimension_numbers = #tpu.dot_dimension_numbers<[1], [0], [0], [1], [0, 0, 1, 1], [], []>} : vector<32x96xbf16>, vector<96x32xbf16>, vector<32x32xf32> -> vector<32x32xf32>
    %34 = arith.addf %28, %33 : vector<32x32xf32>
    %c0_39 = arith.constant 0 : index
    %c2_40 = arith.constant 2 : index
    %c0_41 = arith.constant 0 : index
    %c0_42 = arith.constant 0 : index
    %35 = vector.load %arg1[%c0_39, %c2_40, %c0_41, %c0_42] : memref<1x6x48x96xbf16, #tpu.memory_space<vmem>>, vector<1x1x32x96xbf16>
    %36 = vector.shape_cast %35 : vector<1x1x32x96xbf16> to vector<32x96xbf16>
    %c6 = arith.constant 6 : index
    %c0_43 = arith.constant 0 : index
    %c0_44 = arith.constant 0 : index
    %37 = vector.load %arg2[%c6, %c0_43, %c0_44] : memref<9x96x32xbf16, #tpu.memory_space<vmem>>, vector<1x96x32xbf16>
    %38 = vector.shape_cast %37 : vector<1x96x32xbf16> to vector<96x32xbf16>
    %cst_45 = arith.constant dense<0.000000e+00> : vector<32x32xf32>
    %39 = tpu.matmul %36, %38, %cst_45 {dimension_numbers = #tpu.dot_dimension_numbers<[1], [0], [0], [1], [0, 0, 1, 1], [], []>} : vector<32x96xbf16>, vector<96x32xbf16>, vector<32x32xf32> -> vector<32x32xf32>
    %40 = arith.addf %34, %39 : vector<32x32xf32>
    %c0_46 = arith.constant 0 : index
    %c2_47 = arith.constant 2 : index
    %c8_48 = arith.constant 8 : index
    %c0_49 = arith.constant 0 : index
    %41 = vector.load %arg1[%c0_46, %c2_47, %c8_48, %c0_49] : memref<1x6x48x96xbf16, #tpu.memory_space<vmem>>, vector<1x1x32x96xbf16>
    %42 = vector.shape_cast %41 : vector<1x1x32x96xbf16> to vector<32x96xbf16>
    %c7 = arith.constant 7 : index
    %c0_50 = arith.constant 0 : index
    %c0_51 = arith.constant 0 : index
    %43 = vector.load %arg2[%c7, %c0_50, %c0_51] : memref<9x96x32xbf16, #tpu.memory_space<vmem>>, vector<1x96x32xbf16>
    %44 = vector.shape_cast %43 : vector<1x96x32xbf16> to vector<96x32xbf16>
    %cst_52 = arith.constant dense<0.000000e+00> : vector<32x32xf32>
    %45 = tpu.matmul %42, %44, %cst_52 {dimension_numbers = #tpu.dot_dimension_numbers<[1], [0], [0], [1], [0, 0, 1, 1], [], []>} : vector<32x96xbf16>, vector<96x32xbf16>, vector<32x32xf32> -> vector<32x32xf32>
    %46 = arith.addf %40, %45 : vector<32x32xf32>
    %c0_53 = arith.constant 0 : index
    %c2_54 = arith.constant 2 : index
    %c16_55 = arith.constant 16 : index
    %c0_56 = arith.constant 0 : index
    %47 = vector.load %arg1[%c0_53, %c2_54, %c16_55, %c0_56] : memref<1x6x48x96xbf16, #tpu.memory_space<vmem>>, vector<1x1x32x96xbf16>
    %48 = vector.shape_cast %47 : vector<1x1x32x96xbf16> to vector<32x96xbf16>
    %c8_57 = arith.constant 8 : index
    %c0_58 = arith.constant 0 : index
    %c0_59 = arith.constant 0 : index
    %49 = vector.load %arg2[%c8_57, %c0_58, %c0_59] : memref<9x96x32xbf16, #tpu.memory_space<vmem>>, vector<1x96x32xbf16>
    %50 = vector.shape_cast %49 : vector<1x96x32xbf16> to vector<96x32xbf16>
    %cst_60 = arith.constant dense<0.000000e+00> : vector<32x32xf32>
    %51 = tpu.matmul %48, %50, %cst_60 {dimension_numbers = #tpu.dot_dimension_numbers<[1], [0], [0], [1], [0, 0, 1, 1], [], []>} : vector<32x96xbf16>, vector<96x32xbf16>, vector<32x32xf32> -> vector<32x32xf32>
    %52 = arith.addf %46, %51 : vector<32x32xf32>
    %c0_61 = arith.constant 0 : index
    %c0_62 = arith.constant 0 : index
    %53 = vector.load %arg3[%c0_61, %c0_62] : memref<1x32xf32, #tpu.memory_space<vmem>>, vector<1x32xf32>
    %54 = vector.broadcast %53 : vector<1x32xf32> to vector<32x32xf32>
    %55 = arith.mulf %52, %54 : vector<32x32xf32>
    %c0_63 = arith.constant 0 : index
    %c0_64 = arith.constant 0 : index
    %56 = vector.load %arg4[%c0_63, %c0_64] : memref<1x32xf32, #tpu.memory_space<vmem>>, vector<1x32xf32>
    %57 = vector.broadcast %56 : vector<1x32xf32> to vector<32x32xf32>
    %58 = arith.addf %55, %57 : vector<32x32xf32>
    %cst_65 = arith.constant 0.000000e+00 : f32
    %59 = vector.broadcast %cst_65 : f32 to vector<32x32xf32>
    %60 = arith.cmpf oge, %58, %59 : vector<32x32xf32>
    %cst_66 = arith.constant 0.00999999977 : f32
    %61 = vector.broadcast %cst_66 : f32 to vector<32x32xf32>
    %62 = arith.mulf %61, %58 : vector<32x32xf32>
    %63 = arith.select %60, %58, %62 : vector<32x32xi1>, vector<32x32xf32>
    %64 = arith.truncf %63 : vector<32x32xf32> to vector<32x32xbf16>
    %c0_67 = arith.constant 0 : index
    %c0_68 = arith.constant 0 : index
    %65 = vector.load %arg5[%c0_67, %c0_68] : memref<32x32xbf16, #tpu.memory_space<vmem>>, vector<32x32xbf16>
    %cst_69 = arith.constant dense<0.000000e+00> : vector<32x32xf32>
    %66 = tpu.matmul %64, %65, %cst_69 {dimension_numbers = #tpu.dot_dimension_numbers<[1], [0], [0], [1], [0, 0, 1, 1], [], []>} : vector<32x32xbf16>, vector<32x32xbf16>, vector<32x32xf32> -> vector<32x32xf32>
    %c0_70 = arith.constant 0 : index
    %c0_71 = arith.constant 0 : index
    %67 = vector.load %arg6[%c0_70, %c0_71] : memref<1x32xf32, #tpu.memory_space<vmem>>, vector<1x32xf32>
    %68 = vector.broadcast %67 : vector<1x32xf32> to vector<32x32xf32>
    %69 = arith.mulf %66, %68 : vector<32x32xf32>
    %c0_72 = arith.constant 0 : index
    %c0_73 = arith.constant 0 : index
    %70 = vector.load %arg7[%c0_72, %c0_73] : memref<1x32xf32, #tpu.memory_space<vmem>>, vector<1x32xf32>
    %71 = vector.broadcast %70 : vector<1x32xf32> to vector<32x32xf32>
    %72 = arith.addf %69, %71 : vector<32x32xf32>
    %c0_74 = arith.constant 0 : index
    %c0_75 = arith.constant 0 : index
    %c0_76 = arith.constant 0 : index
    %c0_77 = arith.constant 0 : index
    %73 = vector.load %arg8[%c0_74, %c0_75, %c0_76, %c0_77] : memref<1x4x32x32xbf16, #tpu.memory_space<vmem>>, vector<1x1x32x32xbf16>
    %74 = vector.shape_cast %73 : vector<1x1x32x32xbf16> to vector<32x32xbf16>
    %75 = arith.extf %74 : vector<32x32xbf16> to vector<32x32xf32>
    %76 = arith.addf %72, %75 : vector<32x32xf32>
    %cst_78 = arith.constant 0.000000e+00 : f32
    %77 = vector.broadcast %cst_78 : f32 to vector<32x32xf32>
    %78 = arith.cmpf oge, %76, %77 : vector<32x32xf32>
    %cst_79 = arith.constant 0.00999999977 : f32
    %79 = vector.broadcast %cst_79 : f32 to vector<32x32xf32>
    %80 = arith.mulf %79, %76 : vector<32x32xf32>
    %81 = arith.select %78, %76, %80 : vector<32x32xi1>, vector<32x32xf32>
    %82 = arith.truncf %81 : vector<32x32xf32> to vector<32x32xbf16>
    %c0_80 = arith.constant 0 : index
    %c0_81 = arith.constant 0 : index
    %83 = vector.load %arg9[%c0_80, %c0_81] : memref<32x8xbf16, #tpu.memory_space<vmem>>, vector<32x8xbf16>
    %cst_82 = arith.constant dense<0.000000e+00> : vector<32x8xf32>
    %84 = tpu.matmul %82, %83, %cst_82 {dimension_numbers = #tpu.dot_dimension_numbers<[1], [0], [0], [1], [0, 0, 1, 1], [], []>} : vector<32x32xbf16>, vector<32x8xbf16>, vector<32x8xf32> -> vector<32x8xf32>
    %c0_83 = arith.constant 0 : index
    %c0_84 = arith.constant 0 : index
    %85 = vector.load %arg10[%c0_83, %c0_84] : memref<1x8xf32, #tpu.memory_space<vmem>>, vector<1x8xf32>
    %86 = vector.broadcast %85 : vector<1x8xf32> to vector<32x8xf32>
    %87 = arith.addf %84, %86 : vector<32x8xf32>
    %c0_85 = arith.constant 0 : index
    %c0_86 = arith.constant 0 : index
    %c0_87 = arith.constant 0 : index
    %c0_88 = arith.constant 0 : index
    %88 = vector.load %arg11[%c0_85, %c0_86, %c0_87, %c0_88] : memref<1x4x32x8xf32, #tpu.memory_space<vmem>>, vector<1x1x32x8xf32>
    %89 = vector.shape_cast %88 : vector<1x1x32x8xf32> to vector<32x8xf32>
    %90 = vector.shape_cast %87 : vector<32x8xf32> to vector<1x1x32x8xf32>
    tpu.vector_store %arg11[%c0_85, %c0_86, %c0_87, %c0_88], %90 {strides = array<i32>} : memref<1x4x32x8xf32, #tpu.memory_space<vmem>>, vector<1x1x32x8xf32>,
    %c0_89 = arith.constant 0 : index
    %c1_90 = arith.constant 1 : index
    %c0_91 = arith.constant 0 : index
    %c0_92 = arith.constant 0 : index
    %91 = vector.load %arg1[%c0_89, %c1_90, %c0_91, %c0_92] : memref<1x6x48x96xbf16, #tpu.memory_space<vmem>>, vector<1x1x32x96xbf16>
    %92 = vector.shape_cast %91 : vector<1x1x32x96xbf16> to vector<32x96xbf16>
    %c0_93 = arith.constant 0 : index
    %c0_94 = arith.constant 0 : index
    %c0_95 = arith.constant 0 : index
    %93 = vector.load %arg2[%c0_93, %c0_94, %c0_95] : memref<9x96x32xbf16, #tpu.memory_space<vmem>>, vector<1x96x32xbf16>
    %94 = vector.shape_cast %93 : vector<1x96x32xbf16> to vector<96x32xbf16>
    %cst_96 = arith.constant dense<0.000000e+00> : vector<32x32xf32>
    %95 = tpu.matmul %92, %94, %cst_96 {dimension_numbers = #tpu.dot_dimension_numbers<[1], [0], [0], [1], [0, 0, 1, 1], [], []>} : vector<32x96xbf16>, vector<96x32xbf16>, vector<32x32xf32> -> vector<32x32xf32>
    %c0_97 = arith.constant 0 : index
    %c1_98 = arith.constant 1 : index
    %c8_99 = arith.constant 8 : index
    %c0_100 = arith.constant 0 : index
    %96 = vector.load %arg1[%c0_97, %c1_98, %c8_99, %c0_100] : memref<1x6x48x96xbf16, #tpu.memory_space<vmem>>, vector<1x1x32x96xbf16>
    %97 = vector.shape_cast %96 : vector<1x1x32x96xbf16> to vector<32x96xbf16>
    %c1_101 = arith.constant 1 : index
    %c0_102 = arith.constant 0 : index
    %c0_103 = arith.constant 0 : index
    %98 = vector.load %arg2[%c1_101, %c0_102, %c0_103] : memref<9x96x32xbf16, #tpu.memory_space<vmem>>, vector<1x96x32xbf16>
    %99 = vector.shape_cast %98 : vector<1x96x32xbf16> to vector<96x32xbf16>
    %cst_104 = arith.constant dense<0.000000e+00> : vector<32x32xf32>
    %100 = tpu.matmul %97, %99, %cst_104 {dimension_numbers = #tpu.dot_dimension_numbers<[1], [0], [0], [1], [0, 0, 1, 1], [], []>} : vector<32x96xbf16>, vector<96x32xbf16>, vector<32x32xf32> -> vector<32x32xf32>
    %101 = arith.addf %95, %100 : vector<32x32xf32>
    %c0_105 = arith.constant 0 : index
    %c1_106 = arith.constant 1 : index
    %c16_107 = arith.constant 16 : index
    %c0_108 = arith.constant 0 : index
    %102 = vector.load %arg1[%c0_105, %c1_106, %c16_107, %c0_108] : memref<1x6x48x96xbf16, #tpu.memory_space<vmem>>, vector<1x1x32x96xbf16>
    %103 = vector.shape_cast %102 : vector<1x1x32x96xbf16> to vector<32x96xbf16>
    %c2_109 = arith.constant 2 : index
    %c0_110 = arith.constant 0 : index
    %c0_111 = arith.constant 0 : index
    %104 = vector.load %arg2[%c2_109, %c0_110, %c0_111] : memref<9x96x32xbf16, #tpu.memory_space<vmem>>, vector<1x96x32xbf16>
    %105 = vector.shape_cast %104 : vector<1x96x32xbf16> to vector<96x32xbf16>
    %cst_112 = arith.constant dense<0.000000e+00> : vector<32x32xf32>
    %106 = tpu.matmul %103, %105, %cst_112 {dimension_numbers = #tpu.dot_dimension_numbers<[1], [0], [0], [1], [0, 0, 1, 1], [], []>} : vector<32x96xbf16>, vector<96x32xbf16>, vector<32x32xf32> -> vector<32x32xf32>
    %107 = arith.addf %101, %106 : vector<32x32xf32>
    %c0_113 = arith.constant 0 : index
    %c2_114 = arith.constant 2 : index
    %c0_115 = arith.constant 0 : index
    %c0_116 = arith.constant 0 : index
    %108 = vector.load %arg1[%c0_113, %c2_114, %c0_115, %c0_116] : memref<1x6x48x96xbf16, #tpu.memory_space<vmem>>, vector<1x1x32x96xbf16>
    %109 = vector.shape_cast %108 : vector<1x1x32x96xbf16> to vector<32x96xbf16>
    %c3_117 = arith.constant 3 : index
    %c0_118 = arith.constant 0 : index
    %c0_119 = arith.constant 0 : index
    %110 = vector.load %arg2[%c3_117, %c0_118, %c0_119] : memref<9x96x32xbf16, #tpu.memory_space<vmem>>, vector<1x96x32xbf16>
    %111 = vector.shape_cast %110 : vector<1x96x32xbf16> to vector<96x32xbf16>
    %cst_120 = arith.constant dense<0.000000e+00> : vector<32x32xf32>
    %112 = tpu.matmul %109, %111, %cst_120 {dimension_numbers = #tpu.dot_dimension_numbers<[1], [0], [0], [1], [0, 0, 1, 1], [], []>} : vector<32x96xbf16>, vector<96x32xbf16>, vector<32x32xf32> -> vector<32x32xf32>
    %113 = arith.addf %107, %112 : vector<32x32xf32>
    %c0_121 = arith.constant 0 : index
    %c2_122 = arith.constant 2 : index
    %c8_123 = arith.constant 8 : index
    %c0_124 = arith.constant 0 : index
    %114 = vector.load %arg1[%c0_121, %c2_122, %c8_123, %c0_124] : memref<1x6x48x96xbf16, #tpu.memory_space<vmem>>, vector<1x1x32x96xbf16>
    %115 = vector.shape_cast %114 : vector<1x1x32x96xbf16> to vector<32x96xbf16>
    %c4_125 = arith.constant 4 : index
    %c0_126 = arith.constant 0 : index
    %c0_127 = arith.constant 0 : index
    %116 = vector.load %arg2[%c4_125, %c0_126, %c0_127] : memref<9x96x32xbf16, #tpu.memory_space<vmem>>, vector<1x96x32xbf16>
    %117 = vector.shape_cast %116 : vector<1x96x32xbf16> to vector<96x32xbf16>
    %cst_128 = arith.constant dense<0.000000e+00> : vector<32x32xf32>
    %118 = tpu.matmul %115, %117, %cst_128 {dimension_numbers = #tpu.dot_dimension_numbers<[1], [0], [0], [1], [0, 0, 1, 1], [], []>} : vector<32x96xbf16>, vector<96x32xbf16>, vector<32x32xf32> -> vector<32x32xf32>
    %119 = arith.addf %113, %118 : vector<32x32xf32>
    %c0_129 = arith.constant 0 : index
    %c2_130 = arith.constant 2 : index
    %c16_131 = arith.constant 16 : index
    %c0_132 = arith.constant 0 : index
    %120 = vector.load %arg1[%c0_129, %c2_130, %c16_131, %c0_132] : memref<1x6x48x96xbf16, #tpu.memory_space<vmem>>, vector<1x1x32x96xbf16>
    %121 = vector.shape_cast %120 : vector<1x1x32x96xbf16> to vector<32x96xbf16>
    %c5_133 = arith.constant 5 : index
    %c0_134 = arith.constant 0 : index
    %c0_135 = arith.constant 0 : index
    %122 = vector.load %arg2[%c5_133, %c0_134, %c0_135] : memref<9x96x32xbf16, #tpu.memory_space<vmem>>, vector<1x96x32xbf16>
    %123 = vector.shape_cast %122 : vector<1x96x32xbf16> to vector<96x32xbf16>
    %cst_136 = arith.constant dense<0.000000e+00> : vector<32x32xf32>
    %124 = tpu.matmul %121, %123, %cst_136 {dimension_numbers = #tpu.dot_dimension_numbers<[1], [0], [0], [1], [0, 0, 1, 1], [], []>} : vector<32x96xbf16>, vector<96x32xbf16>, vector<32x32xf32> -> vector<32x32xf32>
    %125 = arith.addf %119, %124 : vector<32x32xf32>
    %c0_137 = arith.constant 0 : index
    %c3_138 = arith.constant 3 : index
    %c0_139 = arith.constant 0 : index
    %c0_140 = arith.constant 0 : index
    %126 = vector.load %arg1[%c0_137, %c3_138, %c0_139, %c0_140] : memref<1x6x48x96xbf16, #tpu.memory_space<vmem>>, vector<1x1x32x96xbf16>
    %127 = vector.shape_cast %126 : vector<1x1x32x96xbf16> to vector<32x96xbf16>
    %c6_141 = arith.constant 6 : index
    %c0_142 = arith.constant 0 : index
    %c0_143 = arith.constant 0 : index
    %128 = vector.load %arg2[%c6_141, %c0_142, %c0_143] : memref<9x96x32xbf16, #tpu.memory_space<vmem>>, vector<1x96x32xbf16>
    %129 = vector.shape_cast %128 : vector<1x96x32xbf16> to vector<96x32xbf16>
    %cst_144 = arith.constant dense<0.000000e+00> : vector<32x32xf32>
    %130 = tpu.matmul %127, %129, %cst_144 {dimension_numbers = #tpu.dot_dimension_numbers<[1], [0], [0], [1], [0, 0, 1, 1], [], []>} : vector<32x96xbf16>, vector<96x32xbf16>, vector<32x32xf32> -> vector<32x32xf32>
    %131 = arith.addf %125, %130 : vector<32x32xf32>
    %c0_145 = arith.constant 0 : index
    %c3_146 = arith.constant 3 : index
    %c8_147 = arith.constant 8 : index
    %c0_148 = arith.constant 0 : index
    %132 = vector.load %arg1[%c0_145, %c3_146, %c8_147, %c0_148] : memref<1x6x48x96xbf16, #tpu.memory_space<vmem>>, vector<1x1x32x96xbf16>
    %133 = vector.shape_cast %132 : vector<1x1x32x96xbf16> to vector<32x96xbf16>
    %c7_149 = arith.constant 7 : index
    %c0_150 = arith.constant 0 : index
    %c0_151 = arith.constant 0 : index
    %134 = vector.load %arg2[%c7_149, %c0_150, %c0_151] : memref<9x96x32xbf16, #tpu.memory_space<vmem>>, vector<1x96x32xbf16>
    %135 = vector.shape_cast %134 : vector<1x96x32xbf16> to vector<96x32xbf16>
    %cst_152 = arith.constant dense<0.000000e+00> : vector<32x32xf32>
    %136 = tpu.matmul %133, %135, %cst_152 {dimension_numbers = #tpu.dot_dimension_numbers<[1], [0], [0], [1], [0, 0, 1, 1], [], []>} : vector<32x96xbf16>, vector<96x32xbf16>, vector<32x32xf32> -> vector<32x32xf32>
    %137 = arith.addf %131, %136 : vector<32x32xf32>
    %c0_153 = arith.constant 0 : index
    %c3_154 = arith.constant 3 : index
    %c16_155 = arith.constant 16 : index
    %c0_156 = arith.constant 0 : index
    %138 = vector.load %arg1[%c0_153, %c3_154, %c16_155, %c0_156] : memref<1x6x48x96xbf16, #tpu.memory_space<vmem>>, vector<1x1x32x96xbf16>
    %139 = vector.shape_cast %138 : vector<1x1x32x96xbf16> to vector<32x96xbf16>
    %c8_157 = arith.constant 8 : index
    %c0_158 = arith.constant 0 : index
    %c0_159 = arith.constant 0 : index
    %140 = vector.load %arg2[%c8_157, %c0_158, %c0_159] : memref<9x96x32xbf16, #tpu.memory_space<vmem>>, vector<1x96x32xbf16>
    %141 = vector.shape_cast %140 : vector<1x96x32xbf16> to vector<96x32xbf16>
    %cst_160 = arith.constant dense<0.000000e+00> : vector<32x32xf32>
    %142 = tpu.matmul %139, %141, %cst_160 {dimension_numbers = #tpu.dot_dimension_numbers<[1], [0], [0], [1], [0, 0, 1, 1], [], []>} : vector<32x96xbf16>, vector<96x32xbf16>, vector<32x32xf32> -> vector<32x32xf32>
    %143 = arith.addf %137, %142 : vector<32x32xf32>
    %c0_161 = arith.constant 0 : index
    %c0_162 = arith.constant 0 : index
    %144 = vector.load %arg3[%c0_161, %c0_162] : memref<1x32xf32, #tpu.memory_space<vmem>>, vector<1x32xf32>
    %145 = vector.broadcast %144 : vector<1x32xf32> to vector<32x32xf32>
    %146 = arith.mulf %143, %145 : vector<32x32xf32>
    %c0_163 = arith.constant 0 : index
    %c0_164 = arith.constant 0 : index
    %147 = vector.load %arg4[%c0_163, %c0_164] : memref<1x32xf32, #tpu.memory_space<vmem>>, vector<1x32xf32>
    %148 = vector.broadcast %147 : vector<1x32xf32> to vector<32x32xf32>
    %149 = arith.addf %146, %148 : vector<32x32xf32>
    %cst_165 = arith.constant 0.000000e+00 : f32
    %150 = vector.broadcast %cst_165 : f32 to vector<32x32xf32>
    %151 = arith.cmpf oge, %149, %150 : vector<32x32xf32>
    %cst_166 = arith.constant 0.00999999977 : f32
    %152 = vector.broadcast %cst_166 : f32 to vector<32x32xf32>
    %153 = arith.mulf %152, %149 : vector<32x32xf32>
    %154 = arith.select %151, %149, %153 : vector<32x32xi1>, vector<32x32xf32>
    %155 = arith.truncf %154 : vector<32x32xf32> to vector<32x32xbf16>
    %c0_167 = arith.constant 0 : index
    %c0_168 = arith.constant 0 : index
    %156 = vector.load %arg5[%c0_167, %c0_168] : memref<32x32xbf16, #tpu.memory_space<vmem>>, vector<32x32xbf16>
    %cst_169 = arith.constant dense<0.000000e+00> : vector<32x32xf32>
    %157 = tpu.matmul %155, %156, %cst_169 {dimension_numbers = #tpu.dot_dimension_numbers<[1], [0], [0], [1], [0, 0, 1, 1], [], []>} : vector<32x32xbf16>, vector<32x32xbf16>, vector<32x32xf32> -> vector<32x32xf32>
    %c0_170 = arith.constant 0 : index
    %c0_171 = arith.constant 0 : index
    %158 = vector.load %arg6[%c0_170, %c0_171] : memref<1x32xf32, #tpu.memory_space<vmem>>, vector<1x32xf32>
    %159 = vector.broadcast %158 : vector<1x32xf32> to vector<32x32xf32>
    %160 = arith.mulf %157, %159 : vector<32x32xf32>
    %c0_172 = arith.constant 0 : index
    %c0_173 = arith.constant 0 : index
    %161 = vector.load %arg7[%c0_172, %c0_173] : memref<1x32xf32, #tpu.memory_space<vmem>>, vector<1x32xf32>
    %162 = vector.broadcast %161 : vector<1x32xf32> to vector<32x32xf32>
    %163 = arith.addf %160, %162 : vector<32x32xf32>
    %c0_174 = arith.constant 0 : index
    %c1_175 = arith.constant 1 : index
    %c0_176 = arith.constant 0 : index
    %c0_177 = arith.constant 0 : index
    %164 = vector.load %arg8[%c0_174, %c1_175, %c0_176, %c0_177] : memref<1x4x32x32xbf16, #tpu.memory_space<vmem>>, vector<1x1x32x32xbf16>
    %165 = vector.shape_cast %164 : vector<1x1x32x32xbf16> to vector<32x32xbf16>
    %166 = arith.extf %165 : vector<32x32xbf16> to vector<32x32xf32>
    %167 = arith.addf %163, %166 : vector<32x32xf32>
    %cst_178 = arith.constant 0.000000e+00 : f32
    %168 = vector.broadcast %cst_178 : f32 to vector<32x32xf32>
    %169 = arith.cmpf oge, %167, %168 : vector<32x32xf32>
    %cst_179 = arith.constant 0.00999999977 : f32
    %170 = vector.broadcast %cst_179 : f32 to vector<32x32xf32>
    %171 = arith.mulf %170, %167 : vector<32x32xf32>
    %172 = arith.select %169, %167, %171 : vector<32x32xi1>, vector<32x32xf32>
    %173 = arith.truncf %172 : vector<32x32xf32> to vector<32x32xbf16>
    %c0_180 = arith.constant 0 : index
    %c0_181 = arith.constant 0 : index
    %174 = vector.load %arg9[%c0_180, %c0_181] : memref<32x8xbf16, #tpu.memory_space<vmem>>, vector<32x8xbf16>
    %cst_182 = arith.constant dense<0.000000e+00> : vector<32x8xf32>
    %175 = tpu.matmul %173, %174, %cst_182 {dimension_numbers = #tpu.dot_dimension_numbers<[1], [0], [0], [1], [0, 0, 1, 1], [], []>} : vector<32x32xbf16>, vector<32x8xbf16>, vector<32x8xf32> -> vector<32x8xf32>
    %c0_183 = arith.constant 0 : index
    %c0_184 = arith.constant 0 : index
    %176 = vector.load %arg10[%c0_183, %c0_184] : memref<1x8xf32, #tpu.memory_space<vmem>>, vector<1x8xf32>
    %177 = vector.broadcast %176 : vector<1x8xf32> to vector<32x8xf32>
    %178 = arith.addf %175, %177 : vector<32x8xf32>
    %c0_185 = arith.constant 0 : index
    %c1_186 = arith.constant 1 : index
    %c0_187 = arith.constant 0 : index
    %c0_188 = arith.constant 0 : index
    %179 = vector.load %arg11[%c0_185, %c1_186, %c0_187, %c0_188] : memref<1x4x32x8xf32, #tpu.memory_space<vmem>>, vector<1x1x32x8xf32>
    %180 = vector.shape_cast %179 : vector<1x1x32x8xf32> to vector<32x8xf32>
    %181 = vector.shape_cast %178 : vector<32x8xf32> to vector<1x1x32x8xf32>
    tpu.vector_store %arg11[%c0_185, %c1_186, %c0_187, %c0_188], %181 {strides = array<i32>} : memref<1x4x32x8xf32, #tpu.memory_space<vmem>>, vector<1x1x32x8xf32>,
    %c0_189 = arith.constant 0 : index
    %c2_190 = arith.constant 2 : index
    %c0_191 = arith.constant 0 : index
    %c0_192 = arith.constant 0 : index
    %182 = vector.load %arg1[%c0_189, %c2_190, %c0_191, %c0_192] : memref<1x6x48x96xbf16, #tpu.memory_space<vmem>>, vector<1x1x32x96xbf16>
    %183 = vector.shape_cast %182 : vector<1x1x32x96xbf16> to vector<32x96xbf16>
    %c0_193 = arith.constant 0 : index
    %c0_194 = arith.constant 0 : index
    %c0_195 = arith.constant 0 : index
    %184 = vector.load %arg2[%c0_193, %c0_194, %c0_195] : memref<9x96x32xbf16, #tpu.memory_space<vmem>>, vector<1x96x32xbf16>
    %185 = vector.shape_cast %184 : vector<1x96x32xbf16> to vector<96x32xbf16>
    %cst_196 = arith.constant dense<0.000000e+00> : vector<32x32xf32>
    %186 = tpu.matmul %183, %185, %cst_196 {dimension_numbers = #tpu.dot_dimension_numbers<[1], [0], [0], [1], [0, 0, 1, 1], [], []>} : vector<32x96xbf16>, vector<96x32xbf16>, vector<32x32xf32> -> vector<32x32xf32>
    %c0_197 = arith.constant 0 : index
    %c2_198 = arith.constant 2 : index
    %c8_199 = arith.constant 8 : index
    %c0_200 = arith.constant 0 : index
    %187 = vector.load %arg1[%c0_197, %c2_198, %c8_199, %c0_200] : memref<1x6x48x96xbf16, #tpu.memory_space<vmem>>, vector<1x1x32x96xbf16>
    %188 = vector.shape_cast %187 : vector<1x1x32x96xbf16> to vector<32x96xbf16>
    %c1_201 = arith.constant 1 : index
    %c0_202 = arith.constant 0 : index
    %c0_203 = arith.constant 0 : index
    %189 = vector.load %arg2[%c1_201, %c0_202, %c0_203] : memref<9x96x32xbf16, #tpu.memory_space<vmem>>, vector<1x96x32xbf16>
    %190 = vector.shape_cast %189 : vector<1x96x32xbf16> to vector<96x32xbf16>
    %cst_204 = arith.constant dense<0.000000e+00> : vector<32x32xf32>
    %191 = tpu.matmul %188, %190, %cst_204 {dimension_numbers = #tpu.dot_dimension_numbers<[1], [0], [0], [1], [0, 0, 1, 1], [], []>} : vector<32x96xbf16>, vector<96x32xbf16>, vector<32x32xf32> -> vector<32x32xf32>
    %192 = arith.addf %186, %191 : vector<32x32xf32>
    %c0_205 = arith.constant 0 : index
    %c2_206 = arith.constant 2 : index
    %c16_207 = arith.constant 16 : index
    %c0_208 = arith.constant 0 : index
    %193 = vector.load %arg1[%c0_205, %c2_206, %c16_207, %c0_208] : memref<1x6x48x96xbf16, #tpu.memory_space<vmem>>, vector<1x1x32x96xbf16>
    %194 = vector.shape_cast %193 : vector<1x1x32x96xbf16> to vector<32x96xbf16>
    %c2_209 = arith.constant 2 : index
    %c0_210 = arith.constant 0 : index
    %c0_211 = arith.constant 0 : index
    %195 = vector.load %arg2[%c2_209, %c0_210, %c0_211] : memref<9x96x32xbf16, #tpu.memory_space<vmem>>, vector<1x96x32xbf16>
    %196 = vector.shape_cast %195 : vector<1x96x32xbf16> to vector<96x32xbf16>
    %cst_212 = arith.constant dense<0.000000e+00> : vector<32x32xf32>
    %197 = tpu.matmul %194, %196, %cst_212 {dimension_numbers = #tpu.dot_dimension_numbers<[1], [0], [0], [1], [0, 0, 1, 1], [], []>} : vector<32x96xbf16>, vector<96x32xbf16>, vector<32x32xf32> -> vector<32x32xf32>
    %198 = arith.addf %192, %197 : vector<32x32xf32>
    %c0_213 = arith.constant 0 : index
    %c3_214 = arith.constant 3 : index
    %c0_215 = arith.constant 0 : index
    %c0_216 = arith.constant 0 : index
    %199 = vector.load %arg1[%c0_213, %c3_214, %c0_215, %c0_216] : memref<1x6x48x96xbf16, #tpu.memory_space<vmem>>, vector<1x1x32x96xbf16>
    %200 = vector.shape_cast %199 : vector<1x1x32x96xbf16> to vector<32x96xbf16>
    %c3_217 = arith.constant 3 : index
    %c0_218 = arith.constant 0 : index
    %c0_219 = arith.constant 0 : index
    %201 = vector.load %arg2[%c3_217, %c0_218, %c0_219] : memref<9x96x32xbf16, #tpu.memory_space<vmem>>, vector<1x96x32xbf16>
    %202 = vector.shape_cast %201 : vector<1x96x32xbf16> to vector<96x32xbf16>
    %cst_220 = arith.constant dense<0.000000e+00> : vector<32x32xf32>
    %203 = tpu.matmul %200, %202, %cst_220 {dimension_numbers = #tpu.dot_dimension_numbers<[1], [0], [0], [1], [0, 0, 1, 1], [], []>} : vector<32x96xbf16>, vector<96x32xbf16>, vector<32x32xf32> -> vector<32x32xf32>
    %204 = arith.addf %198, %203 : vector<32x32xf32>
    %c0_221 = arith.constant 0 : index
    %c3_222 = arith.constant 3 : index
    %c8_223 = arith.constant 8 : index
    %c0_224 = arith.constant 0 : index
    %205 = vector.load %arg1[%c0_221, %c3_222, %c8_223, %c0_224] : memref<1x6x48x96xbf16, #tpu.memory_space<vmem>>, vector<1x1x32x96xbf16>
    %206 = vector.shape_cast %205 : vector<1x1x32x96xbf16> to vector<32x96xbf16>
    %c4_225 = arith.constant 4 : index
    %c0_226 = arith.constant 0 : index
    %c0_227 = arith.constant 0 : index
    %207 = vector.load %arg2[%c4_225, %c0_226, %c0_227] : memref<9x96x32xbf16, #tpu.memory_space<vmem>>, vector<1x96x32xbf16>
    %208 = vector.shape_cast %207 : vector<1x96x32xbf16> to vector<96x32xbf16>
    %cst_228 = arith.constant dense<0.000000e+00> : vector<32x32xf32>
    %209 = tpu.matmul %206, %208, %cst_228 {dimension_numbers = #tpu.dot_dimension_numbers<[1], [0], [0], [1], [0, 0, 1, 1], [], []>} : vector<32x96xbf16>, vector<96x32xbf16>, vector<32x32xf32> -> vector<32x32xf32>
    %210 = arith.addf %204, %209 : vector<32x32xf32>
    %c0_229 = arith.constant 0 : index
    %c3_230 = arith.constant 3 : index
    %c16_231 = arith.constant 16 : index
    %c0_232 = arith.constant 0 : index
    %211 = vector.load %arg1[%c0_229, %c3_230, %c16_231, %c0_232] : memref<1x6x48x96xbf16, #tpu.memory_space<vmem>>, vector<1x1x32x96xbf16>
    %212 = vector.shape_cast %211 : vector<1x1x32x96xbf16> to vector<32x96xbf16>
    %c5_233 = arith.constant 5 : index
    %c0_234 = arith.constant 0 : index
    %c0_235 = arith.constant 0 : index
    %213 = vector.load %arg2[%c5_233, %c0_234, %c0_235] : memref<9x96x32xbf16, #tpu.memory_space<vmem>>, vector<1x96x32xbf16>
    %214 = vector.shape_cast %213 : vector<1x96x32xbf16> to vector<96x32xbf16>
    %cst_236 = arith.constant dense<0.000000e+00> : vector<32x32xf32>
    %215 = tpu.matmul %212, %214, %cst_236 {dimension_numbers = #tpu.dot_dimension_numbers<[1], [0], [0], [1], [0, 0, 1, 1], [], []>} : vector<32x96xbf16>, vector<96x32xbf16>, vector<32x32xf32> -> vector<32x32xf32>
    %216 = arith.addf %210, %215 : vector<32x32xf32>
    %c0_237 = arith.constant 0 : index
    %c4_238 = arith.constant 4 : index
    %c0_239 = arith.constant 0 : index
    %c0_240 = arith.constant 0 : index
    %217 = vector.load %arg1[%c0_237, %c4_238, %c0_239, %c0_240] : memref<1x6x48x96xbf16, #tpu.memory_space<vmem>>, vector<1x1x32x96xbf16>
    %218 = vector.shape_cast %217 : vector<1x1x32x96xbf16> to vector<32x96xbf16>
    %c6_241 = arith.constant 6 : index
    %c0_242 = arith.constant 0 : index
    %c0_243 = arith.constant 0 : index
    %219 = vector.load %arg2[%c6_241, %c0_242, %c0_243] : memref<9x96x32xbf16, #tpu.memory_space<vmem>>, vector<1x96x32xbf16>
    %220 = vector.shape_cast %219 : vector<1x96x32xbf16> to vector<96x32xbf16>
    %cst_244 = arith.constant dense<0.000000e+00> : vector<32x32xf32>
    %221 = tpu.matmul %218, %220, %cst_244 {dimension_numbers = #tpu.dot_dimension_numbers<[1], [0], [0], [1], [0, 0, 1, 1], [], []>} : vector<32x96xbf16>, vector<96x32xbf16>, vector<32x32xf32> -> vector<32x32xf32>
    %222 = arith.addf %216, %221 : vector<32x32xf32>
    %c0_245 = arith.constant 0 : index
    %c4_246 = arith.constant 4 : index
    %c8_247 = arith.constant 8 : index
    %c0_248 = arith.constant 0 : index
    %223 = vector.load %arg1[%c0_245, %c4_246, %c8_247, %c0_248] : memref<1x6x48x96xbf16, #tpu.memory_space<vmem>>, vector<1x1x32x96xbf16>
    %224 = vector.shape_cast %223 : vector<1x1x32x96xbf16> to vector<32x96xbf16>
    %c7_249 = arith.constant 7 : index
    %c0_250 = arith.constant 0 : index
    %c0_251 = arith.constant 0 : index
    %225 = vector.load %arg2[%c7_249, %c0_250, %c0_251] : memref<9x96x32xbf16, #tpu.memory_space<vmem>>, vector<1x96x32xbf16>
    %226 = vector.shape_cast %225 : vector<1x96x32xbf16> to vector<96x32xbf16>
    %cst_252 = arith.constant dense<0.000000e+00> : vector<32x32xf32>
    %227 = tpu.matmul %224, %226, %cst_252 {dimension_numbers = #tpu.dot_dimension_numbers<[1], [0], [0], [1], [0, 0, 1, 1], [], []>} : vector<32x96xbf16>, vector<96x32xbf16>, vector<32x32xf32> -> vector<32x32xf32>
    %228 = arith.addf %222, %227 : vector<32x32xf32>
    %c0_253 = arith.constant 0 : index
    %c4_254 = arith.constant 4 : index
    %c16_255 = arith.constant 16 : index
    %c0_256 = arith.constant 0 : index
    %229 = vector.load %arg1[%c0_253, %c4_254, %c16_255, %c0_256] : memref<1x6x48x96xbf16, #tpu.memory_space<vmem>>, vector<1x1x32x96xbf16>
    %230 = vector.shape_cast %229 : vector<1x1x32x96xbf16> to vector<32x96xbf16>
    %c8_257 = arith.constant 8 : index
    %c0_258 = arith.constant 0 : index
    %c0_259 = arith.constant 0 : index
    %231 = vector.load %arg2[%c8_257, %c0_258, %c0_259] : memref<9x96x32xbf16, #tpu.memory_space<vmem>>, vector<1x96x32xbf16>
    %232 = vector.shape_cast %231 : vector<1x96x32xbf16> to vector<96x32xbf16>
    %cst_260 = arith.constant dense<0.000000e+00> : vector<32x32xf32>
    %233 = tpu.matmul %230, %232, %cst_260 {dimension_numbers = #tpu.dot_dimension_numbers<[1], [0], [0], [1], [0, 0, 1, 1], [], []>} : vector<32x96xbf16>, vector<96x32xbf16>, vector<32x32xf32> -> vector<32x32xf32>
    %234 = arith.addf %228, %233 : vector<32x32xf32>
    %c0_261 = arith.constant 0 : index
    %c0_262 = arith.constant 0 : index
    %235 = vector.load %arg3[%c0_261, %c0_262] : memref<1x32xf32, #tpu.memory_space<vmem>>, vector<1x32xf32>
    %236 = vector.broadcast %235 : vector<1x32xf32> to vector<32x32xf32>
    %237 = arith.mulf %234, %236 : vector<32x32xf32>
    %c0_263 = arith.constant 0 : index
    %c0_264 = arith.constant 0 : index
    %238 = vector.load %arg4[%c0_263, %c0_264] : memref<1x32xf32, #tpu.memory_space<vmem>>, vector<1x32xf32>
    %239 = vector.broadcast %238 : vector<1x32xf32> to vector<32x32xf32>
    %240 = arith.addf %237, %239 : vector<32x32xf32>
    %cst_265 = arith.constant 0.000000e+00 : f32
    %241 = vector.broadcast %cst_265 : f32 to vector<32x32xf32>
    %242 = arith.cmpf oge, %240, %241 : vector<32x32xf32>
    %cst_266 = arith.constant 0.00999999977 : f32
    %243 = vector.broadcast %cst_266 : f32 to vector<32x32xf32>
    %244 = arith.mulf %243, %240 : vector<32x32xf32>
    %245 = arith.select %242, %240, %244 : vector<32x32xi1>, vector<32x32xf32>
    %246 = arith.truncf %245 : vector<32x32xf32> to vector<32x32xbf16>
    %c0_267 = arith.constant 0 : index
    %c0_268 = arith.constant 0 : index
    %247 = vector.load %arg5[%c0_267, %c0_268] : memref<32x32xbf16, #tpu.memory_space<vmem>>, vector<32x32xbf16>
    %cst_269 = arith.constant dense<0.000000e+00> : vector<32x32xf32>
    %248 = tpu.matmul %246, %247, %cst_269 {dimension_numbers = #tpu.dot_dimension_numbers<[1], [0], [0], [1], [0, 0, 1, 1], [], []>} : vector<32x32xbf16>, vector<32x32xbf16>, vector<32x32xf32> -> vector<32x32xf32>
    %c0_270 = arith.constant 0 : index
    %c0_271 = arith.constant 0 : index
    %249 = vector.load %arg6[%c0_270, %c0_271] : memref<1x32xf32, #tpu.memory_space<vmem>>, vector<1x32xf32>
    %250 = vector.broadcast %249 : vector<1x32xf32> to vector<32x32xf32>
    %251 = arith.mulf %248, %250 : vector<32x32xf32>
    %c0_272 = arith.constant 0 : index
    %c0_273 = arith.constant 0 : index
    %252 = vector.load %arg7[%c0_272, %c0_273] : memref<1x32xf32, #tpu.memory_space<vmem>>, vector<1x32xf32>
    %253 = vector.broadcast %252 : vector<1x32xf32> to vector<32x32xf32>
    %254 = arith.addf %251, %253 : vector<32x32xf32>
    %c0_274 = arith.constant 0 : index
    %c2_275 = arith.constant 2 : index
    %c0_276 = arith.constant 0 : index
    %c0_277 = arith.constant 0 : index
    %255 = vector.load %arg8[%c0_274, %c2_275, %c0_276, %c0_277] : memref<1x4x32x32xbf16, #tpu.memory_space<vmem>>, vector<1x1x32x32xbf16>
    %256 = vector.shape_cast %255 : vector<1x1x32x32xbf16> to vector<32x32xbf16>
    %257 = arith.extf %256 : vector<32x32xbf16> to vector<32x32xf32>
    %258 = arith.addf %254, %257 : vector<32x32xf32>
    %cst_278 = arith.constant 0.000000e+00 : f32
    %259 = vector.broadcast %cst_278 : f32 to vector<32x32xf32>
    %260 = arith.cmpf oge, %258, %259 : vector<32x32xf32>
    %cst_279 = arith.constant 0.00999999977 : f32
    %261 = vector.broadcast %cst_279 : f32 to vector<32x32xf32>
    %262 = arith.mulf %261, %258 : vector<32x32xf32>
    %263 = arith.select %260, %258, %262 : vector<32x32xi1>, vector<32x32xf32>
    %264 = arith.truncf %263 : vector<32x32xf32> to vector<32x32xbf16>
    %c0_280 = arith.constant 0 : index
    %c0_281 = arith.constant 0 : index
    %265 = vector.load %arg9[%c0_280, %c0_281] : memref<32x8xbf16, #tpu.memory_space<vmem>>, vector<32x8xbf16>
    %cst_282 = arith.constant dense<0.000000e+00> : vector<32x8xf32>
    %266 = tpu.matmul %264, %265, %cst_282 {dimension_numbers = #tpu.dot_dimension_numbers<[1], [0], [0], [1], [0, 0, 1, 1], [], []>} : vector<32x32xbf16>, vector<32x8xbf16>, vector<32x8xf32> -> vector<32x8xf32>
    %c0_283 = arith.constant 0 : index
    %c0_284 = arith.constant 0 : index
    %267 = vector.load %arg10[%c0_283, %c0_284] : memref<1x8xf32, #tpu.memory_space<vmem>>, vector<1x8xf32>
    %268 = vector.broadcast %267 : vector<1x8xf32> to vector<32x8xf32>
    %269 = arith.addf %266, %268 : vector<32x8xf32>
    %c0_285 = arith.constant 0 : index
    %c2_286 = arith.constant 2 : index
    %c0_287 = arith.constant 0 : index
    %c0_288 = arith.constant 0 : index
    %270 = vector.load %arg11[%c0_285, %c2_286, %c0_287, %c0_288] : memref<1x4x32x8xf32, #tpu.memory_space<vmem>>, vector<1x1x32x8xf32>
    %271 = vector.shape_cast %270 : vector<1x1x32x8xf32> to vector<32x8xf32>
    %272 = vector.shape_cast %269 : vector<32x8xf32> to vector<1x1x32x8xf32>
    tpu.vector_store %arg11[%c0_285, %c2_286, %c0_287, %c0_288], %272 {strides = array<i32>} : memref<1x4x32x8xf32, #tpu.memory_space<vmem>>, vector<1x1x32x8xf32>,
    %c0_289 = arith.constant 0 : index
    %c3_290 = arith.constant 3 : index
    %c0_291 = arith.constant 0 : index
    %c0_292 = arith.constant 0 : index
    %273 = vector.load %arg1[%c0_289, %c3_290, %c0_291, %c0_292] : memref<1x6x48x96xbf16, #tpu.memory_space<vmem>>, vector<1x1x32x96xbf16>
    %274 = vector.shape_cast %273 : vector<1x1x32x96xbf16> to vector<32x96xbf16>
    %c0_293 = arith.constant 0 : index
    %c0_294 = arith.constant 0 : index
    %c0_295 = arith.constant 0 : index
    %275 = vector.load %arg2[%c0_293, %c0_294, %c0_295] : memref<9x96x32xbf16, #tpu.memory_space<vmem>>, vector<1x96x32xbf16>
    %276 = vector.shape_cast %275 : vector<1x96x32xbf16> to vector<96x32xbf16>
    %cst_296 = arith.constant dense<0.000000e+00> : vector<32x32xf32>
    %277 = tpu.matmul %274, %276, %cst_296 {dimension_numbers = #tpu.dot_dimension_numbers<[1], [0], [0], [1], [0, 0, 1, 1], [], []>} : vector<32x96xbf16>, vector<96x32xbf16>, vector<32x32xf32> -> vector<32x32xf32>
    %c0_297 = arith.constant 0 : index
    %c3_298 = arith.constant 3 : index
    %c8_299 = arith.constant 8 : index
    %c0_300 = arith.constant 0 : index
    %278 = vector.load %arg1[%c0_297, %c3_298, %c8_299, %c0_300] : memref<1x6x48x96xbf16, #tpu.memory_space<vmem>>, vector<1x1x32x96xbf16>
    %279 = vector.shape_cast %278 : vector<1x1x32x96xbf16> to vector<32x96xbf16>
    %c1_301 = arith.constant 1 : index
    %c0_302 = arith.constant 0 : index
    %c0_303 = arith.constant 0 : index
    %280 = vector.load %arg2[%c1_301, %c0_302, %c0_303] : memref<9x96x32xbf16, #tpu.memory_space<vmem>>, vector<1x96x32xbf16>
    %281 = vector.shape_cast %280 : vector<1x96x32xbf16> to vector<96x32xbf16>
    %cst_304 = arith.constant dense<0.000000e+00> : vector<32x32xf32>
    %282 = tpu.matmul %279, %281, %cst_304 {dimension_numbers = #tpu.dot_dimension_numbers<[1], [0], [0], [1], [0, 0, 1, 1], [], []>} : vector<32x96xbf16>, vector<96x32xbf16>, vector<32x32xf32> -> vector<32x32xf32>
    %283 = arith.addf %277, %282 : vector<32x32xf32>
    %c0_305 = arith.constant 0 : index
    %c3_306 = arith.constant 3 : index
    %c16_307 = arith.constant 16 : index
    %c0_308 = arith.constant 0 : index
    %284 = vector.load %arg1[%c0_305, %c3_306, %c16_307, %c0_308] : memref<1x6x48x96xbf16, #tpu.memory_space<vmem>>, vector<1x1x32x96xbf16>
    %285 = vector.shape_cast %284 : vector<1x1x32x96xbf16> to vector<32x96xbf16>
    %c2_309 = arith.constant 2 : index
    %c0_310 = arith.constant 0 : index
    %c0_311 = arith.constant 0 : index
    %286 = vector.load %arg2[%c2_309, %c0_310, %c0_311] : memref<9x96x32xbf16, #tpu.memory_space<vmem>>, vector<1x96x32xbf16>
    %287 = vector.shape_cast %286 : vector<1x96x32xbf16> to vector<96x32xbf16>
    %cst_312 = arith.constant dense<0.000000e+00> : vector<32x32xf32>
    %288 = tpu.matmul %285, %287, %cst_312 {dimension_numbers = #tpu.dot_dimension_numbers<[1], [0], [0], [1], [0, 0, 1, 1], [], []>} : vector<32x96xbf16>, vector<96x32xbf16>, vector<32x32xf32> -> vector<32x32xf32>
    %289 = arith.addf %283, %288 : vector<32x32xf32>
    %c0_313 = arith.constant 0 : index
    %c4_314 = arith.constant 4 : index
    %c0_315 = arith.constant 0 : index
    %c0_316 = arith.constant 0 : index
    %290 = vector.load %arg1[%c0_313, %c4_314, %c0_315, %c0_316] : memref<1x6x48x96xbf16, #tpu.memory_space<vmem>>, vector<1x1x32x96xbf16>
    %291 = vector.shape_cast %290 : vector<1x1x32x96xbf16> to vector<32x96xbf16>
    %c3_317 = arith.constant 3 : index
    %c0_318 = arith.constant 0 : index
    %c0_319 = arith.constant 0 : index
    %292 = vector.load %arg2[%c3_317, %c0_318, %c0_319] : memref<9x96x32xbf16, #tpu.memory_space<vmem>>, vector<1x96x32xbf16>
    %293 = vector.shape_cast %292 : vector<1x96x32xbf16> to vector<96x32xbf16>
    %cst_320 = arith.constant dense<0.000000e+00> : vector<32x32xf32>
    %294 = tpu.matmul %291, %293, %cst_320 {dimension_numbers = #tpu.dot_dimension_numbers<[1], [0], [0], [1], [0, 0, 1, 1], [], []>} : vector<32x96xbf16>, vector<96x32xbf16>, vector<32x32xf32> -> vector<32x32xf32>
    %295 = arith.addf %289, %294 : vector<32x32xf32>
    %c0_321 = arith.constant 0 : index
    %c4_322 = arith.constant 4 : index
    %c8_323 = arith.constant 8 : index
    %c0_324 = arith.constant 0 : index
    %296 = vector.load %arg1[%c0_321, %c4_322, %c8_323, %c0_324] : memref<1x6x48x96xbf16, #tpu.memory_space<vmem>>, vector<1x1x32x96xbf16>
    %297 = vector.shape_cast %296 : vector<1x1x32x96xbf16> to vector<32x96xbf16>
    %c4_325 = arith.constant 4 : index
    %c0_326 = arith.constant 0 : index
    %c0_327 = arith.constant 0 : index
    %298 = vector.load %arg2[%c4_325, %c0_326, %c0_327] : memref<9x96x32xbf16, #tpu.memory_space<vmem>>, vector<1x96x32xbf16>
    %299 = vector.shape_cast %298 : vector<1x96x32xbf16> to vector<96x32xbf16>
    %cst_328 = arith.constant dense<0.000000e+00> : vector<32x32xf32>
    %300 = tpu.matmul %297, %299, %cst_328 {dimension_numbers = #tpu.dot_dimension_numbers<[1], [0], [0], [1], [0, 0, 1, 1], [], []>} : vector<32x96xbf16>, vector<96x32xbf16>, vector<32x32xf32> -> vector<32x32xf32>
    %301 = arith.addf %295, %300 : vector<32x32xf32>
    %c0_329 = arith.constant 0 : index
    %c4_330 = arith.constant 4 : index
    %c16_331 = arith.constant 16 : index
    %c0_332 = arith.constant 0 : index
    %302 = vector.load %arg1[%c0_329, %c4_330, %c16_331, %c0_332] : memref<1x6x48x96xbf16, #tpu.memory_space<vmem>>, vector<1x1x32x96xbf16>
    %303 = vector.shape_cast %302 : vector<1x1x32x96xbf16> to vector<32x96xbf16>
    %c5_333 = arith.constant 5 : index
    %c0_334 = arith.constant 0 : index
    %c0_335 = arith.constant 0 : index
    %304 = vector.load %arg2[%c5_333, %c0_334, %c0_335] : memref<9x96x32xbf16, #tpu.memory_space<vmem>>, vector<1x96x32xbf16>
    %305 = vector.shape_cast %304 : vector<1x96x32xbf16> to vector<96x32xbf16>
    %cst_336 = arith.constant dense<0.000000e+00> : vector<32x32xf32>
    %306 = tpu.matmul %303, %305, %cst_336 {dimension_numbers = #tpu.dot_dimension_numbers<[1], [0], [0], [1], [0, 0, 1, 1], [], []>} : vector<32x96xbf16>, vector<96x32xbf16>, vector<32x32xf32> -> vector<32x32xf32>
    %307 = arith.addf %301, %306 : vector<32x32xf32>
    %c0_337 = arith.constant 0 : index
    %c5_338 = arith.constant 5 : index
    %c0_339 = arith.constant 0 : index
    %c0_340 = arith.constant 0 : index
    %308 = vector.load %arg1[%c0_337, %c5_338, %c0_339, %c0_340] : memref<1x6x48x96xbf16, #tpu.memory_space<vmem>>, vector<1x1x32x96xbf16>
    %309 = vector.shape_cast %308 : vector<1x1x32x96xbf16> to vector<32x96xbf16>
    %c6_341 = arith.constant 6 : index
    %c0_342 = arith.constant 0 : index
    %c0_343 = arith.constant 0 : index
    %310 = vector.load %arg2[%c6_341, %c0_342, %c0_343] : memref<9x96x32xbf16, #tpu.memory_space<vmem>>, vector<1x96x32xbf16>
    %311 = vector.shape_cast %310 : vector<1x96x32xbf16> to vector<96x32xbf16>
    %cst_344 = arith.constant dense<0.000000e+00> : vector<32x32xf32>
    %312 = tpu.matmul %309, %311, %cst_344 {dimension_numbers = #tpu.dot_dimension_numbers<[1], [0], [0], [1], [0, 0, 1, 1], [], []>} : vector<32x96xbf16>, vector<96x32xbf16>, vector<32x32xf32> -> vector<32x32xf32>
    %313 = arith.addf %307, %312 : vector<32x32xf32>
    %c0_345 = arith.constant 0 : index
    %c5_346 = arith.constant 5 : index
    %c8_347 = arith.constant 8 : index
    %c0_348 = arith.constant 0 : index
    %314 = vector.load %arg1[%c0_345, %c5_346, %c8_347, %c0_348] : memref<1x6x48x96xbf16, #tpu.memory_space<vmem>>, vector<1x1x32x96xbf16>
    %315 = vector.shape_cast %314 : vector<1x1x32x96xbf16> to vector<32x96xbf16>
    %c7_349 = arith.constant 7 : index
    %c0_350 = arith.constant 0 : index
    %c0_351 = arith.constant 0 : index
    %316 = vector.load %arg2[%c7_349, %c0_350, %c0_351] : memref<9x96x32xbf16, #tpu.memory_space<vmem>>, vector<1x96x32xbf16>
    %317 = vector.shape_cast %316 : vector<1x96x32xbf16> to vector<96x32xbf16>
    %cst_352 = arith.constant dense<0.000000e+00> : vector<32x32xf32>
    %318 = tpu.matmul %315, %317, %cst_352 {dimension_numbers = #tpu.dot_dimension_numbers<[1], [0], [0], [1], [0, 0, 1, 1], [], []>} : vector<32x96xbf16>, vector<96x32xbf16>, vector<32x32xf32> -> vector<32x32xf32>
    %319 = arith.addf %313, %318 : vector<32x32xf32>
    %c0_353 = arith.constant 0 : index
    %c5_354 = arith.constant 5 : index
    %c16_355 = arith.constant 16 : index
    %c0_356 = arith.constant 0 : index
    %320 = vector.load %arg1[%c0_353, %c5_354, %c16_355, %c0_356] : memref<1x6x48x96xbf16, #tpu.memory_space<vmem>>, vector<1x1x32x96xbf16>
    %321 = vector.shape_cast %320 : vector<1x1x32x96xbf16> to vector<32x96xbf16>
    %c8_357 = arith.constant 8 : index
    %c0_358 = arith.constant 0 : index
    %c0_359 = arith.constant 0 : index
    %322 = vector.load %arg2[%c8_357, %c0_358, %c0_359] : memref<9x96x32xbf16, #tpu.memory_space<vmem>>, vector<1x96x32xbf16>
    %323 = vector.shape_cast %322 : vector<1x96x32xbf16> to vector<96x32xbf16>
    %cst_360 = arith.constant dense<0.000000e+00> : vector<32x32xf32>
    %324 = tpu.matmul %321, %323, %cst_360 {dimension_numbers = #tpu.dot_dimension_numbers<[1], [0], [0], [1], [0, 0, 1, 1], [], []>} : vector<32x96xbf16>, vector<96x32xbf16>, vector<32x32xf32> -> vector<32x32xf32>
    %325 = arith.addf %319, %324 : vector<32x32xf32>
    %c0_361 = arith.constant 0 : index
    %c0_362 = arith.constant 0 : index
    %326 = vector.load %arg3[%c0_361, %c0_362] : memref<1x32xf32, #tpu.memory_space<vmem>>, vector<1x32xf32>
    %327 = vector.broadcast %326 : vector<1x32xf32> to vector<32x32xf32>
    %328 = arith.mulf %325, %327 : vector<32x32xf32>
    %c0_363 = arith.constant 0 : index
    %c0_364 = arith.constant 0 : index
    %329 = vector.load %arg4[%c0_363, %c0_364] : memref<1x32xf32, #tpu.memory_space<vmem>>, vector<1x32xf32>
    %330 = vector.broadcast %329 : vector<1x32xf32> to vector<32x32xf32>
    %331 = arith.addf %328, %330 : vector<32x32xf32>
    %cst_365 = arith.constant 0.000000e+00 : f32
    %332 = vector.broadcast %cst_365 : f32 to vector<32x32xf32>
    %333 = arith.cmpf oge, %331, %332 : vector<32x32xf32>
    %cst_366 = arith.constant 0.00999999977 : f32
    %334 = vector.broadcast %cst_366 : f32 to vector<32x32xf32>
    %335 = arith.mulf %334, %331 : vector<32x32xf32>
    %336 = arith.select %333, %331, %335 : vector<32x32xi1>, vector<32x32xf32>
    %337 = arith.truncf %336 : vector<32x32xf32> to vector<32x32xbf16>
    %c0_367 = arith.constant 0 : index
    %c0_368 = arith.constant 0 : index
    %338 = vector.load %arg5[%c0_367, %c0_368] : memref<32x32xbf16, #tpu.memory_space<vmem>>, vector<32x32xbf16>
    %cst_369 = arith.constant dense<0.000000e+00> : vector<32x32xf32>
    %339 = tpu.matmul %337, %338, %cst_369 {dimension_numbers = #tpu.dot_dimension_numbers<[1], [0], [0], [1], [0, 0, 1, 1], [], []>} : vector<32x32xbf16>, vector<32x32xbf16>, vector<32x32xf32> -> vector<32x32xf32>
    %c0_370 = arith.constant 0 : index
    %c0_371 = arith.constant 0 : index
    %340 = vector.load %arg6[%c0_370, %c0_371] : memref<1x32xf32, #tpu.memory_space<vmem>>, vector<1x32xf32>
    %341 = vector.broadcast %340 : vector<1x32xf32> to vector<32x32xf32>
    %342 = arith.mulf %339, %341 : vector<32x32xf32>
    %c0_372 = arith.constant 0 : index
    %c0_373 = arith.constant 0 : index
    %343 = vector.load %arg7[%c0_372, %c0_373] : memref<1x32xf32, #tpu.memory_space<vmem>>, vector<1x32xf32>
    %344 = vector.broadcast %343 : vector<1x32xf32> to vector<32x32xf32>
    %345 = arith.addf %342, %344 : vector<32x32xf32>
    %c0_374 = arith.constant 0 : index
    %c3_375 = arith.constant 3 : index
    %c0_376 = arith.constant 0 : index
    %c0_377 = arith.constant 0 : index
    %346 = vector.load %arg8[%c0_374, %c3_375, %c0_376, %c0_377] : memref<1x4x32x32xbf16, #tpu.memory_space<vmem>>, vector<1x1x32x32xbf16>
    %347 = vector.shape_cast %346 : vector<1x1x32x32xbf16> to vector<32x32xbf16>
    %348 = arith.extf %347 : vector<32x32xbf16> to vector<32x32xf32>
    %349 = arith.addf %345, %348 : vector<32x32xf32>
    %cst_378 = arith.constant 0.000000e+00 : f32
    %350 = vector.broadcast %cst_378 : f32 to vector<32x32xf32>
    %351 = arith.cmpf oge, %349, %350 : vector<32x32xf32>
    %cst_379 = arith.constant 0.00999999977 : f32
    %352 = vector.broadcast %cst_379 : f32 to vector<32x32xf32>
    %353 = arith.mulf %352, %349 : vector<32x32xf32>
    %354 = arith.select %351, %349, %353 : vector<32x32xi1>, vector<32x32xf32>
    %355 = arith.truncf %354 : vector<32x32xf32> to vector<32x32xbf16>
    %c0_380 = arith.constant 0 : index
    %c0_381 = arith.constant 0 : index
    %356 = vector.load %arg9[%c0_380, %c0_381] : memref<32x8xbf16, #tpu.memory_space<vmem>>, vector<32x8xbf16>
    %cst_382 = arith.constant dense<0.000000e+00> : vector<32x8xf32>
    %357 = tpu.matmul %355, %356, %cst_382 {dimension_numbers = #tpu.dot_dimension_numbers<[1], [0], [0], [1], [0, 0, 1, 1], [], []>} : vector<32x32xbf16>, vector<32x8xbf16>, vector<32x8xf32> -> vector<32x8xf32>
    %c0_383 = arith.constant 0 : index
    %c0_384 = arith.constant 0 : index
    %358 = vector.load %arg10[%c0_383, %c0_384] : memref<1x8xf32, #tpu.memory_space<vmem>>, vector<1x8xf32>
    %359 = vector.broadcast %358 : vector<1x8xf32> to vector<32x8xf32>
    %360 = arith.addf %357, %359 : vector<32x8xf32>
    %c0_385 = arith.constant 0 : index
    %c3_386 = arith.constant 3 : index
    %c0_387 = arith.constant 0 : index
    %c0_388 = arith.constant 0 : index
    %361 = vector.load %arg11[%c0_385, %c3_386, %c0_387, %c0_388] : memref<1x4x32x8xf32, #tpu.memory_space<vmem>>, vector<1x1x32x8xf32>
    %362 = vector.shape_cast %361 : vector<1x1x32x8xf32> to vector<32x8xf32>
    %363 = vector.shape_cast %360 : vector<32x8xf32> to vector<1x1x32x8xf32>
    tpu.vector_store %arg11[%c0_385, %c3_386, %c0_387, %c0_388], %363 {strides = array<i32>} : memref<1x4x32x8xf32, #tpu.memory_space<vmem>>, vector<1x1x32x8xf32>,
    return
  }
  func.func @transform_0(%arg0: i32) -> (i32, i32, i32, i32) {
    %c0_i32 = arith.constant 0 : i32
    %c0_i32_0 = arith.constant 0 : i32
    %c0_i32_1 = arith.constant 0 : i32
    %c0_i32_2 = arith.constant 0 : i32
    return %arg0, %c0_i32, %c0_i32_0, %c0_i32_1 : i32, i32, i32, i32
  }
  func.func @transform_1(%arg0: i32) -> (i32, i32, i32) {
    %c0_i32 = arith.constant 0 : i32
    %c0_i32_0 = arith.constant 0 : i32
    %c0_i32_1 = arith.constant 0 : i32
    %c0_i32_2 = arith.constant 0 : i32
    return %c0_i32, %c0_i32_0, %c0_i32_1 : i32, i32, i32
  }
  func.func @transform_2(%arg0: i32) -> (i32, i32) {
    %c0_i32 = arith.constant 0 : i32
    %c0_i32_0 = arith.constant 0 : i32
    %c0_i32_1 = arith.constant 0 : i32
    return %c0_i32, %c0_i32_0 : i32, i32
  }
  func.func @transform_3(%arg0: i32) -> (i32, i32) {
    %c0_i32 = arith.constant 0 : i32
    %c0_i32_0 = arith.constant 0 : i32
    %c0_i32_1 = arith.constant 0 : i32
    return %c0_i32, %c0_i32_0 : i32, i32
  }
  func.func @transform_4(%arg0: i32) -> (i32, i32) {
    %c0_i32 = arith.constant 0 : i32
    %c0_i32_0 = arith.constant 0 : i32
    %c0_i32_1 = arith.constant 0 : i32
    return %c0_i32, %c0_i32_0 : i32, i32
  }
  func.func @transform_5(%arg0: i32) -> (i32, i32) {
    %c0_i32 = arith.constant 0 : i32
    %c0_i32_0 = arith.constant 0 : i32
    %c0_i32_1 = arith.constant 0 : i32
    return %c0_i32, %c0_i32_0 : i32, i32
  }
  func.func @transform_6(%arg0: i32) -> (i32, i32) {
    %c0_i32 = arith.constant 0 : i32
    %c0_i32_0 = arith.constant 0 : i32
    %c0_i32_1 = arith.constant 0 : i32
    return %c0_i32, %c0_i32_0 : i32, i32
  }
  func.func @transform_7(%arg0: i32) -> (i32, i32, i32, i32) {
    %c0_i32 = arith.constant 0 : i32
    %c0_i32_0 = arith.constant 0 : i32
    %c0_i32_1 = arith.constant 0 : i32
    %c0_i32_2 = arith.constant 0 : i32
    return %arg0, %c0_i32, %c0_i32_0, %c0_i32_1 : i32, i32, i32, i32
  }
  func.func @transform_8(%arg0: i32) -> (i32, i32) {
    %c0_i32 = arith.constant 0 : i32
    %c0_i32_0 = arith.constant 0 : i32
    %c0_i32_1 = arith.constant 0 : i32
    return %c0_i32, %c0_i32_0 : i32, i32
  }
  func.func @transform_9(%arg0: i32) -> (i32, i32) {
    %c0_i32 = arith.constant 0 : i32
    %c0_i32_0 = arith.constant 0 : i32
    %c0_i32_1 = arith.constant 0 : i32
    return %c0_i32, %c0_i32_0 : i32, i32
  }
  func.func @transform_10(%arg0: i32) -> (i32, i32, i32, i32) {
    %c0_i32 = arith.constant 0 : i32
    %c0_i32_0 = arith.constant 0 : i32
    %c0_i32_1 = arith.constant 0 : i32
    %c0_i32_2 = arith.constant 0 : i32
    return %arg0, %c0_i32, %c0_i32_0, %c0_i32_1 : i32, i32, i32, i32
  }
}

module attributes {stable_mosaic.version = 11 : i64} {
  func.func @_spatial_fused_kernel(%arg0: i32, %arg1: memref<1x6x48x96xbf16, #tpu.memory_space<vmem>>, %arg2: memref<9x96x32xbf16, #tpu.memory_space<vmem>>, %arg3: memref<1x32xf32, #tpu.memory_space<vmem>>, %arg4: memref<1x32xf32, #tpu.memory_space<vmem>>, %arg5: memref<32x32xbf16, #tpu.memory_space<vmem>>, %arg6: memref<1x32xf32, #tpu.memory_space<vmem>>, %arg7: memref<1x32xf32, #tpu.memory_space<vmem>>, %arg8: memref<1x4x32x32xbf16, #tpu.memory_space<vmem>>, %arg9: memref<32x32xbf16, #tpu.memory_space<vmem>>, %arg10: memref<1x32xf32, #tpu.memory_space<vmem>>, %arg11: memref<1x32xf32, #tpu.memory_space<vmem>>, %arg12: memref<1x4x32x32xbf16, #tpu.memory_space<vmem>>, %arg13: memref<1x4x32x32xbf16, #tpu.memory_space<vmem>>) attributes {dimension_semantics = [#tpu.dimension_semantics<parallel>], iteration_bounds = array<i64: 2>, scalar_prefetch = 0 : i64, scratch_operands = 0 : i64, tpu.core_type = #tpu.core_type<tc>, window_params = [{transform_indices = @transform_0, window_bounds = array<i64: 1, 6, 48, 96>}, {pipeline_mode = #tpu.pipeline_mode<synchronous>, transform_indices = @transform_1, window_bounds = array<i64: 9, 96, 32>}, {pipeline_mode = #tpu.pipeline_mode<synchronous>, transform_indices = @transform_2, window_bounds = array<i64: 1, 32>}, {pipeline_mode = #tpu.pipeline_mode<synchronous>, transform_indices = @transform_3, window_bounds = array<i64: 1, 32>}, {pipeline_mode = #tpu.pipeline_mode<synchronous>, transform_indices = @transform_4, window_bounds = array<i64: 32, 32>}, {pipeline_mode = #tpu.pipeline_mode<synchronous>, transform_indices = @transform_5, window_bounds = array<i64: 1, 32>}, {pipeline_mode = #tpu.pipeline_mode<synchronous>, transform_indices = @transform_6, window_bounds = array<i64: 1, 32>}, {transform_indices = @transform_7, window_bounds = array<i64: 1, 4, 32, 32>}, {pipeline_mode = #tpu.pipeline_mode<synchronous>, transform_indices = @transform_8, window_bounds = array<i64: 32, 32>}, {pipeline_mode = #tpu.pipeline_mode<synchronous>, transform_indices = @transform_9, window_bounds = array<i64: 1, 32>}, {pipeline_mode = #tpu.pipeline_mode<synchronous>, transform_indices = @transform_10, window_bounds = array<i64: 1, 32>}, {transform_indices = @transform_11, window_bounds = array<i64: 1, 4, 32, 32>}, {transform_indices = @transform_12, window_bounds = array<i64: 1, 4, 32, 32>}]} {
    %c0 = arith.constant 0 : index
    %c0_0 = arith.constant 0 : index
    %c0_1 = arith.constant 0 : index
    %c0_2 = arith.constant 0 : index
    %0 = vector.load %arg1[%c0, %c0_0, %c0_1, %c0_2] : memref<1x6x48x96xbf16, #tpu.memory_space<vmem>>, vector<1x1x32x96xbf16>
    %1 = vector.shape_cast %0 : vector<1x1x32x96xbf16> to vector<32x96xbf16>
    %c0_3 = arith.constant 0 : index
    %c0_4 = arith.constant 0 : index
    %c0_5 = arith.constant 0 : index
    %2 = vector.load %arg2[%c0_3, %c0_4, %c0_5] : memref<9x96x32xbf16, #tpu.memory_space<vmem>>, vector<1x96x32xbf16>
    %3 = vector.shape_cast %2 : vector<1x96x32xbf16> to vector<96x32xbf16>
    %cst = arith.constant dense<0.000000e+00> : vector<32x32xf32>
    %4 = tpu.matmul %1, %3, %cst {dimension_numbers = #tpu.dot_dimension_numbers<[1], [0], [0], [1], [0, 0, 1, 1], [], []>} : vector<32x96xbf16>, vector<96x32xbf16>, vector<32x32xf32> -> vector<32x32xf32>
    %c0_6 = arith.constant 0 : index
    %c0_7 = arith.constant 0 : index
    %c8 = arith.constant 8 : index
    %c0_8 = arith.constant 0 : index
    %5 = vector.load %arg1[%c0_6, %c0_7, %c8, %c0_8] : memref<1x6x48x96xbf16, #tpu.memory_space<vmem>>, vector<1x1x32x96xbf16>
    %6 = vector.shape_cast %5 : vector<1x1x32x96xbf16> to vector<32x96xbf16>
    %c1 = arith.constant 1 : index
    %c0_9 = arith.constant 0 : index
    %c0_10 = arith.constant 0 : index
    %7 = vector.load %arg2[%c1, %c0_9, %c0_10] : memref<9x96x32xbf16, #tpu.memory_space<vmem>>, vector<1x96x32xbf16>
    %8 = vector.shape_cast %7 : vector<1x96x32xbf16> to vector<96x32xbf16>
    %cst_11 = arith.constant dense<0.000000e+00> : vector<32x32xf32>
    %9 = tpu.matmul %6, %8, %cst_11 {dimension_numbers = #tpu.dot_dimension_numbers<[1], [0], [0], [1], [0, 0, 1, 1], [], []>} : vector<32x96xbf16>, vector<96x32xbf16>, vector<32x32xf32> -> vector<32x32xf32>
    %10 = arith.addf %4, %9 : vector<32x32xf32>
    %c0_12 = arith.constant 0 : index
    %c0_13 = arith.constant 0 : index
    %c16 = arith.constant 16 : index
    %c0_14 = arith.constant 0 : index
    %11 = vector.load %arg1[%c0_12, %c0_13, %c16, %c0_14] : memref<1x6x48x96xbf16, #tpu.memory_space<vmem>>, vector<1x1x32x96xbf16>
    %12 = vector.shape_cast %11 : vector<1x1x32x96xbf16> to vector<32x96xbf16>
    %c2 = arith.constant 2 : index
    %c0_15 = arith.constant 0 : index
    %c0_16 = arith.constant 0 : index
    %13 = vector.load %arg2[%c2, %c0_15, %c0_16] : memref<9x96x32xbf16, #tpu.memory_space<vmem>>, vector<1x96x32xbf16>
    %14 = vector.shape_cast %13 : vector<1x96x32xbf16> to vector<96x32xbf16>
    %cst_17 = arith.constant dense<0.000000e+00> : vector<32x32xf32>
    %15 = tpu.matmul %12, %14, %cst_17 {dimension_numbers = #tpu.dot_dimension_numbers<[1], [0], [0], [1], [0, 0, 1, 1], [], []>} : vector<32x96xbf16>, vector<96x32xbf16>, vector<32x32xf32> -> vector<32x32xf32>
    %16 = arith.addf %10, %15 : vector<32x32xf32>
    %c0_18 = arith.constant 0 : index
    %c1_19 = arith.constant 1 : index
    %c0_20 = arith.constant 0 : index
    %c0_21 = arith.constant 0 : index
    %17 = vector.load %arg1[%c0_18, %c1_19, %c0_20, %c0_21] : memref<1x6x48x96xbf16, #tpu.memory_space<vmem>>, vector<1x1x32x96xbf16>
    %18 = vector.shape_cast %17 : vector<1x1x32x96xbf16> to vector<32x96xbf16>
    %c3 = arith.constant 3 : index
    %c0_22 = arith.constant 0 : index
    %c0_23 = arith.constant 0 : index
    %19 = vector.load %arg2[%c3, %c0_22, %c0_23] : memref<9x96x32xbf16, #tpu.memory_space<vmem>>, vector<1x96x32xbf16>
    %20 = vector.shape_cast %19 : vector<1x96x32xbf16> to vector<96x32xbf16>
    %cst_24 = arith.constant dense<0.000000e+00> : vector<32x32xf32>
    %21 = tpu.matmul %18, %20, %cst_24 {dimension_numbers = #tpu.dot_dimension_numbers<[1], [0], [0], [1], [0, 0, 1, 1], [], []>} : vector<32x96xbf16>, vector<96x32xbf16>, vector<32x32xf32> -> vector<32x32xf32>
    %22 = arith.addf %16, %21 : vector<32x32xf32>
    %c0_25 = arith.constant 0 : index
    %c1_26 = arith.constant 1 : index
    %c8_27 = arith.constant 8 : index
    %c0_28 = arith.constant 0 : index
    %23 = vector.load %arg1[%c0_25, %c1_26, %c8_27, %c0_28] : memref<1x6x48x96xbf16, #tpu.memory_space<vmem>>, vector<1x1x32x96xbf16>
    %24 = vector.shape_cast %23 : vector<1x1x32x96xbf16> to vector<32x96xbf16>
    %c4 = arith.constant 4 : index
    %c0_29 = arith.constant 0 : index
    %c0_30 = arith.constant 0 : index
    %25 = vector.load %arg2[%c4, %c0_29, %c0_30] : memref<9x96x32xbf16, #tpu.memory_space<vmem>>, vector<1x96x32xbf16>
    %26 = vector.shape_cast %25 : vector<1x96x32xbf16> to vector<96x32xbf16>
    %cst_31 = arith.constant dense<0.000000e+00> : vector<32x32xf32>
    %27 = tpu.matmul %24, %26, %cst_31 {dimension_numbers = #tpu.dot_dimension_numbers<[1], [0], [0], [1], [0, 0, 1, 1], [], []>} : vector<32x96xbf16>, vector<96x32xbf16>, vector<32x32xf32> -> vector<32x32xf32>
    %28 = arith.addf %22, %27 : vector<32x32xf32>
    %c0_32 = arith.constant 0 : index
    %c1_33 = arith.constant 1 : index
    %c16_34 = arith.constant 16 : index
    %c0_35 = arith.constant 0 : index
    %29 = vector.load %arg1[%c0_32, %c1_33, %c16_34, %c0_35] : memref<1x6x48x96xbf16, #tpu.memory_space<vmem>>, vector<1x1x32x96xbf16>
    %30 = vector.shape_cast %29 : vector<1x1x32x96xbf16> to vector<32x96xbf16>
    %c5 = arith.constant 5 : index
    %c0_36 = arith.constant 0 : index
    %c0_37 = arith.constant 0 : index
    %31 = vector.load %arg2[%c5, %c0_36, %c0_37] : memref<9x96x32xbf16, #tpu.memory_space<vmem>>, vector<1x96x32xbf16>
    %32 = vector.shape_cast %31 : vector<1x96x32xbf16> to vector<96x32xbf16>
    %cst_38 = arith.constant dense<0.000000e+00> : vector<32x32xf32>
    %33 = tpu.matmul %30, %32, %cst_38 {dimension_numbers = #tpu.dot_dimension_numbers<[1], [0], [0], [1], [0, 0, 1, 1], [], []>} : vector<32x96xbf16>, vector<96x32xbf16>, vector<32x32xf32> -> vector<32x32xf32>
    %34 = arith.addf %28, %33 : vector<32x32xf32>
    %c0_39 = arith.constant 0 : index
    %c2_40 = arith.constant 2 : index
    %c0_41 = arith.constant 0 : index
    %c0_42 = arith.constant 0 : index
    %35 = vector.load %arg1[%c0_39, %c2_40, %c0_41, %c0_42] : memref<1x6x48x96xbf16, #tpu.memory_space<vmem>>, vector<1x1x32x96xbf16>
    %36 = vector.shape_cast %35 : vector<1x1x32x96xbf16> to vector<32x96xbf16>
    %c6 = arith.constant 6 : index
    %c0_43 = arith.constant 0 : index
    %c0_44 = arith.constant 0 : index
    %37 = vector.load %arg2[%c6, %c0_43, %c0_44] : memref<9x96x32xbf16, #tpu.memory_space<vmem>>, vector<1x96x32xbf16>
    %38 = vector.shape_cast %37 : vector<1x96x32xbf16> to vector<96x32xbf16>
    %cst_45 = arith.constant dense<0.000000e+00> : vector<32x32xf32>
    %39 = tpu.matmul %36, %38, %cst_45 {dimension_numbers = #tpu.dot_dimension_numbers<[1], [0], [0], [1], [0, 0, 1, 1], [], []>} : vector<32x96xbf16>, vector<96x32xbf16>, vector<32x32xf32> -> vector<32x32xf32>
    %40 = arith.addf %34, %39 : vector<32x32xf32>
    %c0_46 = arith.constant 0 : index
    %c2_47 = arith.constant 2 : index
    %c8_48 = arith.constant 8 : index
    %c0_49 = arith.constant 0 : index
    %41 = vector.load %arg1[%c0_46, %c2_47, %c8_48, %c0_49] : memref<1x6x48x96xbf16, #tpu.memory_space<vmem>>, vector<1x1x32x96xbf16>
    %42 = vector.shape_cast %41 : vector<1x1x32x96xbf16> to vector<32x96xbf16>
    %c7 = arith.constant 7 : index
    %c0_50 = arith.constant 0 : index
    %c0_51 = arith.constant 0 : index
    %43 = vector.load %arg2[%c7, %c0_50, %c0_51] : memref<9x96x32xbf16, #tpu.memory_space<vmem>>, vector<1x96x32xbf16>
    %44 = vector.shape_cast %43 : vector<1x96x32xbf16> to vector<96x32xbf16>
    %cst_52 = arith.constant dense<0.000000e+00> : vector<32x32xf32>
    %45 = tpu.matmul %42, %44, %cst_52 {dimension_numbers = #tpu.dot_dimension_numbers<[1], [0], [0], [1], [0, 0, 1, 1], [], []>} : vector<32x96xbf16>, vector<96x32xbf16>, vector<32x32xf32> -> vector<32x32xf32>
    %46 = arith.addf %40, %45 : vector<32x32xf32>
    %c0_53 = arith.constant 0 : index
    %c2_54 = arith.constant 2 : index
    %c16_55 = arith.constant 16 : index
    %c0_56 = arith.constant 0 : index
    %47 = vector.load %arg1[%c0_53, %c2_54, %c16_55, %c0_56] : memref<1x6x48x96xbf16, #tpu.memory_space<vmem>>, vector<1x1x32x96xbf16>
    %48 = vector.shape_cast %47 : vector<1x1x32x96xbf16> to vector<32x96xbf16>
    %c8_57 = arith.constant 8 : index
    %c0_58 = arith.constant 0 : index
    %c0_59 = arith.constant 0 : index
    %49 = vector.load %arg2[%c8_57, %c0_58, %c0_59] : memref<9x96x32xbf16, #tpu.memory_space<vmem>>, vector<1x96x32xbf16>
    %50 = vector.shape_cast %49 : vector<1x96x32xbf16> to vector<96x32xbf16>
    %cst_60 = arith.constant dense<0.000000e+00> : vector<32x32xf32>
    %51 = tpu.matmul %48, %50, %cst_60 {dimension_numbers = #tpu.dot_dimension_numbers<[1], [0], [0], [1], [0, 0, 1, 1], [], []>} : vector<32x96xbf16>, vector<96x32xbf16>, vector<32x32xf32> -> vector<32x32xf32>
    %52 = arith.addf %46, %51 : vector<32x32xf32>
    %c0_61 = arith.constant 0 : index
    %c0_62 = arith.constant 0 : index
    %53 = vector.load %arg3[%c0_61, %c0_62] : memref<1x32xf32, #tpu.memory_space<vmem>>, vector<1x32xf32>
    %54 = vector.broadcast %53 : vector<1x32xf32> to vector<32x32xf32>
    %55 = arith.mulf %52, %54 : vector<32x32xf32>
    %c0_63 = arith.constant 0 : index
    %c0_64 = arith.constant 0 : index
    %56 = vector.load %arg4[%c0_63, %c0_64] : memref<1x32xf32, #tpu.memory_space<vmem>>, vector<1x32xf32>
    %57 = vector.broadcast %56 : vector<1x32xf32> to vector<32x32xf32>
    %58 = arith.addf %55, %57 : vector<32x32xf32>
    %cst_65 = arith.constant 0.000000e+00 : f32
    %59 = vector.broadcast %cst_65 : f32 to vector<32x32xf32>
    %60 = arith.cmpf oge, %58, %59 : vector<32x32xf32>
    %cst_66 = arith.constant 0.00999999977 : f32
    %61 = vector.broadcast %cst_66 : f32 to vector<32x32xf32>
    %62 = arith.mulf %61, %58 : vector<32x32xf32>
    %63 = arith.select %60, %58, %62 : vector<32x32xi1>, vector<32x32xf32>
    %64 = arith.truncf %63 : vector<32x32xf32> to vector<32x32xbf16>
    %c0_67 = arith.constant 0 : index
    %c0_68 = arith.constant 0 : index
    %65 = vector.load %arg5[%c0_67, %c0_68] : memref<32x32xbf16, #tpu.memory_space<vmem>>, vector<32x32xbf16>
    %cst_69 = arith.constant dense<0.000000e+00> : vector<32x32xf32>
    %66 = tpu.matmul %64, %65, %cst_69 {dimension_numbers = #tpu.dot_dimension_numbers<[1], [0], [0], [1], [0, 0, 1, 1], [], []>} : vector<32x32xbf16>, vector<32x32xbf16>, vector<32x32xf32> -> vector<32x32xf32>
    %c0_70 = arith.constant 0 : index
    %c0_71 = arith.constant 0 : index
    %67 = vector.load %arg6[%c0_70, %c0_71] : memref<1x32xf32, #tpu.memory_space<vmem>>, vector<1x32xf32>
    %68 = vector.broadcast %67 : vector<1x32xf32> to vector<32x32xf32>
    %69 = arith.mulf %66, %68 : vector<32x32xf32>
    %c0_72 = arith.constant 0 : index
    %c0_73 = arith.constant 0 : index
    %70 = vector.load %arg7[%c0_72, %c0_73] : memref<1x32xf32, #tpu.memory_space<vmem>>, vector<1x32xf32>
    %71 = vector.broadcast %70 : vector<1x32xf32> to vector<32x32xf32>
    %72 = arith.addf %69, %71 : vector<32x32xf32>
    %c0_74 = arith.constant 0 : index
    %c0_75 = arith.constant 0 : index
    %c0_76 = arith.constant 0 : index
    %c0_77 = arith.constant 0 : index
    %73 = vector.load %arg8[%c0_74, %c0_75, %c0_76, %c0_77] : memref<1x4x32x32xbf16, #tpu.memory_space<vmem>>, vector<1x1x32x32xbf16>
    %74 = vector.shape_cast %73 : vector<1x1x32x32xbf16> to vector<32x32xbf16>
    %75 = arith.extf %74 : vector<32x32xbf16> to vector<32x32xf32>
    %76 = arith.addf %72, %75 : vector<32x32xf32>
    %cst_78 = arith.constant 0.000000e+00 : f32
    %77 = vector.broadcast %cst_78 : f32 to vector<32x32xf32>
    %78 = arith.cmpf oge, %76, %77 : vector<32x32xf32>
    %cst_79 = arith.constant 0.00999999977 : f32
    %79 = vector.broadcast %cst_79 : f32 to vector<32x32xf32>
    %80 = arith.mulf %79, %76 : vector<32x32xf32>
    %81 = arith.select %78, %76, %80 : vector<32x32xi1>, vector<32x32xf32>
    %82 = arith.truncf %81 : vector<32x32xf32> to vector<32x32xbf16>
    %c0_80 = arith.constant 0 : index
    %c0_81 = arith.constant 0 : index
    %c0_82 = arith.constant 0 : index
    %c0_83 = arith.constant 0 : index
    %83 = vector.load %arg12[%c0_80, %c0_81, %c0_82, %c0_83] : memref<1x4x32x32xbf16, #tpu.memory_space<vmem>>, vector<1x1x32x32xbf16>
    %84 = vector.shape_cast %83 : vector<1x1x32x32xbf16> to vector<32x32xbf16>
    %85 = vector.shape_cast %82 : vector<32x32xbf16> to vector<1x1x32x32xbf16>
    tpu.vector_store %arg12[%c0_80, %c0_81, %c0_82, %c0_83], %85 {strides = array<i32>} : memref<1x4x32x32xbf16, #tpu.memory_space<vmem>>, vector<1x1x32x32xbf16>,
    %86 = arith.truncf %81 : vector<32x32xf32> to vector<32x32xbf16>
    %c0_84 = arith.constant 0 : index
    %c0_85 = arith.constant 0 : index
    %87 = vector.load %arg9[%c0_84, %c0_85] : memref<32x32xbf16, #tpu.memory_space<vmem>>, vector<32x32xbf16>
    %cst_86 = arith.constant dense<0.000000e+00> : vector<32x32xf32>
    %88 = tpu.matmul %86, %87, %cst_86 {dimension_numbers = #tpu.dot_dimension_numbers<[1], [0], [0], [1], [0, 0, 1, 1], [], []>} : vector<32x32xbf16>, vector<32x32xbf16>, vector<32x32xf32> -> vector<32x32xf32>
    %c0_87 = arith.constant 0 : index
    %c0_88 = arith.constant 0 : index
    %89 = vector.load %arg10[%c0_87, %c0_88] : memref<1x32xf32, #tpu.memory_space<vmem>>, vector<1x32xf32>
    %90 = vector.broadcast %89 : vector<1x32xf32> to vector<32x32xf32>
    %91 = arith.mulf %88, %90 : vector<32x32xf32>
    %c0_89 = arith.constant 0 : index
    %c0_90 = arith.constant 0 : index
    %92 = vector.load %arg11[%c0_89, %c0_90] : memref<1x32xf32, #tpu.memory_space<vmem>>, vector<1x32xf32>
    %93 = vector.broadcast %92 : vector<1x32xf32> to vector<32x32xf32>
    %94 = arith.addf %91, %93 : vector<32x32xf32>
    %cst_91 = arith.constant 0.000000e+00 : f32
    %95 = vector.broadcast %cst_91 : f32 to vector<32x32xf32>
    %96 = arith.cmpf oge, %94, %95 : vector<32x32xf32>
    %cst_92 = arith.constant 0.00999999977 : f32
    %97 = vector.broadcast %cst_92 : f32 to vector<32x32xf32>
    %98 = arith.mulf %97, %94 : vector<32x32xf32>
    %99 = arith.select %96, %94, %98 : vector<32x32xi1>, vector<32x32xf32>
    %100 = arith.truncf %99 : vector<32x32xf32> to vector<32x32xbf16>
    %c0_93 = arith.constant 0 : index
    %c0_94 = arith.constant 0 : index
    %c0_95 = arith.constant 0 : index
    %c0_96 = arith.constant 0 : index
    %101 = vector.load %arg13[%c0_93, %c0_94, %c0_95, %c0_96] : memref<1x4x32x32xbf16, #tpu.memory_space<vmem>>, vector<1x1x32x32xbf16>
    %102 = vector.shape_cast %101 : vector<1x1x32x32xbf16> to vector<32x32xbf16>
    %103 = vector.shape_cast %100 : vector<32x32xbf16> to vector<1x1x32x32xbf16>
    tpu.vector_store %arg13[%c0_93, %c0_94, %c0_95, %c0_96], %103 {strides = array<i32>} : memref<1x4x32x32xbf16, #tpu.memory_space<vmem>>, vector<1x1x32x32xbf16>,
    %c0_97 = arith.constant 0 : index
    %c1_98 = arith.constant 1 : index
    %c0_99 = arith.constant 0 : index
    %c0_100 = arith.constant 0 : index
    %104 = vector.load %arg1[%c0_97, %c1_98, %c0_99, %c0_100] : memref<1x6x48x96xbf16, #tpu.memory_space<vmem>>, vector<1x1x32x96xbf16>
    %105 = vector.shape_cast %104 : vector<1x1x32x96xbf16> to vector<32x96xbf16>
    %c0_101 = arith.constant 0 : index
    %c0_102 = arith.constant 0 : index
    %c0_103 = arith.constant 0 : index
    %106 = vector.load %arg2[%c0_101, %c0_102, %c0_103] : memref<9x96x32xbf16, #tpu.memory_space<vmem>>, vector<1x96x32xbf16>
    %107 = vector.shape_cast %106 : vector<1x96x32xbf16> to vector<96x32xbf16>
    %cst_104 = arith.constant dense<0.000000e+00> : vector<32x32xf32>
    %108 = tpu.matmul %105, %107, %cst_104 {dimension_numbers = #tpu.dot_dimension_numbers<[1], [0], [0], [1], [0, 0, 1, 1], [], []>} : vector<32x96xbf16>, vector<96x32xbf16>, vector<32x32xf32> -> vector<32x32xf32>
    %c0_105 = arith.constant 0 : index
    %c1_106 = arith.constant 1 : index
    %c8_107 = arith.constant 8 : index
    %c0_108 = arith.constant 0 : index
    %109 = vector.load %arg1[%c0_105, %c1_106, %c8_107, %c0_108] : memref<1x6x48x96xbf16, #tpu.memory_space<vmem>>, vector<1x1x32x96xbf16>
    %110 = vector.shape_cast %109 : vector<1x1x32x96xbf16> to vector<32x96xbf16>
    %c1_109 = arith.constant 1 : index
    %c0_110 = arith.constant 0 : index
    %c0_111 = arith.constant 0 : index
    %111 = vector.load %arg2[%c1_109, %c0_110, %c0_111] : memref<9x96x32xbf16, #tpu.memory_space<vmem>>, vector<1x96x32xbf16>
    %112 = vector.shape_cast %111 : vector<1x96x32xbf16> to vector<96x32xbf16>
    %cst_112 = arith.constant dense<0.000000e+00> : vector<32x32xf32>
    %113 = tpu.matmul %110, %112, %cst_112 {dimension_numbers = #tpu.dot_dimension_numbers<[1], [0], [0], [1], [0, 0, 1, 1], [], []>} : vector<32x96xbf16>, vector<96x32xbf16>, vector<32x32xf32> -> vector<32x32xf32>
    %114 = arith.addf %108, %113 : vector<32x32xf32>
    %c0_113 = arith.constant 0 : index
    %c1_114 = arith.constant 1 : index
    %c16_115 = arith.constant 16 : index
    %c0_116 = arith.constant 0 : index
    %115 = vector.load %arg1[%c0_113, %c1_114, %c16_115, %c0_116] : memref<1x6x48x96xbf16, #tpu.memory_space<vmem>>, vector<1x1x32x96xbf16>
    %116 = vector.shape_cast %115 : vector<1x1x32x96xbf16> to vector<32x96xbf16>
    %c2_117 = arith.constant 2 : index
    %c0_118 = arith.constant 0 : index
    %c0_119 = arith.constant 0 : index
    %117 = vector.load %arg2[%c2_117, %c0_118, %c0_119] : memref<9x96x32xbf16, #tpu.memory_space<vmem>>, vector<1x96x32xbf16>
    %118 = vector.shape_cast %117 : vector<1x96x32xbf16> to vector<96x32xbf16>
    %cst_120 = arith.constant dense<0.000000e+00> : vector<32x32xf32>
    %119 = tpu.matmul %116, %118, %cst_120 {dimension_numbers = #tpu.dot_dimension_numbers<[1], [0], [0], [1], [0, 0, 1, 1], [], []>} : vector<32x96xbf16>, vector<96x32xbf16>, vector<32x32xf32> -> vector<32x32xf32>
    %120 = arith.addf %114, %119 : vector<32x32xf32>
    %c0_121 = arith.constant 0 : index
    %c2_122 = arith.constant 2 : index
    %c0_123 = arith.constant 0 : index
    %c0_124 = arith.constant 0 : index
    %121 = vector.load %arg1[%c0_121, %c2_122, %c0_123, %c0_124] : memref<1x6x48x96xbf16, #tpu.memory_space<vmem>>, vector<1x1x32x96xbf16>
    %122 = vector.shape_cast %121 : vector<1x1x32x96xbf16> to vector<32x96xbf16>
    %c3_125 = arith.constant 3 : index
    %c0_126 = arith.constant 0 : index
    %c0_127 = arith.constant 0 : index
    %123 = vector.load %arg2[%c3_125, %c0_126, %c0_127] : memref<9x96x32xbf16, #tpu.memory_space<vmem>>, vector<1x96x32xbf16>
    %124 = vector.shape_cast %123 : vector<1x96x32xbf16> to vector<96x32xbf16>
    %cst_128 = arith.constant dense<0.000000e+00> : vector<32x32xf32>
    %125 = tpu.matmul %122, %124, %cst_128 {dimension_numbers = #tpu.dot_dimension_numbers<[1], [0], [0], [1], [0, 0, 1, 1], [], []>} : vector<32x96xbf16>, vector<96x32xbf16>, vector<32x32xf32> -> vector<32x32xf32>
    %126 = arith.addf %120, %125 : vector<32x32xf32>
    %c0_129 = arith.constant 0 : index
    %c2_130 = arith.constant 2 : index
    %c8_131 = arith.constant 8 : index
    %c0_132 = arith.constant 0 : index
    %127 = vector.load %arg1[%c0_129, %c2_130, %c8_131, %c0_132] : memref<1x6x48x96xbf16, #tpu.memory_space<vmem>>, vector<1x1x32x96xbf16>
    %128 = vector.shape_cast %127 : vector<1x1x32x96xbf16> to vector<32x96xbf16>
    %c4_133 = arith.constant 4 : index
    %c0_134 = arith.constant 0 : index
    %c0_135 = arith.constant 0 : index
    %129 = vector.load %arg2[%c4_133, %c0_134, %c0_135] : memref<9x96x32xbf16, #tpu.memory_space<vmem>>, vector<1x96x32xbf16>
    %130 = vector.shape_cast %129 : vector<1x96x32xbf16> to vector<96x32xbf16>
    %cst_136 = arith.constant dense<0.000000e+00> : vector<32x32xf32>
    %131 = tpu.matmul %128, %130, %cst_136 {dimension_numbers = #tpu.dot_dimension_numbers<[1], [0], [0], [1], [0, 0, 1, 1], [], []>} : vector<32x96xbf16>, vector<96x32xbf16>, vector<32x32xf32> -> vector<32x32xf32>
    %132 = arith.addf %126, %131 : vector<32x32xf32>
    %c0_137 = arith.constant 0 : index
    %c2_138 = arith.constant 2 : index
    %c16_139 = arith.constant 16 : index
    %c0_140 = arith.constant 0 : index
    %133 = vector.load %arg1[%c0_137, %c2_138, %c16_139, %c0_140] : memref<1x6x48x96xbf16, #tpu.memory_space<vmem>>, vector<1x1x32x96xbf16>
    %134 = vector.shape_cast %133 : vector<1x1x32x96xbf16> to vector<32x96xbf16>
    %c5_141 = arith.constant 5 : index
    %c0_142 = arith.constant 0 : index
    %c0_143 = arith.constant 0 : index
    %135 = vector.load %arg2[%c5_141, %c0_142, %c0_143] : memref<9x96x32xbf16, #tpu.memory_space<vmem>>, vector<1x96x32xbf16>
    %136 = vector.shape_cast %135 : vector<1x96x32xbf16> to vector<96x32xbf16>
    %cst_144 = arith.constant dense<0.000000e+00> : vector<32x32xf32>
    %137 = tpu.matmul %134, %136, %cst_144 {dimension_numbers = #tpu.dot_dimension_numbers<[1], [0], [0], [1], [0, 0, 1, 1], [], []>} : vector<32x96xbf16>, vector<96x32xbf16>, vector<32x32xf32> -> vector<32x32xf32>
    %138 = arith.addf %132, %137 : vector<32x32xf32>
    %c0_145 = arith.constant 0 : index
    %c3_146 = arith.constant 3 : index
    %c0_147 = arith.constant 0 : index
    %c0_148 = arith.constant 0 : index
    %139 = vector.load %arg1[%c0_145, %c3_146, %c0_147, %c0_148] : memref<1x6x48x96xbf16, #tpu.memory_space<vmem>>, vector<1x1x32x96xbf16>
    %140 = vector.shape_cast %139 : vector<1x1x32x96xbf16> to vector<32x96xbf16>
    %c6_149 = arith.constant 6 : index
    %c0_150 = arith.constant 0 : index
    %c0_151 = arith.constant 0 : index
    %141 = vector.load %arg2[%c6_149, %c0_150, %c0_151] : memref<9x96x32xbf16, #tpu.memory_space<vmem>>, vector<1x96x32xbf16>
    %142 = vector.shape_cast %141 : vector<1x96x32xbf16> to vector<96x32xbf16>
    %cst_152 = arith.constant dense<0.000000e+00> : vector<32x32xf32>
    %143 = tpu.matmul %140, %142, %cst_152 {dimension_numbers = #tpu.dot_dimension_numbers<[1], [0], [0], [1], [0, 0, 1, 1], [], []>} : vector<32x96xbf16>, vector<96x32xbf16>, vector<32x32xf32> -> vector<32x32xf32>
    %144 = arith.addf %138, %143 : vector<32x32xf32>
    %c0_153 = arith.constant 0 : index
    %c3_154 = arith.constant 3 : index
    %c8_155 = arith.constant 8 : index
    %c0_156 = arith.constant 0 : index
    %145 = vector.load %arg1[%c0_153, %c3_154, %c8_155, %c0_156] : memref<1x6x48x96xbf16, #tpu.memory_space<vmem>>, vector<1x1x32x96xbf16>
    %146 = vector.shape_cast %145 : vector<1x1x32x96xbf16> to vector<32x96xbf16>
    %c7_157 = arith.constant 7 : index
    %c0_158 = arith.constant 0 : index
    %c0_159 = arith.constant 0 : index
    %147 = vector.load %arg2[%c7_157, %c0_158, %c0_159] : memref<9x96x32xbf16, #tpu.memory_space<vmem>>, vector<1x96x32xbf16>
    %148 = vector.shape_cast %147 : vector<1x96x32xbf16> to vector<96x32xbf16>
    %cst_160 = arith.constant dense<0.000000e+00> : vector<32x32xf32>
    %149 = tpu.matmul %146, %148, %cst_160 {dimension_numbers = #tpu.dot_dimension_numbers<[1], [0], [0], [1], [0, 0, 1, 1], [], []>} : vector<32x96xbf16>, vector<96x32xbf16>, vector<32x32xf32> -> vector<32x32xf32>
    %150 = arith.addf %144, %149 : vector<32x32xf32>
    %c0_161 = arith.constant 0 : index
    %c3_162 = arith.constant 3 : index
    %c16_163 = arith.constant 16 : index
    %c0_164 = arith.constant 0 : index
    %151 = vector.load %arg1[%c0_161, %c3_162, %c16_163, %c0_164] : memref<1x6x48x96xbf16, #tpu.memory_space<vmem>>, vector<1x1x32x96xbf16>
    %152 = vector.shape_cast %151 : vector<1x1x32x96xbf16> to vector<32x96xbf16>
    %c8_165 = arith.constant 8 : index
    %c0_166 = arith.constant 0 : index
    %c0_167 = arith.constant 0 : index
    %153 = vector.load %arg2[%c8_165, %c0_166, %c0_167] : memref<9x96x32xbf16, #tpu.memory_space<vmem>>, vector<1x96x32xbf16>
    %154 = vector.shape_cast %153 : vector<1x96x32xbf16> to vector<96x32xbf16>
    %cst_168 = arith.constant dense<0.000000e+00> : vector<32x32xf32>
    %155 = tpu.matmul %152, %154, %cst_168 {dimension_numbers = #tpu.dot_dimension_numbers<[1], [0], [0], [1], [0, 0, 1, 1], [], []>} : vector<32x96xbf16>, vector<96x32xbf16>, vector<32x32xf32> -> vector<32x32xf32>
    %156 = arith.addf %150, %155 : vector<32x32xf32>
    %c0_169 = arith.constant 0 : index
    %c0_170 = arith.constant 0 : index
    %157 = vector.load %arg3[%c0_169, %c0_170] : memref<1x32xf32, #tpu.memory_space<vmem>>, vector<1x32xf32>
    %158 = vector.broadcast %157 : vector<1x32xf32> to vector<32x32xf32>
    %159 = arith.mulf %156, %158 : vector<32x32xf32>
    %c0_171 = arith.constant 0 : index
    %c0_172 = arith.constant 0 : index
    %160 = vector.load %arg4[%c0_171, %c0_172] : memref<1x32xf32, #tpu.memory_space<vmem>>, vector<1x32xf32>
    %161 = vector.broadcast %160 : vector<1x32xf32> to vector<32x32xf32>
    %162 = arith.addf %159, %161 : vector<32x32xf32>
    %cst_173 = arith.constant 0.000000e+00 : f32
    %163 = vector.broadcast %cst_173 : f32 to vector<32x32xf32>
    %164 = arith.cmpf oge, %162, %163 : vector<32x32xf32>
    %cst_174 = arith.constant 0.00999999977 : f32
    %165 = vector.broadcast %cst_174 : f32 to vector<32x32xf32>
    %166 = arith.mulf %165, %162 : vector<32x32xf32>
    %167 = arith.select %164, %162, %166 : vector<32x32xi1>, vector<32x32xf32>
    %168 = arith.truncf %167 : vector<32x32xf32> to vector<32x32xbf16>
    %c0_175 = arith.constant 0 : index
    %c0_176 = arith.constant 0 : index
    %169 = vector.load %arg5[%c0_175, %c0_176] : memref<32x32xbf16, #tpu.memory_space<vmem>>, vector<32x32xbf16>
    %cst_177 = arith.constant dense<0.000000e+00> : vector<32x32xf32>
    %170 = tpu.matmul %168, %169, %cst_177 {dimension_numbers = #tpu.dot_dimension_numbers<[1], [0], [0], [1], [0, 0, 1, 1], [], []>} : vector<32x32xbf16>, vector<32x32xbf16>, vector<32x32xf32> -> vector<32x32xf32>
    %c0_178 = arith.constant 0 : index
    %c0_179 = arith.constant 0 : index
    %171 = vector.load %arg6[%c0_178, %c0_179] : memref<1x32xf32, #tpu.memory_space<vmem>>, vector<1x32xf32>
    %172 = vector.broadcast %171 : vector<1x32xf32> to vector<32x32xf32>
    %173 = arith.mulf %170, %172 : vector<32x32xf32>
    %c0_180 = arith.constant 0 : index
    %c0_181 = arith.constant 0 : index
    %174 = vector.load %arg7[%c0_180, %c0_181] : memref<1x32xf32, #tpu.memory_space<vmem>>, vector<1x32xf32>
    %175 = vector.broadcast %174 : vector<1x32xf32> to vector<32x32xf32>
    %176 = arith.addf %173, %175 : vector<32x32xf32>
    %c0_182 = arith.constant 0 : index
    %c1_183 = arith.constant 1 : index
    %c0_184 = arith.constant 0 : index
    %c0_185 = arith.constant 0 : index
    %177 = vector.load %arg8[%c0_182, %c1_183, %c0_184, %c0_185] : memref<1x4x32x32xbf16, #tpu.memory_space<vmem>>, vector<1x1x32x32xbf16>
    %178 = vector.shape_cast %177 : vector<1x1x32x32xbf16> to vector<32x32xbf16>
    %179 = arith.extf %178 : vector<32x32xbf16> to vector<32x32xf32>
    %180 = arith.addf %176, %179 : vector<32x32xf32>
    %cst_186 = arith.constant 0.000000e+00 : f32
    %181 = vector.broadcast %cst_186 : f32 to vector<32x32xf32>
    %182 = arith.cmpf oge, %180, %181 : vector<32x32xf32>
    %cst_187 = arith.constant 0.00999999977 : f32
    %183 = vector.broadcast %cst_187 : f32 to vector<32x32xf32>
    %184 = arith.mulf %183, %180 : vector<32x32xf32>
    %185 = arith.select %182, %180, %184 : vector<32x32xi1>, vector<32x32xf32>
    %186 = arith.truncf %185 : vector<32x32xf32> to vector<32x32xbf16>
    %c0_188 = arith.constant 0 : index
    %c1_189 = arith.constant 1 : index
    %c0_190 = arith.constant 0 : index
    %c0_191 = arith.constant 0 : index
    %187 = vector.load %arg12[%c0_188, %c1_189, %c0_190, %c0_191] : memref<1x4x32x32xbf16, #tpu.memory_space<vmem>>, vector<1x1x32x32xbf16>
    %188 = vector.shape_cast %187 : vector<1x1x32x32xbf16> to vector<32x32xbf16>
    %189 = vector.shape_cast %186 : vector<32x32xbf16> to vector<1x1x32x32xbf16>
    tpu.vector_store %arg12[%c0_188, %c1_189, %c0_190, %c0_191], %189 {strides = array<i32>} : memref<1x4x32x32xbf16, #tpu.memory_space<vmem>>, vector<1x1x32x32xbf16>,
    %190 = arith.truncf %185 : vector<32x32xf32> to vector<32x32xbf16>
    %c0_192 = arith.constant 0 : index
    %c0_193 = arith.constant 0 : index
    %191 = vector.load %arg9[%c0_192, %c0_193] : memref<32x32xbf16, #tpu.memory_space<vmem>>, vector<32x32xbf16>
    %cst_194 = arith.constant dense<0.000000e+00> : vector<32x32xf32>
    %192 = tpu.matmul %190, %191, %cst_194 {dimension_numbers = #tpu.dot_dimension_numbers<[1], [0], [0], [1], [0, 0, 1, 1], [], []>} : vector<32x32xbf16>, vector<32x32xbf16>, vector<32x32xf32> -> vector<32x32xf32>
    %c0_195 = arith.constant 0 : index
    %c0_196 = arith.constant 0 : index
    %193 = vector.load %arg10[%c0_195, %c0_196] : memref<1x32xf32, #tpu.memory_space<vmem>>, vector<1x32xf32>
    %194 = vector.broadcast %193 : vector<1x32xf32> to vector<32x32xf32>
    %195 = arith.mulf %192, %194 : vector<32x32xf32>
    %c0_197 = arith.constant 0 : index
    %c0_198 = arith.constant 0 : index
    %196 = vector.load %arg11[%c0_197, %c0_198] : memref<1x32xf32, #tpu.memory_space<vmem>>, vector<1x32xf32>
    %197 = vector.broadcast %196 : vector<1x32xf32> to vector<32x32xf32>
    %198 = arith.addf %195, %197 : vector<32x32xf32>
    %cst_199 = arith.constant 0.000000e+00 : f32
    %199 = vector.broadcast %cst_199 : f32 to vector<32x32xf32>
    %200 = arith.cmpf oge, %198, %199 : vector<32x32xf32>
    %cst_200 = arith.constant 0.00999999977 : f32
    %201 = vector.broadcast %cst_200 : f32 to vector<32x32xf32>
    %202 = arith.mulf %201, %198 : vector<32x32xf32>
    %203 = arith.select %200, %198, %202 : vector<32x32xi1>, vector<32x32xf32>
    %204 = arith.truncf %203 : vector<32x32xf32> to vector<32x32xbf16>
    %c0_201 = arith.constant 0 : index
    %c1_202 = arith.constant 1 : index
    %c0_203 = arith.constant 0 : index
    %c0_204 = arith.constant 0 : index
    %205 = vector.load %arg13[%c0_201, %c1_202, %c0_203, %c0_204] : memref<1x4x32x32xbf16, #tpu.memory_space<vmem>>, vector<1x1x32x32xbf16>
    %206 = vector.shape_cast %205 : vector<1x1x32x32xbf16> to vector<32x32xbf16>
    %207 = vector.shape_cast %204 : vector<32x32xbf16> to vector<1x1x32x32xbf16>
    tpu.vector_store %arg13[%c0_201, %c1_202, %c0_203, %c0_204], %207 {strides = array<i32>} : memref<1x4x32x32xbf16, #tpu.memory_space<vmem>>, vector<1x1x32x32xbf16>,
    %c0_205 = arith.constant 0 : index
    %c2_206 = arith.constant 2 : index
    %c0_207 = arith.constant 0 : index
    %c0_208 = arith.constant 0 : index
    %208 = vector.load %arg1[%c0_205, %c2_206, %c0_207, %c0_208] : memref<1x6x48x96xbf16, #tpu.memory_space<vmem>>, vector<1x1x32x96xbf16>
    %209 = vector.shape_cast %208 : vector<1x1x32x96xbf16> to vector<32x96xbf16>
    %c0_209 = arith.constant 0 : index
    %c0_210 = arith.constant 0 : index
    %c0_211 = arith.constant 0 : index
    %210 = vector.load %arg2[%c0_209, %c0_210, %c0_211] : memref<9x96x32xbf16, #tpu.memory_space<vmem>>, vector<1x96x32xbf16>
    %211 = vector.shape_cast %210 : vector<1x96x32xbf16> to vector<96x32xbf16>
    %cst_212 = arith.constant dense<0.000000e+00> : vector<32x32xf32>
    %212 = tpu.matmul %209, %211, %cst_212 {dimension_numbers = #tpu.dot_dimension_numbers<[1], [0], [0], [1], [0, 0, 1, 1], [], []>} : vector<32x96xbf16>, vector<96x32xbf16>, vector<32x32xf32> -> vector<32x32xf32>
    %c0_213 = arith.constant 0 : index
    %c2_214 = arith.constant 2 : index
    %c8_215 = arith.constant 8 : index
    %c0_216 = arith.constant 0 : index
    %213 = vector.load %arg1[%c0_213, %c2_214, %c8_215, %c0_216] : memref<1x6x48x96xbf16, #tpu.memory_space<vmem>>, vector<1x1x32x96xbf16>
    %214 = vector.shape_cast %213 : vector<1x1x32x96xbf16> to vector<32x96xbf16>
    %c1_217 = arith.constant 1 : index
    %c0_218 = arith.constant 0 : index
    %c0_219 = arith.constant 0 : index
    %215 = vector.load %arg2[%c1_217, %c0_218, %c0_219] : memref<9x96x32xbf16, #tpu.memory_space<vmem>>, vector<1x96x32xbf16>
    %216 = vector.shape_cast %215 : vector<1x96x32xbf16> to vector<96x32xbf16>
    %cst_220 = arith.constant dense<0.000000e+00> : vector<32x32xf32>
    %217 = tpu.matmul %214, %216, %cst_220 {dimension_numbers = #tpu.dot_dimension_numbers<[1], [0], [0], [1], [0, 0, 1, 1], [], []>} : vector<32x96xbf16>, vector<96x32xbf16>, vector<32x32xf32> -> vector<32x32xf32>
    %218 = arith.addf %212, %217 : vector<32x32xf32>
    %c0_221 = arith.constant 0 : index
    %c2_222 = arith.constant 2 : index
    %c16_223 = arith.constant 16 : index
    %c0_224 = arith.constant 0 : index
    %219 = vector.load %arg1[%c0_221, %c2_222, %c16_223, %c0_224] : memref<1x6x48x96xbf16, #tpu.memory_space<vmem>>, vector<1x1x32x96xbf16>
    %220 = vector.shape_cast %219 : vector<1x1x32x96xbf16> to vector<32x96xbf16>
    %c2_225 = arith.constant 2 : index
    %c0_226 = arith.constant 0 : index
    %c0_227 = arith.constant 0 : index
    %221 = vector.load %arg2[%c2_225, %c0_226, %c0_227] : memref<9x96x32xbf16, #tpu.memory_space<vmem>>, vector<1x96x32xbf16>
    %222 = vector.shape_cast %221 : vector<1x96x32xbf16> to vector<96x32xbf16>
    %cst_228 = arith.constant dense<0.000000e+00> : vector<32x32xf32>
    %223 = tpu.matmul %220, %222, %cst_228 {dimension_numbers = #tpu.dot_dimension_numbers<[1], [0], [0], [1], [0, 0, 1, 1], [], []>} : vector<32x96xbf16>, vector<96x32xbf16>, vector<32x32xf32> -> vector<32x32xf32>
    %224 = arith.addf %218, %223 : vector<32x32xf32>
    %c0_229 = arith.constant 0 : index
    %c3_230 = arith.constant 3 : index
    %c0_231 = arith.constant 0 : index
    %c0_232 = arith.constant 0 : index
    %225 = vector.load %arg1[%c0_229, %c3_230, %c0_231, %c0_232] : memref<1x6x48x96xbf16, #tpu.memory_space<vmem>>, vector<1x1x32x96xbf16>
    %226 = vector.shape_cast %225 : vector<1x1x32x96xbf16> to vector<32x96xbf16>
    %c3_233 = arith.constant 3 : index
    %c0_234 = arith.constant 0 : index
    %c0_235 = arith.constant 0 : index
    %227 = vector.load %arg2[%c3_233, %c0_234, %c0_235] : memref<9x96x32xbf16, #tpu.memory_space<vmem>>, vector<1x96x32xbf16>
    %228 = vector.shape_cast %227 : vector<1x96x32xbf16> to vector<96x32xbf16>
    %cst_236 = arith.constant dense<0.000000e+00> : vector<32x32xf32>
    %229 = tpu.matmul %226, %228, %cst_236 {dimension_numbers = #tpu.dot_dimension_numbers<[1], [0], [0], [1], [0, 0, 1, 1], [], []>} : vector<32x96xbf16>, vector<96x32xbf16>, vector<32x32xf32> -> vector<32x32xf32>
    %230 = arith.addf %224, %229 : vector<32x32xf32>
    %c0_237 = arith.constant 0 : index
    %c3_238 = arith.constant 3 : index
    %c8_239 = arith.constant 8 : index
    %c0_240 = arith.constant 0 : index
    %231 = vector.load %arg1[%c0_237, %c3_238, %c8_239, %c0_240] : memref<1x6x48x96xbf16, #tpu.memory_space<vmem>>, vector<1x1x32x96xbf16>
    %232 = vector.shape_cast %231 : vector<1x1x32x96xbf16> to vector<32x96xbf16>
    %c4_241 = arith.constant 4 : index
    %c0_242 = arith.constant 0 : index
    %c0_243 = arith.constant 0 : index
    %233 = vector.load %arg2[%c4_241, %c0_242, %c0_243] : memref<9x96x32xbf16, #tpu.memory_space<vmem>>, vector<1x96x32xbf16>
    %234 = vector.shape_cast %233 : vector<1x96x32xbf16> to vector<96x32xbf16>
    %cst_244 = arith.constant dense<0.000000e+00> : vector<32x32xf32>
    %235 = tpu.matmul %232, %234, %cst_244 {dimension_numbers = #tpu.dot_dimension_numbers<[1], [0], [0], [1], [0, 0, 1, 1], [], []>} : vector<32x96xbf16>, vector<96x32xbf16>, vector<32x32xf32> -> vector<32x32xf32>
    %236 = arith.addf %230, %235 : vector<32x32xf32>
    %c0_245 = arith.constant 0 : index
    %c3_246 = arith.constant 3 : index
    %c16_247 = arith.constant 16 : index
    %c0_248 = arith.constant 0 : index
    %237 = vector.load %arg1[%c0_245, %c3_246, %c16_247, %c0_248] : memref<1x6x48x96xbf16, #tpu.memory_space<vmem>>, vector<1x1x32x96xbf16>
    %238 = vector.shape_cast %237 : vector<1x1x32x96xbf16> to vector<32x96xbf16>
    %c5_249 = arith.constant 5 : index
    %c0_250 = arith.constant 0 : index
    %c0_251 = arith.constant 0 : index
    %239 = vector.load %arg2[%c5_249, %c0_250, %c0_251] : memref<9x96x32xbf16, #tpu.memory_space<vmem>>, vector<1x96x32xbf16>
    %240 = vector.shape_cast %239 : vector<1x96x32xbf16> to vector<96x32xbf16>
    %cst_252 = arith.constant dense<0.000000e+00> : vector<32x32xf32>
    %241 = tpu.matmul %238, %240, %cst_252 {dimension_numbers = #tpu.dot_dimension_numbers<[1], [0], [0], [1], [0, 0, 1, 1], [], []>} : vector<32x96xbf16>, vector<96x32xbf16>, vector<32x32xf32> -> vector<32x32xf32>
    %242 = arith.addf %236, %241 : vector<32x32xf32>
    %c0_253 = arith.constant 0 : index
    %c4_254 = arith.constant 4 : index
    %c0_255 = arith.constant 0 : index
    %c0_256 = arith.constant 0 : index
    %243 = vector.load %arg1[%c0_253, %c4_254, %c0_255, %c0_256] : memref<1x6x48x96xbf16, #tpu.memory_space<vmem>>, vector<1x1x32x96xbf16>
    %244 = vector.shape_cast %243 : vector<1x1x32x96xbf16> to vector<32x96xbf16>
    %c6_257 = arith.constant 6 : index
    %c0_258 = arith.constant 0 : index
    %c0_259 = arith.constant 0 : index
    %245 = vector.load %arg2[%c6_257, %c0_258, %c0_259] : memref<9x96x32xbf16, #tpu.memory_space<vmem>>, vector<1x96x32xbf16>
    %246 = vector.shape_cast %245 : vector<1x96x32xbf16> to vector<96x32xbf16>
    %cst_260 = arith.constant dense<0.000000e+00> : vector<32x32xf32>
    %247 = tpu.matmul %244, %246, %cst_260 {dimension_numbers = #tpu.dot_dimension_numbers<[1], [0], [0], [1], [0, 0, 1, 1], [], []>} : vector<32x96xbf16>, vector<96x32xbf16>, vector<32x32xf32> -> vector<32x32xf32>
    %248 = arith.addf %242, %247 : vector<32x32xf32>
    %c0_261 = arith.constant 0 : index
    %c4_262 = arith.constant 4 : index
    %c8_263 = arith.constant 8 : index
    %c0_264 = arith.constant 0 : index
    %249 = vector.load %arg1[%c0_261, %c4_262, %c8_263, %c0_264] : memref<1x6x48x96xbf16, #tpu.memory_space<vmem>>, vector<1x1x32x96xbf16>
    %250 = vector.shape_cast %249 : vector<1x1x32x96xbf16> to vector<32x96xbf16>
    %c7_265 = arith.constant 7 : index
    %c0_266 = arith.constant 0 : index
    %c0_267 = arith.constant 0 : index
    %251 = vector.load %arg2[%c7_265, %c0_266, %c0_267] : memref<9x96x32xbf16, #tpu.memory_space<vmem>>, vector<1x96x32xbf16>
    %252 = vector.shape_cast %251 : vector<1x96x32xbf16> to vector<96x32xbf16>
    %cst_268 = arith.constant dense<0.000000e+00> : vector<32x32xf32>
    %253 = tpu.matmul %250, %252, %cst_268 {dimension_numbers = #tpu.dot_dimension_numbers<[1], [0], [0], [1], [0, 0, 1, 1], [], []>} : vector<32x96xbf16>, vector<96x32xbf16>, vector<32x32xf32> -> vector<32x32xf32>
    %254 = arith.addf %248, %253 : vector<32x32xf32>
    %c0_269 = arith.constant 0 : index
    %c4_270 = arith.constant 4 : index
    %c16_271 = arith.constant 16 : index
    %c0_272 = arith.constant 0 : index
    %255 = vector.load %arg1[%c0_269, %c4_270, %c16_271, %c0_272] : memref<1x6x48x96xbf16, #tpu.memory_space<vmem>>, vector<1x1x32x96xbf16>
    %256 = vector.shape_cast %255 : vector<1x1x32x96xbf16> to vector<32x96xbf16>
    %c8_273 = arith.constant 8 : index
    %c0_274 = arith.constant 0 : index
    %c0_275 = arith.constant 0 : index
    %257 = vector.load %arg2[%c8_273, %c0_274, %c0_275] : memref<9x96x32xbf16, #tpu.memory_space<vmem>>, vector<1x96x32xbf16>
    %258 = vector.shape_cast %257 : vector<1x96x32xbf16> to vector<96x32xbf16>
    %cst_276 = arith.constant dense<0.000000e+00> : vector<32x32xf32>
    %259 = tpu.matmul %256, %258, %cst_276 {dimension_numbers = #tpu.dot_dimension_numbers<[1], [0], [0], [1], [0, 0, 1, 1], [], []>} : vector<32x96xbf16>, vector<96x32xbf16>, vector<32x32xf32> -> vector<32x32xf32>
    %260 = arith.addf %254, %259 : vector<32x32xf32>
    %c0_277 = arith.constant 0 : index
    %c0_278 = arith.constant 0 : index
    %261 = vector.load %arg3[%c0_277, %c0_278] : memref<1x32xf32, #tpu.memory_space<vmem>>, vector<1x32xf32>
    %262 = vector.broadcast %261 : vector<1x32xf32> to vector<32x32xf32>
    %263 = arith.mulf %260, %262 : vector<32x32xf32>
    %c0_279 = arith.constant 0 : index
    %c0_280 = arith.constant 0 : index
    %264 = vector.load %arg4[%c0_279, %c0_280] : memref<1x32xf32, #tpu.memory_space<vmem>>, vector<1x32xf32>
    %265 = vector.broadcast %264 : vector<1x32xf32> to vector<32x32xf32>
    %266 = arith.addf %263, %265 : vector<32x32xf32>
    %cst_281 = arith.constant 0.000000e+00 : f32
    %267 = vector.broadcast %cst_281 : f32 to vector<32x32xf32>
    %268 = arith.cmpf oge, %266, %267 : vector<32x32xf32>
    %cst_282 = arith.constant 0.00999999977 : f32
    %269 = vector.broadcast %cst_282 : f32 to vector<32x32xf32>
    %270 = arith.mulf %269, %266 : vector<32x32xf32>
    %271 = arith.select %268, %266, %270 : vector<32x32xi1>, vector<32x32xf32>
    %272 = arith.truncf %271 : vector<32x32xf32> to vector<32x32xbf16>
    %c0_283 = arith.constant 0 : index
    %c0_284 = arith.constant 0 : index
    %273 = vector.load %arg5[%c0_283, %c0_284] : memref<32x32xbf16, #tpu.memory_space<vmem>>, vector<32x32xbf16>
    %cst_285 = arith.constant dense<0.000000e+00> : vector<32x32xf32>
    %274 = tpu.matmul %272, %273, %cst_285 {dimension_numbers = #tpu.dot_dimension_numbers<[1], [0], [0], [1], [0, 0, 1, 1], [], []>} : vector<32x32xbf16>, vector<32x32xbf16>, vector<32x32xf32> -> vector<32x32xf32>
    %c0_286 = arith.constant 0 : index
    %c0_287 = arith.constant 0 : index
    %275 = vector.load %arg6[%c0_286, %c0_287] : memref<1x32xf32, #tpu.memory_space<vmem>>, vector<1x32xf32>
    %276 = vector.broadcast %275 : vector<1x32xf32> to vector<32x32xf32>
    %277 = arith.mulf %274, %276 : vector<32x32xf32>
    %c0_288 = arith.constant 0 : index
    %c0_289 = arith.constant 0 : index
    %278 = vector.load %arg7[%c0_288, %c0_289] : memref<1x32xf32, #tpu.memory_space<vmem>>, vector<1x32xf32>
    %279 = vector.broadcast %278 : vector<1x32xf32> to vector<32x32xf32>
    %280 = arith.addf %277, %279 : vector<32x32xf32>
    %c0_290 = arith.constant 0 : index
    %c2_291 = arith.constant 2 : index
    %c0_292 = arith.constant 0 : index
    %c0_293 = arith.constant 0 : index
    %281 = vector.load %arg8[%c0_290, %c2_291, %c0_292, %c0_293] : memref<1x4x32x32xbf16, #tpu.memory_space<vmem>>, vector<1x1x32x32xbf16>
    %282 = vector.shape_cast %281 : vector<1x1x32x32xbf16> to vector<32x32xbf16>
    %283 = arith.extf %282 : vector<32x32xbf16> to vector<32x32xf32>
    %284 = arith.addf %280, %283 : vector<32x32xf32>
    %cst_294 = arith.constant 0.000000e+00 : f32
    %285 = vector.broadcast %cst_294 : f32 to vector<32x32xf32>
    %286 = arith.cmpf oge, %284, %285 : vector<32x32xf32>
    %cst_295 = arith.constant 0.00999999977 : f32
    %287 = vector.broadcast %cst_295 : f32 to vector<32x32xf32>
    %288 = arith.mulf %287, %284 : vector<32x32xf32>
    %289 = arith.select %286, %284, %288 : vector<32x32xi1>, vector<32x32xf32>
    %290 = arith.truncf %289 : vector<32x32xf32> to vector<32x32xbf16>
    %c0_296 = arith.constant 0 : index
    %c2_297 = arith.constant 2 : index
    %c0_298 = arith.constant 0 : index
    %c0_299 = arith.constant 0 : index
    %291 = vector.load %arg12[%c0_296, %c2_297, %c0_298, %c0_299] : memref<1x4x32x32xbf16, #tpu.memory_space<vmem>>, vector<1x1x32x32xbf16>
    %292 = vector.shape_cast %291 : vector<1x1x32x32xbf16> to vector<32x32xbf16>
    %293 = vector.shape_cast %290 : vector<32x32xbf16> to vector<1x1x32x32xbf16>
    tpu.vector_store %arg12[%c0_296, %c2_297, %c0_298, %c0_299], %293 {strides = array<i32>} : memref<1x4x32x32xbf16, #tpu.memory_space<vmem>>, vector<1x1x32x32xbf16>,
    %294 = arith.truncf %289 : vector<32x32xf32> to vector<32x32xbf16>
    %c0_300 = arith.constant 0 : index
    %c0_301 = arith.constant 0 : index
    %295 = vector.load %arg9[%c0_300, %c0_301] : memref<32x32xbf16, #tpu.memory_space<vmem>>, vector<32x32xbf16>
    %cst_302 = arith.constant dense<0.000000e+00> : vector<32x32xf32>
    %296 = tpu.matmul %294, %295, %cst_302 {dimension_numbers = #tpu.dot_dimension_numbers<[1], [0], [0], [1], [0, 0, 1, 1], [], []>} : vector<32x32xbf16>, vector<32x32xbf16>, vector<32x32xf32> -> vector<32x32xf32>
    %c0_303 = arith.constant 0 : index
    %c0_304 = arith.constant 0 : index
    %297 = vector.load %arg10[%c0_303, %c0_304] : memref<1x32xf32, #tpu.memory_space<vmem>>, vector<1x32xf32>
    %298 = vector.broadcast %297 : vector<1x32xf32> to vector<32x32xf32>
    %299 = arith.mulf %296, %298 : vector<32x32xf32>
    %c0_305 = arith.constant 0 : index
    %c0_306 = arith.constant 0 : index
    %300 = vector.load %arg11[%c0_305, %c0_306] : memref<1x32xf32, #tpu.memory_space<vmem>>, vector<1x32xf32>
    %301 = vector.broadcast %300 : vector<1x32xf32> to vector<32x32xf32>
    %302 = arith.addf %299, %301 : vector<32x32xf32>
    %cst_307 = arith.constant 0.000000e+00 : f32
    %303 = vector.broadcast %cst_307 : f32 to vector<32x32xf32>
    %304 = arith.cmpf oge, %302, %303 : vector<32x32xf32>
    %cst_308 = arith.constant 0.00999999977 : f32
    %305 = vector.broadcast %cst_308 : f32 to vector<32x32xf32>
    %306 = arith.mulf %305, %302 : vector<32x32xf32>
    %307 = arith.select %304, %302, %306 : vector<32x32xi1>, vector<32x32xf32>
    %308 = arith.truncf %307 : vector<32x32xf32> to vector<32x32xbf16>
    %c0_309 = arith.constant 0 : index
    %c2_310 = arith.constant 2 : index
    %c0_311 = arith.constant 0 : index
    %c0_312 = arith.constant 0 : index
    %309 = vector.load %arg13[%c0_309, %c2_310, %c0_311, %c0_312] : memref<1x4x32x32xbf16, #tpu.memory_space<vmem>>, vector<1x1x32x32xbf16>
    %310 = vector.shape_cast %309 : vector<1x1x32x32xbf16> to vector<32x32xbf16>
    %311 = vector.shape_cast %308 : vector<32x32xbf16> to vector<1x1x32x32xbf16>
    tpu.vector_store %arg13[%c0_309, %c2_310, %c0_311, %c0_312], %311 {strides = array<i32>} : memref<1x4x32x32xbf16, #tpu.memory_space<vmem>>, vector<1x1x32x32xbf16>,
    %c0_313 = arith.constant 0 : index
    %c3_314 = arith.constant 3 : index
    %c0_315 = arith.constant 0 : index
    %c0_316 = arith.constant 0 : index
    %312 = vector.load %arg1[%c0_313, %c3_314, %c0_315, %c0_316] : memref<1x6x48x96xbf16, #tpu.memory_space<vmem>>, vector<1x1x32x96xbf16>
    %313 = vector.shape_cast %312 : vector<1x1x32x96xbf16> to vector<32x96xbf16>
    %c0_317 = arith.constant 0 : index
    %c0_318 = arith.constant 0 : index
    %c0_319 = arith.constant 0 : index
    %314 = vector.load %arg2[%c0_317, %c0_318, %c0_319] : memref<9x96x32xbf16, #tpu.memory_space<vmem>>, vector<1x96x32xbf16>
    %315 = vector.shape_cast %314 : vector<1x96x32xbf16> to vector<96x32xbf16>
    %cst_320 = arith.constant dense<0.000000e+00> : vector<32x32xf32>
    %316 = tpu.matmul %313, %315, %cst_320 {dimension_numbers = #tpu.dot_dimension_numbers<[1], [0], [0], [1], [0, 0, 1, 1], [], []>} : vector<32x96xbf16>, vector<96x32xbf16>, vector<32x32xf32> -> vector<32x32xf32>
    %c0_321 = arith.constant 0 : index
    %c3_322 = arith.constant 3 : index
    %c8_323 = arith.constant 8 : index
    %c0_324 = arith.constant 0 : index
    %317 = vector.load %arg1[%c0_321, %c3_322, %c8_323, %c0_324] : memref<1x6x48x96xbf16, #tpu.memory_space<vmem>>, vector<1x1x32x96xbf16>
    %318 = vector.shape_cast %317 : vector<1x1x32x96xbf16> to vector<32x96xbf16>
    %c1_325 = arith.constant 1 : index
    %c0_326 = arith.constant 0 : index
    %c0_327 = arith.constant 0 : index
    %319 = vector.load %arg2[%c1_325, %c0_326, %c0_327] : memref<9x96x32xbf16, #tpu.memory_space<vmem>>, vector<1x96x32xbf16>
    %320 = vector.shape_cast %319 : vector<1x96x32xbf16> to vector<96x32xbf16>
    %cst_328 = arith.constant dense<0.000000e+00> : vector<32x32xf32>
    %321 = tpu.matmul %318, %320, %cst_328 {dimension_numbers = #tpu.dot_dimension_numbers<[1], [0], [0], [1], [0, 0, 1, 1], [], []>} : vector<32x96xbf16>, vector<96x32xbf16>, vector<32x32xf32> -> vector<32x32xf32>
    %322 = arith.addf %316, %321 : vector<32x32xf32>
    %c0_329 = arith.constant 0 : index
    %c3_330 = arith.constant 3 : index
    %c16_331 = arith.constant 16 : index
    %c0_332 = arith.constant 0 : index
    %323 = vector.load %arg1[%c0_329, %c3_330, %c16_331, %c0_332] : memref<1x6x48x96xbf16, #tpu.memory_space<vmem>>, vector<1x1x32x96xbf16>
    %324 = vector.shape_cast %323 : vector<1x1x32x96xbf16> to vector<32x96xbf16>
    %c2_333 = arith.constant 2 : index
    %c0_334 = arith.constant 0 : index
    %c0_335 = arith.constant 0 : index
    %325 = vector.load %arg2[%c2_333, %c0_334, %c0_335] : memref<9x96x32xbf16, #tpu.memory_space<vmem>>, vector<1x96x32xbf16>
    %326 = vector.shape_cast %325 : vector<1x96x32xbf16> to vector<96x32xbf16>
    %cst_336 = arith.constant dense<0.000000e+00> : vector<32x32xf32>
    %327 = tpu.matmul %324, %326, %cst_336 {dimension_numbers = #tpu.dot_dimension_numbers<[1], [0], [0], [1], [0, 0, 1, 1], [], []>} : vector<32x96xbf16>, vector<96x32xbf16>, vector<32x32xf32> -> vector<32x32xf32>
    %328 = arith.addf %322, %327 : vector<32x32xf32>
    %c0_337 = arith.constant 0 : index
    %c4_338 = arith.constant 4 : index
    %c0_339 = arith.constant 0 : index
    %c0_340 = arith.constant 0 : index
    %329 = vector.load %arg1[%c0_337, %c4_338, %c0_339, %c0_340] : memref<1x6x48x96xbf16, #tpu.memory_space<vmem>>, vector<1x1x32x96xbf16>
    %330 = vector.shape_cast %329 : vector<1x1x32x96xbf16> to vector<32x96xbf16>
    %c3_341 = arith.constant 3 : index
    %c0_342 = arith.constant 0 : index
    %c0_343 = arith.constant 0 : index
    %331 = vector.load %arg2[%c3_341, %c0_342, %c0_343] : memref<9x96x32xbf16, #tpu.memory_space<vmem>>, vector<1x96x32xbf16>
    %332 = vector.shape_cast %331 : vector<1x96x32xbf16> to vector<96x32xbf16>
    %cst_344 = arith.constant dense<0.000000e+00> : vector<32x32xf32>
    %333 = tpu.matmul %330, %332, %cst_344 {dimension_numbers = #tpu.dot_dimension_numbers<[1], [0], [0], [1], [0, 0, 1, 1], [], []>} : vector<32x96xbf16>, vector<96x32xbf16>, vector<32x32xf32> -> vector<32x32xf32>
    %334 = arith.addf %328, %333 : vector<32x32xf32>
    %c0_345 = arith.constant 0 : index
    %c4_346 = arith.constant 4 : index
    %c8_347 = arith.constant 8 : index
    %c0_348 = arith.constant 0 : index
    %335 = vector.load %arg1[%c0_345, %c4_346, %c8_347, %c0_348] : memref<1x6x48x96xbf16, #tpu.memory_space<vmem>>, vector<1x1x32x96xbf16>
    %336 = vector.shape_cast %335 : vector<1x1x32x96xbf16> to vector<32x96xbf16>
    %c4_349 = arith.constant 4 : index
    %c0_350 = arith.constant 0 : index
    %c0_351 = arith.constant 0 : index
    %337 = vector.load %arg2[%c4_349, %c0_350, %c0_351] : memref<9x96x32xbf16, #tpu.memory_space<vmem>>, vector<1x96x32xbf16>
    %338 = vector.shape_cast %337 : vector<1x96x32xbf16> to vector<96x32xbf16>
    %cst_352 = arith.constant dense<0.000000e+00> : vector<32x32xf32>
    %339 = tpu.matmul %336, %338, %cst_352 {dimension_numbers = #tpu.dot_dimension_numbers<[1], [0], [0], [1], [0, 0, 1, 1], [], []>} : vector<32x96xbf16>, vector<96x32xbf16>, vector<32x32xf32> -> vector<32x32xf32>
    %340 = arith.addf %334, %339 : vector<32x32xf32>
    %c0_353 = arith.constant 0 : index
    %c4_354 = arith.constant 4 : index
    %c16_355 = arith.constant 16 : index
    %c0_356 = arith.constant 0 : index
    %341 = vector.load %arg1[%c0_353, %c4_354, %c16_355, %c0_356] : memref<1x6x48x96xbf16, #tpu.memory_space<vmem>>, vector<1x1x32x96xbf16>
    %342 = vector.shape_cast %341 : vector<1x1x32x96xbf16> to vector<32x96xbf16>
    %c5_357 = arith.constant 5 : index
    %c0_358 = arith.constant 0 : index
    %c0_359 = arith.constant 0 : index
    %343 = vector.load %arg2[%c5_357, %c0_358, %c0_359] : memref<9x96x32xbf16, #tpu.memory_space<vmem>>, vector<1x96x32xbf16>
    %344 = vector.shape_cast %343 : vector<1x96x32xbf16> to vector<96x32xbf16>
    %cst_360 = arith.constant dense<0.000000e+00> : vector<32x32xf32>
    %345 = tpu.matmul %342, %344, %cst_360 {dimension_numbers = #tpu.dot_dimension_numbers<[1], [0], [0], [1], [0, 0, 1, 1], [], []>} : vector<32x96xbf16>, vector<96x32xbf16>, vector<32x32xf32> -> vector<32x32xf32>
    %346 = arith.addf %340, %345 : vector<32x32xf32>
    %c0_361 = arith.constant 0 : index
    %c5_362 = arith.constant 5 : index
    %c0_363 = arith.constant 0 : index
    %c0_364 = arith.constant 0 : index
    %347 = vector.load %arg1[%c0_361, %c5_362, %c0_363, %c0_364] : memref<1x6x48x96xbf16, #tpu.memory_space<vmem>>, vector<1x1x32x96xbf16>
    %348 = vector.shape_cast %347 : vector<1x1x32x96xbf16> to vector<32x96xbf16>
    %c6_365 = arith.constant 6 : index
    %c0_366 = arith.constant 0 : index
    %c0_367 = arith.constant 0 : index
    %349 = vector.load %arg2[%c6_365, %c0_366, %c0_367] : memref<9x96x32xbf16, #tpu.memory_space<vmem>>, vector<1x96x32xbf16>
    %350 = vector.shape_cast %349 : vector<1x96x32xbf16> to vector<96x32xbf16>
    %cst_368 = arith.constant dense<0.000000e+00> : vector<32x32xf32>
    %351 = tpu.matmul %348, %350, %cst_368 {dimension_numbers = #tpu.dot_dimension_numbers<[1], [0], [0], [1], [0, 0, 1, 1], [], []>} : vector<32x96xbf16>, vector<96x32xbf16>, vector<32x32xf32> -> vector<32x32xf32>
    %352 = arith.addf %346, %351 : vector<32x32xf32>
    %c0_369 = arith.constant 0 : index
    %c5_370 = arith.constant 5 : index
    %c8_371 = arith.constant 8 : index
    %c0_372 = arith.constant 0 : index
    %353 = vector.load %arg1[%c0_369, %c5_370, %c8_371, %c0_372] : memref<1x6x48x96xbf16, #tpu.memory_space<vmem>>, vector<1x1x32x96xbf16>
    %354 = vector.shape_cast %353 : vector<1x1x32x96xbf16> to vector<32x96xbf16>
    %c7_373 = arith.constant 7 : index
    %c0_374 = arith.constant 0 : index
    %c0_375 = arith.constant 0 : index
    %355 = vector.load %arg2[%c7_373, %c0_374, %c0_375] : memref<9x96x32xbf16, #tpu.memory_space<vmem>>, vector<1x96x32xbf16>
    %356 = vector.shape_cast %355 : vector<1x96x32xbf16> to vector<96x32xbf16>
    %cst_376 = arith.constant dense<0.000000e+00> : vector<32x32xf32>
    %357 = tpu.matmul %354, %356, %cst_376 {dimension_numbers = #tpu.dot_dimension_numbers<[1], [0], [0], [1], [0, 0, 1, 1], [], []>} : vector<32x96xbf16>, vector<96x32xbf16>, vector<32x32xf32> -> vector<32x32xf32>
    %358 = arith.addf %352, %357 : vector<32x32xf32>
    %c0_377 = arith.constant 0 : index
    %c5_378 = arith.constant 5 : index
    %c16_379 = arith.constant 16 : index
    %c0_380 = arith.constant 0 : index
    %359 = vector.load %arg1[%c0_377, %c5_378, %c16_379, %c0_380] : memref<1x6x48x96xbf16, #tpu.memory_space<vmem>>, vector<1x1x32x96xbf16>
    %360 = vector.shape_cast %359 : vector<1x1x32x96xbf16> to vector<32x96xbf16>
    %c8_381 = arith.constant 8 : index
    %c0_382 = arith.constant 0 : index
    %c0_383 = arith.constant 0 : index
    %361 = vector.load %arg2[%c8_381, %c0_382, %c0_383] : memref<9x96x32xbf16, #tpu.memory_space<vmem>>, vector<1x96x32xbf16>
    %362 = vector.shape_cast %361 : vector<1x96x32xbf16> to vector<96x32xbf16>
    %cst_384 = arith.constant dense<0.000000e+00> : vector<32x32xf32>
    %363 = tpu.matmul %360, %362, %cst_384 {dimension_numbers = #tpu.dot_dimension_numbers<[1], [0], [0], [1], [0, 0, 1, 1], [], []>} : vector<32x96xbf16>, vector<96x32xbf16>, vector<32x32xf32> -> vector<32x32xf32>
    %364 = arith.addf %358, %363 : vector<32x32xf32>
    %c0_385 = arith.constant 0 : index
    %c0_386 = arith.constant 0 : index
    %365 = vector.load %arg3[%c0_385, %c0_386] : memref<1x32xf32, #tpu.memory_space<vmem>>, vector<1x32xf32>
    %366 = vector.broadcast %365 : vector<1x32xf32> to vector<32x32xf32>
    %367 = arith.mulf %364, %366 : vector<32x32xf32>
    %c0_387 = arith.constant 0 : index
    %c0_388 = arith.constant 0 : index
    %368 = vector.load %arg4[%c0_387, %c0_388] : memref<1x32xf32, #tpu.memory_space<vmem>>, vector<1x32xf32>
    %369 = vector.broadcast %368 : vector<1x32xf32> to vector<32x32xf32>
    %370 = arith.addf %367, %369 : vector<32x32xf32>
    %cst_389 = arith.constant 0.000000e+00 : f32
    %371 = vector.broadcast %cst_389 : f32 to vector<32x32xf32>
    %372 = arith.cmpf oge, %370, %371 : vector<32x32xf32>
    %cst_390 = arith.constant 0.00999999977 : f32
    %373 = vector.broadcast %cst_390 : f32 to vector<32x32xf32>
    %374 = arith.mulf %373, %370 : vector<32x32xf32>
    %375 = arith.select %372, %370, %374 : vector<32x32xi1>, vector<32x32xf32>
    %376 = arith.truncf %375 : vector<32x32xf32> to vector<32x32xbf16>
    %c0_391 = arith.constant 0 : index
    %c0_392 = arith.constant 0 : index
    %377 = vector.load %arg5[%c0_391, %c0_392] : memref<32x32xbf16, #tpu.memory_space<vmem>>, vector<32x32xbf16>
    %cst_393 = arith.constant dense<0.000000e+00> : vector<32x32xf32>
    %378 = tpu.matmul %376, %377, %cst_393 {dimension_numbers = #tpu.dot_dimension_numbers<[1], [0], [0], [1], [0, 0, 1, 1], [], []>} : vector<32x32xbf16>, vector<32x32xbf16>, vector<32x32xf32> -> vector<32x32xf32>
    %c0_394 = arith.constant 0 : index
    %c0_395 = arith.constant 0 : index
    %379 = vector.load %arg6[%c0_394, %c0_395] : memref<1x32xf32, #tpu.memory_space<vmem>>, vector<1x32xf32>
    %380 = vector.broadcast %379 : vector<1x32xf32> to vector<32x32xf32>
    %381 = arith.mulf %378, %380 : vector<32x32xf32>
    %c0_396 = arith.constant 0 : index
    %c0_397 = arith.constant 0 : index
    %382 = vector.load %arg7[%c0_396, %c0_397] : memref<1x32xf32, #tpu.memory_space<vmem>>, vector<1x32xf32>
    %383 = vector.broadcast %382 : vector<1x32xf32> to vector<32x32xf32>
    %384 = arith.addf %381, %383 : vector<32x32xf32>
    %c0_398 = arith.constant 0 : index
    %c3_399 = arith.constant 3 : index
    %c0_400 = arith.constant 0 : index
    %c0_401 = arith.constant 0 : index
    %385 = vector.load %arg8[%c0_398, %c3_399, %c0_400, %c0_401] : memref<1x4x32x32xbf16, #tpu.memory_space<vmem>>, vector<1x1x32x32xbf16>
    %386 = vector.shape_cast %385 : vector<1x1x32x32xbf16> to vector<32x32xbf16>
    %387 = arith.extf %386 : vector<32x32xbf16> to vector<32x32xf32>
    %388 = arith.addf %384, %387 : vector<32x32xf32>
    %cst_402 = arith.constant 0.000000e+00 : f32
    %389 = vector.broadcast %cst_402 : f32 to vector<32x32xf32>
    %390 = arith.cmpf oge, %388, %389 : vector<32x32xf32>
    %cst_403 = arith.constant 0.00999999977 : f32
    %391 = vector.broadcast %cst_403 : f32 to vector<32x32xf32>
    %392 = arith.mulf %391, %388 : vector<32x32xf32>
    %393 = arith.select %390, %388, %392 : vector<32x32xi1>, vector<32x32xf32>
    %394 = arith.truncf %393 : vector<32x32xf32> to vector<32x32xbf16>
    %c0_404 = arith.constant 0 : index
    %c3_405 = arith.constant 3 : index
    %c0_406 = arith.constant 0 : index
    %c0_407 = arith.constant 0 : index
    %395 = vector.load %arg12[%c0_404, %c3_405, %c0_406, %c0_407] : memref<1x4x32x32xbf16, #tpu.memory_space<vmem>>, vector<1x1x32x32xbf16>
    %396 = vector.shape_cast %395 : vector<1x1x32x32xbf16> to vector<32x32xbf16>
    %397 = vector.shape_cast %394 : vector<32x32xbf16> to vector<1x1x32x32xbf16>
    tpu.vector_store %arg12[%c0_404, %c3_405, %c0_406, %c0_407], %397 {strides = array<i32>} : memref<1x4x32x32xbf16, #tpu.memory_space<vmem>>, vector<1x1x32x32xbf16>,
    %398 = arith.truncf %393 : vector<32x32xf32> to vector<32x32xbf16>
    %c0_408 = arith.constant 0 : index
    %c0_409 = arith.constant 0 : index
    %399 = vector.load %arg9[%c0_408, %c0_409] : memref<32x32xbf16, #tpu.memory_space<vmem>>, vector<32x32xbf16>
    %cst_410 = arith.constant dense<0.000000e+00> : vector<32x32xf32>
    %400 = tpu.matmul %398, %399, %cst_410 {dimension_numbers = #tpu.dot_dimension_numbers<[1], [0], [0], [1], [0, 0, 1, 1], [], []>} : vector<32x32xbf16>, vector<32x32xbf16>, vector<32x32xf32> -> vector<32x32xf32>
    %c0_411 = arith.constant 0 : index
    %c0_412 = arith.constant 0 : index
    %401 = vector.load %arg10[%c0_411, %c0_412] : memref<1x32xf32, #tpu.memory_space<vmem>>, vector<1x32xf32>
    %402 = vector.broadcast %401 : vector<1x32xf32> to vector<32x32xf32>
    %403 = arith.mulf %400, %402 : vector<32x32xf32>
    %c0_413 = arith.constant 0 : index
    %c0_414 = arith.constant 0 : index
    %404 = vector.load %arg11[%c0_413, %c0_414] : memref<1x32xf32, #tpu.memory_space<vmem>>, vector<1x32xf32>
    %405 = vector.broadcast %404 : vector<1x32xf32> to vector<32x32xf32>
    %406 = arith.addf %403, %405 : vector<32x32xf32>
    %cst_415 = arith.constant 0.000000e+00 : f32
    %407 = vector.broadcast %cst_415 : f32 to vector<32x32xf32>
    %408 = arith.cmpf oge, %406, %407 : vector<32x32xf32>
    %cst_416 = arith.constant 0.00999999977 : f32
    %409 = vector.broadcast %cst_416 : f32 to vector<32x32xf32>
    %410 = arith.mulf %409, %406 : vector<32x32xf32>
    %411 = arith.select %408, %406, %410 : vector<32x32xi1>, vector<32x32xf32>
    %412 = arith.truncf %411 : vector<32x32xf32> to vector<32x32xbf16>
    %c0_417 = arith.constant 0 : index
    %c3_418 = arith.constant 3 : index
    %c0_419 = arith.constant 0 : index
    %c0_420 = arith.constant 0 : index
    %413 = vector.load %arg13[%c0_417, %c3_418, %c0_419, %c0_420] : memref<1x4x32x32xbf16, #tpu.memory_space<vmem>>, vector<1x1x32x32xbf16>
    %414 = vector.shape_cast %413 : vector<1x1x32x32xbf16> to vector<32x32xbf16>
    %415 = vector.shape_cast %412 : vector<32x32xbf16> to vector<1x1x32x32xbf16>
    tpu.vector_store %arg13[%c0_417, %c3_418, %c0_419, %c0_420], %415 {strides = array<i32>} : memref<1x4x32x32xbf16, #tpu.memory_space<vmem>>, vector<1x1x32x32xbf16>,
    return
  }
  func.func @transform_0(%arg0: i32) -> (i32, i32, i32, i32) {
    %c0_i32 = arith.constant 0 : i32
    %c0_i32_0 = arith.constant 0 : i32
    %c0_i32_1 = arith.constant 0 : i32
    %c0_i32_2 = arith.constant 0 : i32
    return %arg0, %c0_i32, %c0_i32_0, %c0_i32_1 : i32, i32, i32, i32
  }
  func.func @transform_1(%arg0: i32) -> (i32, i32, i32) {
    %c0_i32 = arith.constant 0 : i32
    %c0_i32_0 = arith.constant 0 : i32
    %c0_i32_1 = arith.constant 0 : i32
    %c0_i32_2 = arith.constant 0 : i32
    return %c0_i32, %c0_i32_0, %c0_i32_1 : i32, i32, i32
  }
  func.func @transform_2(%arg0: i32) -> (i32, i32) {
    %c0_i32 = arith.constant 0 : i32
    %c0_i32_0 = arith.constant 0 : i32
    %c0_i32_1 = arith.constant 0 : i32
    return %c0_i32, %c0_i32_0 : i32, i32
  }
  func.func @transform_3(%arg0: i32) -> (i32, i32) {
    %c0_i32 = arith.constant 0 : i32
    %c0_i32_0 = arith.constant 0 : i32
    %c0_i32_1 = arith.constant 0 : i32
    return %c0_i32, %c0_i32_0 : i32, i32
  }
  func.func @transform_4(%arg0: i32) -> (i32, i32) {
    %c0_i32 = arith.constant 0 : i32
    %c0_i32_0 = arith.constant 0 : i32
    %c0_i32_1 = arith.constant 0 : i32
    return %c0_i32, %c0_i32_0 : i32, i32
  }
  func.func @transform_5(%arg0: i32) -> (i32, i32) {
    %c0_i32 = arith.constant 0 : i32
    %c0_i32_0 = arith.constant 0 : i32
    %c0_i32_1 = arith.constant 0 : i32
    return %c0_i32, %c0_i32_0 : i32, i32
  }
  func.func @transform_6(%arg0: i32) -> (i32, i32) {
    %c0_i32 = arith.constant 0 : i32
    %c0_i32_0 = arith.constant 0 : i32
    %c0_i32_1 = arith.constant 0 : i32
    return %c0_i32, %c0_i32_0 : i32, i32
  }
  func.func @transform_7(%arg0: i32) -> (i32, i32, i32, i32) {
    %c0_i32 = arith.constant 0 : i32
    %c0_i32_0 = arith.constant 0 : i32
    %c0_i32_1 = arith.constant 0 : i32
    %c0_i32_2 = arith.constant 0 : i32
    return %arg0, %c0_i32, %c0_i32_0, %c0_i32_1 : i32, i32, i32, i32
  }
  func.func @transform_8(%arg0: i32) -> (i32, i32) {
    %c0_i32 = arith.constant 0 : i32
    %c0_i32_0 = arith.constant 0 : i32
    %c0_i32_1 = arith.constant 0 : i32
    return %c0_i32, %c0_i32_0 : i32, i32
  }
  func.func @transform_9(%arg0: i32) -> (i32, i32) {
    %c0_i32 = arith.constant 0 : i32
    %c0_i32_0 = arith.constant 0 : i32
    %c0_i32_1 = arith.constant 0 : i32
    return %c0_i32, %c0_i32_0 : i32, i32
  }
  func.func @transform_10(%arg0: i32) -> (i32, i32) {
    %c0_i32 = arith.constant 0 : i32
    %c0_i32_0 = arith.constant 0 : i32
    %c0_i32_1 = arith.constant 0 : i32
    return %c0_i32, %c0_i32_0 : i32, i32
  }
  func.func @transform_11(%arg0: i32) -> (i32, i32, i32, i32) {
    %c0_i32 = arith.constant 0 : i32
    %c0_i32_0 = arith.constant 0 : i32
    %c0_i32_1 = arith.constant 0 : i32
    %c0_i32_2 = arith.constant 0 : i32
    return %arg0, %c0_i32, %c0_i32_0, %c0_i32_1 : i32, i32, i32, i32
  }
  func.func @transform_12(%arg0: i32) -> (i32, i32, i32, i32) {
    %c0_i32 = arith.constant 0 : i32
    %c0_i32_0 = arith.constant 0 : i32
    %c0_i32_1 = arith.constant 0 : i32
    %c0_i32_2 = arith.constant 0 : i32
    return %arg0, %c0_i32, %c0_i32_0, %c0_i32_1 : i32, i32, i32, i32
  }
}

</mosaic_0001>

<bundles_post_ra>
// kernel: resnet3d_forward.4
= control target key start
LH: loop header
LB: loop body
LE: loop exit
PB: predicated region body
PF: predicated region fallthrough
CT: control target
= control target key end

     0   :  { %s3707_s27 = smov 0   ;;  %s4187_s0 = inlined_call_operand.vmem [shape: bf16[2,5,40,64], index: 0, kind: input, shape index: {}]   ;;  %s4188_s1 = inlined_call_operand.vmem [shape: bf16[4,64,32], index: 1, kind: input, shape index: {}]   ;;  %s4189_s2 = inlined_call_operand.vmem [shape: f32[1,32], index: 2, kind: input, shape index: {}]   ;;  %s4190_s3 = inlined_call_operand.vmem [shape: f32[1,32], index: 3, kind: input, shape index: {}]   ;;  %s4191_s4 = inlined_call_operand.vmem [shape: bf16[32,32], index: 4, kind: input, shape index: {}]   ;;  %s4192_s5 = inlined_call_operand.vmem [shape: f32[1,32], index: 5, kind: input, shape index: {}]   ;;  %s4193_s6 = inlined_call_operand.vmem [shape: f32[1,32], index: 6, kind: input, shape index: {}]   ;;  %s4194_s7 = inlined_call_operand.vmem [shape: bf16[2,4,32,32], index: 7, kind: output, shape index: {0}]   ;;  %s4195_s8 = inlined_call_operand.vmem [shape: bf16[2,4,32,32], index: 8, kind: output, shape index: {1}]  }
   0x1 LB: > { %s2752_s28 = sadd.s32 4294967295, %s3660_s27   ;;  %p2756_p0 = scmp.ge.s32.totalorder %s3660_s27, 1  ;;  %s3660_s27 = sphi %s3707_s27, %s19_s27  }
   0x2   : > { %p265_p1 = scmp.lt.s32.totalorder %s3660_s27, 3 }
   0x4   : > { %p266_p2 = pnand %p2756_p0, %p265_p1 }
   0x5   : > { %v3550_v0 = vld [vmem:[%s4188_s1 + $0x20] sm:$0xff] (!%p266_p2)   ;;  %p304_p3 = scmp.lt.s32.totalorder (!%p266_p2), %s2752_s28, 1  ;;  %v3551_v1 = vld [vmem:[%s4188_s1 + $0x28] sm:$0xff] (!%p266_p2)   ;;  %v3552_v2 = vld [vmem:[%s4188_s1 + $0x30] sm:$0xff] (!%p266_p2)   ;;  %vm376_vm0 = vcmask (!%p266_p2), 523264   ;;  %vm778_vm3 = vcmask (!%p266_p2), 257024  }
   0x6   : > { %269 = sbr.rel (%p266_p2) target bundleno = 1387 (0x56b), region = 48  ;;  %3269 = vmatprep.subr.bf16.mxu0 (!%p266_p2), %v3550_v0  ;;  %v3553_v5 = vld [vmem:[%s4188_s1 + $0x38] sm:$0xff] (!%p266_p2)   ;;  %v3558_v8 = vld [vmem:[%s4188_s1] sm:$0xff] (!%p266_p2)   ;;  %v3559_v13 = vld [vmem:[%s4188_s1 + $0x8] sm:$0xff] (!%p266_p2)   ;;  %vm799_vm6 = vcmask (!%p266_p2), 261120  }
   0x7   : > { %3270 = vmatpush3.bf16.msra.mxu0 (!%p266_p2), %v3550_v0  ;;  %v3560_v14 = vld [vmem:[%s4188_s1 + $0x10] sm:$0xff] (!%p266_p2)   ;;  %v3561_v15 = vld [vmem:[%s4188_s1 + $0x18] sm:$0xff] (!%p266_p2)   ;;  %v3562_v16 = vld [vmem:[%s4188_s1 + $0x40] sm:$0xff] (!%p266_p2)  }
   0x8   : > { %3271 = vmatprep.subr.bf16.mxu0 (!%p266_p2), %v3551_v1  ;;  %v3563_v19 = vld [vmem:[%s4188_s1 + $0x48] sm:$0xff] (!%p266_p2)   ;;  %v3564_v20 = vld [vmem:[%s4188_s1 + $0x50] sm:$0xff] (!%p266_p2)   ;;  %v3565_v21 = vld [vmem:[%s4188_s1 + $0x58] sm:$0xff] (!%p266_p2)  }
   0x9   : > { %v3567_v22 = vld [vmem:[%s4188_s1 + $0x60] sm:$0xff] (!%p266_p2)   ;;  %v3569_v25 = vld [vmem:[%s4188_s1 + $0x68] sm:$0xff] (!%p266_p2)   ;;  %v3570_v26 = vld [vmem:[%s4188_s1 + $0x70] sm:$0xff] (!%p266_p2)  }
   0xa   : > { %v3571_v27 = vld [vmem:[%s4188_s1 + $0x78] sm:$0xff] (!%p266_p2)   ;;  %v3574_v29 = vld [vmem:[%s4191_s4] sm:$0xff] (!%p266_p2)   ;;  %v3575_v30 = vld [vmem:[%s4191_s4 + $0x8] sm:$0xff] (!%p266_p2)  }
   0xb   : > { %3272 = vmatpush3.bf16.msra.mxu0 (!%p266_p2), %v3551_v1  ;;  %3317 = vmatprep.subr.bf16.mxu1 (!%p266_p2), %v3574_v29  ;;  %v3576_v31 = vld [vmem:[%s4188_s1 + $0x20] sm:$0xff] (!%p266_p2)   ;;  %v3577_v63 = vld [vmem:[%s4188_s1 + $0x28] sm:$0xff] (!%p266_p2)   ;;  %v3578_v0 = vld [vmem:[%s4188_s1 + $0x30] sm:$0xff] (!%p266_p2)  }
   0xc   : > { %3273 = vmatprep.subr.bf16.mxu0 (!%p266_p2), %v3552_v2  ;;  %3318 = vmatpush3.bf16.msra.mxu1 (!%p266_p2), %v3574_v29  ;;  %v3800_v32 = vld [vmem:[%s4189_s2] ss:$0 sm:$0xff] (!%p266_p2)  ;;  %v3579_v1 = vld [vmem:[%s4188_s1 + $0x38] sm:$0xff] (!%p266_p2)  }
   0xd   : > { %s4197_s28 = smov (!%p304_p3, %s2752_s28), 1  ;;  %3319 = vmatprep.subr.bf16.mxu1 %v3575_v30  ;;  %v3805_v34 = vld [vmem:[%s4190_s3] ss:$0 sm:$0xff] }
   0xe   : > { %s3541_s13 = smul.u32 100, %s4197_s28  ;;  %s3123_s14 = sshll.u32 %s4197_s28, 6  ;;  %v3915_v29 = vld [vmem:[%s4193_s6] ss:$0 sm:$0xff] }
   0xf   : > { %3274 = vmatpush3.bf16.msra.mxu0 %v3552_v2  ;;  %s3821_s18 = scalar_lea.vmem %s4194_s7, %s3123_s14  ;;  %s3930_s29 = scalar_lea.vmem %s4195_s8, %s3123_s14 }
  0x10   : > { %s3730_s16 = scalar_lea.vmem %s4187_s0, %s3541_s13  ;;  %3275 = vmatprep.subr.bf16.mxu0 %v3553_v5  ;;  %3320 = vmatpush3.bf16.msra.mxu1 %v3575_v30 }
  0x11   : > { %v321_v3 = vld [vmem:[%s3730_s16 + $0x4] sm:$0xf]  ;;  %v322_v4 = vld [vmem:[%s3730_s16 + $0x8] sm:$0xf]  ;;  %v323_v7 = vld [vmem:[%s3730_s16 + $0xc] sm:$0xf]  ;;  %3325 = vmatprep.subr.bf16.mxu1 %v3576_v31 }
  0x12   : > { %v2770_v6 = vcombine.low %v321_v3, %v322_v4  ;;  %v332_v9 = vld [vmem:[%s3730_s16 + $0x10] sm:$0xf]  ;;  %v320_v10 = vld [vmem:[%s3730_s16] sm:$0xf]  ;;  %v3566_v17 = vld [vmem:[%s3730_s16 + $0x14] sm:$0xff]   ;;  %v2779_v18 = vcombine.low %v322_v4, %v323_v7 }
  0x13   : > { %v2771_v11 = vcombine.low %v323_v7, %v332_v9  ;;  %3276 = vmatpush3.bf16.msra.mxu0 %v3553_v5  ;;  %v2778_v12 = vcombine.low %v320_v10, %v321_v3  ;;  %v3568_v23 = vld [vmem:[%s3730_s16 + $0x1c] sm:$0xff]   ;;  %v2843_v50 = vld [vmem:[%s3730_s16 + $0x18] sm:$0xf]  ;;  %v2846_v3 = vld [vmem:[%s3730_s16 + $0x24] sm:$0xf] }
  0x14   : > { %3277 = vmatprep.mubr.msk.bf16.mxu0 %vm376_vm0, %v2770_v6  ;;  %3281 = vmatprep.subr.bf16.mxu0 %v3558_v8  ;;  %v3572_v24 = vld [vmem:[%s3730_s16 + $0x18] sm:$0xff]   ;;  %v3573_v28 = vld [vmem:[%s3730_s16 + $0x20] sm:$0xff]   ;;  %v2842_v5 = vld [vmem:[%s3730_s16 + $0x14] sm:$0xf] }
  0x15   : > { %v2844_v54 = vld [vmem:[%s3730_s16 + $0x1c] sm:$0xf]  ;;  %v2845_v2 = vld [vmem:[%s3730_s16 + $0x20] sm:$0xf]  ;;  %v2863_v7 = vcombine.low %v2842_v5, %v2843_v50  ;;  %v3585_v9 = vld [vmem:[%s4188_s1 + $0x10] sm:$0xff]  }
  0x16   : > { %3278 = vmatmul.mubr.msk.bf16.vlgmr.msra.gmra.mrb[0].mxu0 %vm376_vm0, %v2771_v11  ;;  %v2855_v62 = vcombine.low %v2843_v50, %v2844_v54  ;;  %v3583_v4 = vld [vmem:[%s4188_s1] sm:$0xff]   ;;  %v2856_v6 = vcombine.low %v2845_v2, %v2846_v3  ;;  %v3586_v10 = vld [vmem:[%s4188_s1 + $0x18] sm:$0xff]  }
  0x17   : > { %3282 = vmatpush3.bf16.msra.mxu0 %v3558_v8  ;;  %3289 = vmatprep.mubr.msk.bf16.mxu0 %vm376_vm0, %v2778_v12  ;;  %v3584_v8 = vld [vmem:[%s4188_s1 + $0x8] sm:$0xff]   ;;  %v3588_v11 = vld [vmem:[%s4188_s1 + $0x40] sm:$0xff]   ;;  %v2864_v12 = vcombine.low %v2844_v54, %v2845_v2 }
  0x18   : > { %3283 = vmatprep.subr.bf16.mxu0 %v3559_v13 }
  0x1b   : > { %3284 = vmatpush3.bf16.msra.mxu0 %v3559_v13  ;;  %v3592_v13 = vld [vmem:[%s3730_s16 + $0x28] sm:$0xff]  }
  0x1c   : > { %3285 = vmatprep.subr.bf16.mxu0 %v3560_v14 }
  0x1f   : > { %3286 = vmatpush3.bf16.msra.mxu0 %v3560_v14  ;;  %v3589_v14 = vld [vmem:[%s4188_s1 + $0x48] sm:$0xff]  }
  0x20   : > { %3287 = vmatprep.subr.bf16.mxu0 %v3561_v15 }
  0x23   : > { %3288 = vmatpush3.bf16.msra.mxu0 %v3561_v15  ;;  %v3590_v15 = vld [vmem:[%s4188_s1 + $0x50] sm:$0xff]  }
  0x24   : > { %3293 = vmatprep.subr.bf16.mxu0 %v3562_v16 }
  0x26   : > { %3290 = vmatmul.mubr.msk.bf16.vlgmr.msra.gmra.mrb[0].mxu0 %vm376_vm0, %v2779_v18  ;;  %v3594_v18 = vld [vmem:[%s3730_s16 + $0x30] sm:$0xff]  }
  0x27   : > { %3294 = vmatpush3.bf16.msra.mxu0 %v3562_v16  ;;  %3301 = vmatprep.mubr.msk.bf16.mxu0 %vm376_vm0, %v3566_v17  ;;  %v3591_v16 = vld [vmem:[%s4188_s1 + $0x58] sm:$0xff]   ;;  %v3593_v17 = vld [vmem:[%s4188_s1 + $0x60] sm:$0xff]  }
  0x28   : > { %3295 = vmatprep.subr.bf16.mxu0 %v3563_v19 }
  0x2b   : > { %3296 = vmatpush3.bf16.msra.mxu0 %v3563_v19  ;;  %v3598_v19 = vld [vmem:[%s3730_s16 + $0x2c] sm:$0xff]  }
  0x2c   : > { %3297 = vmatprep.subr.bf16.mxu0 %v3564_v20 }
  0x2f   : > { %3298 = vmatpush3.bf16.msra.mxu0 %v3564_v20  ;;  %v3595_v20 = vld [vmem:[%s4188_s1 + $0x68] sm:$0xff]  }
  0x30   : > { %3299 = vmatprep.subr.bf16.mxu0 %v3565_v21 }
  0x33   : > { %3300 = vmatpush3.bf16.msra.mxu0 %v3565_v21  ;;  %v3596_v21 = vld [vmem:[%s4188_s1 + $0x70] sm:$0xff]  }
  0x34   : > { %3305 = vmatprep.subr.bf16.mxu0 %v3567_v22 }
  0x36   : > { %3302 = vmatmul.mubr.msk.bf16.vlgmr.msra.gmra.mrb[0].mxu0 %vm376_vm0, %v3568_v23  ;;  %v3599_v23 = vld [vmem:[%s3730_s16 + $0x34] sm:$0xff]  }
  0x37   : > { %3306 = vmatpush3.bf16.msra.mxu0 %v3567_v22  ;;  %3313 = vmatprep.mubr.msk.bf16.mxu0 %vm376_vm0, %v3572_v24  ;;  %v3597_v22 = vld [vmem:[%s4188_s1 + $0x78] sm:$0xff]   ;;  %v3600_v24 = vld [vmem:[%s4191_s4] sm:$0xff]  }
  0x38   : > { %3307 = vmatprep.subr.bf16.mxu0 %v3569_v25 }
  0x3b   : > { %3308 = vmatpush3.bf16.msra.mxu0 %v3569_v25  ;;  %v3601_v25 = vld [vmem:[%s4191_s4 + $0x8] sm:$0xff]  }
  0x3c   : > { %3309 = vmatprep.subr.bf16.mxu0 %v3570_v26 }
  0x3f   : > { %3310 = vmatpush3.bf16.msra.mxu0 %v3570_v26  ;;  %v3904_v26 = vld [vmem:[%s4188_s1 + $0x20] sm:$0xff]  }
  0x40   : > { %3311 = vmatprep.subr.bf16.mxu0 %v3571_v27 }
  0x43   : > { %3312 = vmatpush3.bf16.msra.mxu0 %v3571_v27  ;;  %v3910_v27 = vld [vmem:[%s4192_s5] ss:$0 sm:$0xff] }
  0x44   : > { %3373 = vmatprep.subr.bf16.mxu0 %v3600_v24 }
  0x46   : > { %3314 = vmatmul.mubr.msk.bf16.vlgmr.msra.gmra.mrb[0].mxu0 %vm376_vm0, %v3573_v28 }
  0x47   : > { %3374 = vmatpush3.bf16.msra.mxu0 %v3600_v24  ;;  %v2939_v24 = vld [vmem:[%s3730_s16 + $0x38] sm:$0xf] }
  0x48   : > { %3375 = vmatprep.subr.bf16.mxu0 %v3601_v25 }
  0x4b   : > { %3376 = vmatpush3.bf16.msra.mxu0 %v3601_v25  ;;  %v3609_v25 = vld [vmem:[%s4188_s1] sm:$0xff]  }
  0x4c   : > { %3381 = vmatprep.subr.bf16.mxu0 %v3904_v26 }
 0x119   : > { %v3315_v33 = vpop.f32.mrb[0].mxu0 }
 0x11a   : > { %v737_v35 = vmul.f32 %v3315_v33, %v3800_v32  ;;  %v709_v36 = vpop.f32.mrb[1].mxu0 }
 0x11b   : > { %v735_v37 = vmul.f32 %v3800_v32, %v709_v36  ;;  %v3316_v38 = vpop.f32.mrb[2].mxu0 }
 0x11c   : > { %v748_v39 = vadd.f32 %v3805_v34, %v737_v35  ;;  %v738_v40 = vmul.f32 %v3316_v38, %v3800_v32  ;;  %v712_v41 = vpop.f32.mrb[3].mxu0 }
 0x11d   : > { %v746_v42 = vadd.f32 %v3805_v34, %v735_v37  ;;  %v736_v43 = vmul.f32 %v3800_v32, %v712_v41 }
 0x11e   : > { %vm752_vm1 = vcmp.ge.f32.partialorder %v748_v39, 0.0  ;;  %v756_v44 = vmul.f32 0.01, %v748_v39  ;;  %v749_v45 = vadd.f32 %v3805_v34, %v738_v40 }
 0x11f   : > { %v747_v46 = vadd.f32 %v3805_v34, %v736_v43  ;;  %vm750_vm2 = vcmp.ge.f32.partialorder %v746_v42, 0.0  ;;  %v754_v47 = vmul.f32 0.01, %v746_v42 }
 0x120   : > { %v760_v48 = vsel %vm752_vm1, %v748_v39, %v756_v44  ;;  %vm753_vm4 = vcmp.ge.f32.partialorder %v749_v45, 0.0  ;;  %v757_v49 = vmul.f32 0.01, %v749_v45 }
 0x121   : > { %v3127_v51 = vpack.c.bf16 %v760_v48, %v760_v48  ;;  %vm751_vm5 = vcmp.ge.f32.partialorder %v747_v46, 0.0  ;;  %v755_v52 = vmul.f32 0.01, %v747_v46  ;;  %v758_v53 = vsel %vm750_vm2, %v746_v42, %v754_v47 }
 0x122   : > { %v761_v55 = vsel %vm753_vm4, %v749_v45, %v757_v49  ;;  %v3125_v56 = vpack.c.bf16 %v758_v53, %v758_v53 }
 0x123   : > { %781 = vst.msk [vmem:[%s3821_s18 + $0x8] sm:$0xf] %vm778_vm3, %v3127_v51  ;;  %v3128_v57 = vpack.c.bf16 %v761_v55, %v761_v55  ;;  %v759_v58 = vsel %vm751_vm5, %v747_v46, %v755_v52  ;;  %v763_v59 = vpack.c.bf16 %v761_v55, %v760_v48 }
 0x124   : > { %v762_v60 = vpack.c.bf16 %v759_v58, %v758_v53  ;;  %v3126_v61 = vpack.c.bf16 %v759_v58, %v759_v58  ;;  %779 = vst.msk [vmem:[%s3821_s18] sm:$0xf] %vm778_vm3, %v3125_v56 }
 0x125   : > { %782 = vst.msk [vmem:[%s3821_s18 + $0xc] sm:$0xf] %vm778_vm3, %v3128_v57 }
 0x126   : > { %780 = vst.msk [vmem:[%s3821_s18 + $0x4] sm:$0xf] %vm778_vm3, %v3126_v61  ;;  %3321 = vmatprep.mubr.msk.bf16.mxu1 %vm799_vm6, %v762_v60 }
 0x127   : > { %3322 = vmatmul.mubr.msk.bf16.vlgmr.msra.gmra.mrb[0].mxu1 %vm799_vm6, %v763_v59 }
 0x128   : > { %3326 = vmatpush3.bf16.msra.mxu1 %v3576_v31  ;;  %3333 = vmatprep.mubr.msk.bf16.mxu1 %vm376_vm0, %v2855_v62 }
 0x129   : > { %3327 = vmatprep.subr.bf16.mxu1 %v3577_v63 }
 0x12c   : > { %3328 = vmatpush3.bf16.msra.mxu1 %v3577_v63 }
 0x12d   : > { %3329 = vmatprep.subr.bf16.mxu1 %v3578_v0 }
 0x130   : > { %3330 = vmatpush3.bf16.msra.mxu1 %v3578_v0 }
 0x131   : > { %3331 = vmatprep.subr.bf16.mxu1 %v3579_v1 }
 0x134   : > { %3332 = vmatpush3.bf16.msra.mxu1 %v3579_v1 }
 0x135   : > { %3337 = vmatprep.subr.bf16.mxu1 %v3583_v4 }
 0x137   : > { %3334 = vmatmul.mubr.msk.bf16.vlgmr.msra.gmra.mrb[4].mxu1 %vm376_vm0, %v2856_v6 }
 0x138   : > { %3338 = vmatpush3.bf16.msra.mxu1 %v3583_v4  ;;  %3345 = vmatprep.mubr.msk.bf16.mxu1 %vm376_vm0, %v2863_v7  ;;  %v2936_v7 = vld [vmem:[%s3730_s16 + $0x2c] sm:$0xf] }
 0x139   : > { %3339 = vmatprep.subr.bf16.mxu1 %v3584_v8 }
 0x13c   : > { %3340 = vmatpush3.bf16.msra.mxu1 %v3584_v8 }
 0x13d   : > { %3341 = vmatprep.subr.bf16.mxu1 %v3585_v9 }
 0x140   : > { %3342 = vmatpush3.bf16.msra.mxu1 %v3585_v9 }
 0x141   : > { %3343 = vmatprep.subr.bf16.mxu1 %v3586_v10 }
 0x144   : > { %3344 = vmatpush3.bf16.msra.mxu1 %v3586_v10 }
 0x145   : > { %3349 = vmatprep.subr.bf16.mxu1 %v3588_v11 }
 0x147   : > { %3346 = vmatmul.mubr.msk.bf16.vlgmr.msra.gmra.mrb[4].mxu1 %vm376_vm0, %v2864_v12 }
 0x148   : > { %3350 = vmatpush3.bf16.msra.mxu1 %v3588_v11  ;;  %3357 = vmatprep.mubr.msk.bf16.mxu1 %vm376_vm0, %v3592_v13  ;;  %v2937_v11 = vld [vmem:[%s3730_s16 + $0x30] sm:$0xf] }
 0x149   : > { %3351 = vmatprep.subr.bf16.mxu1 %v3589_v14 }
 0x14c   : > { %3352 = vmatpush3.bf16.msra.mxu1 %v3589_v14 }
 0x14d   : > { %3353 = vmatprep.subr.bf16.mxu1 %v3590_v15 }
 0x150   : > { %3354 = vmatpush3.bf16.msra.mxu1 %v3590_v15 }
 0x151   : > { %3355 = vmatprep.subr.bf16.mxu1 %v3591_v16 }
 0x154   : > { %3356 = vmatpush3.bf16.msra.mxu1 %v3591_v16 }
 0x155   : > { %3361 = vmatprep.subr.bf16.mxu1 %v3593_v17 }
 0x157   : > { %3358 = vmatmul.mubr.msk.bf16.vlgmr.msra.gmra.mrb[4].mxu1 %vm376_vm0, %v3594_v18 }
 0x158   : > { %3362 = vmatpush3.bf16.msra.mxu1 %v3593_v17  ;;  %3369 = vmatprep.mubr.msk.bf16.mxu1 %vm376_vm0, %v3598_v19  ;;  %v2948_v19 = vcombine.low %v2936_v7, %v2937_v11 }
 0x159   : > { %3363 = vmatprep.subr.bf16.mxu1 %v3595_v20 }
 0x15c   : > { %3364 = vmatpush3.bf16.msra.mxu1 %v3595_v20  ;;  %v3603_v20 = vld [vmem:[%s4188_s1 + $0x28] sm:$0xff]  }
 0x15d   : > { %3365 = vmatprep.subr.bf16.mxu1 %v3596_v21 }
 0x160   : > { %3366 = vmatpush3.bf16.msra.mxu1 %v3596_v21  ;;  %v3604_v21 = vld [vmem:[%s4188_s1 + $0x30] sm:$0xff]  }
 0x161   : > { %3367 = vmatprep.subr.bf16.mxu1 %v3597_v22 }
 0x164   : > { %3368 = vmatpush3.bf16.msra.mxu1 %v3597_v22  ;;  %v3605_v22 = vld [vmem:[%s4188_s1 + $0x38] sm:$0xff]  }
 0x167   : > { %3370 = vmatmul.mubr.msk.bf16.vlgmr.msra.gmra.mrb[4].mxu1 %vm376_vm0, %v3599_v23  ;;  %v2938_v23 = vld [vmem:[%s3730_s16 + $0x34] sm:$0xf] }
 0x1fa   : > { %v3323_v28 = vpop.f32.mrb[0].mxu1 }
 0x1fb   : > { %v864_v30 = vmul.f32 %v3323_v28, %v3910_v27  ;;  %v840_v31 = vpop.f32.mrb[1].mxu1  ;;  %v2949_v28 = vcombine.low %v2938_v23, %v2939_v24 }
 0x1fc   : > { %v862_v33 = vmul.f32 %v3910_v27, %v840_v31  ;;  %v3324_v35 = vpop.f32.mrb[2].mxu1  ;;  %v3610_v31 = vld [vmem:[%s4188_s1 + $0x8] sm:$0xff]  }
 0x1fd   : > { %v875_v36 = vadd.f32 %v3915_v29, %v864_v30  ;;  %v865_v37 = vmul.f32 %v3324_v35, %v3910_v27  ;;  %v843_v38 = vpop.f32.mrb[3].mxu1  ;;  %v3612_v35 = vld [vmem:[%s4188_s1 + $0x18] sm:$0xff]  }
 0x1fe   : > { %v873_v39 = vadd.f32 %v3915_v29, %v862_v33  ;;  %v863_v40 = vmul.f32 %v3910_v27, %v843_v38  ;;  %v3611_v33 = vld [vmem:[%s4188_s1 + $0x10] sm:$0xff]   ;;  %v3618_v38 = vld [vmem:[%s3730_s16 + $0x3c] sm:$0xff]  }
 0x1ff   : > { %vm879_vm7 = vcmp.ge.f32.partialorder %v875_v36, 0.0  ;;  %v883_v41 = vmul.f32 0.01, %v875_v36  ;;  %v876_v42 = vadd.f32 %v3915_v29, %v865_v37  ;;  %v2957_v37 = vcombine.low %v2937_v11, %v2938_v23 }
 0x200   : > { %vm877_vm8 = vcmp.ge.f32.partialorder %v873_v39, 0.0  ;;  %v881_v43 = vmul.f32 0.01, %v873_v39  ;;  %v874_v44 = vadd.f32 %v3915_v29, %v863_v40  ;;  %v3616_v40 = vld [vmem:[%s4188_s1 + $0x50] sm:$0xff]  }
 0x201   : > { %v887_v45 = vsel %vm879_vm7, %v875_v36, %v883_v41  ;;  %vm880_vm9 = vcmp.ge.f32.partialorder %v876_v42, 0.0  ;;  %v884_v46 = vmul.f32 0.01, %v876_v42  ;;  %v3614_v36 = vld [vmem:[%s4188_s1 + $0x40] sm:$0xff]   ;;  %v3617_v41 = vld [vmem:[%s4188_s1 + $0x58] sm:$0xff]  }
 0x202   : > { %v3131_v47 = vpack.c.bf16 %v887_v45, %v887_v45  ;;  %v885_v48 = vsel %vm877_vm8, %v873_v39, %v881_v43  ;;  %vm878_vm10 = vcmp.ge.f32.partialorder %v874_v44, 0.0  ;;  %v882_v49 = vmul.f32 0.01, %v874_v44  ;;  %v3615_v39 = vld [vmem:[%s4188_s1 + $0x48] sm:$0xff]  }
 0x203   : > { %v3129_v50 = vpack.c.bf16 %v885_v48, %v885_v48  ;;  %v888_v51 = vsel %vm880_vm9, %v876_v42, %v884_v46  ;;  %v3619_v42 = vld [vmem:[%s4188_s1 + $0x60] sm:$0xff]   ;;  %v3621_v45 = vld [vmem:[%s4188_s1 + $0x68] sm:$0xff]   ;;  %v3622_v46 = vld [vmem:[%s4188_s1 + $0x70] sm:$0xff]  }
 0x204   : > { %907 = vst.msk [vmem:[%s3930_s29 + $0x8] sm:$0xf] %vm778_vm3, %v3131_v47  ;;  %v3132_v52 = vpack.c.bf16 %v888_v51, %v888_v51  ;;  %v886_v53 = vsel %vm878_vm10, %v874_v44, %v882_v49  ;;  %v3620_v43 = vld [vmem:[%s3730_s16 + $0x44] sm:$0xff]   ;;  %v3623_v47 = vld [vmem:[%s4188_s1 + $0x78] sm:$0xff]  }
 0x205   : > { %905 = vst.msk [vmem:[%s3930_s29] sm:$0xf] %vm778_vm3, %v3129_v50  ;;  %v3130_v54 = vpack.c.bf16 %v886_v53, %v886_v53  ;;  %v3624_v44 = vld [vmem:[%s3730_s16 + $0x40] sm:$0xff]   ;;  %v3625_v48 = vld [vmem:[%s3730_s16 + $0x48] sm:$0xff]  }
 0x206   : > { %908 = vst.msk [vmem:[%s3930_s29 + $0xc] sm:$0xf] %vm778_vm3, %v3132_v52  ;;  %v3626_v49 = vld [vmem:[%s4191_s4] sm:$0xff]   ;;  %v3627_v50 = vld [vmem:[%s4191_s4 + $0x8] sm:$0xff]  }
 0x207   : > { %906 = vst.msk [vmem:[%s3930_s29 + $0x4] sm:$0xf] %vm778_vm3, %v3130_v54  ;;  %3429 = vmatprep.subr.bf16.mxu1 %v3626_v49  ;;  %v4030_v51 = vld [vmem:[%s4188_s1 + $0x20] sm:$0xff]  }
 0x208   : > { %3430 = vmatpush3.bf16.msra.mxu1 %v3626_v49  ;;  %v3028_v49 = vld [vmem:[%s3730_s16 + $0x3c] sm:$0xf] }
 0x209   : > { %3431 = vmatprep.subr.bf16.mxu1 %v3627_v50 }
 0x20c   : > { %3432 = vmatpush3.bf16.msra.mxu1 %v3627_v50 }
 0x20d   : > { %3437 = vmatprep.subr.bf16.mxu1 %v4030_v51 }
 0x23a   : > { %v3371_v55 = vpop.f32.mrb[4].mxu1 }
 0x23b   : > { %v1322_v56 = vmul.f32 %v3371_v55, %v3800_v32  ;;  %v1294_v57 = vpop.f32.mrb[5].mxu1 }
 0x23c   : > { %v1320_v58 = vmul.f32 %v3800_v32, %v1294_v57  ;;  %v3372_v59 = vpop.f32.mrb[6].mxu1 }
 0x23d   : > { %v1333_v60 = vadd.f32 %v3805_v34, %v1322_v56  ;;  %v1323_v61 = vmul.f32 %v3372_v59, %v3800_v32  ;;  %v1297_v62 = vpop.f32.mrb[7].mxu1 }
 0x23e   : > { %v1331_v63 = vadd.f32 %v3805_v34, %v1320_v58  ;;  %v1321_v0 = vmul.f32 %v3800_v32, %v1297_v62 }
 0x23f   : > { %vm1337_vm11 = vcmp.ge.f32.partialorder %v1333_v60, 0.0  ;;  %v1341_v1 = vmul.f32 0.01, %v1333_v60  ;;  %v1334_v2 = vadd.f32 %v3805_v34, %v1323_v61 }
 0x240   : > { %vm1335_vm12 = vcmp.ge.f32.partialorder %v1331_v63, 0.0  ;;  %v1339_v3 = vmul.f32 0.01, %v1331_v63  ;;  %v1332_v4 = vadd.f32 %v3805_v34, %v1321_v0 }
 0x241   : > { %v1345_v5 = vsel %vm1337_vm11, %v1333_v60, %v1341_v1  ;;  %vm1338_vm13 = vcmp.ge.f32.partialorder %v1334_v2, 0.0  ;;  %v1342_v6 = vmul.f32 0.01, %v1334_v2 }
 0x242   : > { %v3135_v8 = vpack.c.bf16 %v1345_v5, %v1345_v5  ;;  %v1343_v9 = vsel %vm1335_vm12, %v1331_v63, %v1339_v3  ;;  %vm1336_vm14 = vcmp.ge.f32.partialorder %v1332_v4, 0.0  ;;  %v1340_v10 = vmul.f32 0.01, %v1332_v4 }
 0x243   : > { %v3133_v12 = vpack.c.bf16 %v1343_v9, %v1343_v9  ;;  %v1346_v13 = vsel %vm1338_vm13, %v1334_v2, %v1342_v6 }
 0x244   : > { %2919 = vst.msk [vmem:[%s3821_s18 + $0x18] sm:$0xf] %vm778_vm3, %v3135_v8  ;;  %v1348_v14 = vpack.c.bf16 %v1346_v13, %v1345_v5  ;;  %v3136_v15 = vpack.c.bf16 %v1346_v13, %v1346_v13  ;;  %v1344_v16 = vsel %vm1336_vm14, %v1332_v4, %v1340_v10 }
 0x245   : > { %2917 = vst.msk [vmem:[%s3821_s18 + $0x10] sm:$0xf] %vm778_vm3, %v3133_v12  ;;  %v3134_v17 = vpack.c.bf16 %v1344_v16, %v1344_v16  ;;  %v1347_v18 = vpack.c.bf16 %v1344_v16, %v1343_v9 }
 0x246   : > { %2920 = vst.msk [vmem:[%s3821_s18 + $0x1c] sm:$0xf] %vm778_vm3, %v3136_v15 }
 0x247   : > { %2918 = vst.msk [vmem:[%s3821_s18 + $0x14] sm:$0xf] %vm778_vm3, %v3134_v17  ;;  %3377 = vmatprep.mubr.msk.bf16.mxu0 %vm799_vm6, %v1347_v18 }
 0x248   : > { %3378 = vmatmul.mubr.msk.bf16.vlgmr.msra.gmra.mrb[4].mxu0 %vm799_vm6, %v1348_v14 }
 0x249   : > { %3382 = vmatpush3.bf16.msra.mxu0 %v3904_v26  ;;  %3389 = vmatprep.mubr.msk.bf16.mxu0 %vm376_vm0, %v2948_v19  ;;  %v2935_v26 = vld [vmem:[%s3730_s16 + $0x28] sm:$0xf] }
 0x24a   : > { %3383 = vmatprep.subr.bf16.mxu0 %v3603_v20  ;;  %v2956_v30 = vcombine.low %v2935_v26, %v2936_v7 }
 0x24d   : > { %3384 = vmatpush3.bf16.msra.mxu0 %v3603_v20 }
 0x24e   : > { %3385 = vmatprep.subr.bf16.mxu0 %v3604_v21 }
 0x251   : > { %3386 = vmatpush3.bf16.msra.mxu0 %v3604_v21 }
 0x252   : > { %3387 = vmatprep.subr.bf16.mxu0 %v3605_v22 }
 0x255   : > { %3388 = vmatpush3.bf16.msra.mxu0 %v3605_v22 }
 0x256   : > { %3393 = vmatprep.subr.bf16.mxu0 %v3609_v25 }
 0x258   : > { %3390 = vmatmul.mubr.msk.bf16.vlgmr.msra.gmra.mrb[8].mxu0 %vm376_vm0, %v2949_v28 }
 0x259   : > { %3394 = vmatpush3.bf16.msra.mxu0 %v3609_v25  ;;  %3401 = vmatprep.mubr.msk.bf16.mxu0 %vm376_vm0, %v2956_v30  ;;  %v3029_v30 = vld [vmem:[%s3730_s16 + $0x40] sm:$0xf] }
 0x25a   : > { %3395 = vmatprep.subr.bf16.mxu0 %v3610_v31 }
 0x25d   : > { %3396 = vmatpush3.bf16.msra.mxu0 %v3610_v31 }
 0x25e   : > { %3397 = vmatprep.subr.bf16.mxu0 %v3611_v33 }
 0x261   : > { %3398 = vmatpush3.bf16.msra.mxu0 %v3611_v33 }
 0x262   : > { %3399 = vmatprep.subr.bf16.mxu0 %v3612_v35 }
 0x265   : > { %3400 = vmatpush3.bf16.msra.mxu0 %v3612_v35  ;;  %v3030_v35 = vld [vmem:[%s3730_s16 + $0x44] sm:$0xf] }
 0x266   : > { %3405 = vmatprep.subr.bf16.mxu0 %v3614_v36 }
 0x268   : > { %3402 = vmatmul.mubr.msk.bf16.vlgmr.msra.gmra.mrb[8].mxu0 %vm376_vm0, %v2957_v37 }
 0x269   : > { %3406 = vmatpush3.bf16.msra.mxu0 %v3614_v36  ;;  %3413 = vmatprep.mubr.msk.bf16.mxu0 %vm376_vm0, %v3618_v38 }
 0x26a   : > { %3407 = vmatprep.subr.bf16.mxu0 %v3615_v39 }
 0x26d   : > { %3408 = vmatpush3.bf16.msra.mxu0 %v3615_v39 }
 0x26e   : > { %3409 = vmatprep.subr.bf16.mxu0 %v3616_v40 }
 0x271   : > { %3410 = vmatpush3.bf16.msra.mxu0 %v3616_v40 }
 0x272   : > { %3411 = vmatprep.subr.bf16.mxu0 %v3617_v41 }
 0x275   : > { %3412 = vmatpush3.bf16.msra.mxu0 %v3617_v41 }
 0x276   : > { %3417 = vmatprep.subr.bf16.mxu0 %v3619_v42 }
 0x278   : > { %3414 = vmatmul.mubr.msk.bf16.vlgmr.msra.gmra.mrb[8].mxu0 %vm376_vm0, %v3620_v43  ;;  %v3629_v43 = vld [vmem:[%s4188_s1 + $0x28] sm:$0xff]  }
 0x279   : > { %3418 = vmatpush3.bf16.msra.mxu0 %v3619_v42  ;;  %3425 = vmatprep.mubr.msk.bf16.mxu0 %vm376_vm0, %v3624_v44  ;;  %v3041_v42 = vcombine.low %v3029_v30, %v3030_v35  ;;  %v3630_v44 = vld [vmem:[%s4188_s1 + $0x30] sm:$0xff]  }
 0x27a   : > { %3419 = vmatprep.subr.bf16.mxu0 %v3621_v45 }
 0x27d   : > { %3420 = vmatpush3.bf16.msra.mxu0 %v3621_v45  ;;  %v3631_v45 = vld [vmem:[%s4188_s1 + $0x38] sm:$0xff]  }
 0x27e   : > { %3421 = vmatprep.subr.bf16.mxu0 %v3622_v46 }
 0x281   : > { %3422 = vmatpush3.bf16.msra.mxu0 %v3622_v46  ;;  %v3031_v46 = vld [vmem:[%s3730_s16 + $0x48] sm:$0xf] }
 0x282   : > { %3423 = vmatprep.subr.bf16.mxu0 %v3623_v47 }
 0x285   : > { %3424 = vmatpush3.bf16.msra.mxu0 %v3623_v47  ;;  %v3032_v47 = vld [vmem:[%s3730_s16 + $0x4c] sm:$0xf] }
 0x286   : > { %v3042_v50 = vcombine.low %v3031_v46, %v3032_v47 }
 0x288   : > { %3426 = vmatmul.mubr.msk.bf16.vlgmr.msra.gmra.mrb[8].mxu0 %vm376_vm0, %v3625_v48  ;;  %v3635_v48 = vld [vmem:[%s4188_s1] sm:$0xff]  }
 0x31b   : > { %v3379_v52 = vpop.f32.mrb[4].mxu0 }
 0x31c   : > { %v1448_v53 = vmul.f32 %v3379_v52, %v3910_v27  ;;  %v1424_v54 = vpop.f32.mrb[5].mxu0  ;;  %v3636_v52 = vld [vmem:[%s4188_s1 + $0x8] sm:$0xff]  }
 0x31d   : > { %v1446_v55 = vmul.f32 %v3910_v27, %v1424_v54  ;;  %v3380_v56 = vpop.f32.mrb[6].mxu0  ;;  %v3638_v54 = vld [vmem:[%s4188_s1 + $0x18] sm:$0xff]  }
 0x31e   : > { %v1459_v57 = vadd.f32 %v3915_v29, %v1448_v53  ;;  %v1449_v58 = vmul.f32 %v3380_v56, %v3910_v27  ;;  %v1427_v59 = vpop.f32.mrb[7].mxu0  ;;  %v3637_v53 = vld [vmem:[%s4188_s1 + $0x10] sm:$0xff]   ;;  %v3050_v56 = vcombine.low %v3030_v35, %v3031_v46  ;;  %v3098_v35 = vld [vmem:[%s4190_s3] ss:$0 sm:$0xff] }
 0x31f   : > { %v1457_v60 = vadd.f32 %v3915_v29, %v1446_v55  ;;  %v1447_v61 = vmul.f32 %v3910_v27, %v1427_v59  ;;  %v3640_v55 = vld [vmem:[%s4188_s1 + $0x40] sm:$0xff]   ;;  %v3642_v59 = vld [vmem:[%s4188_s1 + $0x50] sm:$0xff]  }
 0x320   : > { %vm1463_vm15 = vcmp.ge.f32.partialorder %v1459_v57, 0.0  ;;  %v1467_v62 = vmul.f32 0.01, %v1459_v57  ;;  %v1460_v63 = vadd.f32 %v3915_v29, %v1449_v58  ;;  %v3641_v58 = vld [vmem:[%s4188_s1 + $0x48] sm:$0xff]  }
 0x321   : > { %vm1461_vm1 = vcmp.ge.f32.partialorder %v1457_v60, 0.0  ;;  %v1465_v0 = vmul.f32 0.01, %v1457_v60  ;;  %v1458_v1 = vadd.f32 %v3915_v29, %v1447_v61  ;;  %v3645_v61 = vld [vmem:[%s4188_s1 + $0x60] sm:$0xff]  }
 0x322   : > { %v1471_v2 = vsel %vm1463_vm15, %v1459_v57, %v1467_v62  ;;  %vm1464_vm2 = vcmp.ge.f32.partialorder %v1460_v63, 0.0  ;;  %v1468_v3 = vmul.f32 0.01, %v1460_v63  ;;  %v3644_v57 = vld [vmem:[%s3730_s16 + $0x50] sm:$0xff]   ;;  %v3646_v62 = vld [vmem:[%s3730_s16 + $0x58] sm:$0xff]  }
 0x323   : > { %v3139_v4 = vpack.c.bf16 %v1471_v2, %v1471_v2  ;;  %v1469_v5 = vsel %vm1461_vm1, %v1457_v60, %v1465_v0  ;;  %vm1462_vm4 = vcmp.ge.f32.partialorder %v1458_v1, 0.0  ;;  %v1466_v6 = vmul.f32 0.01, %v1458_v1  ;;  %v3643_v60 = vld [vmem:[%s4188_s1 + $0x58] sm:$0xff]   ;;  %v3647_v0 = vld [vmem:[%s4188_s1 + $0x68] sm:$0xff]  }
 0x324   : > { %v3137_v7 = vpack.c.bf16 %v1469_v5, %v1469_v5  ;;  %v1472_v8 = vsel %vm1464_vm2, %v1460_v63, %v1468_v3  ;;  %v3650_v63 = vld [vmem:[%s3730_s16 + $0x54] sm:$0xff]   ;;  %v3651_v3 = vld [vmem:[%s3730_s16 + $0x5c] sm:$0xff]   ;;  %v3653_v5 = vld [vmem:[%s4191_s4 + $0x8] sm:$0xff]  }
 0x325   : > { %2933 = vst.msk [vmem:[%s3930_s29 + $0x18] sm:$0xf] %vm778_vm3, %v3139_v4  ;;  %v3140_v9 = vpack.c.bf16 %v1472_v8, %v1472_v8  ;;  %v1470_v10 = vsel %vm1462_vm4, %v1458_v1, %v1466_v6  ;;  %v3648_v1 = vld [vmem:[%s4188_s1 + $0x70] sm:$0xff]   ;;  %v3649_v2 = vld [vmem:[%s4188_s1 + $0x78] sm:$0xff]   ;;  %v3652_v4 = vld [vmem:[%s4191_s4] sm:$0xff]  }
 0x326   : > { %2931 = vst.msk [vmem:[%s3930_s29 + $0x10] sm:$0xf] %vm778_vm3, %v3137_v7  ;;  %v3138_v11 = vpack.c.bf16 %v1470_v10, %v1470_v10  ;;  %3485 = vmatprep.subr.bf16.mxu0 %v3652_v4 }
 0x327   : > { %2934 = vst.msk [vmem:[%s3930_s29 + $0x1c] sm:$0xf] %vm778_vm3, %v3140_v9  ;;  %3486 = vmatpush3.bf16.msra.mxu0 %v3652_v4 }
 0x328   : > { %2932 = vst.msk [vmem:[%s3930_s29 + $0x14] sm:$0xf] %vm778_vm3, %v3138_v11  ;;  %3487 = vmatprep.subr.bf16.mxu0 %v3653_v5 }
 0x32b   : > { %3488 = vmatpush3.bf16.msra.mxu0 %v3653_v5 }
 0x35b   : > { %v3427_v12 = vpop.f32.mrb[8].mxu0 }
 0x35c   : > { %v1907_v13 = vmul.f32 %v3427_v12, %v3800_v32  ;;  %v1879_v14 = vpop.f32.mrb[9].mxu0 }
 0x35d   : > { %v1905_v15 = vmul.f32 %v3800_v32, %v1879_v14  ;;  %v3428_v16 = vpop.f32.mrb[10].mxu0 }
 0x35e   : > { %v1918_v17 = vadd.f32 %v3805_v34, %v1907_v13  ;;  %v1908_v18 = vmul.f32 %v3428_v16, %v3800_v32  ;;  %v1882_v19 = vpop.f32.mrb[11].mxu0 }
 0x35f   : > { %v1916_v20 = vadd.f32 %v3805_v34, %v1905_v15  ;;  %v1906_v21 = vmul.f32 %v3800_v32, %v1882_v19 }
 0x360   : > { %vm1922_vm5 = vcmp.ge.f32.partialorder %v1918_v17, 0.0  ;;  %v1926_v22 = vmul.f32 0.01, %v1918_v17  ;;  %v1919_v23 = vadd.f32 %v3805_v34, %v1908_v18 }
 0x361   : > { %vm1920_vm7 = vcmp.ge.f32.partialorder %v1916_v20, 0.0  ;;  %v1924_v24 = vmul.f32 0.01, %v1916_v20  ;;  %v1917_v25 = vadd.f32 %v3805_v34, %v1906_v21 }
 0x362   : > { %v1930_v26 = vsel %vm1922_vm5, %v1918_v17, %v1926_v22  ;;  %vm1923_vm8 = vcmp.ge.f32.partialorder %v1919_v23, 0.0  ;;  %v1927_v28 = vmul.f32 0.01, %v1919_v23 }
 0x363   : > { %v3143_v31 = vpack.c.bf16 %v1930_v26, %v1930_v26  ;;  %v1928_v33 = vsel %vm1920_vm7, %v1916_v20, %v1924_v24  ;;  %vm1921_vm9 = vcmp.ge.f32.partialorder %v1917_v25, 0.0  ;;  %v1925_v32 = vmul.f32 0.01, %v1917_v25 }
 0x364   : > { %v3141_v36 = vpack.c.bf16 %v1928_v33, %v1928_v33  ;;  %v1931_v37 = vsel %vm1923_vm8, %v1919_v23, %v1927_v28 }
 0x365   : > { %3012 = vst.msk [vmem:[%s3821_s18 + $0x28] sm:$0xf] %vm778_vm3, %v3143_v31  ;;  %v1933_v38 = vpack.c.bf16 %v1931_v37, %v1930_v26  ;;  %v3144_v39 = vpack.c.bf16 %v1931_v37, %v1931_v37  ;;  %v1929_v40 = vsel %vm1921_vm9, %v1917_v25, %v1925_v32 }
 0x366   : > { %3010 = vst.msk [vmem:[%s3821_s18 + $0x20] sm:$0xf] %vm778_vm3, %v3141_v36  ;;  %v3142_v34 = vpack.c.bf16 %v1929_v40, %v1929_v40  ;;  %v1932_v41 = vpack.c.bf16 %v1929_v40, %v1928_v33  ;;  %v3097_v33 = vld [vmem:[%s4189_s2] ss:$0 sm:$0xff] }
 0x367   : > { %3013 = vst.msk [vmem:[%s3821_s18 + $0x2c] sm:$0xf] %vm778_vm3, %v3144_v39 }
 0x368   : > { %3011 = vst.msk [vmem:[%s3821_s18 + $0x24] sm:$0xf] %vm778_vm3, %v3142_v34  ;;  %3433 = vmatprep.mubr.msk.bf16.mxu1 %vm799_vm6, %v1932_v41 }
 0x369   : > { %3434 = vmatmul.mubr.msk.bf16.vlgmr.msra.gmra.mrb[8].mxu1 %vm799_vm6, %v1933_v38 }
 0x36a   : > { %3438 = vmatpush3.bf16.msra.mxu1 %v4030_v51  ;;  %3445 = vmatprep.mubr.msk.bf16.mxu1 %vm376_vm0, %v3041_v42  ;;  %v3049_v51 = vcombine.low %v3028_v49, %v3029_v30 }
 0x36b   : > { %3439 = vmatprep.subr.bf16.mxu1 %v3629_v43 }
 0x36e   : > { %3440 = vmatpush3.bf16.msra.mxu1 %v3629_v43 }
 0x36f   : > { %3441 = vmatprep.subr.bf16.mxu1 %v3630_v44 }
 0x372   : > { %3442 = vmatpush3.bf16.msra.mxu1 %v3630_v44 }
 0x373   : > { %3443 = vmatprep.subr.bf16.mxu1 %v3631_v45 }
 0x376   : > { %3444 = vmatpush3.bf16.msra.mxu1 %v3631_v45 }
 0x377   : > { %3449 = vmatprep.subr.bf16.mxu1 %v3635_v48 }
 0x379   : > { %3446 = vmatmul.mubr.msk.bf16.vlgmr.msra.gmra.mrb[12].mxu1 %vm376_vm0, %v3042_v50 }
 0x37a   : > { %3450 = vmatpush3.bf16.msra.mxu1 %v3635_v48  ;;  %3457 = vmatprep.mubr.msk.bf16.mxu1 %vm376_vm0, %v3049_v51 }
 0x37b   : > { %3451 = vmatprep.subr.bf16.mxu1 %v3636_v52 }
 0x37e   : > { %3452 = vmatpush3.bf16.msra.mxu1 %v3636_v52 }
 0x37f   : > { %3453 = vmatprep.subr.bf16.mxu1 %v3637_v53 }
 0x382   : > { %3454 = vmatpush3.bf16.msra.mxu1 %v3637_v53 }
 0x383   : > { %3455 = vmatprep.subr.bf16.mxu1 %v3638_v54 }
 0x386   : > { %3456 = vmatpush3.bf16.msra.mxu1 %v3638_v54 }
 0x387   : > { %3461 = vmatprep.subr.bf16.mxu1 %v3640_v55 }
 0x389   : > { %3458 = vmatmul.mubr.msk.bf16.vlgmr.msra.gmra.mrb[12].mxu1 %vm376_vm0, %v3050_v56 }
 0x38a   : > { %3462 = vmatpush3.bf16.msra.mxu1 %v3640_v55  ;;  %3469 = vmatprep.mubr.msk.bf16.mxu1 %vm376_vm0, %v3644_v57 }
 0x38b   : > { %3463 = vmatprep.subr.bf16.mxu1 %v3641_v58 }
 0x38e   : > { %3464 = vmatpush3.bf16.msra.mxu1 %v3641_v58 }
 0x38f   : > { %3465 = vmatprep.subr.bf16.mxu1 %v3642_v59 }
 0x392   : > { %3466 = vmatpush3.bf16.msra.mxu1 %v3642_v59 }
 0x393   : > { %3467 = vmatprep.subr.bf16.mxu1 %v3643_v60 }
 0x396   : > { %3468 = vmatpush3.bf16.msra.mxu1 %v3643_v60 }
 0x397   : > { %3473 = vmatprep.subr.bf16.mxu1 %v3645_v61 }
 0x399   : > { %3470 = vmatmul.mubr.msk.bf16.vlgmr.msra.gmra.mrb[12].mxu1 %vm376_vm0, %v3646_v62 }
 0x39a   : > { %3474 = vmatpush3.bf16.msra.mxu1 %v3645_v61  ;;  %3481 = vmatprep.mubr.msk.bf16.mxu1 %vm376_vm0, %v3650_v63 }
 0x39b   : > { %3475 = vmatprep.subr.bf16.mxu1 %v3647_v0 }
 0x39e   : > { %3476 = vmatpush3.bf16.msra.mxu1 %v3647_v0 }
 0x39f   : > { %3477 = vmatprep.subr.bf16.mxu1 %v3648_v1 }
 0x3a2   : > { %3478 = vmatpush3.bf16.msra.mxu1 %v3648_v1 }
 0x3a3   : > { %3479 = vmatprep.subr.bf16.mxu1 %v3649_v2 }
 0x3a6   : > { %3480 = vmatpush3.bf16.msra.mxu1 %v3649_v2 }
 0x3a9   : > { %3482 = vmatmul.mubr.msk.bf16.vlgmr.msra.gmra.mrb[12].mxu1 %vm376_vm0, %v3651_v3 }
 0x43c   : > { %v3435_v6 = vpop.f32.mrb[8].mxu1 }
 0x43d   : > { %v2033_v7 = vmul.f32 %v3435_v6, %v3910_v27  ;;  %v2009_v8 = vpop.f32.mrb[9].mxu1 }
 0x43e   : > { %v2031_v9 = vmul.f32 %v3910_v27, %v2009_v8  ;;  %v3436_v10 = vpop.f32.mrb[10].mxu1 }
 0x43f   : > { %v2044_v11 = vadd.f32 %v3915_v29, %v2033_v7  ;;  %v2034_v12 = vmul.f32 %v3436_v10, %v3910_v27  ;;  %v2012_v13 = vpop.f32.mrb[11].mxu1 }
 0x440   : > { %v2042_v14 = vadd.f32 %v3915_v29, %v2031_v9  ;;  %v2032_v15 = vmul.f32 %v3910_v27, %v2012_v13 }
 0x441   : > { %vm2048_vm0 = vcmp.ge.f32.partialorder %v2044_v11, 0.0  ;;  %v2052_v16 = vmul.f32 0.01, %v2044_v11  ;;  %v2045_v17 = vadd.f32 %v3915_v29, %v2034_v12 }
 0x442   : > { %vm2046_vm10 = vcmp.ge.f32.partialorder %v2042_v14, 0.0  ;;  %v2050_v18 = vmul.f32 0.01, %v2042_v14  ;;  %v2043_v19 = vadd.f32 %v3915_v29, %v2032_v15 }
 0x443   : > { %v2056_v20 = vsel %vm2048_vm0, %v2044_v11, %v2052_v16  ;;  %vm2049_vm11 = vcmp.ge.f32.partialorder %v2045_v17, 0.0  ;;  %v2053_v21 = vmul.f32 0.01, %v2045_v17 }
 0x444   : > { %v3147_v22 = vpack.c.bf16 %v2056_v20, %v2056_v20  ;;  %v2054_v23 = vsel %vm2046_vm10, %v2042_v14, %v2050_v18  ;;  %vm2047_vm12 = vcmp.ge.f32.partialorder %v2043_v19, 0.0  ;;  %v2051_v24 = vmul.f32 0.01, %v2043_v19 }
 0x445   : > { %v3145_v25 = vpack.c.bf16 %v2054_v23, %v2054_v23  ;;  %v2057_v26 = vsel %vm2049_vm11, %v2045_v17, %v2053_v21 }
 0x446   : > { %3026 = vst.msk [vmem:[%s3930_s29 + $0x28] sm:$0xf] %vm778_vm3, %v3147_v22  ;;  %v3148_v28 = vpack.c.bf16 %v2057_v26, %v2057_v26  ;;  %v2055_v30 = vsel %vm2047_vm12, %v2043_v19, %v2051_v24 }
 0x447   : > { %3024 = vst.msk [vmem:[%s3930_s29 + $0x20] sm:$0xf] %vm778_vm3, %v3145_v25  ;;  %v3146_v31 = vpack.c.bf16 %v2055_v30, %v2055_v30 }
 0x448   : > { %3027 = vst.msk [vmem:[%s3930_s29 + $0x2c] sm:$0xf] %vm778_vm3, %v3148_v28 }
 0x449   : > { %3025 = vst.msk [vmem:[%s3930_s29 + $0x24] sm:$0xf] %vm778_vm3, %v3146_v31 }
 0x47c   : > { %v3483_v32 = vpop.f32.mrb[12].mxu1 }
 0x47d   : > { %v2492_v36 = vmul.f32 %v3483_v32, %v3097_v33  ;;  %v2464_v37 = vpop.f32.mrb[13].mxu1 }
 0x47e   : > { %v2490_v38 = vmul.f32 %v3097_v33, %v2464_v37  ;;  %v3484_v39 = vpop.f32.mrb[14].mxu1 }
 0x47f   : > { %v2503_v40 = vadd.f32 %v3098_v35, %v2492_v36  ;;  %v2493_v34 = vmul.f32 %v3484_v39, %v3097_v33  ;;  %v2467_v41 = vpop.f32.mrb[15].mxu1 }
 0x480   : > { %v2501_v42 = vadd.f32 %v3098_v35, %v2490_v38  ;;  %v2491_v43 = vmul.f32 %v3097_v33, %v2467_v41 }
 0x481   : > { %vm2507_vm13 = vcmp.ge.f32.partialorder %v2503_v40, 0.0  ;;  %v2511_v44 = vmul.f32 0.01, %v2503_v40  ;;  %v2504_v45 = vadd.f32 %v3098_v35, %v2493_v34 }
 0x482   : > { %vm2505_vm14 = vcmp.ge.f32.partialorder %v2501_v42, 0.0  ;;  %v2509_v46 = vmul.f32 0.01, %v2501_v42  ;;  %v2502_v47 = vadd.f32 %v3098_v35, %v2491_v43 }
 0x483   : > { %v2515_v48 = vsel %vm2507_vm13, %v2503_v40, %v2511_v44  ;;  %vm2508_vm15 = vcmp.ge.f32.partialorder %v2504_v45, 0.0  ;;  %v2512_v49 = vmul.f32 0.01, %v2504_v45 }
 0x484   : > { %v3151_v50 = vpack.c.bf16 %v2515_v48, %v2515_v48  ;;  %v2513_v51 = vsel %vm2505_vm14, %v2501_v42, %v2509_v46  ;;  %vm2506_vm1 = vcmp.ge.f32.partialorder %v2502_v47, 0.0  ;;  %v2510_v52 = vmul.f32 0.01, %v2502_v47 }
 0x485   : > { %v3149_v53 = vpack.c.bf16 %v2513_v51, %v2513_v51  ;;  %v2516_v54 = vsel %vm2508_vm15, %v2504_v45, %v2512_v49 }
 0x486   : > { %3105 = vst.msk [vmem:[%s3821_s18 + $0x38] sm:$0xf] %vm778_vm3, %v3151_v50  ;;  %v2518_v55 = vpack.c.bf16 %v2516_v54, %v2515_v48  ;;  %v3152_v56 = vpack.c.bf16 %v2516_v54, %v2516_v54  ;;  %v2514_v57 = vsel %vm2506_vm1, %v2502_v47, %v2510_v52 }
 0x487   : > { %3103 = vst.msk [vmem:[%s3821_s18 + $0x30] sm:$0xf] %vm778_vm3, %v3149_v53  ;;  %v3150_v58 = vpack.c.bf16 %v2514_v57, %v2514_v57  ;;  %v2517_v59 = vpack.c.bf16 %v2514_v57, %v2513_v51 }
 0x488   : > { %3106 = vst.msk [vmem:[%s3821_s18 + $0x3c] sm:$0xf] %vm778_vm3, %v3152_v56 }
 0x489   : > { %3104 = vst.msk [vmem:[%s3821_s18 + $0x34] sm:$0xf] %vm778_vm3, %v3150_v58  ;;  %3489 = vmatprep.mubr.msk.bf16.mxu0 %vm799_vm6, %v2517_v59 }
 0x48a   : > { %3490 = vmatmul.mubr.msk.bf16.vlgmr.msra.gmra.mrb[12].mxu0 %vm799_vm6, %v2518_v55 }
 0x55d   : > { %v3491_v60 = vpop.f32.mrb[12].mxu0 }
 0x55e   : > { %v2618_v61 = vmul.f32 %v3491_v60, %v3910_v27  ;;  %v2594_v62 = vpop.f32.mrb[13].mxu0 }
 0x55f   : > { %v2616_v63 = vmul.f32 %v3910_v27, %v2594_v62  ;;  %v3492_v0 = vpop.f32.mrb[14].mxu0 }
 0x560   : > { %v2629_v1 = vadd.f32 %v3915_v29, %v2618_v61  ;;  %v2619_v2 = vmul.f32 %v3492_v0, %v3910_v27  ;;  %v2597_v3 = vpop.f32.mrb[15].mxu0 }
 0x561   : > { %v2627_v4 = vadd.f32 %v3915_v29, %v2616_v63  ;;  %v2617_v5 = vmul.f32 %v3910_v27, %v2597_v3 }
 0x562   : > { %vm2633_vm2 = vcmp.ge.f32.partialorder %v2629_v1, 0.0  ;;  %v2637_v6 = vmul.f32 0.01, %v2629_v1  ;;  %v2630_v7 = vadd.f32 %v3915_v29, %v2619_v2 }
 0x563   : > { %vm2631_vm6 = vcmp.ge.f32.partialorder %v2627_v4, 0.0  ;;  %v2635_v8 = vmul.f32 0.01, %v2627_v4  ;;  %v2628_v9 = vadd.f32 %v3915_v29, %v2617_v5 }
 0x564   : > { %v2641_v10 = vsel %vm2633_vm2, %v2629_v1, %v2637_v6  ;;  %vm2634_vm4 = vcmp.ge.f32.partialorder %v2630_v7, 0.0  ;;  %v2638_v11 = vmul.f32 0.01, %v2630_v7 }
 0x565   : > { %v3155_v12 = vpack.c.bf16 %v2641_v10, %v2641_v10  ;;  %v2639_v13 = vsel %vm2631_vm6, %v2627_v4, %v2635_v8  ;;  %vm2632_vm5 = vcmp.ge.f32.partialorder %v2628_v9, 0.0  ;;  %v2636_v14 = vmul.f32 0.01, %v2628_v9 }
 0x566   : > { %v3153_v27 = vpack.c.bf16 %v2639_v13, %v2639_v13  ;;  %v2642_v15 = vsel %vm2634_vm4, %v2630_v7, %v2638_v11 }
 0x567   : > { %3119 = vst.msk [vmem:[%s3930_s29 + $0x38] sm:$0xf] %vm778_vm3, %v3155_v12  ;;  %v3156_v16 = vpack.c.bf16 %v2642_v15, %v2642_v15  ;;  %v2640_v17 = vsel %vm2632_vm5, %v2628_v9, %v2636_v14 }
 0x568   : > { %3117 = vst.msk [vmem:[%s3930_s29 + $0x30] sm:$0xf] %vm778_vm3, %v3153_v27  ;;  %v3154_v18 = vpack.c.bf16 %v2640_v17, %v2640_v17 }
 0x569   : > { %3120 = vst.msk [vmem:[%s3930_s29 + $0x3c] sm:$0xf] %vm778_vm3, %v3156_v16 }
 0x56a   : > { %3118 = vst.msk [vmem:[%s3930_s29 + $0x34] sm:$0xf] %vm778_vm3, %v3154_v18 }
 0x56b PF: > { %s19_s27 = sadd.s32 1, %s3660_s27  }
 0x56c   : > { %p16_p4 = scmp.ge.s32.totalorder %s19_s27, 4  }
 0x56e   :  { %18 = sbr.rel (!%p16_p4) target bundleno = 1 (0x1), region = 103 }

// kernel: resnet3d_forward.7
= control target key start
LH: loop header
LB: loop body
LE: loop exit
PB: predicated region body
PF: predicated region fallthrough
CT: control target
= control target key end

     0   :  { %s8166_s13 = smov 0   ;;  %s9227_s0 = inlined_call_operand.vmem [shape: bf16[2,6,48,96], index: 0, kind: input, shape index: {}]   ;;  %s9228_s1 = inlined_call_operand.vmem [shape: bf16[9,96,32], index: 1, kind: input, shape index: {}]   ;;  %s9229_s2 = inlined_call_operand.vmem [shape: f32[1,32], index: 2, kind: input, shape index: {}]   ;;  %s9230_s3 = inlined_call_operand.vmem [shape: f32[1,32], index: 3, kind: input, shape index: {}]   ;;  %s9231_s4 = inlined_call_operand.vmem [shape: bf16[32,32], index: 4, kind: input, shape index: {}]   ;;  %s9232_s5 = inlined_call_operand.vmem [shape: f32[1,32], index: 5, kind: input, shape index: {}]   ;;  %s9233_s6 = inlined_call_operand.vmem [shape: f32[1,32], index: 6, kind: input, shape index: {}]   ;;  %s9234_s7 = inlined_call_operand.vmem [shape: bf16[2,4,32,32], index: 7, kind: input, shape index: {}]   ;;  %s9235_s8 = inlined_call_operand.vmem [shape: bf16[32,8], index: 8, kind: input, shape index: {}]   ;;  %s9236_s9 = inlined_call_operand.vmem [shape: f32[1,8], index: 9, kind: input, shape index: {}]   ;;  %s9237_s10 = inlined_call_operand.vmem [shape: f32[2,4,32,8], index: 10, kind: output, shape index: {}]  }
   0x1 LB: > { %s5706_s14 = sadd.s32 4294967295, %s8109_s13   ;;  %p5710_p0 = scmp.ge.s32.totalorder %s8109_s13, 1  ;;  %s8109_s13 = sphi %s8166_s13, %s20_s13  }
   0x2   : > { %p322_p1 = scmp.lt.s32.totalorder %s8109_s13, 3 }
   0x4   : > { %p323_p2 = pnand %p5710_p0, %p322_p1 }
   0x5   : > { %v7799_v0 = vld [vmem:[%s9228_s1 + $0x30] sm:$0xff] (!%p323_p2)   ;;  %p365_p3 = scmp.lt.s32.totalorder (!%p323_p2), %s5706_s14, 1  ;;  %v7800_v1 = vld [vmem:[%s9228_s1 + $0x38] sm:$0xff] (!%p323_p2)   ;;  %v7801_v2 = vld [vmem:[%s9228_s1 + $0x40] sm:$0xff] (!%p323_p2)   ;;  %vm457_vm0 = vcmask (!%p323_p2), 785408   ;;  %vm1516_vm5 = vcmask (!%p323_p2), 261120  }
   0x6   : > { %326 = sbr.rel (%p323_p2) target bundleno = 2896 (0xb50), region = 60  ;;  %7022 = vmatprep.subr.bf16.mxu0 (!%p323_p2), %v7799_v0  ;;  %v7802_v5 = vld [vmem:[%s9228_s1 + $0x48] sm:$0xff] (!%p323_p2)   ;;  %v7803_v7 = vld [vmem:[%s9228_s1 + $0x50] sm:$0xff] (!%p323_p2)   ;;  %v7804_v8 = vld [vmem:[%s9228_s1 + $0x58] sm:$0xff] (!%p323_p2)   ;;  %vm1698_vm10 = vcmask (!%p323_p2), 64512  }
   0x7   : > { %7023 = vmatpush3.bf16.msra.mxu0 (!%p323_p2), %v7799_v0  ;;  %v7809_v10 = vld [vmem:[%s9228_s1] sm:$0xff] (!%p323_p2)   ;;  %v7810_v15 = vld [vmem:[%s9228_s1 + $0x8] sm:$0xff] (!%p323_p2)   ;;  %v7811_v16 = vld [vmem:[%s9228_s1 + $0x10] sm:$0xff] (!%p323_p2)  }
   0x8   : > { %7024 = vmatprep.subr.bf16.mxu0 (!%p323_p2), %v7800_v1  ;;  %v7812_v17 = vld [vmem:[%s9228_s1 + $0x18] sm:$0xff] (!%p323_p2)   ;;  %v7813_v18 = vld [vmem:[%s9228_s1 + $0x20] sm:$0xff] (!%p323_p2)   ;;  %v7814_v19 = vld [vmem:[%s9228_s1 + $0x28] sm:$0xff] (!%p323_p2)  }
   0x9   : > { %v7815_v20 = vld [vmem:[%s9228_s1 + $0x60] sm:$0xff] (!%p323_p2)   ;;  %v7816_v23 = vld [vmem:[%s9228_s1 + $0x68] sm:$0xff] (!%p323_p2)   ;;  %v7817_v24 = vld [vmem:[%s9228_s1 + $0x70] sm:$0xff] (!%p323_p2)  }
   0xa   : > { %v7818_v25 = vld [vmem:[%s9228_s1 + $0x78] sm:$0xff] (!%p323_p2)   ;;  %v7819_v26 = vld [vmem:[%s9228_s1 + $0x80] sm:$0xff] (!%p323_p2)   ;;  %v7820_v27 = vld [vmem:[%s9228_s1 + $0x88] sm:$0xff] (!%p323_p2)  }
   0xb   : > { %7025 = vmatpush3.bf16.msra.mxu0 (!%p323_p2), %v7800_v1  ;;  %v7822_v28 = vld [vmem:[%s9228_s1 + $0x90] sm:$0xff] (!%p323_p2)   ;;  %v7824_v30 = vld [vmem:[%s9228_s1 + $0x98] sm:$0xff] (!%p323_p2)   ;;  %v7825_v32 = vld [vmem:[%s9228_s1 + $0xa0] sm:$0xff] (!%p323_p2)  }
   0xc   : > { %7026 = vmatprep.subr.bf16.mxu0 (!%p323_p2), %v7801_v2  ;;  %v7826_v33 = vld [vmem:[%s9228_s1 + $0xa8] sm:$0xff] (!%p323_p2)   ;;  %v7827_v34 = vld [vmem:[%s9228_s1 + $0xb0] sm:$0xff] (!%p323_p2)   ;;  %v7828_v35 = vld [vmem:[%s9228_s1 + $0xb8] sm:$0xff] (!%p323_p2)  }
   0xd   : > { %s9239_s14 = smov (!%p365_p3, %s5706_s14), 1  ;;  %v7830_v36 = vld [vmem:[%s9228_s1 + $0xc0] sm:$0xff]   ;;  %v7832_v39 = vld [vmem:[%s9228_s1 + $0xc8] sm:$0xff]   ;;  %v7833_v40 = vld [vmem:[%s9228_s1 + $0xd0] sm:$0xff]  }
   0xe   : > { %s7790_s21 = smul.u32 144, %s9239_s14  ;;  %v7834_v41 = vld [vmem:[%s9228_s1 + $0xd8] sm:$0xff]   ;;  %v7835_v42 = vld [vmem:[%s9228_s1 + $0xe0] sm:$0xff]   ;;  %v7836_v43 = vld [vmem:[%s9228_s1 + $0xe8] sm:$0xff]   ;;  %s6662_s22 = sshll.u32 %s9239_s14, 7 }
   0xf   : > { %7027 = vmatpush3.bf16.msra.mxu0 %v7801_v2  ;;  %v7838_v44 = vld [vmem:[%s9228_s1 + $0xf0] sm:$0xff]   ;;  %v7840_v47 = vld [vmem:[%s9228_s1 + $0xf8] sm:$0xff]   ;;  %v7841_v48 = vld [vmem:[%s9228_s1 + $0x100] sm:$0xff]   ;;  %s8647_s29 = scalar_lea.vmem %s9237_s10, %s6662_s22 }
  0x10   : > { %s8189_s24 = scalar_lea.vmem %s9227_s0, %s7790_s21  ;;  %7028 = vmatprep.subr.bf16.mxu0 %v7802_v5  ;;  %v7842_v49 = vld [vmem:[%s9228_s1 + $0x108] sm:$0xff]   ;;  %v7843_v50 = vld [vmem:[%s9228_s1 + $0x110] sm:$0xff]   ;;  %v7844_v51 = vld [vmem:[%s9228_s1 + $0x118] sm:$0xff]   ;;  %s6661_s21 = sshll.u32 %s9239_s14, 6 }
  0x11   : > { %v382_v3 = vld [vmem:[%s8189_s24 + $0x4] sm:$0xf]  ;;  %v383_v4 = vld [vmem:[%s8189_s24 + $0x8] sm:$0xf]  ;;  %v384_v9 = vld [vmem:[%s8189_s24 + $0xc] sm:$0xf]  ;;  %s8420_s25 = scalar_lea.vmem %s9234_s7, %s6661_s21 }
  0x12   : > { %v5728_v6 = vcombine.low %v382_v3, %v383_v4  ;;  %v397_v11 = vld [vmem:[%s8189_s24 + $0x10] sm:$0xf]  ;;  %v381_v12 = vld [vmem:[%s8189_s24] sm:$0xf]  ;;  %v5739_v21 = vcombine.low %v383_v4, %v384_v9  ;;  %v7821_v22 = vld [vmem:[%s8189_s24 + $0x8] sm:$0xff]  }
  0x13   : > { %7029 = vmatpush3.bf16.msra.mxu0 %v7802_v5  ;;  %v5729_v13 = vcombine.low %v384_v9, %v397_v11  ;;  %v5738_v14 = vcombine.low %v381_v12, %v382_v3  ;;  %v7823_v29 = vld [vmem:[%s8189_s24 + $0x10] sm:$0xff]   ;;  %v7829_v31 = vld [vmem:[%s8189_s24 + $0x18] sm:$0xff]   ;;  %v7831_v37 = vld [vmem:[%s8189_s24 + $0x20] sm:$0xff]  }
  0x14   : > { %7034 = vmatprep.mubr.msk.bf16.mxu0 %vm457_vm0, %v5728_v6  ;;  %7030 = vmatprep.subr.bf16.mxu0 %v7803_v7  ;;  %v7837_v38 = vld [vmem:[%s8189_s24 + $0x1c] sm:$0xff]   ;;  %v7839_v45 = vld [vmem:[%s8189_s24 + $0x24] sm:$0xff]   ;;  %v7853_v54 = vld [vmem:[%s8189_s24 + $0x30] sm:$0xff]  }
  0x15   : > { %v7845_v46 = vld [vmem:[%s8189_s24 + $0x20] sm:$0xff]   ;;  %v7847_v53 = vld [vmem:[%s8189_s24 + $0x28] sm:$0xff]   ;;  %v7849_v56 = vld [vmem:[%s9228_s1 + $0x130] sm:$0xff]  }
  0x16   : > { %v7846_v52 = vld [vmem:[%s9228_s1 + $0x120] sm:$0xff]   ;;  %v7848_v55 = vld [vmem:[%s9228_s1 + $0x128] sm:$0xff]   ;;  %v7850_v57 = vld [vmem:[%s9228_s1 + $0x138] sm:$0xff]  }
  0x17   : > { %7031 = vmatpush3.bf16.msra.mxu0 %v7803_v7  ;;  %v7851_v58 = vld [vmem:[%s9228_s1 + $0x140] sm:$0xff]   ;;  %v7852_v59 = vld [vmem:[%s9228_s1 + $0x148] sm:$0xff]   ;;  %v7854_v60 = vld [vmem:[%s9228_s1 + $0x150] sm:$0xff]  }
  0x18   : > { %7032 = vmatprep.subr.bf16.mxu0 %v7804_v8  ;;  %v7855_v61 = vld [vmem:[%s8189_s24 + $0x38] sm:$0xff]   ;;  %v7857_v0 = vld [vmem:[%s9228_s1 + $0x160] sm:$0xff]   ;;  %v7858_v1 = vld [vmem:[%s9228_s1 + $0x168] sm:$0xff]  }
  0x19   : > { %v7861_v62 = vld [vmem:[%s8189_s24 + $0x34] sm:$0xff]   ;;  %v7862_v4 = vld [vmem:[%s9228_s1 + $0x180] sm:$0xff]   ;;  %v7864_v7 = vld [vmem:[%s9228_s1 + $0x188] sm:$0xff]  }
  0x1a   : > { %v7856_v63 = vld [vmem:[%s9228_s1 + $0x158] sm:$0xff]   ;;  %v7859_v2 = vld [vmem:[%s9228_s1 + $0x170] sm:$0xff]   ;;  %v7868_v11 = vld [vmem:[%s9228_s1 + $0x1a8] sm:$0xff]  }
  0x1b   : > { %7033 = vmatpush3.bf16.msra.mxu0 %v7804_v8  ;;  %v7860_v3 = vld [vmem:[%s9228_s1 + $0x178] sm:$0xff]   ;;  %v7865_v8 = vld [vmem:[%s9228_s1 + $0x190] sm:$0xff]   ;;  %v7870_v12 = vld [vmem:[%s8189_s24 + $0x40] sm:$0xff]  }
  0x1c   : > { %7038 = vmatprep.subr.bf16.mxu0 %v7809_v10  ;;  %v7863_v5 = vld [vmem:[%s8189_s24 + $0x3c] sm:$0xff]  }
  0x1d   : > { %v7869_v6 = vld [vmem:[%s8189_s24 + $0x38] sm:$0xff]  }
  0x1e   : > { %7035 = vmatmul.mubr.msk.bf16.vlgmr.msra.gmra.mrb[0].mxu0 %vm457_vm0, %v5729_v13  ;;  %v7866_v9 = vld [vmem:[%s9228_s1 + $0x198] sm:$0xff]   ;;  %v7871_v13 = vld [vmem:[%s9231_s4] sm:$0xff]  }
  0x1f   : > { %7039 = vmatpush3.bf16.msra.mxu0 %v7809_v10  ;;  %7050 = vmatprep.mubr.msk.bf16.mxu0 %vm457_vm0, %v5738_v14  ;;  %v7867_v10 = vld [vmem:[%s9228_s1 + $0x1a0] sm:$0xff]   ;;  %v7872_v14 = vld [vmem:[%s9231_s4 + $0x8] sm:$0xff]  }
  0x20   : > { %7040 = vmatprep.subr.bf16.mxu0 %v7810_v15  ;;  %7166 = vmatprep.subr.bf16.mxu1 %v7871_v13 }
  0x21   : > { %7167 = vmatpush3.bf16.msra.mxu1 %v7871_v13 }
  0x22   : > { %7168 = vmatprep.subr.bf16.mxu1 %v7872_v14 }
  0x23   : > { %7041 = vmatpush3.bf16.msra.mxu0 %v7810_v15  ;;  %v8390_v15 = vld [vmem:[%s9229_s2] ss:$0 sm:$0xff] }
  0x24   : > { %7042 = vmatprep.subr.bf16.mxu0 %v7811_v16 }
  0x25   : > { %7169 = vmatpush3.bf16.msra.mxu1 %v7872_v14 }
  0x27   : > { %7043 = vmatpush3.bf16.msra.mxu0 %v7811_v16 }
  0x28   : > { %7044 = vmatprep.subr.bf16.mxu0 %v7812_v17 }
  0x2b   : > { %7045 = vmatpush3.bf16.msra.mxu0 %v7812_v17  ;;  %v8395_v17 = vld [vmem:[%s9230_s3] ss:$0 sm:$0xff] }
  0x2c   : > { %7046 = vmatprep.subr.bf16.mxu0 %v7813_v18 }
  0x2f   : > { %7047 = vmatpush3.bf16.msra.mxu0 %v7813_v18 }
  0x30   : > { %7048 = vmatprep.subr.bf16.mxu0 %v7814_v19 }
  0x33   : > { %7049 = vmatpush3.bf16.msra.mxu0 %v7814_v19 }
  0x34   : > { %7054 = vmatprep.subr.bf16.mxu0 %v7815_v20 }
  0x36   : > { %7051 = vmatmul.mubr.msk.bf16.vlgmr.msra.gmra.mrb[0].mxu0 %vm457_vm0, %v5739_v21 }
  0x37   : > { %7055 = vmatpush3.bf16.msra.mxu0 %v7815_v20  ;;  %7066 = vmatprep.mubr.msk.bf16.mxu0 %vm457_vm0, %v7821_v22 }
  0x38   : > { %7056 = vmatprep.subr.bf16.mxu0 %v7816_v23 }
  0x3b   : > { %7057 = vmatpush3.bf16.msra.mxu0 %v7816_v23 }
  0x3c   : > { %7058 = vmatprep.subr.bf16.mxu0 %v7817_v24 }
  0x3f   : > { %7059 = vmatpush3.bf16.msra.mxu0 %v7817_v24 }
  0x40   : > { %7060 = vmatprep.subr.bf16.mxu0 %v7818_v25 }
  0x43   : > { %7061 = vmatpush3.bf16.msra.mxu0 %v7818_v25 }
  0x44   : > { %7062 = vmatprep.subr.bf16.mxu0 %v7819_v26 }
  0x47   : > { %7063 = vmatpush3.bf16.msra.mxu0 %v7819_v26 }
  0x48   : > { %7064 = vmatprep.subr.bf16.mxu0 %v7820_v27 }
  0x4b   : > { %7065 = vmatpush3.bf16.msra.mxu0 %v7820_v27 }
  0x4c   : > { %7070 = vmatprep.subr.bf16.mxu0 %v7822_v28 }
  0x4e   : > { %7067 = vmatmul.mubr.msk.bf16.vlgmr.msra.gmra.mrb[0].mxu0 %vm457_vm0, %v7823_v29 }
  0x4f   : > { %7071 = vmatpush3.bf16.msra.mxu0 %v7822_v28  ;;  %7082 = vmatprep.mubr.msk.bf16.mxu0 %vm457_vm0, %v7829_v31 }
  0x50   : > { %7072 = vmatprep.subr.bf16.mxu0 %v7824_v30 }
  0x53   : > { %7073 = vmatpush3.bf16.msra.mxu0 %v7824_v30 }
  0x54   : > { %7074 = vmatprep.subr.bf16.mxu0 %v7825_v32 }
  0x57   : > { %7075 = vmatpush3.bf16.msra.mxu0 %v7825_v32 }
  0x58   : > { %7076 = vmatprep.subr.bf16.mxu0 %v7826_v33 }
  0x5b   : > { %7077 = vmatpush3.bf16.msra.mxu0 %v7826_v33 }
  0x5c   : > { %7078 = vmatprep.subr.bf16.mxu0 %v7827_v34 }
  0x5f   : > { %7079 = vmatpush3.bf16.msra.mxu0 %v7827_v34 }
  0x60   : > { %7080 = vmatprep.subr.bf16.mxu0 %v7828_v35 }
  0x63   : > { %7081 = vmatpush3.bf16.msra.mxu0 %v7828_v35 }
  0x64   : > { %7086 = vmatprep.subr.bf16.mxu0 %v7830_v36 }
  0x66   : > { %7083 = vmatmul.mubr.msk.bf16.vlgmr.msra.gmra.mrb[0].mxu0 %vm457_vm0, %v7831_v37 }
  0x67   : > { %7087 = vmatpush3.bf16.msra.mxu0 %v7830_v36  ;;  %7098 = vmatprep.mubr.msk.bf16.mxu0 %vm457_vm0, %v7837_v38 }
  0x68   : > { %7088 = vmatprep.subr.bf16.mxu0 %v7832_v39 }
  0x6b   : > { %7089 = vmatpush3.bf16.msra.mxu0 %v7832_v39  ;;  %v7873_v39 = vld [vmem:[%s9235_s8] sm:$0xff]  }
  0x6c   : > { %7090 = vmatprep.subr.bf16.mxu0 %v7833_v40  ;;  %7174 = vmatprep.subr.bf16.mxu1 %v7873_v39 }
  0x6f   : > { %7091 = vmatpush3.bf16.msra.mxu0 %v7833_v40  ;;  %v7874_v40 = vld [vmem:[%s9235_s8 + $0x8] sm:$0xff]  }
  0x70   : > { %7092 = vmatprep.subr.bf16.mxu0 %v7834_v41 }
  0x73   : > { %7093 = vmatpush3.bf16.msra.mxu0 %v7834_v41  ;;  %v7875_v41 = vld [vmem:[%s9228_s1 + $0x30] sm:$0xff]  }
  0x74   : > { %7094 = vmatprep.subr.bf16.mxu0 %v7835_v42 }
  0x77   : > { %7095 = vmatpush3.bf16.msra.mxu0 %v7835_v42  ;;  %v8425_v42 = vld [vmem:[%s9232_s5] ss:$0 sm:$0xff] }
  0x78   : > { %7096 = vmatprep.subr.bf16.mxu0 %v7836_v43 }
  0x7b   : > { %7097 = vmatpush3.bf16.msra.mxu0 %v7836_v43  ;;  %v6695_v43 = vld [vmem:[%s8420_s25 + $0x8] sm:$0xff]  }
  0x7c   : > { %7102 = vmatprep.subr.bf16.mxu0 %v7838_v44 }
  0x7e   : > { %7099 = vmatmul.mubr.msk.bf16.vlgmr.msra.gmra.mrb[0].mxu0 %vm457_vm0, %v7839_v45 }
  0x7f   : > { %7103 = vmatpush3.bf16.msra.mxu0 %v7838_v44  ;;  %7114 = vmatprep.mubr.msk.bf16.mxu0 %vm457_vm0, %v7845_v46  ;;  %v6664_v44 = vld [vmem:[%s8420_s25] sm:$0xff]  }
  0x80   : > { %7104 = vmatprep.subr.bf16.mxu0 %v7840_v47  ;;  %v8432_v46 = vld [vmem:[%s9233_s6] ss:$0 sm:$0xff] }
  0x83   : > { %7105 = vmatpush3.bf16.msra.mxu0 %v7840_v47 }
  0x84   : > { %7106 = vmatprep.subr.bf16.mxu0 %v7841_v48 }
  0x87   : > { %7107 = vmatpush3.bf16.msra.mxu0 %v7841_v48  ;;  %v6669_v48 = vunpack.c.l.bf16 %v6695_v43 }
  0x88   : > { %7108 = vmatprep.subr.bf16.mxu0 %v7842_v49 }
  0x8b   : > { %7109 = vmatpush3.bf16.msra.mxu0 %v7842_v49 }
  0x8c   : > { %7110 = vmatprep.subr.bf16.mxu0 %v7843_v50 }
  0x8f   : > { %7111 = vmatpush3.bf16.msra.mxu0 %v7843_v50 }
  0x90   : > { %7112 = vmatprep.subr.bf16.mxu0 %v7844_v51 }
  0x93   : > { %7113 = vmatpush3.bf16.msra.mxu0 %v7844_v51  ;;  %v6665_v51 = vunpack.c.l.bf16 %v6664_v44 }
  0x94   : > { %7118 = vmatprep.subr.bf16.mxu0 %v7846_v52 }
  0x96   : > { %7115 = vmatmul.mubr.msk.bf16.vlgmr.msra.gmra.mrb[0].mxu0 %vm457_vm0, %v7847_v53 }
  0x97   : > { %7119 = vmatpush3.bf16.msra.mxu0 %v7846_v52  ;;  %7130 = vmatprep.mubr.msk.bf16.mxu0 %vm457_vm0, %v7853_v54 }
  0x98   : > { %7120 = vmatprep.subr.bf16.mxu0 %v7848_v55 }
  0x9b   : > { %7121 = vmatpush3.bf16.msra.mxu0 %v7848_v55  ;;  %v6670_v55 = vunpack.c.h.bf16 %v6695_v43  ;;  %v7899_v43 = vld [vmem:[%s8189_s24 + $0x28] sm:$0xff]  }
  0x9c   : > { %7122 = vmatprep.subr.bf16.mxu0 %v7849_v56 }
  0x9f   : > { %7123 = vmatpush3.bf16.msra.mxu0 %v7849_v56 }
  0xa0   : > { %7124 = vmatprep.subr.bf16.mxu0 %v7850_v57 }
  0xa3   : > { %7125 = vmatpush3.bf16.msra.mxu0 %v7850_v57 }
  0xa4   : > { %7126 = vmatprep.subr.bf16.mxu0 %v7851_v58 }
  0xa7   : > { %7127 = vmatpush3.bf16.msra.mxu0 %v7851_v58 }
  0xa8   : > { %7128 = vmatprep.subr.bf16.mxu0 %v7852_v59 }
  0xab   : > { %7129 = vmatpush3.bf16.msra.mxu0 %v7852_v59  ;;  %v6666_v59 = vunpack.c.h.bf16 %v6664_v44  ;;  %v7905_v44 = vld [vmem:[%s8189_s24 + $0x30] sm:$0xff]  }
  0xac   : > { %7134 = vmatprep.subr.bf16.mxu0 %v7854_v60 }
  0xae   : > { %7131 = vmatmul.mubr.msk.bf16.vlgmr.msra.gmra.mrb[0].mxu0 %vm457_vm0, %v7855_v61 }
  0xaf   : > { %7135 = vmatpush3.bf16.msra.mxu0 %v7854_v60  ;;  %7146 = vmatprep.mubr.msk.bf16.mxu0 %vm457_vm0, %v7861_v62 }
  0xb0   : > { %7136 = vmatprep.subr.bf16.mxu0 %v7856_v63 }
  0xb3   : > { %7137 = vmatpush3.bf16.msra.mxu0 %v7856_v63 }
  0xb4   : > { %7138 = vmatprep.subr.bf16.mxu0 %v7857_v0 }
  0xb7   : > { %7139 = vmatpush3.bf16.msra.mxu0 %v7857_v0 }
  0xb8   : > { %7140 = vmatprep.subr.bf16.mxu0 %v7858_v1 }
  0xbb   : > { %7141 = vmatpush3.bf16.msra.mxu0 %v7858_v1 }
  0xbc   : > { %7142 = vmatprep.subr.bf16.mxu0 %v7859_v2 }
  0xbf   : > { %7143 = vmatpush3.bf16.msra.mxu0 %v7859_v2 }
  0xc0   : > { %7144 = vmatprep.subr.bf16.mxu0 %v7860_v3 }
  0xc3   : > { %7145 = vmatpush3.bf16.msra.mxu0 %v7860_v3 }
  0xc4   : > { %7150 = vmatprep.subr.bf16.mxu0 %v7862_v4 }
  0xc6   : > { %7147 = vmatmul.mubr.msk.bf16.vlgmr.msra.gmra.mrb[0].mxu0 %vm457_vm0, %v7863_v5  ;;  %v5940_v5 = vld [vmem:[%s8189_s24 + $0x1c] sm:$0xf] }
  0xc7   : > { %7151 = vmatpush3.bf16.msra.mxu0 %v7862_v4  ;;  %7162 = vmatprep.mubr.msk.bf16.mxu0 %vm457_vm0, %v7869_v6 }
  0xc8   : > { %7152 = vmatprep.subr.bf16.mxu0 %v7864_v7 }
  0xcb   : > { %7153 = vmatpush3.bf16.msra.mxu0 %v7864_v7  ;;  %v5941_v7 = vld [vmem:[%s8189_s24 + $0x20] sm:$0xf] }
  0xcc   : > { %7154 = vmatprep.subr.bf16.mxu0 %v7865_v8  ;;  %v5956_v14 = vcombine.low %v5940_v5, %v5941_v7 }
  0xcf   : > { %7155 = vmatpush3.bf16.msra.mxu0 %v7865_v8 }
  0xd0   : > { %7156 = vmatprep.subr.bf16.mxu0 %v7866_v9 }
  0xd3   : > { %7157 = vmatpush3.bf16.msra.mxu0 %v7866_v9 }
  0xd4   : > { %7158 = vmatprep.subr.bf16.mxu0 %v7867_v10 }
  0xd7   : > { %7159 = vmatpush3.bf16.msra.mxu0 %v7867_v10 }
  0xd8   : > { %7160 = vmatprep.subr.bf16.mxu0 %v7868_v11 }
  0xdb   : > { %7161 = vmatpush3.bf16.msra.mxu0 %v7868_v11 }
  0xde   : > { %7163 = vmatmul.mubr.msk.bf16.vlgmr.msra.gmra.mrb[0].mxu0 %vm457_vm0, %v7870_v12 }
 0x1b1   : > { %v7164_v16 = vpop.f32.mrb[0].mxu0 }
 0x1b2   : > { %v1473_v18 = vmul.f32 %v7164_v16, %v8390_v15  ;;  %v1445_v19 = vpop.f32.mrb[1].mxu0  ;;  %v7876_v16 = vld [vmem:[%s9228_s1 + $0x38] sm:$0xff]  }
 0x1b3   : > { %v1471_v20 = vmul.f32 %v8390_v15, %v1445_v19  ;;  %v7165_v21 = vpop.f32.mrb[2].mxu0  ;;  %v7878_v19 = vld [vmem:[%s9228_s1 + $0x48] sm:$0xff]  }
 0x1b4   : > { %v1484_v22 = vadd.f32 %v8395_v17, %v1473_v18  ;;  %v1474_v23 = vmul.f32 %v7165_v21, %v8390_v15  ;;  %v1448_v24 = vpop.f32.mrb[3].mxu0  ;;  %v7877_v18 = vld [vmem:[%s9228_s1 + $0x40] sm:$0xff]   ;;  %v7880_v21 = vld [vmem:[%s9228_s1 + $0x58] sm:$0xff]  }
 0x1b5   : > { %v1482_v25 = vadd.f32 %v8395_v17, %v1471_v20  ;;  %v1472_v26 = vmul.f32 %v8390_v15, %v1448_v24  ;;  %v7879_v20 = vld [vmem:[%s9228_s1 + $0x50] sm:$0xff]   ;;  %v7884_v24 = vld [vmem:[%s9228_s1] sm:$0xff]  }
 0x1b6   : > { %v1492_v27 = vmul.f32 0.01, %v1484_v22  ;;  %v1485_v28 = vadd.f32 %v8395_v17, %v1474_v23  ;;  %vm1488_vm1 = vcmp.ge.f32.partialorder %v1484_v22, 0.0  ;;  %v5943_v23 = vld [vmem:[%s8189_s24 + $0x28] sm:$0xf] }
 0x1b7   : > { %v1483_v29 = vadd.f32 %v8395_v17, %v1472_v26  ;;  %v1490_v30 = vmul.f32 0.01, %v1482_v25  ;;  %vm1486_vm3 = vcmp.ge.f32.partialorder %v1482_v25, 0.0 }
 0x1b8   : > { %vm1489_vm2 = vcmp.ge.f32.partialorder %v1485_v28, 0.0  ;;  %v1493_v31 = vmul.f32 0.01, %v1485_v28  ;;  %v1496_v33 = vsel %vm1488_vm1, %v1484_v22, %v1492_v27  ;;  %v5942_v22 = vld [vmem:[%s8189_s24 + $0x24] sm:$0xf] }
 0x1b9   : > { %vm1487_vm4 = vcmp.ge.f32.partialorder %v1483_v29, 0.0  ;;  %v1491_v32 = vmul.f32 0.01, %v1483_v29  ;;  %v1494_v35 = vsel %vm1486_vm3, %v1482_v25, %v1490_v30  ;;  %v5939_v25 = vld [vmem:[%s8189_s24 + $0x18] sm:$0xf]  ;;  %v5957_v26 = vcombine.low %v5942_v22, %v5943_v23  ;;  %v7945_v23 = vld [vmem:[%s8189_s24 + $0x50] sm:$0xff]  }
 0x1ba   : > { %v1497_v34 = vsel %vm1489_vm2, %v1485_v28, %v1493_v31  ;;  %v5966_v27 = vcombine.low %v5939_v25, %v5940_v5  ;;  %v7885_v28 = vld [vmem:[%s9228_s1 + $0x8] sm:$0xff]   ;;  %v7887_v30 = vld [vmem:[%s9228_s1 + $0x18] sm:$0xff]   ;;  %v7888_v31 = vld [vmem:[%s9228_s1 + $0x20] sm:$0xff]  }
 0x1bb   : > { %v1495_v36 = vsel %vm1487_vm4, %v1483_v29, %v1491_v32  ;;  %v1499_v37 = vpack.c.bf16 %v1497_v34, %v1496_v33  ;;  %v7886_v29 = vld [vmem:[%s9228_s1 + $0x10] sm:$0xff]   ;;  %v7889_v32 = vld [vmem:[%s9228_s1 + $0x28] sm:$0xff]   ;;  %v7891_v33 = vld [vmem:[%s9228_s1 + $0x60] sm:$0xff]   ;;  %v5967_v34 = vcombine.low %v5941_v7, %v5942_v22 }
 0x1bc   : > { %v1498_v38 = vpack.c.bf16 %v1495_v36, %v1494_v35  ;;  %v7897_v35 = vld [vmem:[%s8189_s24 + $0x20] sm:$0xff]   ;;  %v7892_v36 = vld [vmem:[%s9228_s1 + $0x68] sm:$0xff]   ;;  %v7925_v7 = vld [vmem:[%s9228_s1 + $0x130] sm:$0xff]  }
 0x1bd   : > { %v7929_v5 = vld [vmem:[%s8189_s24 + $0x48] sm:$0xff]   ;;  %v7939_v22 = vld [vmem:[%s8189_s24 + $0x54] sm:$0xff]  }
 0x1be   : > { %7170 = vmatprep.mubr.msk.bf16.mxu1 %vm1516_vm5, %v1498_v38  ;;  %v7894_v38 = vld [vmem:[%s9228_s1 + $0x78] sm:$0xff]   ;;  %v7941_v25 = vld [vmem:[%s9228_s1 + $0x190] sm:$0xff]  }
 0x1bf   : > { %7171 = vmatmul.mubr.msk.bf16.vlgmr.msra.gmra.mrb[0].mxu1 %vm1516_vm5, %v1499_v37  ;;  %v7893_v37 = vld [vmem:[%s9228_s1 + $0x70] sm:$0xff]  }
 0x1c0   : > { %7175 = vmatpush3.bf16.msra.mxu1 %v7873_v39  ;;  %v7895_v39 = vld [vmem:[%s9228_s1 + $0x80] sm:$0xff]  }
 0x1c1   : > { %7176 = vmatprep.subr.bf16.mxu1 %v7874_v40 }
 0x1c4   : > { %7177 = vmatpush3.bf16.msra.mxu1 %v7874_v40  ;;  %v7896_v40 = vld [vmem:[%s9228_s1 + $0x88] sm:$0xff]  }
 0x1c5   : > { %7182 = vmatprep.subr.bf16.mxu1 %v7875_v41 }
 0x292   : > { %v7172_v45 = vpop.f32.mrb[0].mxu1 }
 0x293   : > { %v1581_v47 = vmul.f32 %v7172_v45, %v8425_v42  ;;  %v1557_v49 = vpop.f32.mrb[1].mxu1  ;;  %v7900_v45 = vld [vmem:[%s9228_s1 + $0x98] sm:$0xff]  }
 0x294   : > { %v1579_v50 = vmul.f32 %v8425_v42, %v1557_v49  ;;  %v7173_v52 = vpop.f32.mrb[2].mxu1  ;;  %v7903_v49 = vld [vmem:[%s9228_s1 + $0xb0] sm:$0xff]  }
 0x295   : > { %v1592_v53 = vadd.f32 %v8432_v46, %v1581_v47  ;;  %v1582_v54 = vmul.f32 %v7173_v52, %v8425_v42  ;;  %v1560_v56 = vpop.f32.mrb[3].mxu1  ;;  %v7901_v47 = vld [vmem:[%s9228_s1 + $0xa0] sm:$0xff]   ;;  %v7907_v52 = vld [vmem:[%s8189_s24 + $0x38] sm:$0xff]  }
 0x296   : > { %v1590_v57 = vadd.f32 %v8432_v46, %v1579_v50  ;;  %v1580_v58 = vmul.f32 %v8425_v42, %v1560_v56  ;;  %v7904_v50 = vld [vmem:[%s9228_s1 + $0xb8] sm:$0xff]  }
 0x297   : > { %v1604_v60 = vadd.f32 %v6669_v48, %v1592_v53  ;;  %v1593_v61 = vadd.f32 %v8432_v46, %v1582_v54  ;;  %v7902_v48 = vld [vmem:[%s9228_s1 + $0xa8] sm:$0xff]   ;;  %v7913_v53 = vld [vmem:[%s8189_s24 + $0x34] sm:$0xff]  }
 0x298   : > { %v1602_v62 = vadd.f32 %v6665_v51, %v1590_v57  ;;  %v1591_v63 = vadd.f32 %v8432_v46, %v1580_v58  ;;  %v7906_v51 = vld [vmem:[%s9228_s1 + $0xc0] sm:$0xff]   ;;  %v7908_v54 = vld [vmem:[%s9228_s1 + $0xc8] sm:$0xff]   ;;  %v7910_v56 = vld [vmem:[%s9228_s1 + $0xd8] sm:$0xff]  }
 0x299   : > { %v1612_v0 = vmul.f32 0.01, %v1604_v60  ;;  %v1605_v1 = vadd.f32 %v6670_v55, %v1593_v61  ;;  %vm1608_vm6 = vcmp.ge.f32.partialorder %v1604_v60, 0.0  ;;  %v7909_v55 = vld [vmem:[%s9228_s1 + $0xd0] sm:$0xff]   ;;  %v7911_v57 = vld [vmem:[%s9228_s1 + $0xe0] sm:$0xff]   ;;  %v7912_v58 = vld [vmem:[%s9228_s1 + $0xe8] sm:$0xff]  }
 0x29a   : > { %v1610_v2 = vmul.f32 0.01, %v1602_v62  ;;  %v1603_v3 = vadd.f32 %v6666_v59, %v1591_v63  ;;  %vm1606_vm7 = vcmp.ge.f32.partialorder %v1602_v62, 0.0  ;;  %v7914_v59 = vld [vmem:[%s9228_s1 + $0xf0] sm:$0xff]   ;;  %v7921_v61 = vld [vmem:[%s8189_s24 + $0x38] sm:$0xff]   ;;  %v7917_v63 = vld [vmem:[%s9228_s1 + $0x100] sm:$0xff]  }
 0x29b   : > { %vm1609_vm8 = vcmp.ge.f32.partialorder %v1605_v1, 0.0  ;;  %v1613_v4 = vmul.f32 0.01, %v1605_v1  ;;  %v1616_v8 = vsel %vm1608_vm6, %v1604_v60, %v1612_v0  ;;  %v7915_v60 = vld [vmem:[%s8189_s24 + $0x3c] sm:$0xff]   ;;  %v7918_v0 = vld [vmem:[%s9228_s1 + $0x108] sm:$0xff]  }
 0x29c   : > { %vm1607_vm9 = vcmp.ge.f32.partialorder %v1603_v3, 0.0  ;;  %v1611_v6 = vmul.f32 0.01, %v1603_v3  ;;  %v1614_v11 = vsel %vm1606_vm7, %v1602_v62, %v1610_v2  ;;  %v7916_v62 = vld [vmem:[%s9228_s1 + $0xf8] sm:$0xff]  }
 0x29d   : > { %v1617_v9 = vsel %vm1609_vm8, %v1605_v1, %v1613_v4  ;;  %v7919_v1 = vld [vmem:[%s9228_s1 + $0x110] sm:$0xff]   ;;  %v7920_v2 = vld [vmem:[%s9228_s1 + $0x118] sm:$0xff]   ;;  %v7923_v4 = vld [vmem:[%s8189_s24 + $0x40] sm:$0xff]  }
 0x29e   : > { %v1619_v10 = vpack.c.bf16 %v1617_v9, %v1616_v8  ;;  %v1615_v12 = vsel %vm1607_vm9, %v1603_v3, %v1611_v6  ;;  %v7922_v3 = vld [vmem:[%s9228_s1 + $0x120] sm:$0xff]   ;;  %v7924_v6 = vld [vmem:[%s9228_s1 + $0x128] sm:$0xff]   ;;  %v7926_v8 = vld [vmem:[%s9228_s1 + $0x138] sm:$0xff]  }
 0x29f   : > { %v1618_v13 = vpack.c.bf16 %v1615_v12, %v1614_v11  ;;  %v7927_v9 = vld [vmem:[%s9228_s1 + $0x140] sm:$0xff]   ;;  %v7930_v11 = vld [vmem:[%s9228_s1 + $0x150] sm:$0xff]  }
 0x2a0   : > { %v7931_v12 = vld [vmem:[%s8189_s24 + $0x50] sm:$0xff]  }
 0x2a1   : > { %7178 = vmatprep.mubr.msk.bf16.mxu1 %vm1516_vm5, %v1618_v13  ;;  %v7937_v13 = vld [vmem:[%s8189_s24 + $0x4c] sm:$0xff]  }
 0x2a2   : > { %7179 = vmatmul.mubr.msk.bf16.vlgmr.msra.gmra.mrb[4].mxu1 %vm1516_vm5, %v1619_v10  ;;  %v7928_v10 = vld [vmem:[%s9228_s1 + $0x148] sm:$0xff]  }
 0x2a3   : > { %7183 = vmatpush3.bf16.msra.mxu1 %v7875_v41  ;;  %7194 = vmatprep.mubr.msk.bf16.mxu1 %vm457_vm0, %v5956_v14  ;;  %v7898_v41 = vld [vmem:[%s9228_s1 + $0x90] sm:$0xff]   ;;  %v7932_v14 = vld [vmem:[%s9228_s1 + $0x158] sm:$0xff]  }
 0x2a4   : > { %7184 = vmatprep.subr.bf16.mxu1 %v7876_v16 }
 0x2a7   : > { %7185 = vmatpush3.bf16.msra.mxu1 %v7876_v16  ;;  %v7933_v16 = vld [vmem:[%s9228_s1 + $0x160] sm:$0xff]  }
 0x2a8   : > { %7186 = vmatprep.subr.bf16.mxu1 %v7877_v18 }
 0x2ab   : > { %7187 = vmatpush3.bf16.msra.mxu1 %v7877_v18  ;;  %v7934_v18 = vld [vmem:[%s9228_s1 + $0x168] sm:$0xff]  }
 0x2ac   : > { %7188 = vmatprep.subr.bf16.mxu1 %v7878_v19 }
 0x2af   : > { %7189 = vmatpush3.bf16.msra.mxu1 %v7878_v19  ;;  %v7935_v19 = vld [vmem:[%s9228_s1 + $0x170] sm:$0xff]  }
 0x2b0   : > { %7190 = vmatprep.subr.bf16.mxu1 %v7879_v20 }
 0x2b3   : > { %7191 = vmatpush3.bf16.msra.mxu1 %v7879_v20  ;;  %v7936_v20 = vld [vmem:[%s9228_s1 + $0x178] sm:$0xff]  }
 0x2b4   : > { %7192 = vmatprep.subr.bf16.mxu1 %v7880_v21 }
 0x2b7   : > { %7193 = vmatpush3.bf16.msra.mxu1 %v7880_v21  ;;  %v7938_v21 = vld [vmem:[%s9228_s1 + $0x180] sm:$0xff]  }
 0x2b8   : > { %7198 = vmatprep.subr.bf16.mxu1 %v7884_v24 }
 0x2ba   : > { %7195 = vmatmul.mubr.msk.bf16.vlgmr.msra.gmra.mrb[8].mxu1 %vm457_vm0, %v5957_v26  ;;  %v7942_v26 = vld [vmem:[%s9228_s1 + $0x198] sm:$0xff]  }
 0x2bb   : > { %7199 = vmatpush3.bf16.msra.mxu1 %v7884_v24  ;;  %7210 = vmatprep.mubr.msk.bf16.mxu1 %vm457_vm0, %v5966_v27  ;;  %v7940_v24 = vld [vmem:[%s9228_s1 + $0x188] sm:$0xff]   ;;  %v7943_v27 = vld [vmem:[%s9228_s1 + $0x1a0] sm:$0xff]  }
 0x2bc   : > { %7200 = vmatprep.subr.bf16.mxu1 %v7885_v28 }
 0x2bf   : > { %7201 = vmatpush3.bf16.msra.mxu1 %v7885_v28  ;;  %v7944_v28 = vld [vmem:[%s9228_s1 + $0x1a8] sm:$0xff]  }
 0x2c0   : > { %7202 = vmatprep.subr.bf16.mxu1 %v7886_v29 }
 0x2c3   : > { %7203 = vmatpush3.bf16.msra.mxu1 %v7886_v29  ;;  %v8642_v29 = vld [vmem:[%s9236_s9] ss:$0 sm:$0xff] }
 0x2c4   : > { %7204 = vmatprep.subr.bf16.mxu1 %v7887_v30 }
 0x2c7   : > { %7205 = vmatpush3.bf16.msra.mxu1 %v7887_v30 }
 0x2c8   : > { %7206 = vmatprep.subr.bf16.mxu1 %v7888_v31 }
 0x2cb   : > { %7207 = vmatpush3.bf16.msra.mxu1 %v7888_v31 }
 0x2cc   : > { %7208 = vmatprep.subr.bf16.mxu1 %v7889_v32 }
 0x2cf   : > { %7209 = vmatpush3.bf16.msra.mxu1 %v7889_v32 }
 0x2d0   : > { %7214 = vmatprep.subr.bf16.mxu1 %v7891_v33 }
 0x2d2   : > { %7211 = vmatmul.mubr.msk.bf16.vlgmr.msra.gmra.mrb[8].mxu1 %vm457_vm0, %v5967_v34 }
 0x2d3   : > { %7215 = vmatpush3.bf16.msra.mxu1 %v7891_v33  ;;  %7226 = vmatprep.mubr.msk.bf16.mxu1 %vm457_vm0, %v7897_v35  ;;  %v7946_v33 = vld [vmem:[%s8189_s24 + $0x58] sm:$0xff]  }
 0x2d4   : > { %7216 = vmatprep.subr.bf16.mxu1 %v7892_v36 }
 0x2d7   : > { %7217 = vmatpush3.bf16.msra.mxu1 %v7892_v36 }
 0x2d8   : > { %7218 = vmatprep.subr.bf16.mxu1 %v7893_v37 }
 0x2db   : > { %7219 = vmatpush3.bf16.msra.mxu1 %v7893_v37 }
 0x2dc   : > { %7220 = vmatprep.subr.bf16.mxu1 %v7894_v38 }
 0x2df   : > { %7221 = vmatpush3.bf16.msra.mxu1 %v7894_v38 }
 0x2e0   : > { %7222 = vmatprep.subr.bf16.mxu1 %v7895_v39 }
 0x2e3   : > { %7223 = vmatpush3.bf16.msra.mxu1 %v7895_v39  ;;  %v7947_v39 = vld [vmem:[%s9231_s4] sm:$0xff]  }
 0x2e4   : > { %7224 = vmatprep.subr.bf16.mxu1 %v7896_v40  ;;  %7326 = vmatprep.subr.bf16.mxu0 %v7947_v39 }
 0x2e5   : > { %7327 = vmatpush3.bf16.msra.mxu0 %v7947_v39  ;;  %v7953_v39 = vld [vmem:[%s9228_s1 + $0x40] sm:$0xff]  }
 0x2e7   : > { %7225 = vmatpush3.bf16.msra.mxu1 %v7896_v40  ;;  %v7948_v40 = vld [vmem:[%s9231_s4 + $0x8] sm:$0xff]  }
 0x2e8   : > { %7230 = vmatprep.subr.bf16.mxu1 %v7898_v41  ;;  %7328 = vmatprep.subr.bf16.mxu0 %v7948_v40 }
 0x2e9   : > { %7329 = vmatpush3.bf16.msra.mxu0 %v7948_v40  ;;  %v7954_v40 = vld [vmem:[%s9228_s1 + $0x48] sm:$0xff]  }
 0x2ea   : > { %7227 = vmatmul.mubr.msk.bf16.vlgmr.msra.gmra.mrb[8].mxu1 %vm457_vm0, %v7899_v43 }
 0x2eb   : > { %7231 = vmatpush3.bf16.msra.mxu1 %v7898_v41  ;;  %7242 = vmatprep.mubr.msk.bf16.mxu1 %vm457_vm0, %v7905_v44 }
 0x2ec   : > { %7232 = vmatprep.subr.bf16.mxu1 %v7900_v45 }
 0x2ef   : > { %7233 = vmatpush3.bf16.msra.mxu1 %v7900_v45 }
 0x2f0   : > { %7234 = vmatprep.subr.bf16.mxu1 %v7901_v47 }
 0x2f3   : > { %7235 = vmatpush3.bf16.msra.mxu1 %v7901_v47 }
 0x2f4   : > { %7236 = vmatprep.subr.bf16.mxu1 %v7902_v48 }
 0x2f7   : > { %7237 = vmatpush3.bf16.msra.mxu1 %v7902_v48 }
 0x2f8   : > { %7238 = vmatprep.subr.bf16.mxu1 %v7903_v49 }
 0x2fb   : > { %7239 = vmatpush3.bf16.msra.mxu1 %v7903_v49 }
 0x2fc   : > { %7240 = vmatprep.subr.bf16.mxu1 %v7904_v50 }
 0x2ff   : > { %7241 = vmatpush3.bf16.msra.mxu1 %v7904_v50 }
 0x300   : > { %7246 = vmatprep.subr.bf16.mxu1 %v7906_v51 }
 0x302   : > { %7243 = vmatmul.mubr.msk.bf16.vlgmr.msra.gmra.mrb[8].mxu1 %vm457_vm0, %v7907_v52 }
 0x303   : > { %7247 = vmatpush3.bf16.msra.mxu1 %v7906_v51  ;;  %7258 = vmatprep.mubr.msk.bf16.mxu1 %vm457_vm0, %v7913_v53 }
 0x304   : > { %7248 = vmatprep.subr.bf16.mxu1 %v7908_v54 }
 0x307   : > { %7249 = vmatpush3.bf16.msra.mxu1 %v7908_v54 }
 0x308   : > { %7250 = vmatprep.subr.bf16.mxu1 %v7909_v55 }
 0x30b   : > { %7251 = vmatpush3.bf16.msra.mxu1 %v7909_v55 }
 0x30c   : > { %7252 = vmatprep.subr.bf16.mxu1 %v7910_v56 }
 0x30f   : > { %7253 = vmatpush3.bf16.msra.mxu1 %v7910_v56 }
 0x310   : > { %7254 = vmatprep.subr.bf16.mxu1 %v7911_v57 }
 0x313   : > { %7255 = vmatpush3.bf16.msra.mxu1 %v7911_v57 }
 0x314   : > { %7256 = vmatprep.subr.bf16.mxu1 %v7912_v58 }
 0x317   : > { %7257 = vmatpush3.bf16.msra.mxu1 %v7912_v58 }
 0x318   : > { %7262 = vmatprep.subr.bf16.mxu1 %v7914_v59 }
 0x31a   : > { %7259 = vmatmul.mubr.msk.bf16.vlgmr.msra.gmra.mrb[8].mxu1 %vm457_vm0, %v7915_v60 }
 0x31b   : > { %7263 = vmatpush3.bf16.msra.mxu1 %v7914_v59  ;;  %7274 = vmatprep.mubr.msk.bf16.mxu1 %vm457_vm0, %v7921_v61 }
 0x31c   : > { %7264 = vmatprep.subr.bf16.mxu1 %v7916_v62 }
 0x31f   : > { %7265 = vmatpush3.bf16.msra.mxu1 %v7916_v62 }
 0x320   : > { %7266 = vmatprep.subr.bf16.mxu1 %v7917_v63 }
 0x323   : > { %7267 = vmatpush3.bf16.msra.mxu1 %v7917_v63 }
 0x324   : > { %7268 = vmatprep.subr.bf16.mxu1 %v7918_v0 }
 0x327   : > { %7269 = vmatpush3.bf16.msra.mxu1 %v7918_v0  ;;  %v7950_v0 = vld [vmem:[%s9235_s8 + $0x8] sm:$0xff]  }
 0x328   : > { %7270 = vmatprep.subr.bf16.mxu1 %v7919_v1 }
 0x32b   : > { %7271 = vmatpush3.bf16.msra.mxu1 %v7919_v1  ;;  %v7951_v1 = vld [vmem:[%s9228_s1 + $0x30] sm:$0xff]  }
 0x32c   : > { %7272 = vmatprep.subr.bf16.mxu1 %v7920_v2 }
 0x32f   : > { %7273 = vmatpush3.bf16.msra.mxu1 %v7920_v2  ;;  %v6697_v2 = vld [vmem:[%s8420_s25 + $0x18] sm:$0xff]  }
 0x330   : > { %7278 = vmatprep.subr.bf16.mxu1 %v7922_v3 }
 0x332   : > { %7275 = vmatmul.mubr.msk.bf16.vlgmr.msra.gmra.mrb[8].mxu1 %vm457_vm0, %v7923_v4 }
 0x333   : > { %7279 = vmatpush3.bf16.msra.mxu1 %v7922_v3  ;;  %7290 = vmatprep.mubr.msk.bf16.mxu1 %vm457_vm0, %v7929_v5  ;;  %v6696_v3 = vld [vmem:[%s8420_s25 + $0x10] sm:$0xff]  }
 0x334   : > { %7280 = vmatprep.subr.bf16.mxu1 %v7924_v6 }
 0x337   : > { %7281 = vmatpush3.bf16.msra.mxu1 %v7924_v6  ;;  %v6677_v6 = vunpack.c.l.bf16 %v6697_v2 }
 0x338   : > { %7282 = vmatprep.subr.bf16.mxu1 %v7925_v7 }
 0x33b   : > { %7283 = vmatpush3.bf16.msra.mxu1 %v7925_v7 }
 0x33c   : > { %7284 = vmatprep.subr.bf16.mxu1 %v7926_v8 }
 0x33f   : > { %7285 = vmatpush3.bf16.msra.mxu1 %v7926_v8 }
 0x340   : > { %7286 = vmatprep.subr.bf16.mxu1 %v7927_v9 }
 0x343   : > { %7287 = vmatpush3.bf16.msra.mxu1 %v7927_v9  ;;  %v6673_v9 = vunpack.c.l.bf16 %v6696_v3 }
 0x344   : > { %7288 = vmatprep.subr.bf16.mxu1 %v7928_v10 }
 0x347   : > { %7289 = vmatpush3.bf16.msra.mxu1 %v7928_v10 }
 0x348   : > { %7294 = vmatprep.subr.bf16.mxu1 %v7930_v11 }
 0x34a   : > { %7291 = vmatmul.mubr.msk.bf16.vlgmr.msra.gmra.mrb[8].mxu1 %vm457_vm0, %v7931_v12 }
 0x34b   : > { %7295 = vmatpush3.bf16.msra.mxu1 %v7930_v11  ;;  %7306 = vmatprep.mubr.msk.bf16.mxu1 %vm457_vm0, %v7937_v13  ;;  %v6678_v13 = vunpack.c.h.bf16 %v6697_v2  ;;  %v7977_v2 = vld [vmem:[%s9228_s1 + $0xa0] sm:$0xff]  }
 0x34c   : > { %7296 = vmatprep.subr.bf16.mxu1 %v7932_v14 }
 0x34f   : > { %7297 = vmatpush3.bf16.msra.mxu1 %v7932_v14 }
 0x350   : > { %7298 = vmatprep.subr.bf16.mxu1 %v7933_v16 }
 0x353   : > { %7299 = vmatpush3.bf16.msra.mxu1 %v7933_v16 }
 0x354   : > { %7300 = vmatprep.subr.bf16.mxu1 %v7934_v18 }
 0x357   : > { %7301 = vmatpush3.bf16.msra.mxu1 %v7934_v18 }
 0x358   : > { %7302 = vmatprep.subr.bf16.mxu1 %v7935_v19 }
 0x35b   : > { %7303 = vmatpush3.bf16.msra.mxu1 %v7935_v19  ;;  %v6674_v19 = vunpack.c.h.bf16 %v6696_v3  ;;  %v7978_v3 = vld [vmem:[%s9228_s1 + $0xa8] sm:$0xff]  }
 0x35c   : > { %7304 = vmatprep.subr.bf16.mxu1 %v7936_v20 }
 0x35f   : > { %7305 = vmatpush3.bf16.msra.mxu1 %v7936_v20 }
 0x360   : > { %7310 = vmatprep.subr.bf16.mxu1 %v7938_v21 }
 0x362   : > { %7307 = vmatmul.mubr.msk.bf16.vlgmr.msra.gmra.mrb[8].mxu1 %vm457_vm0, %v7939_v22 }
 0x363   : > { %7311 = vmatpush3.bf16.msra.mxu1 %v7938_v21  ;;  %7322 = vmatprep.mubr.msk.bf16.mxu1 %vm457_vm0, %v7945_v23 }
 0x364   : > { %7312 = vmatprep.subr.bf16.mxu1 %v7940_v24 }
 0x367   : > { %7313 = vmatpush3.bf16.msra.mxu1 %v7940_v24 }
 0x368   : > { %7314 = vmatprep.subr.bf16.mxu1 %v7941_v25 }
 0x36b   : > { %7315 = vmatpush3.bf16.msra.mxu1 %v7941_v25 }
 0x36c   : > { %7316 = vmatprep.subr.bf16.mxu1 %v7942_v26 }
 0x36f   : > { %7317 = vmatpush3.bf16.msra.mxu1 %v7942_v26 }
 0x370   : > { %7318 = vmatprep.subr.bf16.mxu1 %v7943_v27 }
 0x373   : > { %7319 = vmatpush3.bf16.msra.mxu1 %v7943_v27 }
 0x374   : > { %7320 = vmatprep.subr.bf16.mxu1 %v7944_v28 }
 0x375   : > { %v7180_v30 = vpop.f32.mrb[4].mxu1 }
 0x376   : > { %v1692_v31 = vadd.f32 %v7180_v30, %v8642_v29  ;;  %v1683_v32 = vpop.f32.mrb[5].mxu1  ;;  %v6180_v30 = vld [vmem:[%s8189_s24 + $0x34] sm:$0xf] }
 0x377   : > { %v1684_v34 = vadd.f32 %v8642_v29, %v1683_v32  ;;  %7321 = vmatpush3.bf16.msra.mxu1 %v7944_v28  ;;  %v7181_v35 = vpop.f32.mrb[6].mxu1 }
 0x378   : > { %1701 = vst.msk [vmem:[%s8647_s29 + $0x10] sm:$0xff] %vm1698_vm10, %v1692_v31  ;;  %v1695_v36 = vadd.f32 %v7181_v35, %v8642_v29  ;;  %v1686_v37 = vpop.f32.mrb[7].mxu1 }
 0x379   : > { %1699 = vst.msk [vmem:[%s8647_s29] sm:$0xff] %vm1698_vm10, %v1684_v34  ;;  %v1687_v38 = vadd.f32 %v8642_v29, %v1686_v37 }
 0x37a   : > { %1702 = vst.msk [vmem:[%s8647_s29 + $0x18] sm:$0xff] %vm1698_vm10, %v1695_v36  ;;  %7323 = vmatmul.mubr.msk.bf16.vlgmr.msra.gmra.mrb[8].mxu1 %vm457_vm0, %v7946_v33 }
 0x37b   : > { %1700 = vst.msk [vmem:[%s8647_s29 + $0x8] sm:$0xff] %vm1698_vm10, %v1687_v38 }
 0x44d   : > { %v7324_v41 = vpop.f32.mrb[8].mxu1 }
 0x44e   : > { %v2785_v43 = vmul.f32 %v7324_v41, %v8390_v15  ;;  %v2757_v44 = vpop.f32.mrb[9].mxu1  ;;  %v7955_v41 = vld [vmem:[%s9228_s1 + $0x50] sm:$0xff]  }
 0x44f   : > { %v2783_v45 = vmul.f32 %v8390_v15, %v2757_v44  ;;  %v7325_v47 = vpop.f32.mrb[10].mxu1  ;;  %v6182_v44 = vld [vmem:[%s8189_s24 + $0x3c] sm:$0xf] }
 0x450   : > { %v2796_v48 = vadd.f32 %v8395_v17, %v2785_v43  ;;  %v2786_v49 = vmul.f32 %v7325_v47, %v8390_v15  ;;  %v2760_v50 = vpop.f32.mrb[11].mxu1  ;;  %v7956_v43 = vld [vmem:[%s9228_s1 + $0x58] sm:$0xff]   ;;  %v7960_v47 = vld [vmem:[%s9228_s1] sm:$0xff]  }
 0x451   : > { %v2794_v51 = vadd.f32 %v8395_v17, %v2783_v45  ;;  %v2784_v52 = vmul.f32 %v8390_v15, %v2760_v50  ;;  %v6183_v45 = vld [vmem:[%s8189_s24 + $0x40] sm:$0xf] }
 0x452   : > { %v2804_v53 = vmul.f32 0.01, %v2796_v48  ;;  %v2797_v54 = vadd.f32 %v8395_v17, %v2786_v49  ;;  %vm2800_vm11 = vcmp.ge.f32.partialorder %v2796_v48, 0.0  ;;  %v6197_v49 = vcombine.low %v6182_v44, %v6183_v45  ;;  %v8018_v45 = vld [vmem:[%s9228_s1 + $0x198] sm:$0xff]  }
 0x453   : > { %v2802_v55 = vmul.f32 0.01, %v2794_v51  ;;  %v2795_v56 = vadd.f32 %v8395_v17, %v2784_v52  ;;  %vm2798_vm12 = vcmp.ge.f32.partialorder %v2794_v51, 0.0  ;;  %v7949_v17 = vld [vmem:[%s9235_s8] sm:$0xff]   ;;  %v7962_v52 = vld [vmem:[%s9228_s1 + $0x10] sm:$0xff]  }
 0x454   : > { %vm2801_vm13 = vcmp.ge.f32.partialorder %v2797_v54, 0.0  ;;  %v2805_v57 = vmul.f32 0.01, %v2797_v54  ;;  %v2808_v59 = vsel %vm2800_vm11, %v2796_v48, %v2804_v53  ;;  %7334 = vmatprep.subr.bf16.mxu0 %v7949_v17  ;;  %v6179_v48 = vld [vmem:[%s8189_s24 + $0x30] sm:$0xf]  ;;  %v7963_v53 = vld [vmem:[%s9228_s1 + $0x18] sm:$0xff]  }
 0x455   : > { %vm2799_vm14 = vcmp.ge.f32.partialorder %v2795_v56, 0.0  ;;  %v2803_v58 = vmul.f32 0.01, %v2795_v56  ;;  %v2806_v61 = vsel %vm2798_vm12, %v2794_v51, %v2802_v55  ;;  %v6206_v50 = vcombine.low %v6179_v48, %v6180_v30  ;;  %v7961_v51 = vld [vmem:[%s9228_s1 + $0x8] sm:$0xff]  }
 0x456   : > { %v2809_v60 = vsel %vm2801_vm13, %v2797_v54, %v2805_v57  ;;  %v7964_v54 = vld [vmem:[%s9228_s1 + $0x20] sm:$0xff]   ;;  %v7965_v55 = vld [vmem:[%s9228_s1 + $0x28] sm:$0xff]  }
 0x457   : > { %v2811_v62 = vpack.c.bf16 %v2809_v60, %v2808_v59  ;;  %v2807_v63 = vsel %vm2799_vm14, %v2795_v56, %v2803_v58  ;;  %v7967_v56 = vld [vmem:[%s9228_s1 + $0x60] sm:$0xff]   ;;  %v7973_v58 = vld [vmem:[%s8189_s24 + $0x38] sm:$0xff]   ;;  %v7968_v59 = vld [vmem:[%s9228_s1 + $0x68] sm:$0xff]  }
 0x458   : > { %v2810_v15 = vpack.c.bf16 %v2807_v63, %v2806_v61  ;;  %v7969_v60 = vld [vmem:[%s9228_s1 + $0x70] sm:$0xff]   ;;  %v7970_v61 = vld [vmem:[%s9228_s1 + $0x78] sm:$0xff]   ;;  %v7972_v63 = vld [vmem:[%s9228_s1 + $0x88] sm:$0xff]  }
 0x459   : > { %v8020_v48 = vld [vmem:[%s9228_s1 + $0x1a8] sm:$0xff]  }
 0x45a   : > { %7330 = vmatprep.mubr.msk.bf16.mxu0 %vm1516_vm5, %v2810_v15  ;;  %v7974_v15 = vld [vmem:[%s9228_s1 + $0x90] sm:$0xff]  }
 0x45b   : > { %7331 = vmatmul.mubr.msk.bf16.vlgmr.msra.gmra.mrb[4].mxu0 %vm1516_vm5, %v2811_v62  ;;  %v7971_v62 = vld [vmem:[%s9228_s1 + $0x80] sm:$0xff]  }
 0x45c   : > { %7335 = vmatpush3.bf16.msra.mxu0 %v7949_v17  ;;  %v7975_v17 = vld [vmem:[%s8189_s24 + $0x40] sm:$0xff]  }
 0x45d   : > { %7336 = vmatprep.subr.bf16.mxu0 %v7950_v0 }
 0x460   : > { %7337 = vmatpush3.bf16.msra.mxu0 %v7950_v0  ;;  %v7981_v0 = vld [vmem:[%s8189_s24 + $0x48] sm:$0xff]  }
 0x461   : > { %7342 = vmatprep.subr.bf16.mxu0 %v7951_v1 }
 0x52e   : > { %v7332_v4 = vpop.f32.mrb[4].mxu0 }
 0x52f   : > { %v2892_v5 = vmul.f32 %v7332_v4, %v8425_v42  ;;  %v2868_v7 = vpop.f32.mrb[5].mxu0  ;;  %v7979_v4 = vld [vmem:[%s9228_s1 + $0xb0] sm:$0xff]  }
 0x530   : > { %v2890_v8 = vmul.f32 %v8425_v42, %v2868_v7  ;;  %v7333_v10 = vpop.f32.mrb[6].mxu0  ;;  %v7983_v7 = vld [vmem:[%s8189_s24 + $0x50] sm:$0xff]  }
 0x531   : > { %v2903_v11 = vadd.f32 %v8432_v46, %v2892_v5  ;;  %v2893_v12 = vmul.f32 %v7333_v10, %v8425_v42  ;;  %v2871_v14 = vpop.f32.mrb[7].mxu0  ;;  %v7980_v5 = vld [vmem:[%s9228_s1 + $0xb8] sm:$0xff]   ;;  %v7985_v10 = vld [vmem:[%s9228_s1 + $0xd0] sm:$0xff]  }
 0x532   : > { %v2901_v16 = vadd.f32 %v8432_v46, %v2890_v8  ;;  %v2891_v18 = vmul.f32 %v8425_v42, %v2871_v14  ;;  %v6181_v42 = vld [vmem:[%s8189_s24 + $0x38] sm:$0xf]  ;;  %v7989_v8 = vld [vmem:[%s8189_s24 + $0x4c] sm:$0xff]  }
 0x533   : > { %v2916_v20 = vadd.f32 %v6677_v6, %v2903_v11  ;;  %v2904_v21 = vadd.f32 %v8432_v46, %v2893_v12  ;;  %v6196_v38 = vcombine.low %v6180_v30, %v6181_v42  ;;  %v6207_v57 = vcombine.low %v6181_v42, %v6182_v44  ;;  %v7982_v6 = vld [vmem:[%s9228_s1 + $0xc0] sm:$0xff]   ;;  %v7986_v11 = vld [vmem:[%s9228_s1 + $0xd8] sm:$0xff]   ;;  %v7990_v14 = vld [vmem:[%s9228_s1 + $0xf0] sm:$0xff]  }
 0x534   : > { %v2914_v22 = vadd.f32 %v6673_v9, %v2901_v16  ;;  %v2902_v23 = vadd.f32 %v8432_v46, %v2891_v18  ;;  %v7952_v46 = vld [vmem:[%s9228_s1 + $0x38] sm:$0xff]   ;;  %v7984_v9 = vld [vmem:[%s9228_s1 + $0xc8] sm:$0xff]   ;;  %v7987_v12 = vld [vmem:[%s9228_s1 + $0xe0] sm:$0xff]  }
 0x535   : > { %v2924_v24 = vmul.f32 0.01, %v2916_v20  ;;  %v2917_v25 = vadd.f32 %v6678_v13, %v2904_v21  ;;  %vm2920_vm15 = vcmp.ge.f32.partialorder %v2916_v20, 0.0  ;;  %v7988_v13 = vld [vmem:[%s9228_s1 + $0xe8] sm:$0xff]   ;;  %v7991_v16 = vld [vmem:[%s8189_s24 + $0x54] sm:$0xff]  }
 0x536   : > { %v2922_v26 = vmul.f32 0.01, %v2914_v22  ;;  %v2915_v27 = vadd.f32 %v6674_v19, %v2902_v23  ;;  %vm2918_vm1 = vcmp.ge.f32.partialorder %v2914_v22, 0.0  ;;  %v7997_v18 = vld [vmem:[%s8189_s24 + $0x50] sm:$0xff]   ;;  %v7992_v19 = vld [vmem:[%s9228_s1 + $0xf8] sm:$0xff]   ;;  %v7994_v21 = vld [vmem:[%s9228_s1 + $0x108] sm:$0xff]  }
 0x537   : > { %vm2921_vm2 = vcmp.ge.f32.partialorder %v2917_v25, 0.0  ;;  %v2925_v28 = vmul.f32 0.01, %v2917_v25  ;;  %v2928_v32 = vsel %vm2920_vm15, %v2916_v20, %v2924_v24  ;;  %v7993_v20 = vld [vmem:[%s9228_s1 + $0x100] sm:$0xff]   ;;  %v7996_v23 = vld [vmem:[%s9228_s1 + $0x118] sm:$0xff]   ;;  %v8004_v42 = vld [vmem:[%s9228_s1 + $0x148] sm:$0xff]  }
 0x538   : > { %vm2919_vm3 = vcmp.ge.f32.partialorder %v2915_v27, 0.0  ;;  %v2923_v31 = vmul.f32 0.01, %v2915_v27  ;;  %v2926_v35 = vsel %vm2918_vm1, %v2914_v22, %v2922_v26  ;;  %v7995_v22 = vld [vmem:[%s9228_s1 + $0x110] sm:$0xff]   ;;  %v7998_v24 = vld [vmem:[%s9228_s1 + $0x120] sm:$0xff]   ;;  %v8002_v30 = vld [vmem:[%s9228_s1 + $0x138] sm:$0xff]  }
 0x539   : > { %v2929_v33 = vsel %vm2921_vm2, %v2917_v25, %v2925_v28  ;;  %v7999_v25 = vld [vmem:[%s8189_s24 + $0x58] sm:$0xff]   ;;  %v8005_v26 = vld [vmem:[%s8189_s24 + $0x60] sm:$0xff]   ;;  %v8001_v28 = vld [vmem:[%s9228_s1 + $0x130] sm:$0xff]  }
 0x53a   : > { %v2931_v34 = vpack.c.bf16 %v2929_v33, %v2928_v32  ;;  %v2927_v36 = vsel %vm2919_vm3, %v2915_v27, %v2923_v31  ;;  %v8000_v27 = vld [vmem:[%s9228_s1 + $0x128] sm:$0xff]   ;;  %v8003_v31 = vld [vmem:[%s9228_s1 + $0x140] sm:$0xff]   ;;  %v8006_v32 = vld [vmem:[%s9228_s1 + $0x150] sm:$0xff]  }
 0x53b   : > { %v2930_v37 = vpack.c.bf16 %v2927_v36, %v2926_v35  ;;  %v8007_v33 = vld [vmem:[%s8189_s24 + $0x68] sm:$0xff]   ;;  %v8008_v35 = vld [vmem:[%s9228_s1 + $0x158] sm:$0xff]   ;;  %v8009_v36 = vld [vmem:[%s9228_s1 + $0x160] sm:$0xff]  }
 0x53c   : > { %v8017_v44 = vld [vmem:[%s9228_s1 + $0x190] sm:$0xff]  }
 0x53d   : > { %7338 = vmatprep.mubr.msk.bf16.mxu0 %vm1516_vm5, %v2930_v37  ;;  %v8010_v37 = vld [vmem:[%s9228_s1 + $0x168] sm:$0xff]  }
 0x53e   : > { %7339 = vmatmul.mubr.msk.bf16.vlgmr.msra.gmra.mrb[8].mxu0 %vm1516_vm5, %v2931_v34  ;;  %v8013_v34 = vld [vmem:[%s8189_s24 + $0x64] sm:$0xff]  }
 0x53f   : > { %7343 = vmatpush3.bf16.msra.mxu0 %v7951_v1  ;;  %7354 = vmatprep.mubr.msk.bf16.mxu0 %vm457_vm0, %v6196_v38  ;;  %v7976_v1 = vld [vmem:[%s9228_s1 + $0x98] sm:$0xff]   ;;  %v8011_v38 = vld [vmem:[%s9228_s1 + $0x170] sm:$0xff]  }
 0x540   : > { %7344 = vmatprep.subr.bf16.mxu0 %v7952_v46 }
 0x543   : > { %7345 = vmatpush3.bf16.msra.mxu0 %v7952_v46  ;;  %v8012_v46 = vld [vmem:[%s9228_s1 + $0x178] sm:$0xff]  }
 0x544   : > { %7346 = vmatprep.subr.bf16.mxu0 %v7953_v39 }
 0x547   : > { %7347 = vmatpush3.bf16.msra.mxu0 %v7953_v39  ;;  %v8014_v39 = vld [vmem:[%s9228_s1 + $0x180] sm:$0xff]  }
 0x548   : > { %7348 = vmatprep.subr.bf16.mxu0 %v7954_v40 }
 0x54b   : > { %7349 = vmatpush3.bf16.msra.mxu0 %v7954_v40  ;;  %v8015_v40 = vld [vmem:[%s8189_s24 + $0x6c] sm:$0xff]  }
 0x54c   : > { %7350 = vmatprep.subr.bf16.mxu0 %v7955_v41 }
 0x54f   : > { %7351 = vmatpush3.bf16.msra.mxu0 %v7955_v41  ;;  %v8021_v41 = vld [vmem:[%s8189_s24 + $0x68] sm:$0xff]  }
 0x550   : > { %7352 = vmatprep.subr.bf16.mxu0 %v7956_v43 }
 0x553   : > { %7353 = vmatpush3.bf16.msra.mxu0 %v7956_v43  ;;  %v8016_v43 = vld [vmem:[%s9228_s1 + $0x188] sm:$0xff]  }
 0x554   : > { %7358 = vmatprep.subr.bf16.mxu0 %v7960_v47 }
 0x556   : > { %7355 = vmatmul.mubr.msk.bf16.vlgmr.msra.gmra.mrb[12].mxu0 %vm457_vm0, %v6197_v49 }
 0x557   : > { %7359 = vmatpush3.bf16.msra.mxu0 %v7960_v47  ;;  %7370 = vmatprep.mubr.msk.bf16.mxu0 %vm457_vm0, %v6206_v50  ;;  %v8019_v47 = vld [vmem:[%s9228_s1 + $0x1a0] sm:$0xff]  }
 0x558   : > { %7360 = vmatprep.subr.bf16.mxu0 %v7961_v51 }
 0x55b   : > { %7361 = vmatpush3.bf16.msra.mxu0 %v7961_v51 }
 0x55c   : > { %7362 = vmatprep.subr.bf16.mxu0 %v7962_v52 }
 0x55f   : > { %7363 = vmatpush3.bf16.msra.mxu0 %v7962_v52  ;;  %v8022_v52 = vld [vmem:[%s8189_s24 + $0x70] sm:$0xff]  }
 0x560   : > { %7364 = vmatprep.subr.bf16.mxu0 %v7963_v53 }
 0x563   : > { %7365 = vmatpush3.bf16.msra.mxu0 %v7963_v53 }
 0x564   : > { %7366 = vmatprep.subr.bf16.mxu0 %v7964_v54 }
 0x567   : > { %7367 = vmatpush3.bf16.msra.mxu0 %v7964_v54 }
 0x568   : > { %7368 = vmatprep.subr.bf16.mxu0 %v7965_v55 }
 0x56b   : > { %7369 = vmatpush3.bf16.msra.mxu0 %v7965_v55 }
 0x56c   : > { %7374 = vmatprep.subr.bf16.mxu0 %v7967_v56 }
 0x56e   : > { %7371 = vmatmul.mubr.msk.bf16.vlgmr.msra.gmra.mrb[12].mxu0 %vm457_vm0, %v6207_v57 }
 0x56f   : > { %7375 = vmatpush3.bf16.msra.mxu0 %v7967_v56  ;;  %7386 = vmatprep.mubr.msk.bf16.mxu0 %vm457_vm0, %v7973_v58  ;;  %v8023_v58 = vld [vmem:[%s9231_s4] sm:$0xff]  }
 0x570   : > { %7376 = vmatprep.subr.bf16.mxu0 %v7968_v59  ;;  %7486 = vmatprep.subr.bf16.mxu1 %v8023_v58 }
 0x571   : > { %7487 = vmatpush3.bf16.msra.mxu1 %v8023_v58 }
 0x573   : > { %7377 = vmatpush3.bf16.msra.mxu0 %v7968_v59  ;;  %v8024_v59 = vld [vmem:[%s9231_s4 + $0x8] sm:$0xff]  }
 0x574   : > { %7378 = vmatprep.subr.bf16.mxu0 %v7969_v60  ;;  %7488 = vmatprep.subr.bf16.mxu1 %v8024_v59 }
 0x575   : > { %7489 = vmatpush3.bf16.msra.mxu1 %v8024_v59 }
 0x577   : > { %7379 = vmatpush3.bf16.msra.mxu0 %v7969_v60 }
 0x578   : > { %7380 = vmatprep.subr.bf16.mxu0 %v7970_v61 }
 0x57b   : > { %7381 = vmatpush3.bf16.msra.mxu0 %v7970_v61  ;;  %v8922_v61 = vld [vmem:[%s9230_s3] ss:$0 sm:$0xff] }
 0x57c   : > { %7382 = vmatprep.subr.bf16.mxu0 %v7971_v62 }
 0x57f   : > { %7383 = vmatpush3.bf16.msra.mxu0 %v7971_v62 }
 0x580   : > { %7384 = vmatprep.subr.bf16.mxu0 %v7972_v63 }
 0x583   : > { %7385 = vmatpush3.bf16.msra.mxu0 %v7972_v63 }
 0x584   : > { %7390 = vmatprep.subr.bf16.mxu0 %v7974_v15 }
 0x586   : > { %7387 = vmatmul.mubr.msk.bf16.vlgmr.msra.gmra.mrb[12].mxu0 %vm457_vm0, %v7975_v17 }
 0x587   : > { %7391 = vmatpush3.bf16.msra.mxu0 %v7974_v15  ;;  %7402 = vmatprep.mubr.msk.bf16.mxu0 %vm457_vm0, %v7981_v0 }
 0x588   : > { %7392 = vmatprep.subr.bf16.mxu0 %v7976_v1 }
 0x58b   : > { %7393 = vmatpush3.bf16.msra.mxu0 %v7976_v1 }
 0x58c   : > { %7394 = vmatprep.subr.bf16.mxu0 %v7977_v2 }
 0x58f   : > { %7395 = vmatpush3.bf16.msra.mxu0 %v7977_v2 }
 0x590   : > { %7396 = vmatprep.subr.bf16.mxu0 %v7978_v3 }
 0x593   : > { %7397 = vmatpush3.bf16.msra.mxu0 %v7978_v3 }
 0x594   : > { %7398 = vmatprep.subr.bf16.mxu0 %v7979_v4 }
 0x597   : > { %7399 = vmatpush3.bf16.msra.mxu0 %v7979_v4 }
 0x598   : > { %7400 = vmatprep.subr.bf16.mxu0 %v7980_v5 }
 0x59b   : > { %7401 = vmatpush3.bf16.msra.mxu0 %v7980_v5 }
 0x59c   : > { %7406 = vmatprep.subr.bf16.mxu0 %v7982_v6 }
 0x59e   : > { %7403 = vmatmul.mubr.msk.bf16.vlgmr.msra.gmra.mrb[12].mxu0 %vm457_vm0, %v7983_v7 }
 0x59f   : > { %7407 = vmatpush3.bf16.msra.mxu0 %v7982_v6  ;;  %7418 = vmatprep.mubr.msk.bf16.mxu0 %vm457_vm0, %v7989_v8 }
 0x5a0   : > { %7408 = vmatprep.subr.bf16.mxu0 %v7984_v9 }
 0x5a3   : > { %7409 = vmatpush3.bf16.msra.mxu0 %v7984_v9 }
 0x5a4   : > { %7410 = vmatprep.subr.bf16.mxu0 %v7985_v10 }
 0x5a7   : > { %7411 = vmatpush3.bf16.msra.mxu0 %v7985_v10 }
 0x5a8   : > { %7412 = vmatprep.subr.bf16.mxu0 %v7986_v11 }
 0x5ab   : > { %7413 = vmatpush3.bf16.msra.mxu0 %v7986_v11 }
 0x5ac   : > { %7414 = vmatprep.subr.bf16.mxu0 %v7987_v12 }
 0x5af   : > { %7415 = vmatpush3.bf16.msra.mxu0 %v7987_v12 }
 0x5b0   : > { %7416 = vmatprep.subr.bf16.mxu0 %v7988_v13 }
 0x5b3   : > { %7417 = vmatpush3.bf16.msra.mxu0 %v7988_v13 }
 0x5b4   : > { %7422 = vmatprep.subr.bf16.mxu0 %v7990_v14 }
 0x5b6   : > { %7419 = vmatmul.mubr.msk.bf16.vlgmr.msra.gmra.mrb[12].mxu0 %vm457_vm0, %v7991_v16 }
 0x5b7   : > { %7423 = vmatpush3.bf16.msra.mxu0 %v7990_v14  ;;  %7434 = vmatprep.mubr.msk.bf16.mxu0 %vm457_vm0, %v7997_v18 }
 0x5b8   : > { %7424 = vmatprep.subr.bf16.mxu0 %v7992_v19 }
 0x5bb   : > { %7425 = vmatpush3.bf16.msra.mxu0 %v7992_v19  ;;  %v8025_v19 = vld [vmem:[%s9235_s8] sm:$0xff]  }
 0x5bc   : > { %7426 = vmatprep.subr.bf16.mxu0 %v7993_v20  ;;  %7494 = vmatprep.subr.bf16.mxu1 %v8025_v19 }
 0x5bf   : > { %7427 = vmatpush3.bf16.msra.mxu0 %v7993_v20  ;;  %v8026_v20 = vld [vmem:[%s9235_s8 + $0x8] sm:$0xff]  }
 0x5c0   : > { %7428 = vmatprep.subr.bf16.mxu0 %v7994_v21 }
 0x5c3   : > { %7429 = vmatpush3.bf16.msra.mxu0 %v7994_v21  ;;  %v8027_v21 = vld [vmem:[%s9228_s1 + $0x30] sm:$0xff]  }
 0x5c4   : > { %7430 = vmatprep.subr.bf16.mxu0 %v7995_v22 }
 0x5c7   : > { %7431 = vmatpush3.bf16.msra.mxu0 %v7995_v22  ;;  %v8946_v22 = vld [vmem:[%s9232_s5] ss:$0 sm:$0xff] }
 0x5c8   : > { %7432 = vmatprep.subr.bf16.mxu0 %v7996_v23 }
 0x5cb   : > { %7433 = vmatpush3.bf16.msra.mxu0 %v7996_v23  ;;  %v6699_v23 = vld [vmem:[%s8420_s25 + $0x28] sm:$0xff]  }
 0x5cc   : > { %7438 = vmatprep.subr.bf16.mxu0 %v7998_v24 }
 0x5ce   : > { %7435 = vmatmul.mubr.msk.bf16.vlgmr.msra.gmra.mrb[12].mxu0 %vm457_vm0, %v7999_v25 }
 0x5cf   : > { %7439 = vmatpush3.bf16.msra.mxu0 %v7998_v24  ;;  %7450 = vmatprep.mubr.msk.bf16.mxu0 %vm457_vm0, %v8005_v26  ;;  %v6698_v24 = vld [vmem:[%s8420_s25 + $0x20] sm:$0xff]  }
 0x5d0   : > { %7440 = vmatprep.subr.bf16.mxu0 %v8000_v27  ;;  %v8953_v26 = vld [vmem:[%s9233_s6] ss:$0 sm:$0xff] }
 0x5d3   : > { %7441 = vmatpush3.bf16.msra.mxu0 %v8000_v27 }
 0x5d4   : > { %7442 = vmatprep.subr.bf16.mxu0 %v8001_v28 }
 0x5d7   : > { %7443 = vmatpush3.bf16.msra.mxu0 %v8001_v28  ;;  %v6685_v28 = vunpack.c.l.bf16 %v6699_v23 }
 0x5d8   : > { %7444 = vmatprep.subr.bf16.mxu0 %v8002_v30 }
 0x5db   : > { %7445 = vmatpush3.bf16.msra.mxu0 %v8002_v30 }
 0x5dc   : > { %7446 = vmatprep.subr.bf16.mxu0 %v8003_v31 }
 0x5df   : > { %7447 = vmatpush3.bf16.msra.mxu0 %v8003_v31 }
 0x5e0   : > { %7448 = vmatprep.subr.bf16.mxu0 %v8004_v42 }
 0x5e3   : > { %7449 = vmatpush3.bf16.msra.mxu0 %v8004_v42  ;;  %v6681_v42 = vunpack.c.l.bf16 %v6698_v24 }
 0x5e4   : > { %7454 = vmatprep.subr.bf16.mxu0 %v8006_v32 }
 0x5e6   : > { %7451 = vmatmul.mubr.msk.bf16.vlgmr.msra.gmra.mrb[12].mxu0 %vm457_vm0, %v8007_v33 }
 0x5e7   : > { %7455 = vmatpush3.bf16.msra.mxu0 %v8006_v32  ;;  %7466 = vmatprep.mubr.msk.bf16.mxu0 %vm457_vm0, %v8013_v34 }
 0x5e8   : > { %7456 = vmatprep.subr.bf16.mxu0 %v8008_v35 }
 0x5eb   : > { %7457 = vmatpush3.bf16.msra.mxu0 %v8008_v35  ;;  %v6686_v35 = vunpack.c.h.bf16 %v6699_v23  ;;  %v8051_v23 = vld [vmem:[%s8189_s24 + $0x58] sm:$0xff]  }
 0x5ec   : > { %7458 = vmatprep.subr.bf16.mxu0 %v8009_v36 }
 0x5ef   : > { %7459 = vmatpush3.bf16.msra.mxu0 %v8009_v36 }
 0x5f0   : > { %7460 = vmatprep.subr.bf16.mxu0 %v8010_v37 }
 0x5f3   : > { %7461 = vmatpush3.bf16.msra.mxu0 %v8010_v37 }
 0x5f4   : > { %7462 = vmatprep.subr.bf16.mxu0 %v8011_v38 }
 0x5f7   : > { %7463 = vmatpush3.bf16.msra.mxu0 %v8011_v38 }
 0x5f8   : > { %7464 = vmatprep.subr.bf16.mxu0 %v8012_v46 }
 0x5fb   : > { %7465 = vmatpush3.bf16.msra.mxu0 %v8012_v46  ;;  %v6682_v46 = vunpack.c.h.bf16 %v6698_v24  ;;  %v8057_v24 = vld [vmem:[%s8189_s24 + $0x60] sm:$0xff]  }
 0x5fc   : > { %7470 = vmatprep.subr.bf16.mxu0 %v8014_v39 }
 0x5fe   : > { %7467 = vmatmul.mubr.msk.bf16.vlgmr.msra.gmra.mrb[12].mxu0 %vm457_vm0, %v8015_v40 }
 0x5ff   : > { %7471 = vmatpush3.bf16.msra.mxu0 %v8014_v39  ;;  %7482 = vmatprep.mubr.msk.bf16.mxu0 %vm457_vm0, %v8021_v41 }
 0x600   : > { %7472 = vmatprep.subr.bf16.mxu0 %v8016_v43 }
 0x603   : > { %7473 = vmatpush3.bf16.msra.mxu0 %v8016_v43 }
 0x604   : > { %7474 = vmatprep.subr.bf16.mxu0 %v8017_v44 }
 0x607   : > { %7475 = vmatpush3.bf16.msra.mxu0 %v8017_v44 }
 0x608   : > { %7476 = vmatprep.subr.bf16.mxu0 %v8018_v45 }
 0x60b   : > { %7477 = vmatpush3.bf16.msra.mxu0 %v8018_v45 }
 0x60c   : > { %7478 = vmatprep.subr.bf16.mxu0 %v8019_v47 }
 0x60f   : > { %7479 = vmatpush3.bf16.msra.mxu0 %v8019_v47 }
 0x610   : > { %7480 = vmatprep.subr.bf16.mxu0 %v8020_v48 }
 0x611   : > { %v7340_v49 = vpop.f32.mrb[8].mxu0 }
 0x612   : > { %v3004_v50 = vadd.f32 %v7340_v49, %v8642_v29  ;;  %v2995_v51 = vpop.f32.mrb[9].mxu0 }
 0x613   : > { %v2996_v53 = vadd.f32 %v8642_v29, %v2995_v51  ;;  %7481 = vmatpush3.bf16.msra.mxu0 %v8020_v48  ;;  %v7341_v54 = vpop.f32.mrb[10].mxu0 }
 0x614   : > { %6177 = vst.msk [vmem:[%s8647_s29 + $0x30] sm:$0xff] %vm1698_vm10, %v3004_v50  ;;  %v3007_v55 = vadd.f32 %v7341_v54, %v8642_v29  ;;  %v2998_v56 = vpop.f32.mrb[11].mxu0  ;;  %v6420_v50 = vld [vmem:[%s8189_s24 + $0x4c] sm:$0xf] }
 0x615   : > { %6175 = vst.msk [vmem:[%s8647_s29 + $0x20] sm:$0xff] %vm1698_vm10, %v2996_v53  ;;  %v2999_v57 = vadd.f32 %v8642_v29, %v2998_v56  ;;  %v8917_v29 = vld [vmem:[%s9229_s2] ss:$0 sm:$0xff] }
 0x616   : > { %6178 = vst.msk [vmem:[%s8647_s29 + $0x38] sm:$0xff] %vm1698_vm10, %v3007_v55  ;;  %7483 = vmatmul.mubr.msk.bf16.vlgmr.msra.gmra.mrb[12].mxu0 %vm457_vm0, %v8022_v52  ;;  %v6421_v52 = vld [vmem:[%s8189_s24 + $0x50] sm:$0xf] }
 0x617   : > { %6176 = vst.msk [vmem:[%s8647_s29 + $0x28] sm:$0xff] %vm1698_vm10, %v2999_v57  ;;  %v6436_v59 = vcombine.low %v6420_v50, %v6421_v52 }
 0x6e9   : > { %v7484_v60 = vpop.f32.mrb[12].mxu0 }
 0x6ea   : > { %v4097_v62 = vmul.f32 %v7484_v60, %v8917_v29  ;;  %v4069_v63 = vpop.f32.mrb[13].mxu0  ;;  %v8028_v60 = vld [vmem:[%s9228_s1 + $0x38] sm:$0xff]  }
 0x6eb   : > { %v4095_v15 = vmul.f32 %v8917_v29, %v4069_v63  ;;  %v7485_v17 = vpop.f32.mrb[14].mxu0  ;;  %v8030_v63 = vld [vmem:[%s9228_s1 + $0x48] sm:$0xff]  }
 0x6ec   : > { %v4108_v0 = vadd.f32 %v8922_v61, %v4097_v62  ;;  %v4098_v1 = vmul.f32 %v7485_v17, %v8917_v29  ;;  %v4072_v2 = vpop.f32.mrb[15].mxu0  ;;  %v8029_v62 = vld [vmem:[%s9228_s1 + $0x40] sm:$0xff]   ;;  %v8032_v17 = vld [vmem:[%s9228_s1 + $0x58] sm:$0xff]  }
 0x6ed   : > { %v4106_v3 = vadd.f32 %v8922_v61, %v4095_v15  ;;  %v4096_v4 = vmul.f32 %v8917_v29, %v4072_v2  ;;  %v8031_v15 = vld [vmem:[%s9228_s1 + $0x50] sm:$0xff]   ;;  %v8036_v2 = vld [vmem:[%s9228_s1] sm:$0xff]  }
 0x6ee   : > { %v4116_v5 = vmul.f32 0.01, %v4108_v0  ;;  %v4109_v6 = vadd.f32 %v8922_v61, %v4098_v1  ;;  %vm4112_vm4 = vcmp.ge.f32.partialorder %v4108_v0, 0.0  ;;  %v6423_v1 = vld [vmem:[%s8189_s24 + $0x58] sm:$0xf] }
 0x6ef   : > { %v4114_v7 = vmul.f32 0.01, %v4106_v3  ;;  %v4107_v8 = vadd.f32 %v8922_v61, %v4096_v4  ;;  %vm4110_vm6 = vcmp.ge.f32.partialorder %v4106_v3, 0.0 }
 0x6f0   : > { %vm4113_vm7 = vcmp.ge.f32.partialorder %v4109_v6, 0.0  ;;  %v4117_v9 = vmul.f32 0.01, %v4109_v6  ;;  %v4120_v11 = vsel %vm4112_vm4, %v4108_v0, %v4116_v5  ;;  %v6422_v0 = vld [vmem:[%s8189_s24 + $0x54] sm:$0xf] }
 0x6f1   : > { %vm4111_vm8 = vcmp.ge.f32.partialorder %v4107_v8, 0.0  ;;  %v4115_v10 = vmul.f32 0.01, %v4107_v8  ;;  %v4118_v13 = vsel %vm4110_vm6, %v4106_v3, %v4114_v7  ;;  %v6419_v3 = vld [vmem:[%s8189_s24 + $0x48] sm:$0xf]  ;;  %v6437_v4 = vcombine.low %v6422_v0, %v6423_v1  ;;  %v8038_v7 = vld [vmem:[%s9228_s1 + $0x10] sm:$0xff]  }
 0x6f2   : > { %v4121_v12 = vsel %vm4113_vm7, %v4109_v6, %v4117_v9  ;;  %v6446_v5 = vcombine.low %v6419_v3, %v6420_v50  ;;  %v8037_v6 = vld [vmem:[%s9228_s1 + $0x8] sm:$0xff]   ;;  %v8040_v9 = vld [vmem:[%s9228_s1 + $0x20] sm:$0xff]   ;;  %v8081_v50 = vld [vmem:[%s8189_s24 + $0x78] sm:$0xff]  }
 0x6f3   : > { %v4123_v14 = vpack.c.bf16 %v4121_v12, %v4120_v11  ;;  %v4119_v16 = vsel %vm4111_vm8, %v4107_v8, %v4115_v10  ;;  %v8039_v8 = vld [vmem:[%s9228_s1 + $0x18] sm:$0xff]   ;;  %v8041_v10 = vld [vmem:[%s9228_s1 + $0x28] sm:$0xff]   ;;  %v8043_v11 = vld [vmem:[%s9228_s1 + $0x60] sm:$0xff]   ;;  %v6447_v12 = vcombine.low %v6421_v52, %v6422_v0 }
 0x6f4   : > { %v4122_v18 = vpack.c.bf16 %v4119_v16, %v4118_v13  ;;  %v8049_v13 = vld [vmem:[%s8189_s24 + $0x50] sm:$0xff]   ;;  %v8091_v0 = vld [vmem:[%s8189_s24 + $0x84] sm:$0xff]  }
 0x6f5   : > { %v8045_v16 = vld [vmem:[%s9228_s1 + $0x70] sm:$0xff]   ;;  %v8097_v1 = vld [vmem:[%s8189_s24 + $0x80] sm:$0xff]  }
 0x6f6   : > { %7490 = vmatprep.mubr.msk.bf16.mxu1 %vm1516_vm5, %v4122_v18  ;;  %v8046_v18 = vld [vmem:[%s9228_s1 + $0x78] sm:$0xff]   ;;  %v8077_v52 = vld [vmem:[%s9228_s1 + $0x130] sm:$0xff]  }
 0x6f7   : > { %7491 = vmatmul.mubr.msk.bf16.vlgmr.msra.gmra.mrb[12].mxu1 %vm1516_vm5, %v4123_v14  ;;  %v8044_v14 = vld [vmem:[%s9228_s1 + $0x68] sm:$0xff]   ;;  %v8093_v3 = vld [vmem:[%s9228_s1 + $0x190] sm:$0xff]  }
 0x6f8   : > { %7495 = vmatpush3.bf16.msra.mxu1 %v8025_v19  ;;  %v8047_v19 = vld [vmem:[%s9228_s1 + $0x80] sm:$0xff]  }
 0x6f9   : > { %7496 = vmatprep.subr.bf16.mxu1 %v8026_v20 }
 0x6fc   : > { %7497 = vmatpush3.bf16.msra.mxu1 %v8026_v20  ;;  %v8048_v20 = vld [vmem:[%s9228_s1 + $0x88] sm:$0xff]  }
 0x6fd   : > { %7502 = vmatprep.subr.bf16.mxu1 %v8027_v21 }
 0x7ca   : > { %v7492_v25 = vpop.f32.mrb[12].mxu1 }
 0x7cb   : > { %v4204_v27 = vmul.f32 %v7492_v25, %v8946_v22  ;;  %v4180_v30 = vpop.f32.mrb[13].mxu1  ;;  %v8052_v25 = vld [vmem:[%s9228_s1 + $0x98] sm:$0xff]  }
 0x7cc   : > { %v4202_v31 = vmul.f32 %v8946_v22, %v4180_v30  ;;  %v7493_v32 = vpop.f32.mrb[14].mxu1  ;;  %v8055_v30 = vld [vmem:[%s9228_s1 + $0xb0] sm:$0xff]  }
 0x7cd   : > { %v4215_v33 = vadd.f32 %v8953_v26, %v4204_v27  ;;  %v4205_v34 = vmul.f32 %v7493_v32, %v8946_v22  ;;  %v4183_v36 = vpop.f32.mrb[15].mxu1  ;;  %v8053_v27 = vld [vmem:[%s9228_s1 + $0xa0] sm:$0xff]   ;;  %v8059_v32 = vld [vmem:[%s8189_s24 + $0x68] sm:$0xff]  }
 0x7ce   : > { %v4213_v37 = vadd.f32 %v8953_v26, %v4202_v31  ;;  %v4203_v38 = vmul.f32 %v8946_v22, %v4183_v36  ;;  %v8056_v31 = vld [vmem:[%s9228_s1 + $0xb8] sm:$0xff]  }
 0x7cf   : > { %v4228_v39 = vadd.f32 %v6685_v28, %v4215_v33  ;;  %v4216_v40 = vadd.f32 %v8953_v26, %v4205_v34  ;;  %v8054_v28 = vld [vmem:[%s9228_s1 + $0xa8] sm:$0xff]   ;;  %v8062_v36 = vld [vmem:[%s9228_s1 + $0xd8] sm:$0xff]  }
 0x7d0   : > { %v4226_v41 = vadd.f32 %v6681_v42, %v4213_v37  ;;  %v4214_v43 = vadd.f32 %v8953_v26, %v4203_v38  ;;  %v8058_v42 = vld [vmem:[%s9228_s1 + $0xc0] sm:$0xff]   ;;  %v8060_v34 = vld [vmem:[%s9228_s1 + $0xc8] sm:$0xff]  }
 0x7d1   : > { %v4236_v44 = vmul.f32 0.01, %v4228_v39  ;;  %v4229_v45 = vadd.f32 %v6686_v35, %v4216_v40  ;;  %vm4232_vm9 = vcmp.ge.f32.partialorder %v4228_v39, 0.0  ;;  %v8065_v33 = vld [vmem:[%s8189_s24 + $0x64] sm:$0xff]   ;;  %v8061_v35 = vld [vmem:[%s9228_s1 + $0xd0] sm:$0xff]  }
 0x7d2   : > { %v4234_v47 = vmul.f32 0.01, %v4226_v41  ;;  %v4227_v48 = vadd.f32 %v6682_v46, %v4214_v43  ;;  %vm4230_vm11 = vcmp.ge.f32.partialorder %v4226_v41, 0.0  ;;  %v8063_v37 = vld [vmem:[%s9228_s1 + $0xe0] sm:$0xff]   ;;  %v8064_v38 = vld [vmem:[%s9228_s1 + $0xe8] sm:$0xff]   ;;  %v8066_v46 = vld [vmem:[%s9228_s1 + $0xf0] sm:$0xff]  }
 0x7d3   : > { %vm4233_vm12 = vcmp.ge.f32.partialorder %v4229_v45, 0.0  ;;  %v4237_v49 = vmul.f32 0.01, %v4229_v45  ;;  %v4240_v53 = vsel %vm4232_vm9, %v4228_v39, %v4236_v44  ;;  %v8067_v39 = vld [vmem:[%s8189_s24 + $0x6c] sm:$0xff]   ;;  %v8069_v43 = vld [vmem:[%s9228_s1 + $0x100] sm:$0xff]  }
 0x7d4   : > { %vm4231_vm13 = vcmp.ge.f32.partialorder %v4227_v48, 0.0  ;;  %v4235_v51 = vmul.f32 0.01, %v4227_v48  ;;  %v4238_v56 = vsel %vm4230_vm11, %v4226_v41, %v4234_v47  ;;  %v8073_v40 = vld [vmem:[%s8189_s24 + $0x68] sm:$0xff]   ;;  %v8068_v41 = vld [vmem:[%s9228_s1 + $0xf8] sm:$0xff]  }
 0x7d5   : > { %v4241_v54 = vsel %vm4233_vm12, %v4229_v45, %v4237_v49  ;;  %v8070_v44 = vld [vmem:[%s9228_s1 + $0x108] sm:$0xff]   ;;  %v8071_v45 = vld [vmem:[%s9228_s1 + $0x110] sm:$0xff]   ;;  %v8072_v47 = vld [vmem:[%s9228_s1 + $0x118] sm:$0xff]  }
 0x7d6   : > { %v4243_v55 = vpack.c.bf16 %v4241_v54, %v4240_v53  ;;  %v4239_v57 = vsel %vm4231_vm13, %v4227_v48, %v4235_v51  ;;  %v8074_v48 = vld [vmem:[%s9228_s1 + $0x120] sm:$0xff]   ;;  %v8075_v49 = vld [vmem:[%s8189_s24 + $0x70] sm:$0xff]   ;;  %v8076_v51 = vld [vmem:[%s9228_s1 + $0x128] sm:$0xff]  }
 0x7d7   : > { %v4242_v58 = vpack.c.bf16 %v4239_v57, %v4238_v56  ;;  %v8078_v53 = vld [vmem:[%s9228_s1 + $0x138] sm:$0xff]   ;;  %v8079_v54 = vld [vmem:[%s9228_s1 + $0x140] sm:$0xff]   ;;  %v8082_v56 = vld [vmem:[%s9228_s1 + $0x150] sm:$0xff]  }
 0x7d8   : > { %v8083_v57 = vld [vmem:[%s8189_s24 + $0x80] sm:$0xff]  }
 0x7d9   : > { %7498 = vmatprep.mubr.msk.bf16.mxu1 %vm1516_vm5, %v4242_v58  ;;  %v8089_v58 = vld [vmem:[%s8189_s24 + $0x7c] sm:$0xff]  }
 0x7da   : > { %7499 = vmatmul.mubr.msk.bf16.vlgmr.msra.gmra.mrb[16].mxu1 %vm1516_vm5, %v4243_v55  ;;  %v8080_v55 = vld [vmem:[%s9228_s1 + $0x148] sm:$0xff]  }
 0x7db   : > { %7503 = vmatpush3.bf16.msra.mxu1 %v8027_v21  ;;  %7514 = vmatprep.mubr.msk.bf16.mxu1 %vm457_vm0, %v6436_v59  ;;  %v8050_v21 = vld [vmem:[%s9228_s1 + $0x90] sm:$0xff]   ;;  %v8084_v59 = vld [vmem:[%s9228_s1 + $0x158] sm:$0xff]  }
 0x7dc   : > { %7504 = vmatprep.subr.bf16.mxu1 %v8028_v60 }
 0x7df   : > { %7505 = vmatpush3.bf16.msra.mxu1 %v8028_v60  ;;  %v8085_v60 = vld [vmem:[%s9228_s1 + $0x160] sm:$0xff]  }
 0x7e0   : > { %7506 = vmatprep.subr.bf16.mxu1 %v8029_v62 }
 0x7e3   : > { %7507 = vmatpush3.bf16.msra.mxu1 %v8029_v62  ;;  %v8086_v62 = vld [vmem:[%s9228_s1 + $0x168] sm:$0xff]  }
 0x7e4   : > { %7508 = vmatprep.subr.bf16.mxu1 %v8030_v63 }
 0x7e7   : > { %7509 = vmatpush3.bf16.msra.mxu1 %v8030_v63  ;;  %v8087_v63 = vld [vmem:[%s9228_s1 + $0x170] sm:$0xff]  }
 0x7e8   : > { %7510 = vmatprep.subr.bf16.mxu1 %v8031_v15 }
 0x7eb   : > { %7511 = vmatpush3.bf16.msra.mxu1 %v8031_v15  ;;  %v8088_v15 = vld [vmem:[%s9228_s1 + $0x178] sm:$0xff]  }
 0x7ec   : > { %7512 = vmatprep.subr.bf16.mxu1 %v8032_v17 }
 0x7ef   : > { %7513 = vmatpush3.bf16.msra.mxu1 %v8032_v17  ;;  %v8090_v17 = vld [vmem:[%s9228_s1 + $0x180] sm:$0xff]  }
 0x7f0   : > { %7518 = vmatprep.subr.bf16.mxu1 %v8036_v2 }
 0x7f2   : > { %7515 = vmatmul.mubr.msk.bf16.vlgmr.msra.gmra.mrb[20].mxu1 %vm457_vm0, %v6437_v4  ;;  %v8094_v4 = vld [vmem:[%s9228_s1 + $0x198] sm:$0xff]  }
 0x7f3   : > { %7519 = vmatpush3.bf16.msra.mxu1 %v8036_v2  ;;  %7530 = vmatprep.mubr.msk.bf16.mxu1 %vm457_vm0, %v6446_v5  ;;  %v8092_v2 = vld [vmem:[%s9228_s1 + $0x188] sm:$0xff]   ;;  %v8095_v5 = vld [vmem:[%s9228_s1 + $0x1a0] sm:$0xff]  }
 0x7f4   : > { %7520 = vmatprep.subr.bf16.mxu1 %v8037_v6 }
 0x7f7   : > { %7521 = vmatpush3.bf16.msra.mxu1 %v8037_v6  ;;  %v8096_v6 = vld [vmem:[%s9228_s1 + $0x1a8] sm:$0xff]  }
 0x7f8   : > { %7522 = vmatprep.subr.bf16.mxu1 %v8038_v7 }
 0x7fb   : > { %7523 = vmatpush3.bf16.msra.mxu1 %v8038_v7  ;;  %v9162_v7 = vld [vmem:[%s9236_s9] ss:$0 sm:$0xff] }
 0x7fc   : > { %7524 = vmatprep.subr.bf16.mxu1 %v8039_v8 }
 0x7ff   : > { %7525 = vmatpush3.bf16.msra.mxu1 %v8039_v8 }
 0x800   : > { %7526 = vmatprep.subr.bf16.mxu1 %v8040_v9 }
 0x803   : > { %7527 = vmatpush3.bf16.msra.mxu1 %v8040_v9 }
 0x804   : > { %7528 = vmatprep.subr.bf16.mxu1 %v8041_v10 }
 0x807   : > { %7529 = vmatpush3.bf16.msra.mxu1 %v8041_v10 }
 0x808   : > { %7534 = vmatprep.subr.bf16.mxu1 %v8043_v11 }
 0x80a   : > { %7531 = vmatmul.mubr.msk.bf16.vlgmr.msra.gmra.mrb[20].mxu1 %vm457_vm0, %v6447_v12 }
 0x80b   : > { %7535 = vmatpush3.bf16.msra.mxu1 %v8043_v11  ;;  %7546 = vmatprep.mubr.msk.bf16.mxu1 %vm457_vm0, %v8049_v13  ;;  %v8098_v11 = vld [vmem:[%s8189_s24 + $0x88] sm:$0xff]  }
 0x80c   : > { %7536 = vmatprep.subr.bf16.mxu1 %v8044_v14 }
 0x80f   : > { %7537 = vmatpush3.bf16.msra.mxu1 %v8044_v14 }
 0x810   : > { %7538 = vmatprep.subr.bf16.mxu1 %v8045_v16 }
 0x813   : > { %7539 = vmatpush3.bf16.msra.mxu1 %v8045_v16 }
 0x814   : > { %7540 = vmatprep.subr.bf16.mxu1 %v8046_v18 }
 0x817   : > { %7541 = vmatpush3.bf16.msra.mxu1 %v8046_v18 }
 0x818   : > { %7542 = vmatprep.subr.bf16.mxu1 %v8047_v19 }
 0x81b   : > { %7543 = vmatpush3.bf16.msra.mxu1 %v8047_v19  ;;  %v8099_v19 = vld [vmem:[%s9231_s4] sm:$0xff]  }
 0x81c   : > { %7544 = vmatprep.subr.bf16.mxu1 %v8048_v20  ;;  %7646 = vmatprep.subr.bf16.mxu0 %v8099_v19 }
 0x81d   : > { %7647 = vmatpush3.bf16.msra.mxu0 %v8099_v19 }
 0x81f   : > { %7545 = vmatpush3.bf16.msra.mxu1 %v8048_v20  ;;  %v8100_v20 = vld [vmem:[%s9231_s4 + $0x8] sm:$0xff]  }
 0x820   : > { %7550 = vmatprep.subr.bf16.mxu1 %v8050_v21  ;;  %7648 = vmatprep.subr.bf16.mxu0 %v8100_v20 }
 0x821   : > { %7649 = vmatpush3.bf16.msra.mxu0 %v8100_v20 }
 0x822   : > { %7547 = vmatmul.mubr.msk.bf16.vlgmr.msra.gmra.mrb[20].mxu1 %vm457_vm0, %v8051_v23 }
 0x823   : > { %7551 = vmatpush3.bf16.msra.mxu1 %v8050_v21  ;;  %7562 = vmatprep.mubr.msk.bf16.mxu1 %vm457_vm0, %v8057_v24 }
 0x824   : > { %7552 = vmatprep.subr.bf16.mxu1 %v8052_v25 }
 0x827   : > { %7553 = vmatpush3.bf16.msra.mxu1 %v8052_v25 }
 0x828   : > { %7554 = vmatprep.subr.bf16.mxu1 %v8053_v27 }
 0x82b   : > { %7555 = vmatpush3.bf16.msra.mxu1 %v8053_v27 }
 0x82c   : > { %7556 = vmatprep.subr.bf16.mxu1 %v8054_v28 }
 0x82f   : > { %7557 = vmatpush3.bf16.msra.mxu1 %v8054_v28 }
 0x830   : > { %7558 = vmatprep.subr.bf16.mxu1 %v8055_v30 }
 0x833   : > { %7559 = vmatpush3.bf16.msra.mxu1 %v8055_v30 }
 0x834   : > { %7560 = vmatprep.subr.bf16.mxu1 %v8056_v31 }
 0x837   : > { %7561 = vmatpush3.bf16.msra.mxu1 %v8056_v31 }
 0x838   : > { %7566 = vmatprep.subr.bf16.mxu1 %v8058_v42 }
 0x83a   : > { %7563 = vmatmul.mubr.msk.bf16.vlgmr.msra.gmra.mrb[20].mxu1 %vm457_vm0, %v8059_v32 }
 0x83b   : > { %7567 = vmatpush3.bf16.msra.mxu1 %v8058_v42  ;;  %7578 = vmatprep.mubr.msk.bf16.mxu1 %vm457_vm0, %v8065_v33 }
 0x83c   : > { %7568 = vmatprep.subr.bf16.mxu1 %v8060_v34 }
 0x83f   : > { %7569 = vmatpush3.bf16.msra.mxu1 %v8060_v34 }
 0x840   : > { %7570 = vmatprep.subr.bf16.mxu1 %v8061_v35 }
 0x843   : > { %7571 = vmatpush3.bf16.msra.mxu1 %v8061_v35 }
 0x844   : > { %7572 = vmatprep.subr.bf16.mxu1 %v8062_v36 }
 0x847   : > { %7573 = vmatpush3.bf16.msra.mxu1 %v8062_v36 }
 0x848   : > { %7574 = vmatprep.subr.bf16.mxu1 %v8063_v37 }
 0x84b   : > { %7575 = vmatpush3.bf16.msra.mxu1 %v8063_v37 }
 0x84c   : > { %7576 = vmatprep.subr.bf16.mxu1 %v8064_v38 }
 0x84f   : > { %7577 = vmatpush3.bf16.msra.mxu1 %v8064_v38 }
 0x850   : > { %7582 = vmatprep.subr.bf16.mxu1 %v8066_v46 }
 0x852   : > { %7579 = vmatmul.mubr.msk.bf16.vlgmr.msra.gmra.mrb[20].mxu1 %vm457_vm0, %v8067_v39 }
 0x853   : > { %7583 = vmatpush3.bf16.msra.mxu1 %v8066_v46  ;;  %7594 = vmatprep.mubr.msk.bf16.mxu1 %vm457_vm0, %v8073_v40 }
 0x854   : > { %7584 = vmatprep.subr.bf16.mxu1 %v8068_v41 }
 0x857   : > { %7585 = vmatpush3.bf16.msra.mxu1 %v8068_v41 }
 0x858   : > { %7586 = vmatprep.subr.bf16.mxu1 %v8069_v43 }
 0x85b   : > { %7587 = vmatpush3.bf16.msra.mxu1 %v8069_v43 }
 0x85c   : > { %7588 = vmatprep.subr.bf16.mxu1 %v8070_v44 }
 0x85f   : > { %7589 = vmatpush3.bf16.msra.mxu1 %v8070_v44  ;;  %v8102_v44 = vld [vmem:[%s9235_s8 + $0x8] sm:$0xff]  }
 0x860   : > { %7590 = vmatprep.subr.bf16.mxu1 %v8071_v45 }
 0x863   : > { %7591 = vmatpush3.bf16.msra.mxu1 %v8071_v45  ;;  %v6701_v45 = vld [vmem:[%s8420_s25 + $0x38] sm:$0xff]  }
 0x864   : > { %7592 = vmatprep.subr.bf16.mxu1 %v8072_v47 }
 0x867   : > { %7593 = vmatpush3.bf16.msra.mxu1 %v8072_v47  ;;  %v6700_v47 = vld [vmem:[%s8420_s25 + $0x30] sm:$0xff]  }
 0x868   : > { %7598 = vmatprep.subr.bf16.mxu1 %v8074_v48 }
 0x86a   : > { %7595 = vmatmul.mubr.msk.bf16.vlgmr.msra.gmra.mrb[20].mxu1 %vm457_vm0, %v8075_v49 }
 0x86b   : > { %7599 = vmatpush3.bf16.msra.mxu1 %v8074_v48  ;;  %7610 = vmatprep.mubr.msk.bf16.mxu1 %vm457_vm0, %v8081_v50  ;;  %v6693_v50 = vunpack.c.l.bf16 %v6701_v45 }
 0x86c   : > { %7600 = vmatprep.subr.bf16.mxu1 %v8076_v51 }
 0x86f   : > { %7601 = vmatpush3.bf16.msra.mxu1 %v8076_v51 }
 0x870   : > { %7602 = vmatprep.subr.bf16.mxu1 %v8077_v52 }
 0x873   : > { %7603 = vmatpush3.bf16.msra.mxu1 %v8077_v52 }
 0x874   : > { %7604 = vmatprep.subr.bf16.mxu1 %v8078_v53 }
 0x877   : > { %7605 = vmatpush3.bf16.msra.mxu1 %v8078_v53  ;;  %v6689_v53 = vunpack.c.l.bf16 %v6700_v47 }
 0x878   : > { %7606 = vmatprep.subr.bf16.mxu1 %v8079_v54 }
 0x87b   : > { %7607 = vmatpush3.bf16.msra.mxu1 %v8079_v54 }
 0x87c   : > { %7608 = vmatprep.subr.bf16.mxu1 %v8080_v55 }
 0x87f   : > { %7609 = vmatpush3.bf16.msra.mxu1 %v8080_v55 }
 0x880   : > { %7614 = vmatprep.subr.bf16.mxu1 %v8082_v56 }
 0x882   : > { %7611 = vmatmul.mubr.msk.bf16.vlgmr.msra.gmra.mrb[20].mxu1 %vm457_vm0, %v8083_v57  ;;  %v6694_v57 = vunpack.c.h.bf16 %v6701_v45 }
 0x883   : > { %7615 = vmatpush3.bf16.msra.mxu1 %v8082_v56  ;;  %7626 = vmatprep.mubr.msk.bf16.mxu1 %vm457_vm0, %v8089_v58 }
 0x884   : > { %7616 = vmatprep.subr.bf16.mxu1 %v8084_v59 }
 0x887   : > { %7617 = vmatpush3.bf16.msra.mxu1 %v8084_v59 }
 0x888   : > { %7618 = vmatprep.subr.bf16.mxu1 %v8085_v60 }
 0x88b   : > { %7619 = vmatpush3.bf16.msra.mxu1 %v8085_v60 }
 0x88c   : > { %7620 = vmatprep.subr.bf16.mxu1 %v8086_v62 }
 0x88f   : > { %7621 = vmatpush3.bf16.msra.mxu1 %v8086_v62  ;;  %v6690_v62 = vunpack.c.h.bf16 %v6700_v47 }
 0x890   : > { %7622 = vmatprep.subr.bf16.mxu1 %v8087_v63 }
 0x893   : > { %7623 = vmatpush3.bf16.msra.mxu1 %v8087_v63 }
 0x894   : > { %7624 = vmatprep.subr.bf16.mxu1 %v8088_v15 }
 0x897   : > { %7625 = vmatpush3.bf16.msra.mxu1 %v8088_v15 }
 0x898   : > { %7630 = vmatprep.subr.bf16.mxu1 %v8090_v17 }
 0x89a   : > { %7627 = vmatmul.mubr.msk.bf16.vlgmr.msra.gmra.mrb[20].mxu1 %vm457_vm0, %v8091_v0 }
 0x89b   : > { %7631 = vmatpush3.bf16.msra.mxu1 %v8090_v17  ;;  %7642 = vmatprep.mubr.msk.bf16.mxu1 %vm457_vm0, %v8097_v1 }
 0x89c   : > { %7632 = vmatprep.subr.bf16.mxu1 %v8092_v2 }
 0x89f   : > { %7633 = vmatpush3.bf16.msra.mxu1 %v8092_v2 }
 0x8a0   : > { %7634 = vmatprep.subr.bf16.mxu1 %v8093_v3 }
 0x8a3   : > { %7635 = vmatpush3.bf16.msra.mxu1 %v8093_v3 }
 0x8a4   : > { %7636 = vmatprep.subr.bf16.mxu1 %v8094_v4 }
 0x8a7   : > { %7637 = vmatpush3.bf16.msra.mxu1 %v8094_v4 }
 0x8a8   : > { %7638 = vmatprep.subr.bf16.mxu1 %v8095_v5 }
 0x8ab   : > { %7639 = vmatpush3.bf16.msra.mxu1 %v8095_v5 }
 0x8ac   : > { %7640 = vmatprep.subr.bf16.mxu1 %v8096_v6 }
 0x8ad   : > { %v7500_v8 = vpop.f32.mrb[16].mxu1 }
 0x8ae   : > { %v4316_v9 = vadd.f32 %v7500_v8, %v9162_v7  ;;  %v4307_v10 = vpop.f32.mrb[17].mxu1 }
 0x8af   : > { %v4308_v12 = vadd.f32 %v9162_v7, %v4307_v10  ;;  %7641 = vmatpush3.bf16.msra.mxu1 %v8096_v6  ;;  %v7501_v13 = vpop.f32.mrb[18].mxu1 }
 0x8b0   : > { %6417 = vst.msk [vmem:[%s8647_s29 + $0x50] sm:$0xff] %vm1698_vm10, %v4316_v9  ;;  %v4319_v14 = vadd.f32 %v7501_v13, %v9162_v7  ;;  %v4310_v16 = vpop.f32.mrb[19].mxu1 }
 0x8b1   : > { %6415 = vst.msk [vmem:[%s8647_s29 + $0x40] sm:$0xff] %vm1698_vm10, %v4308_v12  ;;  %v4311_v18 = vadd.f32 %v9162_v7, %v4310_v16 }
 0x8b2   : > { %6418 = vst.msk [vmem:[%s8647_s29 + $0x58] sm:$0xff] %vm1698_vm10, %v4319_v14  ;;  %7643 = vmatmul.mubr.msk.bf16.vlgmr.msra.gmra.mrb[20].mxu1 %vm457_vm0, %v8098_v11 }
 0x8b3   : > { %6416 = vst.msk [vmem:[%s8647_s29 + $0x48] sm:$0xff] %vm1698_vm10, %v4311_v18 }
 0x985   : > { %v7644_v21 = vpop.f32.mrb[20].mxu1 }
 0x986   : > { %v5409_v23 = vmul.f32 %v7644_v21, %v8917_v29  ;;  %v5381_v24 = vpop.f32.mrb[21].mxu1 }
 0x987   : > { %v5407_v25 = vmul.f32 %v8917_v29, %v5381_v24  ;;  %v7645_v27 = vpop.f32.mrb[22].mxu1 }
 0x988   : > { %v5420_v28 = vadd.f32 %v8922_v61, %v5409_v23  ;;  %v5410_v30 = vmul.f32 %v7645_v27, %v8917_v29  ;;  %v5384_v31 = vpop.f32.mrb[23].mxu1 }
 0x989   : > { %v5418_v42 = vadd.f32 %v8922_v61, %v5407_v25  ;;  %v5408_v32 = vmul.f32 %v8917_v29, %v5384_v31 }
 0x98a   : > { %v5428_v33 = vmul.f32 0.01, %v5420_v28  ;;  %v5421_v34 = vadd.f32 %v8922_v61, %v5410_v30  ;;  %vm5424_vm0 = vcmp.ge.f32.partialorder %v5420_v28, 0.0 }
 0x98b   : > { %v5426_v35 = vmul.f32 0.01, %v5418_v42  ;;  %v5419_v36 = vadd.f32 %v8922_v61, %v5408_v32  ;;  %vm5422_vm14 = vcmp.ge.f32.partialorder %v5418_v42, 0.0  ;;  %v8101_v61 = vld [vmem:[%s9235_s8] sm:$0xff]  }
 0x98c   : > { %vm5425_vm15 = vcmp.ge.f32.partialorder %v5421_v34, 0.0  ;;  %v5429_v37 = vmul.f32 0.01, %v5421_v34  ;;  %v5432_v46 = vsel %vm5424_vm0, %v5420_v28, %v5428_v33  ;;  %7654 = vmatprep.subr.bf16.mxu0 %v8101_v61 }
 0x98d   : > { %vm5423_vm1 = vcmp.ge.f32.partialorder %v5419_v36, 0.0  ;;  %v5427_v38 = vmul.f32 0.01, %v5419_v36  ;;  %v5430_v40 = vsel %vm5422_vm14, %v5418_v42, %v5426_v35 }
 0x98e   : > { %v5433_v39 = vsel %vm5425_vm15, %v5421_v34, %v5429_v37 }
 0x98f   : > { %v5435_v41 = vpack.c.bf16 %v5433_v39, %v5432_v46  ;;  %v5431_v43 = vsel %vm5423_vm1, %v5419_v36, %v5427_v38 }
 0x990   : > { %v5434_v29 = vpack.c.bf16 %v5431_v43, %v5430_v40 }
 0x992   : > { %7650 = vmatprep.mubr.msk.bf16.mxu0 %vm1516_vm5, %v5434_v29 }
 0x993   : > { %7651 = vmatmul.mubr.msk.bf16.vlgmr.msra.gmra.mrb[16].mxu0 %vm1516_vm5, %v5435_v41 }
 0x994   : > { %7655 = vmatpush3.bf16.msra.mxu0 %v8101_v61 }
 0x995   : > { %7656 = vmatprep.subr.bf16.mxu0 %v8102_v44 }
 0x998   : > { %7657 = vmatpush3.bf16.msra.mxu0 %v8102_v44 }
 0xa66   : > { %v7652_v48 = vpop.f32.mrb[16].mxu0 }
 0xa67   : > { %v5516_v49 = vmul.f32 %v7652_v48, %v8946_v22  ;;  %v5492_v51 = vpop.f32.mrb[17].mxu0 }
 0xa68   : > { %v5514_v52 = vmul.f32 %v8946_v22, %v5492_v51  ;;  %v7653_v54 = vpop.f32.mrb[18].mxu0 }
 0xa69   : > { %v5527_v55 = vadd.f32 %v8953_v26, %v5516_v49  ;;  %v5517_v56 = vmul.f32 %v7653_v54, %v8946_v22  ;;  %v5495_v58 = vpop.f32.mrb[19].mxu0 }
 0xa6a   : > { %v5525_v59 = vadd.f32 %v8953_v26, %v5514_v52  ;;  %v5515_v60 = vmul.f32 %v8946_v22, %v5495_v58 }
 0xa6b   : > { %v5540_v63 = vadd.f32 %v6693_v50, %v5527_v55  ;;  %v5528_v15 = vadd.f32 %v8953_v26, %v5517_v56 }
 0xa6c   : > { %v5538_v17 = vadd.f32 %v6689_v53, %v5525_v59  ;;  %v5526_v0 = vadd.f32 %v8953_v26, %v5515_v60 }
 0xa6d   : > { %v5548_v1 = vmul.f32 0.01, %v5540_v63  ;;  %v5541_v2 = vadd.f32 %v6694_v57, %v5528_v15  ;;  %vm5544_vm2 = vcmp.ge.f32.partialorder %v5540_v63, 0.0 }
 0xa6e   : > { %v5546_v3 = vmul.f32 0.01, %v5538_v17  ;;  %v5539_v4 = vadd.f32 %v6690_v62, %v5526_v0  ;;  %vm5542_vm3 = vcmp.ge.f32.partialorder %v5538_v17, 0.0 }
 0xa6f   : > { %vm5545_vm4 = vcmp.ge.f32.partialorder %v5541_v2, 0.0  ;;  %v5549_v5 = vmul.f32 0.01, %v5541_v2  ;;  %v5552_v8 = vsel %vm5544_vm2, %v5540_v63, %v5548_v1 }
 0xa70   : > { %vm5543_vm6 = vcmp.ge.f32.partialorder %v5539_v4, 0.0  ;;  %v5547_v6 = vmul.f32 0.01, %v5539_v4  ;;  %v5550_v10 = vsel %vm5542_vm3, %v5538_v17, %v5546_v3 }
 0xa71   : > { %v5553_v22 = vsel %vm5545_vm4, %v5541_v2, %v5549_v5 }
 0xa72   : > { %v5555_v9 = vpack.c.bf16 %v5553_v22, %v5552_v8  ;;  %v5551_v11 = vsel %vm5543_vm6, %v5539_v4, %v5547_v6 }
 0xa73   : > { %v5554_v26 = vpack.c.bf16 %v5551_v11, %v5550_v10 }
 0xa75   : > { %7658 = vmatprep.mubr.msk.bf16.mxu0 %vm1516_vm5, %v5554_v26 }
 0xa76   : > { %7659 = vmatmul.mubr.msk.bf16.vlgmr.msra.gmra.mrb[20].mxu0 %vm1516_vm5, %v5555_v9 }
 0xb49   : > { %v7660_v12 = vpop.f32.mrb[20].mxu0 }
 0xb4a   : > { %v5628_v13 = vadd.f32 %v7660_v12, %v9162_v7  ;;  %v5619_v14 = vpop.f32.mrb[21].mxu0 }
 0xb4b   : > { %v5620_v16 = vadd.f32 %v9162_v7, %v5619_v14  ;;  %v7661_v18 = vpop.f32.mrb[22].mxu0 }
 0xb4c   : > { %6657 = vst.msk [vmem:[%s8647_s29 + $0x70] sm:$0xff] %vm1698_vm10, %v5628_v13  ;;  %v5631_v19 = vadd.f32 %v7661_v18, %v9162_v7  ;;  %v5622_v20 = vpop.f32.mrb[23].mxu0 }
 0xb4d   : > { %6655 = vst.msk [vmem:[%s8647_s29 + $0x60] sm:$0xff] %vm1698_vm10, %v5620_v16  ;;  %v5623_v21 = vadd.f32 %v9162_v7, %v5622_v20 }
 0xb4e   : > { %6658 = vst.msk [vmem:[%s8647_s29 + $0x78] sm:$0xff] %vm1698_vm10, %v5631_v19 }
 0xb4f   : > { %6656 = vst.msk [vmem:[%s8647_s29 + $0x68] sm:$0xff] %vm1698_vm10, %v5623_v21 }
 0xb50 PF: > { %s20_s13 = sadd.s32 1, %s8109_s13  }
 0xb51   : > { %p17_p4 = scmp.ge.s32.totalorder %s20_s13, 4  }
 0xb53   :  { %19 = sbr.rel (!%p17_p4) target bundleno = 1 (0x1), region = 112 }

// kernel: resnet3d_forward.5
= control target key start
LH: loop header
LB: loop body
LE: loop exit
PB: predicated region body
PF: predicated region fallthrough
CT: control target
= control target key end

     0   :  { %s8606_s21 = smov 0   ;;  %s9746_s0 = inlined_call_operand.vmem [shape: bf16[2,6,48,96], index: 0, kind: input, shape index: {}]   ;;  %s9747_s1 = inlined_call_operand.vmem [shape: bf16[9,96,32], index: 1, kind: input, shape index: {}]   ;;  %s9748_s2 = inlined_call_operand.vmem [shape: f32[1,32], index: 2, kind: input, shape index: {}]   ;;  %s9749_s3 = inlined_call_operand.vmem [shape: f32[1,32], index: 3, kind: input, shape index: {}]   ;;  %s9750_s4 = inlined_call_operand.vmem [shape: bf16[32,32], index: 4, kind: input, shape index: {}]   ;;  %s9751_s5 = inlined_call_operand.vmem [shape: f32[1,32], index: 5, kind: input, shape index: {}]   ;;  %s9752_s6 = inlined_call_operand.vmem [shape: f32[1,32], index: 6, kind: input, shape index: {}]   ;;  %s9753_s7 = inlined_call_operand.vmem [shape: bf16[2,4,32,32], index: 7, kind: input, shape index: {}]   ;;  %s9754_s8 = inlined_call_operand.vmem [shape: bf16[32,32], index: 8, kind: input, shape index: {}]   ;;  %s9755_s9 = inlined_call_operand.vmem [shape: f32[1,32], index: 9, kind: input, shape index: {}]   ;;  %s9756_s10 = inlined_call_operand.vmem [shape: f32[1,32], index: 10, kind: input, shape index: {}]   ;;  %s9757_s11 = inlined_call_operand.vmem [shape: bf16[2,4,32,32], index: 11, kind: output, shape index: {0}]   ;;  %s9758_s12 = inlined_call_operand.vmem [shape: bf16[2,4,32,32], index: 12, kind: output, shape index: {1}]  }
   0x1 LB: > { %s6053_s22 = sadd.s32 4294967295, %s8539_s21   ;;  %p6057_p0 = scmp.ge.s32.totalorder %s8539_s21, 1  ;;  %s8539_s21 = sphi %s8606_s21, %s23_s21  }
   0x2   : > { %p375_p1 = scmp.lt.s32.totalorder %s8539_s21, 3 }
   0x4   : > { %p376_p2 = pnand %p6057_p0, %p375_p1 }
   0x5   : > { %v8229_v0 = vld [vmem:[%s9747_s1 + $0x30] sm:$0xff] (!%p376_p2)   ;;  %p427_p3 = scmp.lt.s32.totalorder (!%p376_p2), %s6053_s22, 1  ;;  %v8230_v1 = vld [vmem:[%s9747_s1 + $0x38] sm:$0xff] (!%p376_p2)   ;;  %v8231_v2 = vld [vmem:[%s9747_s1 + $0x40] sm:$0xff] (!%p376_p2)   ;;  %vm524_vm0 = vcmask (!%p376_p2), 785408   ;;  %vm1583_vm5 = vcmask (!%p376_p2), 261120  }
   0x6   : > { %379 = sbr.rel (%p376_p2) target bundleno = 2903 (0xb57), region = 64  ;;  %7452 = vmatprep.subr.bf16.mxu0 (!%p376_p2), %v8229_v0  ;;  %v8232_v5 = vld [vmem:[%s9747_s1 + $0x48] sm:$0xff] (!%p376_p2)   ;;  %v8233_v7 = vld [vmem:[%s9747_s1 + $0x50] sm:$0xff] (!%p376_p2)   ;;  %v8234_v8 = vld [vmem:[%s9747_s1 + $0x58] sm:$0xff] (!%p376_p2)   ;;  %vm1701_vm8 = vcmask (!%p376_p2), 257024  }
   0x7   : > { %7453 = vmatpush3.bf16.msra.mxu0 (!%p376_p2), %v8229_v0  ;;  %v8239_v10 = vld [vmem:[%s9747_s1] sm:$0xff] (!%p376_p2)   ;;  %v8240_v15 = vld [vmem:[%s9747_s1 + $0x8] sm:$0xff] (!%p376_p2)   ;;  %v8241_v16 = vld [vmem:[%s9747_s1 + $0x10] sm:$0xff] (!%p376_p2)  }
   0x8   : > { %7454 = vmatprep.subr.bf16.mxu0 (!%p376_p2), %v8230_v1  ;;  %v8242_v17 = vld [vmem:[%s9747_s1 + $0x18] sm:$0xff] (!%p376_p2)   ;;  %v8243_v18 = vld [vmem:[%s9747_s1 + $0x20] sm:$0xff] (!%p376_p2)   ;;  %v8244_v19 = vld [vmem:[%s9747_s1 + $0x28] sm:$0xff] (!%p376_p2)  }
   0x9   : > { %v8245_v20 = vld [vmem:[%s9747_s1 + $0x60] sm:$0xff] (!%p376_p2)   ;;  %v8246_v23 = vld [vmem:[%s9747_s1 + $0x68] sm:$0xff] (!%p376_p2)   ;;  %v8247_v24 = vld [vmem:[%s9747_s1 + $0x70] sm:$0xff] (!%p376_p2)  }
   0xa   : > { %v8248_v25 = vld [vmem:[%s9747_s1 + $0x78] sm:$0xff] (!%p376_p2)   ;;  %v8249_v26 = vld [vmem:[%s9747_s1 + $0x80] sm:$0xff] (!%p376_p2)   ;;  %v8250_v27 = vld [vmem:[%s9747_s1 + $0x88] sm:$0xff] (!%p376_p2)  }
   0xb   : > { %7455 = vmatpush3.bf16.msra.mxu0 (!%p376_p2), %v8230_v1  ;;  %v8252_v28 = vld [vmem:[%s9747_s1 + $0x90] sm:$0xff] (!%p376_p2)   ;;  %v8254_v30 = vld [vmem:[%s9747_s1 + $0x98] sm:$0xff] (!%p376_p2)   ;;  %v8255_v32 = vld [vmem:[%s9747_s1 + $0xa0] sm:$0xff] (!%p376_p2)  }
   0xc   : > { %7456 = vmatprep.subr.bf16.mxu0 (!%p376_p2), %v8231_v2  ;;  %v8256_v33 = vld [vmem:[%s9747_s1 + $0xa8] sm:$0xff] (!%p376_p2)   ;;  %v8257_v34 = vld [vmem:[%s9747_s1 + $0xb0] sm:$0xff] (!%p376_p2)   ;;  %v8258_v35 = vld [vmem:[%s9747_s1 + $0xb8] sm:$0xff] (!%p376_p2)  }
   0xd   : > { %s9760_s22 = smov (!%p427_p3, %s6053_s22), 1  ;;  %v8260_v36 = vld [vmem:[%s9747_s1 + $0xc0] sm:$0xff]   ;;  %v8262_v39 = vld [vmem:[%s9747_s1 + $0xc8] sm:$0xff]   ;;  %v8263_v40 = vld [vmem:[%s9747_s1 + $0xd0] sm:$0xff]  }
   0xe   : > { %s8220_s29 = smul.u32 144, %s9760_s22  ;;  %v8264_v41 = vld [vmem:[%s9747_s1 + $0xd8] sm:$0xff]   ;;  %v8265_v42 = vld [vmem:[%s9747_s1 + $0xe0] sm:$0xff]   ;;  %v8266_v43 = vld [vmem:[%s9747_s1 + $0xe8] sm:$0xff]   ;;  %s8857_s28 = sshll.u32 %s9760_s22, 6 }
   0xf   : > { %7457 = vmatpush3.bf16.msra.mxu0 %v8231_v2  ;;  %v8268_v44 = vld [vmem:[%s9747_s1 + $0xf0] sm:$0xff]   ;;  %v8270_v47 = vld [vmem:[%s9747_s1 + $0xf8] sm:$0xff]   ;;  %v8271_v48 = vld [vmem:[%s9747_s1 + $0x100] sm:$0xff]   ;;  %s8863_s13 = scalar_lea.vmem %s9753_s7, %s8857_s28  ;;  %s8889_s20 = scalar_lea.vmem %s9757_s11, %s8857_s28 }
  0x10   : > { %s8629_s14 = scalar_lea.vmem %s9746_s0, %s8220_s29  ;;  %7458 = vmatprep.subr.bf16.mxu0 %v8232_v5  ;;  %v8272_v49 = vld [vmem:[%s9747_s1 + $0x108] sm:$0xff]   ;;  %v8273_v50 = vld [vmem:[%s9747_s1 + $0x110] sm:$0xff]   ;;  %v8274_v51 = vld [vmem:[%s9747_s1 + $0x118] sm:$0xff]   ;;  %s9123_s16 = scalar_lea.vmem %s9758_s12, %s8857_s28 }
  0x11   : > { %v449_v3 = vld [vmem:[%s8629_s14 + $0x4] sm:$0xf]  ;;  %v450_v4 = vld [vmem:[%s8629_s14 + $0x8] sm:$0xf]  ;;  %v451_v9 = vld [vmem:[%s8629_s14 + $0xc] sm:$0xf] }
  0x12   : > { %v6077_v6 = vcombine.low %v449_v3, %v450_v4  ;;  %v464_v11 = vld [vmem:[%s8629_s14 + $0x10] sm:$0xf]  ;;  %v448_v12 = vld [vmem:[%s8629_s14] sm:$0xf]  ;;  %v6088_v21 = vcombine.low %v450_v4, %v451_v9  ;;  %v8251_v22 = vld [vmem:[%s8629_s14 + $0x8] sm:$0xff]  }
  0x13   : > { %7459 = vmatpush3.bf16.msra.mxu0 %v8232_v5  ;;  %v6078_v13 = vcombine.low %v451_v9, %v464_v11  ;;  %v6087_v14 = vcombine.low %v448_v12, %v449_v3  ;;  %v8253_v29 = vld [vmem:[%s8629_s14 + $0x10] sm:$0xff]   ;;  %v8259_v31 = vld [vmem:[%s8629_s14 + $0x18] sm:$0xff]   ;;  %v8261_v37 = vld [vmem:[%s8629_s14 + $0x20] sm:$0xff]  }
  0x14   : > { %7464 = vmatprep.mubr.msk.bf16.mxu0 %vm524_vm0, %v6077_v6  ;;  %7460 = vmatprep.subr.bf16.mxu0 %v8233_v7  ;;  %v8267_v38 = vld [vmem:[%s8629_s14 + $0x1c] sm:$0xff]   ;;  %v8269_v45 = vld [vmem:[%s8629_s14 + $0x24] sm:$0xff]   ;;  %v8283_v54 = vld [vmem:[%s8629_s14 + $0x30] sm:$0xff]  }
  0x15   : > { %v8275_v46 = vld [vmem:[%s8629_s14 + $0x20] sm:$0xff]   ;;  %v8277_v53 = vld [vmem:[%s8629_s14 + $0x28] sm:$0xff]   ;;  %v8279_v56 = vld [vmem:[%s9747_s1 + $0x130] sm:$0xff]  }
  0x16   : > { %v8276_v52 = vld [vmem:[%s9747_s1 + $0x120] sm:$0xff]   ;;  %v8278_v55 = vld [vmem:[%s9747_s1 + $0x128] sm:$0xff]   ;;  %v8280_v57 = vld [vmem:[%s9747_s1 + $0x138] sm:$0xff]  }
  0x17   : > { %7461 = vmatpush3.bf16.msra.mxu0 %v8233_v7  ;;  %v8281_v58 = vld [vmem:[%s9747_s1 + $0x140] sm:$0xff]   ;;  %v8282_v59 = vld [vmem:[%s9747_s1 + $0x148] sm:$0xff]   ;;  %v8284_v60 = vld [vmem:[%s9747_s1 + $0x150] sm:$0xff]  }
  0x18   : > { %7462 = vmatprep.subr.bf16.mxu0 %v8234_v8  ;;  %v8285_v61 = vld [vmem:[%s8629_s14 + $0x38] sm:$0xff]   ;;  %v8287_v0 = vld [vmem:[%s9747_s1 + $0x160] sm:$0xff]   ;;  %v8288_v1 = vld [vmem:[%s9747_s1 + $0x168] sm:$0xff]  }
  0x19   : > { %v8291_v62 = vld [vmem:[%s8629_s14 + $0x34] sm:$0xff]   ;;  %v8292_v4 = vld [vmem:[%s9747_s1 + $0x180] sm:$0xff]   ;;  %v8294_v7 = vld [vmem:[%s9747_s1 + $0x188] sm:$0xff]  }
  0x1a   : > { %v8286_v63 = vld [vmem:[%s9747_s1 + $0x158] sm:$0xff]   ;;  %v8289_v2 = vld [vmem:[%s9747_s1 + $0x170] sm:$0xff]   ;;  %v8298_v11 = vld [vmem:[%s9747_s1 + $0x1a8] sm:$0xff]  }
  0x1b   : > { %7463 = vmatpush3.bf16.msra.mxu0 %v8234_v8  ;;  %v8290_v3 = vld [vmem:[%s9747_s1 + $0x178] sm:$0xff]   ;;  %v8295_v8 = vld [vmem:[%s9747_s1 + $0x190] sm:$0xff]   ;;  %v8300_v12 = vld [vmem:[%s8629_s14 + $0x40] sm:$0xff]  }
  0x1c   : > { %7468 = vmatprep.subr.bf16.mxu0 %v8239_v10  ;;  %v8293_v5 = vld [vmem:[%s8629_s14 + $0x3c] sm:$0xff]  }
  0x1d   : > { %v8299_v6 = vld [vmem:[%s8629_s14 + $0x38] sm:$0xff]  }
  0x1e   : > { %7465 = vmatmul.mubr.msk.bf16.vlgmr.msra.gmra.mrb[0].mxu0 %vm524_vm0, %v6078_v13  ;;  %v8296_v9 = vld [vmem:[%s9747_s1 + $0x198] sm:$0xff]   ;;  %v8301_v13 = vld [vmem:[%s9750_s4] sm:$0xff]  }
  0x1f   : > { %7469 = vmatpush3.bf16.msra.mxu0 %v8239_v10  ;;  %7480 = vmatprep.mubr.msk.bf16.mxu0 %vm524_vm0, %v6087_v14  ;;  %v8297_v10 = vld [vmem:[%s9747_s1 + $0x1a0] sm:$0xff]   ;;  %v8302_v14 = vld [vmem:[%s9750_s4 + $0x8] sm:$0xff]  }
  0x20   : > { %7470 = vmatprep.subr.bf16.mxu0 %v8240_v15  ;;  %7596 = vmatprep.subr.bf16.mxu1 %v8301_v13 }
  0x21   : > { %7597 = vmatpush3.bf16.msra.mxu1 %v8301_v13 }
  0x22   : > { %7598 = vmatprep.subr.bf16.mxu1 %v8302_v14 }
  0x23   : > { %7471 = vmatpush3.bf16.msra.mxu0 %v8240_v15  ;;  %v8830_v15 = vld [vmem:[%s9748_s2] ss:$0 sm:$0xff] }
  0x24   : > { %7472 = vmatprep.subr.bf16.mxu0 %v8241_v16 }
  0x25   : > { %7599 = vmatpush3.bf16.msra.mxu1 %v8302_v14 }
  0x27   : > { %7473 = vmatpush3.bf16.msra.mxu0 %v8241_v16 }
  0x28   : > { %7474 = vmatprep.subr.bf16.mxu0 %v8242_v17 }
  0x2b   : > { %7475 = vmatpush3.bf16.msra.mxu0 %v8242_v17  ;;  %v8835_v17 = vld [vmem:[%s9749_s3] ss:$0 sm:$0xff] }
  0x2c   : > { %7476 = vmatprep.subr.bf16.mxu0 %v8243_v18 }
  0x2f   : > { %7477 = vmatpush3.bf16.msra.mxu0 %v8243_v18 }
  0x30   : > { %7478 = vmatprep.subr.bf16.mxu0 %v8244_v19 }
  0x33   : > { %7479 = vmatpush3.bf16.msra.mxu0 %v8244_v19 }
  0x34   : > { %7484 = vmatprep.subr.bf16.mxu0 %v8245_v20 }
  0x36   : > { %7481 = vmatmul.mubr.msk.bf16.vlgmr.msra.gmra.mrb[0].mxu0 %vm524_vm0, %v6088_v21 }
  0x37   : > { %7485 = vmatpush3.bf16.msra.mxu0 %v8245_v20  ;;  %7496 = vmatprep.mubr.msk.bf16.mxu0 %vm524_vm0, %v8251_v22 }
  0x38   : > { %7486 = vmatprep.subr.bf16.mxu0 %v8246_v23 }
  0x3b   : > { %7487 = vmatpush3.bf16.msra.mxu0 %v8246_v23 }
  0x3c   : > { %7488 = vmatprep.subr.bf16.mxu0 %v8247_v24 }
  0x3f   : > { %7489 = vmatpush3.bf16.msra.mxu0 %v8247_v24 }
  0x40   : > { %7490 = vmatprep.subr.bf16.mxu0 %v8248_v25 }
  0x43   : > { %7491 = vmatpush3.bf16.msra.mxu0 %v8248_v25 }
  0x44   : > { %7492 = vmatprep.subr.bf16.mxu0 %v8249_v26 }
  0x47   : > { %7493 = vmatpush3.bf16.msra.mxu0 %v8249_v26 }
  0x48   : > { %7494 = vmatprep.subr.bf16.mxu0 %v8250_v27 }
  0x4b   : > { %7495 = vmatpush3.bf16.msra.mxu0 %v8250_v27 }
  0x4c   : > { %7500 = vmatprep.subr.bf16.mxu0 %v8252_v28 }
  0x4e   : > { %7497 = vmatmul.mubr.msk.bf16.vlgmr.msra.gmra.mrb[0].mxu0 %vm524_vm0, %v8253_v29 }
  0x4f   : > { %7501 = vmatpush3.bf16.msra.mxu0 %v8252_v28  ;;  %7512 = vmatprep.mubr.msk.bf16.mxu0 %vm524_vm0, %v8259_v31 }
  0x50   : > { %7502 = vmatprep.subr.bf16.mxu0 %v8254_v30 }
  0x53   : > { %7503 = vmatpush3.bf16.msra.mxu0 %v8254_v30 }
  0x54   : > { %7504 = vmatprep.subr.bf16.mxu0 %v8255_v32 }
  0x57   : > { %7505 = vmatpush3.bf16.msra.mxu0 %v8255_v32 }
  0x58   : > { %7506 = vmatprep.subr.bf16.mxu0 %v8256_v33 }
  0x5b   : > { %7507 = vmatpush3.bf16.msra.mxu0 %v8256_v33 }
  0x5c   : > { %7508 = vmatprep.subr.bf16.mxu0 %v8257_v34 }
  0x5f   : > { %7509 = vmatpush3.bf16.msra.mxu0 %v8257_v34 }
  0x60   : > { %7510 = vmatprep.subr.bf16.mxu0 %v8258_v35 }
  0x63   : > { %7511 = vmatpush3.bf16.msra.mxu0 %v8258_v35 }
  0x64   : > { %7516 = vmatprep.subr.bf16.mxu0 %v8260_v36 }
  0x66   : > { %7513 = vmatmul.mubr.msk.bf16.vlgmr.msra.gmra.mrb[0].mxu0 %vm524_vm0, %v8261_v37 }
  0x67   : > { %7517 = vmatpush3.bf16.msra.mxu0 %v8260_v36  ;;  %7528 = vmatprep.mubr.msk.bf16.mxu0 %vm524_vm0, %v8267_v38 }
  0x68   : > { %7518 = vmatprep.subr.bf16.mxu0 %v8262_v39 }
  0x6b   : > { %7519 = vmatpush3.bf16.msra.mxu0 %v8262_v39  ;;  %v8303_v39 = vld [vmem:[%s9754_s8] sm:$0xff]  }
  0x6c   : > { %7520 = vmatprep.subr.bf16.mxu0 %v8263_v40  ;;  %7604 = vmatprep.subr.bf16.mxu1 %v8303_v39 }
  0x6f   : > { %7521 = vmatpush3.bf16.msra.mxu0 %v8263_v40  ;;  %v8304_v40 = vld [vmem:[%s9754_s8 + $0x8] sm:$0xff]  }
  0x70   : > { %7522 = vmatprep.subr.bf16.mxu0 %v8264_v41 }
  0x73   : > { %7523 = vmatpush3.bf16.msra.mxu0 %v8264_v41  ;;  %v8305_v41 = vld [vmem:[%s9747_s1 + $0x30] sm:$0xff]  }
  0x74   : > { %7524 = vmatprep.subr.bf16.mxu0 %v8265_v42 }
  0x77   : > { %7525 = vmatpush3.bf16.msra.mxu0 %v8265_v42  ;;  %v8868_v42 = vld [vmem:[%s9751_s5] ss:$0 sm:$0xff] }
  0x78   : > { %7526 = vmatprep.subr.bf16.mxu0 %v8266_v43 }
  0x7b   : > { %7527 = vmatpush3.bf16.msra.mxu0 %v8266_v43  ;;  %v7125_v43 = vld [vmem:[%s8863_s13 + $0x8] sm:$0xff]  }
  0x7c   : > { %7532 = vmatprep.subr.bf16.mxu0 %v8268_v44 }
  0x7e   : > { %7529 = vmatmul.mubr.msk.bf16.vlgmr.msra.gmra.mrb[0].mxu0 %vm524_vm0, %v8269_v45 }
  0x7f   : > { %7533 = vmatpush3.bf16.msra.mxu0 %v8268_v44  ;;  %7544 = vmatprep.mubr.msk.bf16.mxu0 %vm524_vm0, %v8275_v46  ;;  %v7094_v44 = vld [vmem:[%s8863_s13] sm:$0xff]  }
  0x80   : > { %7534 = vmatprep.subr.bf16.mxu0 %v8270_v47  ;;  %v8875_v46 = vld [vmem:[%s9752_s6] ss:$0 sm:$0xff] }
  0x83   : > { %7535 = vmatpush3.bf16.msra.mxu0 %v8270_v47 }
  0x84   : > { %7536 = vmatprep.subr.bf16.mxu0 %v8271_v48 }
  0x87   : > { %7537 = vmatpush3.bf16.msra.mxu0 %v8271_v48  ;;  %v7099_v48 = vunpack.c.l.bf16 %v7125_v43 }
  0x88   : > { %7538 = vmatprep.subr.bf16.mxu0 %v8272_v49 }
  0x8b   : > { %7539 = vmatpush3.bf16.msra.mxu0 %v8272_v49 }
  0x8c   : > { %7540 = vmatprep.subr.bf16.mxu0 %v8273_v50 }
  0x8f   : > { %7541 = vmatpush3.bf16.msra.mxu0 %v8273_v50 }
  0x90   : > { %7542 = vmatprep.subr.bf16.mxu0 %v8274_v51 }
  0x93   : > { %7543 = vmatpush3.bf16.msra.mxu0 %v8274_v51  ;;  %v7095_v51 = vunpack.c.l.bf16 %v7094_v44 }
  0x94   : > { %7548 = vmatprep.subr.bf16.mxu0 %v8276_v52 }
  0x96   : > { %7545 = vmatmul.mubr.msk.bf16.vlgmr.msra.gmra.mrb[0].mxu0 %vm524_vm0, %v8277_v53 }
  0x97   : > { %7549 = vmatpush3.bf16.msra.mxu0 %v8276_v52  ;;  %7560 = vmatprep.mubr.msk.bf16.mxu0 %vm524_vm0, %v8283_v54 }
  0x98   : > { %7550 = vmatprep.subr.bf16.mxu0 %v8278_v55 }
  0x9b   : > { %7551 = vmatpush3.bf16.msra.mxu0 %v8278_v55  ;;  %v7100_v55 = vunpack.c.h.bf16 %v7125_v43  ;;  %v8324_v43 = vld [vmem:[%s9747_s1 + $0x78] sm:$0xff]  }
  0x9c   : > { %7552 = vmatprep.subr.bf16.mxu0 %v8279_v56 }
  0x9f   : > { %7553 = vmatpush3.bf16.msra.mxu0 %v8279_v56 }
  0xa0   : > { %7554 = vmatprep.subr.bf16.mxu0 %v8280_v57 }
  0xa3   : > { %7555 = vmatpush3.bf16.msra.mxu0 %v8280_v57 }
  0xa4   : > { %7556 = vmatprep.subr.bf16.mxu0 %v8281_v58 }
  0xa7   : > { %7557 = vmatpush3.bf16.msra.mxu0 %v8281_v58 }
  0xa8   : > { %7558 = vmatprep.subr.bf16.mxu0 %v8282_v59 }
  0xab   : > { %7559 = vmatpush3.bf16.msra.mxu0 %v8282_v59  ;;  %v7096_v59 = vunpack.c.h.bf16 %v7094_v44  ;;  %v8325_v44 = vld [vmem:[%s9747_s1 + $0x80] sm:$0xff]  }
  0xac   : > { %7564 = vmatprep.subr.bf16.mxu0 %v8284_v60 }
  0xae   : > { %7561 = vmatmul.mubr.msk.bf16.vlgmr.msra.gmra.mrb[0].mxu0 %vm524_vm0, %v8285_v61 }
  0xaf   : > { %7565 = vmatpush3.bf16.msra.mxu0 %v8284_v60  ;;  %7576 = vmatprep.mubr.msk.bf16.mxu0 %vm524_vm0, %v8291_v62 }
  0xb0   : > { %7566 = vmatprep.subr.bf16.mxu0 %v8286_v63 }
  0xb3   : > { %7567 = vmatpush3.bf16.msra.mxu0 %v8286_v63 }
  0xb4   : > { %7568 = vmatprep.subr.bf16.mxu0 %v8287_v0 }
  0xb7   : > { %7569 = vmatpush3.bf16.msra.mxu0 %v8287_v0 }
  0xb8   : > { %7570 = vmatprep.subr.bf16.mxu0 %v8288_v1 }
  0xbb   : > { %7571 = vmatpush3.bf16.msra.mxu0 %v8288_v1 }
  0xbc   : > { %7572 = vmatprep.subr.bf16.mxu0 %v8289_v2 }
  0xbf   : > { %7573 = vmatpush3.bf16.msra.mxu0 %v8289_v2 }
  0xc0   : > { %7574 = vmatprep.subr.bf16.mxu0 %v8290_v3 }
  0xc3   : > { %7575 = vmatpush3.bf16.msra.mxu0 %v8290_v3 }
  0xc4   : > { %7580 = vmatprep.subr.bf16.mxu0 %v8292_v4 }
  0xc6   : > { %7577 = vmatmul.mubr.msk.bf16.vlgmr.msra.gmra.mrb[0].mxu0 %vm524_vm0, %v8293_v5 }
  0xc7   : > { %7581 = vmatpush3.bf16.msra.mxu0 %v8292_v4  ;;  %7592 = vmatprep.mubr.msk.bf16.mxu0 %vm524_vm0, %v8299_v6  ;;  %v6298_v6 = vld [vmem:[%s8629_s14 + $0x1c] sm:$0xf] }
  0xc8   : > { %7582 = vmatprep.subr.bf16.mxu0 %v8294_v7 }
  0xcb   : > { %7583 = vmatpush3.bf16.msra.mxu0 %v8294_v7 }
  0xcc   : > { %7584 = vmatprep.subr.bf16.mxu0 %v8295_v8 }
  0xcf   : > { %7585 = vmatpush3.bf16.msra.mxu0 %v8295_v8 }
  0xd0   : > { %7586 = vmatprep.subr.bf16.mxu0 %v8296_v9 }
  0xd3   : > { %7587 = vmatpush3.bf16.msra.mxu0 %v8296_v9 }
  0xd4   : > { %7588 = vmatprep.subr.bf16.mxu0 %v8297_v10 }
  0xd7   : > { %7589 = vmatpush3.bf16.msra.mxu0 %v8297_v10  ;;  %v8893_v10 = vld [vmem:[%s8629_s14 + $0x20] sm:$0xf] }
  0xd8   : > { %7590 = vmatprep.subr.bf16.mxu0 %v8298_v11 }
  0xdb   : > { %7591 = vmatpush3.bf16.msra.mxu0 %v8298_v11 }
  0xde   : > { %7593 = vmatmul.mubr.msk.bf16.vlgmr.msra.gmra.mrb[0].mxu0 %vm524_vm0, %v8300_v12 }
 0x1b1   : > { %v7594_v16 = vpop.f32.mrb[0].mxu0 }
 0x1b2   : > { %v1540_v18 = vmul.f32 %v7594_v16, %v8830_v15  ;;  %v1512_v19 = vpop.f32.mrb[1].mxu0 }
 0x1b3   : > { %v1538_v20 = vmul.f32 %v8830_v15, %v1512_v19  ;;  %v7595_v21 = vpop.f32.mrb[2].mxu0 }
 0x1b4   : > { %v1551_v22 = vadd.f32 %v8835_v17, %v1540_v18  ;;  %v1541_v23 = vmul.f32 %v7595_v21, %v8830_v15  ;;  %v1515_v24 = vpop.f32.mrb[3].mxu0  ;;  %v8306_v21 = vld [vmem:[%s9747_s1 + $0x38] sm:$0xff]  }
 0x1b5   : > { %v1549_v25 = vadd.f32 %v8835_v17, %v1538_v20  ;;  %v1539_v26 = vmul.f32 %v8830_v15, %v1515_v24  ;;  %v6314_v20 = vcombine.low %v6298_v6, %v8893_v10  ;;  %v8309_v24 = vld [vmem:[%s9747_s1 + $0x50] sm:$0xff]  }
 0x1b6   : > { %v1559_v27 = vmul.f32 0.01, %v1551_v22  ;;  %v1552_v28 = vadd.f32 %v8835_v17, %v1541_v23  ;;  %vm1555_vm1 = vcmp.ge.f32.partialorder %v1551_v22, 0.0  ;;  %v8308_v23 = vld [vmem:[%s9747_s1 + $0x48] sm:$0xff]  }
 0x1b7   : > { %v1550_v29 = vadd.f32 %v8835_v17, %v1539_v26  ;;  %v1557_v30 = vmul.f32 0.01, %v1549_v25  ;;  %vm1553_vm3 = vcmp.ge.f32.partialorder %v1549_v25, 0.0  ;;  %v6300_v26 = vld [vmem:[%s8629_s14 + $0x24] sm:$0xf] }
 0x1b8   : > { %vm1556_vm2 = vcmp.ge.f32.partialorder %v1552_v28, 0.0  ;;  %v1560_v31 = vmul.f32 0.01, %v1552_v28  ;;  %v1563_v33 = vsel %vm1555_vm1, %v1551_v22, %v1559_v27  ;;  %v8307_v22 = vld [vmem:[%s9747_s1 + $0x40] sm:$0xff]   ;;  %v6301_v27 = vld [vmem:[%s8629_s14 + $0x28] sm:$0xf] }
 0x1b9   : > { %vm1554_vm4 = vcmp.ge.f32.partialorder %v1550_v29, 0.0  ;;  %v1558_v32 = vmul.f32 0.01, %v1550_v29  ;;  %v1561_v35 = vsel %vm1553_vm3, %v1549_v25, %v1557_v30  ;;  %v8310_v25 = vld [vmem:[%s9747_s1 + $0x58] sm:$0xff]   ;;  %v6315_v30 = vcombine.low %v6300_v26, %v6301_v27  ;;  %v8375_v27 = vld [vmem:[%s8629_s14 + $0x50] sm:$0xff]  }
 0x1ba   : > { %v1564_v34 = vsel %vm1556_vm2, %v1552_v28, %v1560_v31  ;;  %v8314_v28 = vld [vmem:[%s9747_s1] sm:$0xff]  }
 0x1bb   : > { %v1562_v36 = vsel %vm1554_vm4, %v1550_v29, %v1558_v32  ;;  %v1566_v37 = vpack.c.bf16 %v1564_v34, %v1563_v33  ;;  %v6297_v29 = vld [vmem:[%s8629_s14 + $0x18] sm:$0xf]  ;;  %v8315_v32 = vld [vmem:[%s9747_s1 + $0x8] sm:$0xff]   ;;  %v8316_v33 = vld [vmem:[%s9747_s1 + $0x10] sm:$0xff]  }
 0x1bc   : > { %v1565_v38 = vpack.c.bf16 %v1562_v36, %v1561_v35  ;;  %v6324_v31 = vcombine.low %v6297_v29, %v6298_v6  ;;  %v8317_v34 = vld [vmem:[%s9747_s1 + $0x18] sm:$0xff]   ;;  %v8318_v35 = vld [vmem:[%s9747_s1 + $0x20] sm:$0xff]   ;;  %v8319_v36 = vld [vmem:[%s9747_s1 + $0x28] sm:$0xff]  }
 0x1bd   : > { %v8350_v6 = vld [vmem:[%s9747_s1 + $0x118] sm:$0xff]   ;;  %v8371_v29 = vld [vmem:[%s9747_s1 + $0x190] sm:$0xff]  }
 0x1be   : > { %7600 = vmatprep.mubr.msk.bf16.mxu1 %vm1583_vm5, %v1565_v38  ;;  %v6325_v38 = vcombine.low %v8893_v10, %v6300_v26  ;;  %v8354_v10 = vld [vmem:[%s9747_s1 + $0x128] sm:$0xff]   ;;  %v8369_v26 = vld [vmem:[%s8629_s14 + $0x54] sm:$0xff]  }
 0x1bf   : > { %7601 = vmatmul.mubr.msk.bf16.vlgmr.msra.gmra.mrb[0].mxu1 %vm1583_vm5, %v1566_v37  ;;  %v8321_v37 = vld [vmem:[%s9747_s1 + $0x60] sm:$0xff]  }
 0x1c0   : > { %7605 = vmatpush3.bf16.msra.mxu1 %v8303_v39  ;;  %v8327_v39 = vld [vmem:[%s8629_s14 + $0x20] sm:$0xff]  }
 0x1c1   : > { %7606 = vmatprep.subr.bf16.mxu1 %v8304_v40 }
 0x1c4   : > { %7607 = vmatpush3.bf16.msra.mxu1 %v8304_v40  ;;  %v8322_v40 = vld [vmem:[%s9747_s1 + $0x68] sm:$0xff]  }
 0x1c5   : > { %7612 = vmatprep.subr.bf16.mxu1 %v8305_v41 }
 0x292   : > { %v7602_v45 = vpop.f32.mrb[0].mxu1 }
 0x293   : > { %v1648_v47 = vmul.f32 %v7602_v45, %v8868_v42  ;;  %v1624_v49 = vpop.f32.mrb[1].mxu1  ;;  %v8326_v45 = vld [vmem:[%s9747_s1 + $0x88] sm:$0xff]  }
 0x294   : > { %v1646_v50 = vmul.f32 %v8868_v42, %v1624_v49  ;;  %v7603_v52 = vpop.f32.mrb[2].mxu1  ;;  %v8335_v49 = vld [vmem:[%s8629_s14 + $0x30] sm:$0xff]  }
 0x295   : > { %v1659_v53 = vadd.f32 %v8875_v46, %v1648_v47  ;;  %v1649_v54 = vmul.f32 %v7603_v52, %v8868_v42  ;;  %v1627_v56 = vpop.f32.mrb[3].mxu1  ;;  %v8328_v47 = vld [vmem:[%s9747_s1 + $0x90] sm:$0xff]   ;;  %v8332_v52 = vld [vmem:[%s9747_s1 + $0xa8] sm:$0xff]  }
 0x296   : > { %v1657_v57 = vadd.f32 %v8875_v46, %v1646_v50  ;;  %v1647_v58 = vmul.f32 %v8868_v42, %v1627_v56  ;;  %v8330_v50 = vld [vmem:[%s9747_s1 + $0x98] sm:$0xff]  }
 0x297   : > { %v1671_v60 = vadd.f32 %v7099_v48, %v1659_v53  ;;  %v1660_v61 = vadd.f32 %v8875_v46, %v1649_v54  ;;  %v8329_v48 = vld [vmem:[%s8629_s14 + $0x28] sm:$0xff]   ;;  %v8333_v53 = vld [vmem:[%s9747_s1 + $0xb0] sm:$0xff]   ;;  %v8334_v54 = vld [vmem:[%s9747_s1 + $0xb8] sm:$0xff]  }
 0x298   : > { %v1669_v62 = vadd.f32 %v7095_v51, %v1657_v57  ;;  %v1658_v63 = vadd.f32 %v8875_v46, %v1647_v58  ;;  %v8331_v51 = vld [vmem:[%s9747_s1 + $0xa0] sm:$0xff]   ;;  %v8337_v56 = vld [vmem:[%s8629_s14 + $0x38] sm:$0xff]   ;;  %v8338_v58 = vld [vmem:[%s9747_s1 + $0xc8] sm:$0xff]  }
 0x299   : > { %vm1675_vm6 = vcmp.ge.f32.partialorder %v1671_v60, 0.0  ;;  %v1679_v0 = vmul.f32 0.01, %v1671_v60  ;;  %v1672_v1 = vadd.f32 %v7100_v55, %v1660_v61  ;;  %v8336_v55 = vld [vmem:[%s9747_s1 + $0xc0] sm:$0xff]   ;;  %v8343_v57 = vld [vmem:[%s8629_s14 + $0x34] sm:$0xff]  }
 0x29a   : > { %vm1673_vm7 = vcmp.ge.f32.partialorder %v1669_v62, 0.0  ;;  %v1677_v2 = vmul.f32 0.01, %v1669_v62  ;;  %v1670_v3 = vadd.f32 %v7096_v59, %v1658_v63  ;;  %v8339_v59 = vld [vmem:[%s9747_s1 + $0xd0] sm:$0xff]   ;;  %v8341_v61 = vld [vmem:[%s9747_s1 + $0xe0] sm:$0xff]  }
 0x29b   : > { %v1683_v4 = vsel %vm1675_vm6, %v1671_v60, %v1679_v0  ;;  %vm1676_vm9 = vcmp.ge.f32.partialorder %v1672_v1, 0.0  ;;  %v1680_v5 = vmul.f32 0.01, %v1672_v1  ;;  %v8340_v60 = vld [vmem:[%s9747_s1 + $0xd8] sm:$0xff]   ;;  %v8344_v63 = vld [vmem:[%s9747_s1 + $0xf0] sm:$0xff]  }
 0x29c   : > { %v7063_v7 = vpack.c.bf16 %v1683_v4, %v1683_v4  ;;  %vm1674_vm10 = vcmp.ge.f32.partialorder %v1670_v3, 0.0  ;;  %v1678_v8 = vmul.f32 0.01, %v1670_v3  ;;  %v1681_v9 = vsel %vm1673_vm7, %v1669_v62, %v1677_v2  ;;  %v8342_v62 = vld [vmem:[%s9747_s1 + $0xe8] sm:$0xff]   ;;  %v8345_v0 = vld [vmem:[%s8629_s14 + $0x3c] sm:$0xff]  }
 0x29d   : > { %v1684_v11 = vsel %vm1676_vm9, %v1672_v1, %v1680_v5  ;;  %v7061_v12 = vpack.c.bf16 %v1681_v9, %v1681_v9  ;;  %v8351_v1 = vld [vmem:[%s8629_s14 + $0x38] sm:$0xff]   ;;  %v8349_v5 = vld [vmem:[%s9747_s1 + $0x110] sm:$0xff]  }
 0x29e   : > { %1704 = vst.msk [vmem:[%s8889_s20 + $0x8] sm:$0xf] %vm1701_vm8, %v7063_v7  ;;  %v1686_v13 = vpack.c.bf16 %v1684_v11, %v1683_v4  ;;  %v7064_v14 = vpack.c.bf16 %v1684_v11, %v1684_v11  ;;  %v1682_v16 = vsel %vm1674_vm10, %v1670_v3, %v1678_v8  ;;  %v8346_v2 = vld [vmem:[%s9747_s1 + $0xf8] sm:$0xff]   ;;  %v8347_v3 = vld [vmem:[%s9747_s1 + $0x100] sm:$0xff]   ;;  %v8348_v4 = vld [vmem:[%s9747_s1 + $0x108] sm:$0xff]  }
 0x29f   : > { %v1685_v18 = vpack.c.bf16 %v1682_v16, %v1681_v9  ;;  %v7062_v19 = vpack.c.bf16 %v1682_v16, %v1682_v16  ;;  %1702 = vst.msk [vmem:[%s8889_s20] sm:$0xf] %vm1701_vm8, %v7061_v12  ;;  %v8352_v7 = vld [vmem:[%s9747_s1 + $0x120] sm:$0xff]   ;;  %v8359_v9 = vld [vmem:[%s8629_s14 + $0x48] sm:$0xff]   ;;  %v8355_v11 = vld [vmem:[%s9747_s1 + $0x130] sm:$0xff]  }
 0x2a0   : > { %1705 = vst.msk [vmem:[%s8889_s20 + $0xc] sm:$0xf] %vm1701_vm8, %v7064_v14  ;;  %v8353_v8 = vld [vmem:[%s8629_s14 + $0x40] sm:$0xff]   ;;  %v8356_v12 = vld [vmem:[%s9747_s1 + $0x138] sm:$0xff]   ;;  %v8358_v14 = vld [vmem:[%s9747_s1 + $0x148] sm:$0xff]  }
 0x2a1   : > { %1703 = vst.msk [vmem:[%s8889_s20 + $0x4] sm:$0xf] %vm1701_vm8, %v7062_v19  ;;  %7608 = vmatprep.mubr.msk.bf16.mxu1 %vm1583_vm5, %v1685_v18  ;;  %v8360_v16 = vld [vmem:[%s9747_s1 + $0x150] sm:$0xff]  }
 0x2a2   : > { %7609 = vmatmul.mubr.msk.bf16.vlgmr.msra.gmra.mrb[4].mxu1 %vm1583_vm5, %v1686_v13  ;;  %v8357_v13 = vld [vmem:[%s9747_s1 + $0x140] sm:$0xff]   ;;  %v8361_v18 = vld [vmem:[%s8629_s14 + $0x50] sm:$0xff]  }
 0x2a3   : > { %7613 = vmatpush3.bf16.msra.mxu1 %v8305_v41  ;;  %7624 = vmatprep.mubr.msk.bf16.mxu1 %vm524_vm0, %v6314_v20  ;;  %v8323_v41 = vld [vmem:[%s9747_s1 + $0x70] sm:$0xff]   ;;  %v8362_v20 = vld [vmem:[%s9747_s1 + $0x158] sm:$0xff]  }
 0x2a4   : > { %7614 = vmatprep.subr.bf16.mxu1 %v8306_v21  ;;  %v8367_v19 = vld [vmem:[%s8629_s14 + $0x4c] sm:$0xff]  }
 0x2a7   : > { %7615 = vmatpush3.bf16.msra.mxu1 %v8306_v21  ;;  %v8363_v21 = vld [vmem:[%s9747_s1 + $0x160] sm:$0xff]  }
 0x2a8   : > { %7616 = vmatprep.subr.bf16.mxu1 %v8307_v22 }
 0x2ab   : > { %7617 = vmatpush3.bf16.msra.mxu1 %v8307_v22  ;;  %v8364_v22 = vld [vmem:[%s9747_s1 + $0x168] sm:$0xff]  }
 0x2ac   : > { %7618 = vmatprep.subr.bf16.mxu1 %v8308_v23 }
 0x2af   : > { %7619 = vmatpush3.bf16.msra.mxu1 %v8308_v23  ;;  %v8365_v23 = vld [vmem:[%s9747_s1 + $0x170] sm:$0xff]  }
 0x2b0   : > { %7620 = vmatprep.subr.bf16.mxu1 %v8309_v24 }
 0x2b3   : > { %7621 = vmatpush3.bf16.msra.mxu1 %v8309_v24  ;;  %v8366_v24 = vld [vmem:[%s9747_s1 + $0x178] sm:$0xff]  }
 0x2b4   : > { %7622 = vmatprep.subr.bf16.mxu1 %v8310_v25 }
 0x2b7   : > { %7623 = vmatpush3.bf16.msra.mxu1 %v8310_v25  ;;  %v8368_v25 = vld [vmem:[%s9747_s1 + $0x180] sm:$0xff]  }
 0x2b8   : > { %7628 = vmatprep.subr.bf16.mxu1 %v8314_v28 }
 0x2ba   : > { %7625 = vmatmul.mubr.msk.bf16.vlgmr.msra.gmra.mrb[8].mxu1 %vm524_vm0, %v6315_v30  ;;  %v8372_v30 = vld [vmem:[%s9747_s1 + $0x198] sm:$0xff]  }
 0x2bb   : > { %7629 = vmatpush3.bf16.msra.mxu1 %v8314_v28  ;;  %7640 = vmatprep.mubr.msk.bf16.mxu1 %vm524_vm0, %v6324_v31  ;;  %v8370_v28 = vld [vmem:[%s9747_s1 + $0x188] sm:$0xff]   ;;  %v8373_v31 = vld [vmem:[%s9747_s1 + $0x1a0] sm:$0xff]  }
 0x2bc   : > { %7630 = vmatprep.subr.bf16.mxu1 %v8315_v32 }
 0x2bf   : > { %7631 = vmatpush3.bf16.msra.mxu1 %v8315_v32  ;;  %v8374_v32 = vld [vmem:[%s9747_s1 + $0x1a8] sm:$0xff]  }
 0x2c0   : > { %7632 = vmatprep.subr.bf16.mxu1 %v8316_v33 }
 0x2c3   : > { %7633 = vmatpush3.bf16.msra.mxu1 %v8316_v33  ;;  %v9102_v33 = vld [vmem:[%s9755_s9] ss:$0 sm:$0xff] }
 0x2c4   : > { %7634 = vmatprep.subr.bf16.mxu1 %v8317_v34 }
 0x2c7   : > { %7635 = vmatpush3.bf16.msra.mxu1 %v8317_v34 }
 0x2c8   : > { %7636 = vmatprep.subr.bf16.mxu1 %v8318_v35 }
 0x2cb   : > { %7637 = vmatpush3.bf16.msra.mxu1 %v8318_v35  ;;  %v9107_v35 = vld [vmem:[%s9756_s10] ss:$0 sm:$0xff] }
 0x2cc   : > { %7638 = vmatprep.subr.bf16.mxu1 %v8319_v36 }
 0x2cf   : > { %7639 = vmatpush3.bf16.msra.mxu1 %v8319_v36 }
 0x2d0   : > { %7644 = vmatprep.subr.bf16.mxu1 %v8321_v37 }
 0x2d2   : > { %7641 = vmatmul.mubr.msk.bf16.vlgmr.msra.gmra.mrb[8].mxu1 %vm524_vm0, %v6325_v38  ;;  %v8376_v38 = vld [vmem:[%s8629_s14 + $0x58] sm:$0xff]  }
 0x2d3   : > { %7645 = vmatpush3.bf16.msra.mxu1 %v8321_v37  ;;  %7656 = vmatprep.mubr.msk.bf16.mxu1 %vm524_vm0, %v8327_v39 }
 0x2d4   : > { %7646 = vmatprep.subr.bf16.mxu1 %v8322_v40 }
 0x2d7   : > { %7647 = vmatpush3.bf16.msra.mxu1 %v8322_v40 }
 0x2d8   : > { %7648 = vmatprep.subr.bf16.mxu1 %v8323_v41 }
 0x2db   : > { %7649 = vmatpush3.bf16.msra.mxu1 %v8323_v41 }
 0x2dc   : > { %7650 = vmatprep.subr.bf16.mxu1 %v8324_v43 }
 0x2df   : > { %7651 = vmatpush3.bf16.msra.mxu1 %v8324_v43 }
 0x2e0   : > { %7652 = vmatprep.subr.bf16.mxu1 %v8325_v44 }
 0x2e3   : > { %7653 = vmatpush3.bf16.msra.mxu1 %v8325_v44 }
 0x2e4   : > { %7654 = vmatprep.subr.bf16.mxu1 %v8326_v45 }
 0x2e7   : > { %7655 = vmatpush3.bf16.msra.mxu1 %v8326_v45 }
 0x2e8   : > { %7660 = vmatprep.subr.bf16.mxu1 %v8328_v47 }
 0x2ea   : > { %7657 = vmatmul.mubr.msk.bf16.vlgmr.msra.gmra.mrb[8].mxu1 %vm524_vm0, %v8329_v48 }
 0x2eb   : > { %7661 = vmatpush3.bf16.msra.mxu1 %v8328_v47  ;;  %7672 = vmatprep.mubr.msk.bf16.mxu1 %vm524_vm0, %v8335_v49 }
 0x2ec   : > { %7662 = vmatprep.subr.bf16.mxu1 %v8330_v50 }
 0x2ef   : > { %7663 = vmatpush3.bf16.msra.mxu1 %v8330_v50 }
 0x2f0   : > { %7664 = vmatprep.subr.bf16.mxu1 %v8331_v51 }
 0x2f3   : > { %7665 = vmatpush3.bf16.msra.mxu1 %v8331_v51 }
 0x2f4   : > { %7666 = vmatprep.subr.bf16.mxu1 %v8332_v52 }
 0x2f7   : > { %7667 = vmatpush3.bf16.msra.mxu1 %v8332_v52 }
 0x2f8   : > { %7668 = vmatprep.subr.bf16.mxu1 %v8333_v53 }
 0x2fb   : > { %7669 = vmatpush3.bf16.msra.mxu1 %v8333_v53 }
 0x2fc   : > { %7670 = vmatprep.subr.bf16.mxu1 %v8334_v54 }
 0x2ff   : > { %7671 = vmatpush3.bf16.msra.mxu1 %v8334_v54 }
 0x300   : > { %7676 = vmatprep.subr.bf16.mxu1 %v8336_v55 }
 0x302   : > { %7673 = vmatmul.mubr.msk.bf16.vlgmr.msra.gmra.mrb[8].mxu1 %vm524_vm0, %v8337_v56 }
 0x303   : > { %7677 = vmatpush3.bf16.msra.mxu1 %v8336_v55  ;;  %7688 = vmatprep.mubr.msk.bf16.mxu1 %vm524_vm0, %v8343_v57 }
 0x304   : > { %7678 = vmatprep.subr.bf16.mxu1 %v8338_v58 }
 0x307   : > { %7679 = vmatpush3.bf16.msra.mxu1 %v8338_v58 }
 0x308   : > { %7680 = vmatprep.subr.bf16.mxu1 %v8339_v59 }
 0x30b   : > { %7681 = vmatpush3.bf16.msra.mxu1 %v8339_v59 }
 0x30c   : > { %7682 = vmatprep.subr.bf16.mxu1 %v8340_v60 }
 0x30f   : > { %7683 = vmatpush3.bf16.msra.mxu1 %v8340_v60 }
 0x310   : > { %7684 = vmatprep.subr.bf16.mxu1 %v8341_v61 }
 0x313   : > { %7685 = vmatpush3.bf16.msra.mxu1 %v8341_v61 }
 0x314   : > { %7686 = vmatprep.subr.bf16.mxu1 %v8342_v62 }
 0x317   : > { %7687 = vmatpush3.bf16.msra.mxu1 %v8342_v62  ;;  %v8377_v62 = vld [vmem:[%s9750_s4] sm:$0xff]  }
 0x318   : > { %7692 = vmatprep.subr.bf16.mxu1 %v8344_v63  ;;  %7756 = vmatprep.subr.bf16.mxu0 %v8377_v62 }
 0x319   : > { %7757 = vmatpush3.bf16.msra.mxu0 %v8377_v62 }
 0x31a   : > { %7689 = vmatmul.mubr.msk.bf16.vlgmr.msra.gmra.mrb[8].mxu1 %vm524_vm0, %v8345_v0 }
 0x31b   : > { %7693 = vmatpush3.bf16.msra.mxu1 %v8344_v63  ;;  %7704 = vmatprep.mubr.msk.bf16.mxu1 %vm524_vm0, %v8351_v1  ;;  %v8378_v63 = vld [vmem:[%s9750_s4 + $0x8] sm:$0xff]  }
 0x31c   : > { %7694 = vmatprep.subr.bf16.mxu1 %v8346_v2  ;;  %7758 = vmatprep.subr.bf16.mxu0 %v8378_v63 }
 0x31d   : > { %7759 = vmatpush3.bf16.msra.mxu0 %v8378_v63 }
 0x31f   : > { %7695 = vmatpush3.bf16.msra.mxu1 %v8346_v2 }
 0x320   : > { %7696 = vmatprep.subr.bf16.mxu1 %v8347_v3 }
 0x323   : > { %7697 = vmatpush3.bf16.msra.mxu1 %v8347_v3 }
 0x324   : > { %7698 = vmatprep.subr.bf16.mxu1 %v8348_v4 }
 0x327   : > { %7699 = vmatpush3.bf16.msra.mxu1 %v8348_v4 }
 0x328   : > { %7700 = vmatprep.subr.bf16.mxu1 %v8349_v5 }
 0x32b   : > { %7701 = vmatpush3.bf16.msra.mxu1 %v8349_v5 }
 0x32c   : > { %7702 = vmatprep.subr.bf16.mxu1 %v8350_v6 }
 0x32f   : > { %7703 = vmatpush3.bf16.msra.mxu1 %v8350_v6 }
 0x330   : > { %7708 = vmatprep.subr.bf16.mxu1 %v8352_v7 }
 0x332   : > { %7705 = vmatmul.mubr.msk.bf16.vlgmr.msra.gmra.mrb[8].mxu1 %vm524_vm0, %v8353_v8 }
 0x333   : > { %7709 = vmatpush3.bf16.msra.mxu1 %v8352_v7  ;;  %7720 = vmatprep.mubr.msk.bf16.mxu1 %vm524_vm0, %v8359_v9 }
 0x334   : > { %7710 = vmatprep.subr.bf16.mxu1 %v8354_v10 }
 0x337   : > { %7711 = vmatpush3.bf16.msra.mxu1 %v8354_v10 }
 0x338   : > { %7712 = vmatprep.subr.bf16.mxu1 %v8355_v11 }
 0x33b   : > { %7713 = vmatpush3.bf16.msra.mxu1 %v8355_v11 }
 0x33c   : > { %7714 = vmatprep.subr.bf16.mxu1 %v8356_v12 }
 0x33f   : > { %7715 = vmatpush3.bf16.msra.mxu1 %v8356_v12 }
 0x340   : > { %7716 = vmatprep.subr.bf16.mxu1 %v8357_v13 }
 0x343   : > { %7717 = vmatpush3.bf16.msra.mxu1 %v8357_v13 }
 0x344   : > { %7718 = vmatprep.subr.bf16.mxu1 %v8358_v14 }
 0x347   : > { %7719 = vmatpush3.bf16.msra.mxu1 %v8358_v14 }
 0x348   : > { %7724 = vmatprep.subr.bf16.mxu1 %v8360_v16 }
 0x34a   : > { %7721 = vmatmul.mubr.msk.bf16.vlgmr.msra.gmra.mrb[8].mxu1 %vm524_vm0, %v8361_v18 }
 0x34b   : > { %7725 = vmatpush3.bf16.msra.mxu1 %v8360_v16  ;;  %7736 = vmatprep.mubr.msk.bf16.mxu1 %vm524_vm0, %v8367_v19 }
 0x34c   : > { %7726 = vmatprep.subr.bf16.mxu1 %v8362_v20 }
 0x34f   : > { %7727 = vmatpush3.bf16.msra.mxu1 %v8362_v20 }
 0x350   : > { %7728 = vmatprep.subr.bf16.mxu1 %v8363_v21 }
 0x353   : > { %7729 = vmatpush3.bf16.msra.mxu1 %v8363_v21 }
 0x354   : > { %7730 = vmatprep.subr.bf16.mxu1 %v8364_v22 }
 0x357   : > { %7731 = vmatpush3.bf16.msra.mxu1 %v8364_v22 }
 0x358   : > { %7732 = vmatprep.subr.bf16.mxu1 %v8365_v23 }
 0x35b   : > { %7733 = vmatpush3.bf16.msra.mxu1 %v8365_v23  ;;  %v8380_v23 = vld [vmem:[%s9754_s8 + $0x8] sm:$0xff]  }
 0x35c   : > { %7734 = vmatprep.subr.bf16.mxu1 %v8366_v24 }
 0x35f   : > { %7735 = vmatpush3.bf16.msra.mxu1 %v8366_v24  ;;  %v8381_v24 = vld [vmem:[%s9747_s1 + $0x30] sm:$0xff]  }
 0x360   : > { %7740 = vmatprep.subr.bf16.mxu1 %v8368_v25 }
 0x362   : > { %7737 = vmatmul.mubr.msk.bf16.vlgmr.msra.gmra.mrb[8].mxu1 %vm524_vm0, %v8369_v26  ;;  %v7126_v26 = vld [vmem:[%s8863_s13 + $0x10] sm:$0xff]  }
 0x363   : > { %7741 = vmatpush3.bf16.msra.mxu1 %v8368_v25  ;;  %7752 = vmatprep.mubr.msk.bf16.mxu1 %vm524_vm0, %v8375_v27  ;;  %v7127_v25 = vld [vmem:[%s8863_s13 + $0x18] sm:$0xff]  }
 0x364   : > { %7742 = vmatprep.subr.bf16.mxu1 %v8370_v28 }
 0x367   : > { %7743 = vmatpush3.bf16.msra.mxu1 %v8370_v28 }
 0x368   : > { %7744 = vmatprep.subr.bf16.mxu1 %v8371_v29 }
 0x36b   : > { %7745 = vmatpush3.bf16.msra.mxu1 %v8371_v29  ;;  %v7107_v29 = vunpack.c.l.bf16 %v7127_v25 }
 0x36c   : > { %7746 = vmatprep.subr.bf16.mxu1 %v8372_v30 }
 0x36f   : > { %7747 = vmatpush3.bf16.msra.mxu1 %v8372_v30 }
 0x370   : > { %7748 = vmatprep.subr.bf16.mxu1 %v8373_v31 }
 0x373   : > { %7749 = vmatpush3.bf16.msra.mxu1 %v8373_v31 }
 0x374   : > { %7750 = vmatprep.subr.bf16.mxu1 %v8374_v32 }
 0x375   : > { %v7610_v34 = vpop.f32.mrb[4].mxu1 }
 0x376   : > { %v1786_v36 = vmul.f32 %v7610_v34, %v9102_v33  ;;  %v1762_v37 = vpop.f32.mrb[5].mxu1 }
 0x377   : > { %v1784_v39 = vmul.f32 %v9102_v33, %v1762_v37  ;;  %7751 = vmatpush3.bf16.msra.mxu1 %v8374_v32  ;;  %v7611_v40 = vpop.f32.mrb[6].mxu1  ;;  %v7103_v32 = vunpack.c.l.bf16 %v7126_v26 }
 0x378   : > { %v1797_v41 = vadd.f32 %v9107_v35, %v1786_v36  ;;  %v1787_v43 = vmul.f32 %v7611_v40, %v9102_v33  ;;  %v1765_v44 = vpop.f32.mrb[7].mxu1 }
 0x379   : > { %v1795_v45 = vadd.f32 %v9107_v35, %v1784_v39  ;;  %v1785_v47 = vmul.f32 %v9102_v33, %v1765_v44 }
 0x37a   : > { %vm1801_vm11 = vcmp.ge.f32.partialorder %v1797_v41, 0.0  ;;  %v1805_v48 = vmul.f32 0.01, %v1797_v41  ;;  %v1798_v49 = vadd.f32 %v9107_v35, %v1787_v43  ;;  %7753 = vmatmul.mubr.msk.bf16.vlgmr.msra.gmra.mrb[8].mxu1 %vm524_vm0, %v8376_v38  ;;  %v7108_v38 = vunpack.c.h.bf16 %v7127_v25  ;;  %v8402_v25 = vld [vmem:[%s9747_s1 + $0x88] sm:$0xff]  }
 0x37b   : > { %vm1799_vm12 = vcmp.ge.f32.partialorder %v1795_v45, 0.0  ;;  %v1803_v50 = vmul.f32 0.01, %v1795_v45  ;;  %v1796_v51 = vadd.f32 %v9107_v35, %v1785_v47  ;;  %v7104_v43 = vunpack.c.h.bf16 %v7126_v26  ;;  %v8404_v26 = vld [vmem:[%s9747_s1 + $0x90] sm:$0xff]  }
 0x37c   : > { %v1809_v52 = vsel %vm1801_vm11, %v1797_v41, %v1805_v48  ;;  %vm1802_vm13 = vcmp.ge.f32.partialorder %v1798_v49, 0.0  ;;  %v1806_v53 = vmul.f32 0.01, %v1798_v49 }
 0x37d   : > { %v7067_v54 = vpack.c.bf16 %v1809_v52, %v1809_v52  ;;  %v1807_v55 = vsel %vm1799_vm12, %v1795_v45, %v1803_v50  ;;  %vm1800_vm14 = vcmp.ge.f32.partialorder %v1796_v51, 0.0  ;;  %v1804_v56 = vmul.f32 0.01, %v1796_v51 }
 0x37e   : > { %v7065_v57 = vpack.c.bf16 %v1807_v55, %v1807_v55  ;;  %v1810_v58 = vsel %vm1802_vm13, %v1798_v49, %v1806_v53 }
 0x37f   : > { %1829 = vst.msk [vmem:[%s9123_s16 + $0x8] sm:$0xf] %vm1701_vm8, %v7067_v54  ;;  %v7068_v59 = vpack.c.bf16 %v1810_v58, %v1810_v58  ;;  %v1808_v60 = vsel %vm1800_vm14, %v1796_v51, %v1804_v56  ;;  %v9170_v58 = vld [vmem:[%s8629_s14 + $0x38] sm:$0xf] }
 0x380   : > { %1827 = vst.msk [vmem:[%s9123_s16] sm:$0xf] %vm1701_vm8, %v7065_v57  ;;  %v7066_v61 = vpack.c.bf16 %v1808_v60, %v1808_v60 }
 0x381   : > { %1830 = vst.msk [vmem:[%s9123_s16 + $0xc] sm:$0xf] %vm1701_vm8, %v7068_v59 }
 0x382   : > { %1828 = vst.msk [vmem:[%s9123_s16 + $0x4] sm:$0xf] %vm1701_vm8, %v7066_v61 }
 0x44d   : > { %v7754_v0 = vpop.f32.mrb[8].mxu1 }
 0x44e   : > { %v2913_v1 = vmul.f32 %v7754_v0, %v8830_v15  ;;  %v2885_v2 = vpop.f32.mrb[9].mxu1 }
 0x44f   : > { %v2911_v3 = vmul.f32 %v8830_v15, %v2885_v2  ;;  %v7755_v4 = vpop.f32.mrb[10].mxu1  ;;  %v8382_v2 = vld [vmem:[%s9747_s1 + $0x38] sm:$0xff]  }
 0x450   : > { %v2924_v5 = vadd.f32 %v8835_v17, %v2913_v1  ;;  %v2914_v6 = vmul.f32 %v7755_v4, %v8830_v15  ;;  %v2888_v7 = vpop.f32.mrb[11].mxu1  ;;  %v8384_v4 = vld [vmem:[%s9747_s1 + $0x48] sm:$0xff]  }
 0x451   : > { %v2922_v8 = vadd.f32 %v8835_v17, %v2911_v3  ;;  %v2912_v9 = vmul.f32 %v8830_v15, %v2888_v7  ;;  %v8383_v3 = vld [vmem:[%s9747_s1 + $0x40] sm:$0xff]   ;;  %v6553_v7 = vld [vmem:[%s8629_s14 + $0x3c] sm:$0xf] }
 0x452   : > { %v2932_v10 = vmul.f32 0.01, %v2924_v5  ;;  %v2925_v11 = vadd.f32 %v8835_v17, %v2914_v6  ;;  %vm2928_vm15 = vcmp.ge.f32.partialorder %v2924_v5, 0.0  ;;  %v8386_v6 = vld [vmem:[%s9747_s1 + $0x58] sm:$0xff]  }
 0x453   : > { %v2930_v12 = vmul.f32 0.01, %v2922_v8  ;;  %v2923_v13 = vadd.f32 %v8835_v17, %v2912_v9  ;;  %vm2926_vm1 = vcmp.ge.f32.partialorder %v2922_v8, 0.0  ;;  %v8379_v17 = vld [vmem:[%s9754_s8] sm:$0xff]  }
 0x454   : > { %vm2929_vm2 = vcmp.ge.f32.partialorder %v2925_v11, 0.0  ;;  %v2933_v14 = vmul.f32 0.01, %v2925_v11  ;;  %v2936_v18 = vsel %vm2928_vm15, %v2924_v5, %v2932_v10  ;;  %7764 = vmatprep.subr.bf16.mxu0 %v8379_v17  ;;  %v8385_v5 = vld [vmem:[%s9747_s1 + $0x50] sm:$0xff]   ;;  %v8390_v9 = vld [vmem:[%s9747_s1] sm:$0xff]  }
 0x455   : > { %vm2927_vm3 = vcmp.ge.f32.partialorder %v2923_v13, 0.0  ;;  %v2931_v16 = vmul.f32 0.01, %v2923_v13  ;;  %v2934_v20 = vsel %vm2926_vm1, %v2922_v8, %v2930_v12  ;;  %v6554_v8 = vld [vmem:[%s8629_s14 + $0x40] sm:$0xf] }
 0x456   : > { %v2937_v19 = vsel %vm2929_vm2, %v2925_v11, %v2933_v14  ;;  %v6550_v10 = vld [vmem:[%s8629_s14 + $0x30] sm:$0xf]  ;;  %v6568_v11 = vcombine.low %v6553_v7, %v6554_v8 }
 0x457   : > { %v2939_v21 = vpack.c.bf16 %v2937_v19, %v2936_v18  ;;  %v2935_v22 = vsel %vm2927_vm3, %v2923_v13, %v2931_v16  ;;  %v8391_v13 = vld [vmem:[%s9747_s1 + $0x8] sm:$0xff]   ;;  %v8392_v14 = vld [vmem:[%s9747_s1 + $0x10] sm:$0xff]   ;;  %v8393_v16 = vld [vmem:[%s9747_s1 + $0x18] sm:$0xff]  }
 0x458   : > { %v2938_v15 = vpack.c.bf16 %v2935_v22, %v2934_v20  ;;  %v8394_v18 = vld [vmem:[%s9747_s1 + $0x20] sm:$0xff]   ;;  %v8395_v19 = vld [vmem:[%s9747_s1 + $0x28] sm:$0xff]   ;;  %v8403_v22 = vld [vmem:[%s8629_s14 + $0x38] sm:$0xff]  }
 0x459   : > { %v8397_v20 = vld [vmem:[%s9747_s1 + $0x60] sm:$0xff]   ;;  %v8447_v8 = vld [vmem:[%s9747_s1 + $0x190] sm:$0xff]  }
 0x45a   : > { %7760 = vmatprep.mubr.msk.bf16.mxu0 %vm1583_vm5, %v2938_v15  ;;  %v8398_v15 = vld [vmem:[%s9747_s1 + $0x68] sm:$0xff]  }
 0x45b   : > { %7761 = vmatmul.mubr.msk.bf16.vlgmr.msra.gmra.mrb[4].mxu0 %vm1583_vm5, %v2939_v21  ;;  %v6578_v21 = vcombine.low %v9170_v58, %v6553_v7  ;;  %v8446_v7 = vld [vmem:[%s9747_s1 + $0x188] sm:$0xff]  }
 0x45c   : > { %7765 = vmatpush3.bf16.msra.mxu0 %v8379_v17  ;;  %v8399_v17 = vld [vmem:[%s9747_s1 + $0x70] sm:$0xff]  }
 0x45d   : > { %7766 = vmatprep.subr.bf16.mxu0 %v8380_v23 }
 0x460   : > { %7767 = vmatpush3.bf16.msra.mxu0 %v8380_v23  ;;  %v8400_v23 = vld [vmem:[%s9747_s1 + $0x78] sm:$0xff]  }
 0x461   : > { %7772 = vmatprep.subr.bf16.mxu0 %v8381_v24 }
 0x52e   : > { %v7762_v27 = vpop.f32.mrb[4].mxu0 }
 0x52f   : > { %v3020_v28 = vmul.f32 %v7762_v27, %v8868_v42  ;;  %v2996_v30 = vpop.f32.mrb[5].mxu0  ;;  %v8405_v27 = vld [vmem:[%s8629_s14 + $0x40] sm:$0xff]  }
 0x530   : > { %v3018_v31 = vmul.f32 %v8868_v42, %v2996_v30  ;;  %v7763_v34 = vpop.f32.mrb[6].mxu0  ;;  %v8407_v30 = vld [vmem:[%s9747_s1 + $0xa0] sm:$0xff]  }
 0x531   : > { %v3031_v36 = vadd.f32 %v8875_v46, %v3020_v28  ;;  %v3021_v37 = vmul.f32 %v7763_v34, %v8868_v42  ;;  %v2999_v39 = vpop.f32.mrb[7].mxu0  ;;  %v8411_v28 = vld [vmem:[%s8629_s14 + $0x48] sm:$0xff]   ;;  %v8410_v34 = vld [vmem:[%s9747_s1 + $0xb8] sm:$0xff]  }
 0x532   : > { %v3029_v40 = vadd.f32 %v8875_v46, %v3018_v31  ;;  %v3019_v41 = vmul.f32 %v8868_v42, %v2999_v39  ;;  %v6551_v42 = vld [vmem:[%s8629_s14 + $0x34] sm:$0xf]  ;;  %v8408_v31 = vld [vmem:[%s9747_s1 + $0xa8] sm:$0xff]  }
 0x533   : > { %v3044_v44 = vadd.f32 %v7107_v29, %v3031_v36  ;;  %v3032_v45 = vadd.f32 %v8875_v46, %v3021_v37  ;;  %v6567_v1 = vcombine.low %v6551_v42, %v9170_v58  ;;  %v6577_v12 = vcombine.low %v6550_v10, %v6551_v42  ;;  %v8406_v29 = vld [vmem:[%s9747_s1 + $0x98] sm:$0xff]   ;;  %v8412_v36 = vld [vmem:[%s9747_s1 + $0xc0] sm:$0xff]   ;;  %v8413_v37 = vld [vmem:[%s8629_s14 + $0x50] sm:$0xff]  }
 0x534   : > { %v3042_v47 = vadd.f32 %v7103_v32, %v3029_v40  ;;  %v3030_v48 = vadd.f32 %v8875_v46, %v3019_v41  ;;  %v8409_v32 = vld [vmem:[%s9747_s1 + $0xb0] sm:$0xff]   ;;  %v8414_v39 = vld [vmem:[%s9747_s1 + $0xc8] sm:$0xff]   ;;  %v8416_v41 = vld [vmem:[%s9747_s1 + $0xd8] sm:$0xff]  }
 0x535   : > { %vm3048_vm4 = vcmp.ge.f32.partialorder %v3044_v44, 0.0  ;;  %v3052_v49 = vmul.f32 0.01, %v3044_v44  ;;  %v3045_v50 = vadd.f32 %v7108_v38, %v3032_v45  ;;  %v8419_v38 = vld [vmem:[%s8629_s14 + $0x4c] sm:$0xff]   ;;  %v8429_v42 = vld [vmem:[%s8629_s14 + $0x58] sm:$0xff]   ;;  %v8449_v10 = vld [vmem:[%s9747_s1 + $0x1a0] sm:$0xff]  }
 0x536   : > { %vm3046_vm6 = vcmp.ge.f32.partialorder %v3042_v47, 0.0  ;;  %v3050_v51 = vmul.f32 0.01, %v3042_v47  ;;  %v3043_v52 = vadd.f32 %v7104_v43, %v3030_v48  ;;  %v8415_v40 = vld [vmem:[%s9747_s1 + $0xd0] sm:$0xff]   ;;  %v8417_v43 = vld [vmem:[%s9747_s1 + $0xe0] sm:$0xff]   ;;  %v8432_v58 = vld [vmem:[%s9747_s1 + $0x138] sm:$0xff]  }
 0x537   : > { %v3056_v53 = vsel %vm3048_vm4, %v3044_v44, %v3052_v49  ;;  %vm3049_vm7 = vcmp.ge.f32.partialorder %v3045_v50, 0.0  ;;  %v3053_v54 = vmul.f32 0.01, %v3045_v50  ;;  %v8418_v44 = vld [vmem:[%s9747_s1 + $0xe8] sm:$0xff]   ;;  %v8420_v45 = vld [vmem:[%s9747_s1 + $0xf0] sm:$0xff]   ;;  %v8422_v49 = vld [vmem:[%s9747_s1 + $0xf8] sm:$0xff]  }
 0x538   : > { %v7071_v55 = vpack.c.bf16 %v3056_v53, %v3056_v53  ;;  %vm3047_vm9 = vcmp.ge.f32.partialorder %v3043_v52, 0.0  ;;  %v3051_v56 = vmul.f32 0.01, %v3043_v52  ;;  %v3054_v57 = vsel %vm3046_vm6, %v3042_v47, %v3050_v51  ;;  %v8421_v47 = vld [vmem:[%s8629_s14 + $0x54] sm:$0xff]   ;;  %v8424_v51 = vld [vmem:[%s9747_s1 + $0x108] sm:$0xff]  }
 0x539   : > { %v3057_v46 = vsel %vm3049_vm7, %v3045_v50, %v3053_v54  ;;  %v7069_v59 = vpack.c.bf16 %v3054_v57, %v3054_v57  ;;  %v8427_v48 = vld [vmem:[%s8629_s14 + $0x50] sm:$0xff]   ;;  %v8423_v50 = vld [vmem:[%s9747_s1 + $0x100] sm:$0xff]  }
 0x53a   : > { %6534 = vst.msk [vmem:[%s8889_s20 + $0x18] sm:$0xf] %vm1701_vm8, %v7071_v55  ;;  %v3059_v60 = vpack.c.bf16 %v3057_v46, %v3056_v53  ;;  %v7072_v61 = vpack.c.bf16 %v3057_v46, %v3057_v46  ;;  %v3055_v62 = vsel %vm3047_vm9, %v3043_v52, %v3051_v56  ;;  %v8425_v52 = vld [vmem:[%s9747_s1 + $0x110] sm:$0xff]   ;;  %v8426_v53 = vld [vmem:[%s9747_s1 + $0x118] sm:$0xff]   ;;  %v8428_v54 = vld [vmem:[%s9747_s1 + $0x120] sm:$0xff]  }
 0x53b   : > { %v3058_v63 = vpack.c.bf16 %v3055_v62, %v3054_v57  ;;  %v7070_v0 = vpack.c.bf16 %v3055_v62, %v3055_v62  ;;  %6532 = vst.msk [vmem:[%s8889_s20 + $0x10] sm:$0xf] %vm1701_vm8, %v7069_v59  ;;  %v8435_v55 = vld [vmem:[%s8629_s14 + $0x60] sm:$0xff]   ;;  %v8430_v56 = vld [vmem:[%s9747_s1 + $0x128] sm:$0xff]   ;;  %v8431_v57 = vld [vmem:[%s9747_s1 + $0x130] sm:$0xff]  }
 0x53c   : > { %6535 = vst.msk [vmem:[%s8889_s20 + $0x1c] sm:$0xf] %vm1701_vm8, %v7072_v61  ;;  %v8433_v46 = vld [vmem:[%s9747_s1 + $0x140] sm:$0xff]   ;;  %v8434_v59 = vld [vmem:[%s9747_s1 + $0x148] sm:$0xff]  }
 0x53d   : > { %6533 = vst.msk [vmem:[%s8889_s20 + $0x14] sm:$0xf] %vm1701_vm8, %v7070_v0  ;;  %7768 = vmatprep.mubr.msk.bf16.mxu0 %vm1583_vm5, %v3058_v63  ;;  %v8437_v61 = vld [vmem:[%s8629_s14 + $0x68] sm:$0xff]   ;;  %v8438_v63 = vld [vmem:[%s9747_s1 + $0x158] sm:$0xff]   ;;  %v8439_v0 = vld [vmem:[%s9747_s1 + $0x160] sm:$0xff]  }
 0x53e   : > { %7769 = vmatmul.mubr.msk.bf16.vlgmr.msra.gmra.mrb[8].mxu0 %vm1583_vm5, %v3059_v60  ;;  %v8436_v60 = vld [vmem:[%s9747_s1 + $0x150] sm:$0xff]   ;;  %v8443_v62 = vld [vmem:[%s8629_s14 + $0x64] sm:$0xff]  }
 0x53f   : > { %7773 = vmatpush3.bf16.msra.mxu0 %v8381_v24  ;;  %7784 = vmatprep.mubr.msk.bf16.mxu0 %vm524_vm0, %v6567_v1  ;;  %v8401_v24 = vld [vmem:[%s9747_s1 + $0x80] sm:$0xff]   ;;  %v8440_v1 = vld [vmem:[%s9747_s1 + $0x168] sm:$0xff]  }
 0x540   : > { %7774 = vmatprep.subr.bf16.mxu0 %v8382_v2 }
 0x543   : > { %7775 = vmatpush3.bf16.msra.mxu0 %v8382_v2  ;;  %v8441_v2 = vld [vmem:[%s9747_s1 + $0x170] sm:$0xff]  }
 0x544   : > { %7776 = vmatprep.subr.bf16.mxu0 %v8383_v3 }
 0x547   : > { %7777 = vmatpush3.bf16.msra.mxu0 %v8383_v3  ;;  %v8442_v3 = vld [vmem:[%s9747_s1 + $0x178] sm:$0xff]  }
 0x548   : > { %7778 = vmatprep.subr.bf16.mxu0 %v8384_v4 }
 0x54b   : > { %7779 = vmatpush3.bf16.msra.mxu0 %v8384_v4  ;;  %v8444_v4 = vld [vmem:[%s9747_s1 + $0x180] sm:$0xff]  }
 0x54c   : > { %7780 = vmatprep.subr.bf16.mxu0 %v8385_v5 }
 0x54f   : > { %7781 = vmatpush3.bf16.msra.mxu0 %v8385_v5  ;;  %v8445_v5 = vld [vmem:[%s8629_s14 + $0x6c] sm:$0xff]  }
 0x550   : > { %7782 = vmatprep.subr.bf16.mxu0 %v8386_v6 }
 0x553   : > { %7783 = vmatpush3.bf16.msra.mxu0 %v8386_v6  ;;  %v8451_v6 = vld [vmem:[%s8629_s14 + $0x68] sm:$0xff]  }
 0x554   : > { %7788 = vmatprep.subr.bf16.mxu0 %v8390_v9 }
 0x556   : > { %7785 = vmatmul.mubr.msk.bf16.vlgmr.msra.gmra.mrb[12].mxu0 %vm524_vm0, %v6568_v11  ;;  %v8450_v11 = vld [vmem:[%s9747_s1 + $0x1a8] sm:$0xff]  }
 0x557   : > { %7789 = vmatpush3.bf16.msra.mxu0 %v8390_v9  ;;  %7800 = vmatprep.mubr.msk.bf16.mxu0 %vm524_vm0, %v6577_v12  ;;  %v8448_v9 = vld [vmem:[%s9747_s1 + $0x198] sm:$0xff]  }
 0x558   : > { %7790 = vmatprep.subr.bf16.mxu0 %v8391_v13 }
 0x55b   : > { %7791 = vmatpush3.bf16.msra.mxu0 %v8391_v13 }
 0x55c   : > { %7792 = vmatprep.subr.bf16.mxu0 %v8392_v14 }
 0x55f   : > { %7793 = vmatpush3.bf16.msra.mxu0 %v8392_v14 }
 0x560   : > { %7794 = vmatprep.subr.bf16.mxu0 %v8393_v16 }
 0x563   : > { %7795 = vmatpush3.bf16.msra.mxu0 %v8393_v16  ;;  %v8452_v16 = vld [vmem:[%s8629_s14 + $0x70] sm:$0xff]  }
 0x564   : > { %7796 = vmatprep.subr.bf16.mxu0 %v8394_v18 }
 0x567   : > { %7797 = vmatpush3.bf16.msra.mxu0 %v8394_v18 }
 0x568   : > { %7798 = vmatprep.subr.bf16.mxu0 %v8395_v19 }
 0x56b   : > { %7799 = vmatpush3.bf16.msra.mxu0 %v8395_v19 }
 0x56c   : > { %7804 = vmatprep.subr.bf16.mxu0 %v8397_v20 }
 0x56e   : > { %7801 = vmatmul.mubr.msk.bf16.vlgmr.msra.gmra.mrb[12].mxu0 %vm524_vm0, %v6578_v21 }
 0x56f   : > { %7805 = vmatpush3.bf16.msra.mxu0 %v8397_v20  ;;  %7816 = vmatprep.mubr.msk.bf16.mxu0 %vm524_vm0, %v8403_v22 }
 0x570   : > { %7806 = vmatprep.subr.bf16.mxu0 %v8398_v15 }
 0x573   : > { %7807 = vmatpush3.bf16.msra.mxu0 %v8398_v15 }
 0x574   : > { %7808 = vmatprep.subr.bf16.mxu0 %v8399_v17 }
 0x577   : > { %7809 = vmatpush3.bf16.msra.mxu0 %v8399_v17 }
 0x578   : > { %7810 = vmatprep.subr.bf16.mxu0 %v8400_v23 }
 0x57b   : > { %7811 = vmatpush3.bf16.msra.mxu0 %v8400_v23 }
 0x57c   : > { %7812 = vmatprep.subr.bf16.mxu0 %v8401_v24 }
 0x57f   : > { %7813 = vmatpush3.bf16.msra.mxu0 %v8401_v24 }
 0x580   : > { %7814 = vmatprep.subr.bf16.mxu0 %v8402_v25 }
 0x583   : > { %7815 = vmatpush3.bf16.msra.mxu0 %v8402_v25 }
 0x584   : > { %7820 = vmatprep.subr.bf16.mxu0 %v8404_v26 }
 0x586   : > { %7817 = vmatmul.mubr.msk.bf16.vlgmr.msra.gmra.mrb[12].mxu0 %vm524_vm0, %v8405_v27 }
 0x587   : > { %7821 = vmatpush3.bf16.msra.mxu0 %v8404_v26  ;;  %7832 = vmatprep.mubr.msk.bf16.mxu0 %vm524_vm0, %v8411_v28 }
 0x588   : > { %7822 = vmatprep.subr.bf16.mxu0 %v8406_v29 }
 0x58b   : > { %7823 = vmatpush3.bf16.msra.mxu0 %v8406_v29 }
 0x58c   : > { %7824 = vmatprep.subr.bf16.mxu0 %v8407_v30 }
 0x58f   : > { %7825 = vmatpush3.bf16.msra.mxu0 %v8407_v30 }
 0x590   : > { %7826 = vmatprep.subr.bf16.mxu0 %v8408_v31 }
 0x593   : > { %7827 = vmatpush3.bf16.msra.mxu0 %v8408_v31 }
 0x594   : > { %7828 = vmatprep.subr.bf16.mxu0 %v8409_v32 }
 0x597   : > { %7829 = vmatpush3.bf16.msra.mxu0 %v8409_v32 }
 0x598   : > { %7830 = vmatprep.subr.bf16.mxu0 %v8410_v34 }
 0x59b   : > { %7831 = vmatpush3.bf16.msra.mxu0 %v8410_v34 }
 0x59c   : > { %7836 = vmatprep.subr.bf16.mxu0 %v8412_v36 }
 0x59e   : > { %7833 = vmatmul.mubr.msk.bf16.vlgmr.msra.gmra.mrb[12].mxu0 %vm524_vm0, %v8413_v37 }
 0x59f   : > { %7837 = vmatpush3.bf16.msra.mxu0 %v8412_v36  ;;  %7848 = vmatprep.mubr.msk.bf16.mxu0 %vm524_vm0, %v8419_v38  ;;  %v8454_v38 = vld [vmem:[%s9750_s4 + $0x8] sm:$0xff]  }
 0x5a0   : > { %7838 = vmatprep.subr.bf16.mxu0 %v8414_v39 }
 0x5a3   : > { %7839 = vmatpush3.bf16.msra.mxu0 %v8414_v39  ;;  %v9403_v39 = vld [vmem:[%s9748_s2] ss:$0 sm:$0xff] }
 0x5a4   : > { %7840 = vmatprep.subr.bf16.mxu0 %v8415_v40 }
 0x5a7   : > { %7841 = vmatpush3.bf16.msra.mxu0 %v8415_v40 }
 0x5a8   : > { %7842 = vmatprep.subr.bf16.mxu0 %v8416_v41 }
 0x5ab   : > { %7843 = vmatpush3.bf16.msra.mxu0 %v8416_v41  ;;  %v9408_v41 = vld [vmem:[%s9749_s3] ss:$0 sm:$0xff] }
 0x5ac   : > { %7844 = vmatprep.subr.bf16.mxu0 %v8417_v43 }
 0x5af   : > { %7845 = vmatpush3.bf16.msra.mxu0 %v8417_v43 }
 0x5b0   : > { %7846 = vmatprep.subr.bf16.mxu0 %v8418_v44 }
 0x5b3   : > { %7847 = vmatpush3.bf16.msra.mxu0 %v8418_v44 }
 0x5b4   : > { %7852 = vmatprep.subr.bf16.mxu0 %v8420_v45 }
 0x5b6   : > { %7849 = vmatmul.mubr.msk.bf16.vlgmr.msra.gmra.mrb[12].mxu0 %vm524_vm0, %v8421_v47 }
 0x5b7   : > { %7853 = vmatpush3.bf16.msra.mxu0 %v8420_v45  ;;  %7864 = vmatprep.mubr.msk.bf16.mxu0 %vm524_vm0, %v8427_v48 }
 0x5b8   : > { %7854 = vmatprep.subr.bf16.mxu0 %v8422_v49 }
 0x5bb   : > { %7855 = vmatpush3.bf16.msra.mxu0 %v8422_v49 }
 0x5bc   : > { %7856 = vmatprep.subr.bf16.mxu0 %v8423_v50 }
 0x5bf   : > { %7857 = vmatpush3.bf16.msra.mxu0 %v8423_v50 }
 0x5c0   : > { %7858 = vmatprep.subr.bf16.mxu0 %v8424_v51 }
 0x5c3   : > { %7859 = vmatpush3.bf16.msra.mxu0 %v8424_v51 }
 0x5c4   : > { %7860 = vmatprep.subr.bf16.mxu0 %v8425_v52 }
 0x5c7   : > { %7861 = vmatpush3.bf16.msra.mxu0 %v8425_v52 }
 0x5c8   : > { %7862 = vmatprep.subr.bf16.mxu0 %v8426_v53 }
 0x5cb   : > { %7863 = vmatpush3.bf16.msra.mxu0 %v8426_v53 }
 0x5cc   : > { %7868 = vmatprep.subr.bf16.mxu0 %v8428_v54 }
 0x5ce   : > { %7865 = vmatmul.mubr.msk.bf16.vlgmr.msra.gmra.mrb[12].mxu0 %vm524_vm0, %v8429_v42 }
 0x5cf   : > { %7869 = vmatpush3.bf16.msra.mxu0 %v8428_v54  ;;  %7880 = vmatprep.mubr.msk.bf16.mxu0 %vm524_vm0, %v8435_v55 }
 0x5d0   : > { %7870 = vmatprep.subr.bf16.mxu0 %v8430_v56 }
 0x5d3   : > { %7871 = vmatpush3.bf16.msra.mxu0 %v8430_v56 }
 0x5d4   : > { %7872 = vmatprep.subr.bf16.mxu0 %v8431_v57 }
 0x5d7   : > { %7873 = vmatpush3.bf16.msra.mxu0 %v8431_v57 }
 0x5d8   : > { %7874 = vmatprep.subr.bf16.mxu0 %v8432_v58 }
 0x5db   : > { %7875 = vmatpush3.bf16.msra.mxu0 %v8432_v58 }
 0x5dc   : > { %7876 = vmatprep.subr.bf16.mxu0 %v8433_v46 }
 0x5df   : > { %7877 = vmatpush3.bf16.msra.mxu0 %v8433_v46 }
 0x5e0   : > { %7878 = vmatprep.subr.bf16.mxu0 %v8434_v59 }
 0x5e3   : > { %7879 = vmatpush3.bf16.msra.mxu0 %v8434_v59 }
 0x5e4   : > { %7884 = vmatprep.subr.bf16.mxu0 %v8436_v60 }
 0x5e6   : > { %7881 = vmatmul.mubr.msk.bf16.vlgmr.msra.gmra.mrb[12].mxu0 %vm524_vm0, %v8437_v61 }
 0x5e7   : > { %7885 = vmatpush3.bf16.msra.mxu0 %v8436_v60  ;;  %7896 = vmatprep.mubr.msk.bf16.mxu0 %vm524_vm0, %v8443_v62 }
 0x5e8   : > { %7886 = vmatprep.subr.bf16.mxu0 %v8438_v63 }
 0x5eb   : > { %7887 = vmatpush3.bf16.msra.mxu0 %v8438_v63  ;;  %v8455_v63 = vld [vmem:[%s9754_s8] sm:$0xff]  }
 0x5ec   : > { %7888 = vmatprep.subr.bf16.mxu0 %v8439_v0 }
 0x5ef   : > { %7889 = vmatpush3.bf16.msra.mxu0 %v8439_v0  ;;  %v8456_v0 = vld [vmem:[%s9754_s8 + $0x8] sm:$0xff]  }
 0x5f0   : > { %7890 = vmatprep.subr.bf16.mxu0 %v8440_v1 }
 0x5f3   : > { %7891 = vmatpush3.bf16.msra.mxu0 %v8440_v1  ;;  %v8457_v1 = vld [vmem:[%s9747_s1 + $0x30] sm:$0xff]  }
 0x5f4   : > { %7892 = vmatprep.subr.bf16.mxu0 %v8441_v2 }
 0x5f7   : > { %7893 = vmatpush3.bf16.msra.mxu0 %v8441_v2  ;;  %v9432_v2 = vld [vmem:[%s9751_s5] ss:$0 sm:$0xff] }
 0x5f8   : > { %7894 = vmatprep.subr.bf16.mxu0 %v8442_v3 }
 0x5fb   : > { %7895 = vmatpush3.bf16.msra.mxu0 %v8442_v3  ;;  %v7129_v3 = vld [vmem:[%s8863_s13 + $0x28] sm:$0xff]  }
 0x5fc   : > { %7900 = vmatprep.subr.bf16.mxu0 %v8444_v4 }
 0x5fe   : > { %7897 = vmatmul.mubr.msk.bf16.vlgmr.msra.gmra.mrb[12].mxu0 %vm524_vm0, %v8445_v5 }
 0x5ff   : > { %7901 = vmatpush3.bf16.msra.mxu0 %v8444_v4  ;;  %7912 = vmatprep.mubr.msk.bf16.mxu0 %vm524_vm0, %v8451_v6  ;;  %v7128_v4 = vld [vmem:[%s8863_s13 + $0x20] sm:$0xff]  }
 0x600   : > { %7902 = vmatprep.subr.bf16.mxu0 %v8446_v7  ;;  %v9439_v6 = vld [vmem:[%s9752_s6] ss:$0 sm:$0xff] }
 0x603   : > { %7903 = vmatpush3.bf16.msra.mxu0 %v8446_v7 }
 0x604   : > { %7904 = vmatprep.subr.bf16.mxu0 %v8447_v8 }
 0x607   : > { %7905 = vmatpush3.bf16.msra.mxu0 %v8447_v8  ;;  %v7115_v8 = vunpack.c.l.bf16 %v7129_v3 }
 0x608   : > { %7906 = vmatprep.subr.bf16.mxu0 %v8448_v9 }
 0x60b   : > { %7907 = vmatpush3.bf16.msra.mxu0 %v8448_v9 }
 0x60c   : > { %7908 = vmatprep.subr.bf16.mxu0 %v8449_v10 }
 0x60f   : > { %7909 = vmatpush3.bf16.msra.mxu0 %v8449_v10 }
 0x610   : > { %7910 = vmatprep.subr.bf16.mxu0 %v8450_v11 }
 0x611   : > { %v7770_v12 = vpop.f32.mrb[8].mxu0 }
 0x612   : > { %v3159_v13 = vmul.f32 %v7770_v12, %v9102_v33  ;;  %v3135_v14 = vpop.f32.mrb[9].mxu0 }
 0x613   : > { %v3157_v18 = vmul.f32 %v9102_v33, %v3135_v14  ;;  %7911 = vmatpush3.bf16.msra.mxu0 %v8450_v11  ;;  %v7771_v19 = vpop.f32.mrb[10].mxu0  ;;  %v7111_v11 = vunpack.c.l.bf16 %v7128_v4 }
 0x614   : > { %v3170_v20 = vadd.f32 %v9107_v35, %v3159_v13  ;;  %v3160_v21 = vmul.f32 %v7771_v19, %v9102_v33  ;;  %v3138_v22 = vpop.f32.mrb[11].mxu0 }
 0x615   : > { %v3168_v15 = vadd.f32 %v9107_v35, %v3157_v18  ;;  %v3158_v17 = vmul.f32 %v9102_v33, %v3138_v22 }
 0x616   : > { %vm3174_vm10 = vcmp.ge.f32.partialorder %v3170_v20, 0.0  ;;  %v3178_v23 = vmul.f32 0.01, %v3170_v20  ;;  %v3171_v24 = vadd.f32 %v9107_v35, %v3160_v21  ;;  %7913 = vmatmul.mubr.msk.bf16.vlgmr.msra.gmra.mrb[12].mxu0 %vm524_vm0, %v8452_v16  ;;  %v7116_v16 = vunpack.c.h.bf16 %v7129_v3  ;;  %v8476_v3 = vld [vmem:[%s9747_s1 + $0x78] sm:$0xff]  }
 0x617   : > { %vm3172_vm11 = vcmp.ge.f32.partialorder %v3168_v15, 0.0  ;;  %v3176_v25 = vmul.f32 0.01, %v3168_v15  ;;  %v3169_v26 = vadd.f32 %v9107_v35, %v3158_v17  ;;  %v8453_v35 = vld [vmem:[%s9750_s4] sm:$0xff]   ;;  %v7112_v21 = vunpack.c.h.bf16 %v7128_v4 }
 0x618   : > { %v3182_v27 = vsel %vm3174_vm10, %v3170_v20, %v3178_v23  ;;  %vm3175_vm12 = vcmp.ge.f32.partialorder %v3171_v24, 0.0  ;;  %v3179_v28 = vmul.f32 0.01, %v3171_v24  ;;  %7916 = vmatprep.subr.bf16.mxu1 %v8453_v35  ;;  %v8477_v4 = vld [vmem:[%s9747_s1 + $0x80] sm:$0xff]  }
 0x619   : > { %v7075_v29 = vpack.c.bf16 %v3182_v27, %v3182_v27  ;;  %v3180_v30 = vsel %vm3172_vm11, %v3168_v15, %v3176_v25  ;;  %vm3173_vm13 = vcmp.ge.f32.partialorder %v3169_v26, 0.0  ;;  %v3177_v33 = vmul.f32 0.01, %v3169_v26  ;;  %7917 = vmatpush3.bf16.msra.mxu1 %v8453_v35 }
 0x61a   : > { %v7073_v31 = vpack.c.bf16 %v3180_v30, %v3180_v30  ;;  %v3183_v32 = vsel %vm3175_vm12, %v3171_v24, %v3179_v28  ;;  %7918 = vmatprep.subr.bf16.mxu1 %v8454_v38  ;;  %v6804_v30 = vld [vmem:[%s8629_s14 + $0x4c] sm:$0xf] }
 0x61b   : > { %6548 = vst.msk [vmem:[%s9123_s16 + $0x18] sm:$0xf] %vm1701_vm8, %v7075_v29  ;;  %v7076_v34 = vpack.c.bf16 %v3183_v32, %v3183_v32  ;;  %v3181_v36 = vsel %vm3173_vm13, %v3169_v26, %v3177_v33 }
 0x61c   : > { %6546 = vst.msk [vmem:[%s9123_s16 + $0x10] sm:$0xf] %vm1701_vm8, %v7073_v31  ;;  %v7074_v37 = vpack.c.bf16 %v3181_v36, %v3181_v36 }
 0x61d   : > { %6549 = vst.msk [vmem:[%s9123_s16 + $0x1c] sm:$0xf] %vm1701_vm8, %v7076_v34  ;;  %7919 = vmatpush3.bf16.msra.mxu1 %v8454_v38  ;;  %v9451_v34 = vld [vmem:[%s8629_s14 + $0x50] sm:$0xf] }
 0x61e   : > { %6547 = vst.msk [vmem:[%s9123_s16 + $0x14] sm:$0xf] %vm1701_vm8, %v7074_v37  ;;  %7924 = vmatprep.subr.bf16.mxu1 %v8455_v63 }
 0x6e9   : > { %v7914_v40 = vpop.f32.mrb[12].mxu0 }
 0x6ea   : > { %v4287_v43 = vmul.f32 %v7914_v40, %v9403_v39  ;;  %v4259_v44 = vpop.f32.mrb[13].mxu0 }
 0x6eb   : > { %v4285_v45 = vmul.f32 %v9403_v39, %v4259_v44  ;;  %v7915_v47 = vpop.f32.mrb[14].mxu0 }
 0x6ec   : > { %v4298_v48 = vadd.f32 %v9408_v41, %v4287_v43  ;;  %v4288_v49 = vmul.f32 %v7915_v47, %v9403_v39  ;;  %v4262_v50 = vpop.f32.mrb[15].mxu0  ;;  %v8458_v47 = vld [vmem:[%s9747_s1 + $0x38] sm:$0xff]  }
 0x6ed   : > { %v4296_v51 = vadd.f32 %v9408_v41, %v4285_v45  ;;  %v4286_v52 = vmul.f32 %v9403_v39, %v4262_v50  ;;  %v6820_v45 = vcombine.low %v6804_v30, %v9451_v34  ;;  %v8461_v50 = vld [vmem:[%s9747_s1 + $0x50] sm:$0xff]  }
 0x6ee   : > { %v4306_v53 = vmul.f32 0.01, %v4298_v48  ;;  %v4299_v54 = vadd.f32 %v9408_v41, %v4288_v49  ;;  %vm4302_vm14 = vcmp.ge.f32.partialorder %v4298_v48, 0.0  ;;  %v8460_v49 = vld [vmem:[%s9747_s1 + $0x48] sm:$0xff]  }
 0x6ef   : > { %v4304_v42 = vmul.f32 0.01, %v4296_v51  ;;  %v4297_v55 = vadd.f32 %v9408_v41, %v4286_v52  ;;  %vm4300_vm15 = vcmp.ge.f32.partialorder %v4296_v51, 0.0  ;;  %v6806_v52 = vld [vmem:[%s8629_s14 + $0x54] sm:$0xf] }
 0x6f0   : > { %vm4303_vm1 = vcmp.ge.f32.partialorder %v4299_v54, 0.0  ;;  %v4307_v56 = vmul.f32 0.01, %v4299_v54  ;;  %v4310_v58 = vsel %vm4302_vm14, %v4298_v48, %v4306_v53  ;;  %v8459_v48 = vld [vmem:[%s9747_s1 + $0x40] sm:$0xff]   ;;  %v6807_v53 = vld [vmem:[%s8629_s14 + $0x58] sm:$0xf] }
 0x6f1   : > { %vm4301_vm2 = vcmp.ge.f32.partialorder %v4297_v55, 0.0  ;;  %v4305_v57 = vmul.f32 0.01, %v4297_v55  ;;  %v4308_v59 = vsel %vm4300_vm15, %v4296_v51, %v4304_v42  ;;  %v8462_v51 = vld [vmem:[%s9747_s1 + $0x58] sm:$0xff]   ;;  %v6803_v42 = vld [vmem:[%s8629_s14 + $0x48] sm:$0xf] }
 0x6f2   : > { %v4311_v46 = vsel %vm4303_vm1, %v4299_v54, %v4307_v56  ;;  %v8466_v54 = vld [vmem:[%s9747_s1] sm:$0xff]   ;;  %v6830_v56 = vcombine.low %v6803_v42, %v6804_v30  ;;  %v8502_v30 = vld [vmem:[%s9747_s1 + $0x118] sm:$0xff]   ;;  %v8523_v42 = vld [vmem:[%s9747_s1 + $0x190] sm:$0xff]  }
 0x6f3   : > { %v4313_v60 = vpack.c.bf16 %v4311_v46, %v4310_v58  ;;  %v4309_v61 = vsel %vm4301_vm2, %v4297_v55, %v4305_v57  ;;  %v6821_v55 = vcombine.low %v6806_v52, %v6807_v53  ;;  %v8467_v57 = vld [vmem:[%s9747_s1 + $0x8] sm:$0xff]   ;;  %v8468_v58 = vld [vmem:[%s9747_s1 + $0x10] sm:$0xff]   ;;  %v8469_v46 = vld [vmem:[%s9747_s1 + $0x18] sm:$0xff]  }
 0x6f4   : > { %v4312_v62 = vpack.c.bf16 %v4309_v61, %v4308_v59  ;;  %v8470_v59 = vld [vmem:[%s9747_s1 + $0x20] sm:$0xff]  }
 0x6f5   : > { %v8473_v61 = vld [vmem:[%s9747_s1 + $0x60] sm:$0xff]  }
 0x6f6   : > { %7920 = vmatprep.mubr.msk.bf16.mxu1 %vm1583_vm5, %v4312_v62  ;;  %v6831_v62 = vcombine.low %v9451_v34, %v6806_v52  ;;  %v8506_v34 = vld [vmem:[%s9747_s1 + $0x128] sm:$0xff]   ;;  %v8527_v53 = vld [vmem:[%s8629_s14 + $0x80] sm:$0xff]  }
 0x6f7   : > { %7921 = vmatmul.mubr.msk.bf16.vlgmr.msra.gmra.mrb[12].mxu1 %vm1583_vm5, %v4313_v60  ;;  %v8471_v60 = vld [vmem:[%s9747_s1 + $0x28] sm:$0xff]  }
 0x6f8   : > { %7925 = vmatpush3.bf16.msra.mxu1 %v8455_v63  ;;  %v8479_v63 = vld [vmem:[%s8629_s14 + $0x50] sm:$0xff]   ;;  %v8521_v52 = vld [vmem:[%s8629_s14 + $0x84] sm:$0xff]  }
 0x6f9   : > { %7926 = vmatprep.subr.bf16.mxu1 %v8456_v0 }
 0x6fc   : > { %7927 = vmatpush3.bf16.msra.mxu1 %v8456_v0  ;;  %v8474_v0 = vld [vmem:[%s9747_s1 + $0x68] sm:$0xff]  }
 0x6fd   : > { %7932 = vmatprep.subr.bf16.mxu1 %v8457_v1 }
 0x7ca   : > { %v7922_v5 = vpop.f32.mrb[12].mxu1 }
 0x7cb   : > { %v4394_v7 = vmul.f32 %v7922_v5, %v9432_v2  ;;  %v4370_v9 = vpop.f32.mrb[13].mxu1  ;;  %v8478_v5 = vld [vmem:[%s9747_s1 + $0x88] sm:$0xff]  }
 0x7cc   : > { %v4392_v10 = vmul.f32 %v9432_v2, %v4370_v9  ;;  %v7923_v12 = vpop.f32.mrb[14].mxu1  ;;  %v8487_v9 = vld [vmem:[%s8629_s14 + $0x60] sm:$0xff]  }
 0x7cd   : > { %v4405_v13 = vadd.f32 %v9439_v6, %v4394_v7  ;;  %v4395_v14 = vmul.f32 %v7923_v12, %v9432_v2  ;;  %v4373_v18 = vpop.f32.mrb[15].mxu1  ;;  %v8480_v7 = vld [vmem:[%s9747_s1 + $0x90] sm:$0xff]   ;;  %v8484_v12 = vld [vmem:[%s9747_s1 + $0xa8] sm:$0xff]  }
 0x7ce   : > { %v4403_v19 = vadd.f32 %v9439_v6, %v4392_v10  ;;  %v4393_v20 = vmul.f32 %v9432_v2, %v4373_v18  ;;  %v8482_v10 = vld [vmem:[%s9747_s1 + $0x98] sm:$0xff]   ;;  %v8489_v18 = vld [vmem:[%s8629_s14 + $0x68] sm:$0xff]  }
 0x7cf   : > { %v4418_v22 = vadd.f32 %v7115_v8, %v4405_v13  ;;  %v4406_v15 = vadd.f32 %v9439_v6, %v4395_v14  ;;  %v8481_v8 = vld [vmem:[%s8629_s14 + $0x58] sm:$0xff]   ;;  %v8485_v13 = vld [vmem:[%s9747_s1 + $0xb0] sm:$0xff]  }
 0x7d0   : > { %v4416_v17 = vadd.f32 %v7111_v11, %v4403_v19  ;;  %v4404_v23 = vadd.f32 %v9439_v6, %v4393_v20  ;;  %v8483_v11 = vld [vmem:[%s9747_s1 + $0xa0] sm:$0xff]   ;;  %v8486_v14 = vld [vmem:[%s9747_s1 + $0xb8] sm:$0xff]   ;;  %v8490_v20 = vld [vmem:[%s9747_s1 + $0xc8] sm:$0xff]  }
 0x7d1   : > { %vm4422_vm3 = vcmp.ge.f32.partialorder %v4418_v22, 0.0  ;;  %v4426_v24 = vmul.f32 0.01, %v4418_v22  ;;  %v4419_v25 = vadd.f32 %v7116_v16, %v4406_v15  ;;  %v8488_v16 = vld [vmem:[%s9747_s1 + $0xc0] sm:$0xff]  }
 0x7d2   : > { %vm4420_vm4 = vcmp.ge.f32.partialorder %v4416_v17, 0.0  ;;  %v4424_v26 = vmul.f32 0.01, %v4416_v17  ;;  %v4417_v27 = vadd.f32 %v7112_v21, %v4404_v23  ;;  %v8495_v19 = vld [vmem:[%s8629_s14 + $0x64] sm:$0xff]   ;;  %v8491_v21 = vld [vmem:[%s9747_s1 + $0xd0] sm:$0xff]  }
 0x7d3   : > { %v4430_v28 = vsel %vm4422_vm3, %v4418_v22, %v4426_v24  ;;  %vm4423_vm6 = vcmp.ge.f32.partialorder %v4419_v25, 0.0  ;;  %v4427_v29 = vmul.f32 0.01, %v4419_v25  ;;  %v8492_v22 = vld [vmem:[%s9747_s1 + $0xd8] sm:$0xff]   ;;  %v8493_v15 = vld [vmem:[%s9747_s1 + $0xe0] sm:$0xff]   ;;  %v8496_v23 = vld [vmem:[%s9747_s1 + $0xf0] sm:$0xff]  }
 0x7d4   : > { %v7079_v33 = vpack.c.bf16 %v4430_v28, %v4430_v28  ;;  %vm4421_vm7 = vcmp.ge.f32.partialorder %v4417_v27, 0.0  ;;  %v4425_v31 = vmul.f32 0.01, %v4417_v27  ;;  %v4428_v32 = vsel %vm4420_vm4, %v4416_v17, %v4424_v26  ;;  %v8494_v17 = vld [vmem:[%s9747_s1 + $0xe8] sm:$0xff]   ;;  %v8498_v26 = vld [vmem:[%s9747_s1 + $0xf8] sm:$0xff]  }
 0x7d5   : > { %v4431_v36 = vsel %vm4423_vm6, %v4419_v25, %v4427_v29  ;;  %v7077_v37 = vpack.c.bf16 %v4428_v32, %v4428_v32  ;;  %v8497_v24 = vld [vmem:[%s8629_s14 + $0x6c] sm:$0xff]  }
 0x7d6   : > { %6787 = vst.msk [vmem:[%s8889_s20 + $0x28] sm:$0xf] %vm1701_vm8, %v7079_v33  ;;  %v4433_v35 = vpack.c.bf16 %v4431_v36, %v4430_v28  ;;  %v7080_v38 = vpack.c.bf16 %v4431_v36, %v4431_v36  ;;  %v4429_v40 = vsel %vm4421_vm7, %v4417_v27, %v4425_v31  ;;  %v8503_v25 = vld [vmem:[%s8629_s14 + $0x68] sm:$0xff]   ;;  %v8499_v27 = vld [vmem:[%s9747_s1 + $0x100] sm:$0xff]   ;;  %v8501_v29 = vld [vmem:[%s9747_s1 + $0x110] sm:$0xff]  }
 0x7d7   : > { %v4432_v43 = vpack.c.bf16 %v4429_v40, %v4428_v32  ;;  %v7078_v44 = vpack.c.bf16 %v4429_v40, %v4429_v40  ;;  %6785 = vst.msk [vmem:[%s8889_s20 + $0x20] sm:$0xf] %vm1701_vm8, %v7077_v37  ;;  %v8500_v28 = vld [vmem:[%s9747_s1 + $0x108] sm:$0xff]   ;;  %v8504_v33 = vld [vmem:[%s9747_s1 + $0x120] sm:$0xff]   ;;  %v8505_v31 = vld [vmem:[%s8629_s14 + $0x70] sm:$0xff]  }
 0x7d8   : > { %6788 = vst.msk [vmem:[%s8889_s20 + $0x2c] sm:$0xf] %vm1701_vm8, %v7080_v38  ;;  %v8511_v32 = vld [vmem:[%s8629_s14 + $0x78] sm:$0xff]   ;;  %v8507_v36 = vld [vmem:[%s9747_s1 + $0x130] sm:$0xff]   ;;  %v8510_v38 = vld [vmem:[%s9747_s1 + $0x148] sm:$0xff]  }
 0x7d9   : > { %6786 = vst.msk [vmem:[%s8889_s20 + $0x24] sm:$0xf] %vm1701_vm8, %v7078_v44  ;;  %7928 = vmatprep.mubr.msk.bf16.mxu1 %vm1583_vm5, %v4432_v43  ;;  %v8508_v37 = vld [vmem:[%s9747_s1 + $0x138] sm:$0xff]   ;;  %v8512_v40 = vld [vmem:[%s9747_s1 + $0x150] sm:$0xff]   ;;  %v8513_v43 = vld [vmem:[%s8629_s14 + $0x80] sm:$0xff]  }
 0x7da   : > { %7929 = vmatmul.mubr.msk.bf16.vlgmr.msra.gmra.mrb[16].mxu1 %vm1583_vm5, %v4433_v35  ;;  %v8509_v35 = vld [vmem:[%s9747_s1 + $0x140] sm:$0xff]  }
 0x7db   : > { %7933 = vmatpush3.bf16.msra.mxu1 %v8457_v1  ;;  %7944 = vmatprep.mubr.msk.bf16.mxu1 %vm524_vm0, %v6820_v45  ;;  %v8475_v1 = vld [vmem:[%s9747_s1 + $0x70] sm:$0xff]   ;;  %v8519_v44 = vld [vmem:[%s8629_s14 + $0x7c] sm:$0xff]  }
 0x7dc   : > { %7934 = vmatprep.subr.bf16.mxu1 %v8458_v47  ;;  %v8514_v45 = vld [vmem:[%s9747_s1 + $0x158] sm:$0xff]  }
 0x7df   : > { %7935 = vmatpush3.bf16.msra.mxu1 %v8458_v47  ;;  %v8515_v47 = vld [vmem:[%s9747_s1 + $0x160] sm:$0xff]  }
 0x7e0   : > { %7936 = vmatprep.subr.bf16.mxu1 %v8459_v48 }
 0x7e3   : > { %7937 = vmatpush3.bf16.msra.mxu1 %v8459_v48  ;;  %v8516_v48 = vld [vmem:[%s9747_s1 + $0x168] sm:$0xff]  }
 0x7e4   : > { %7938 = vmatprep.subr.bf16.mxu1 %v8460_v49 }
 0x7e7   : > { %7939 = vmatpush3.bf16.msra.mxu1 %v8460_v49  ;;  %v8517_v49 = vld [vmem:[%s9747_s1 + $0x170] sm:$0xff]  }
 0x7e8   : > { %7940 = vmatprep.subr.bf16.mxu1 %v8461_v50 }
 0x7eb   : > { %7941 = vmatpush3.bf16.msra.mxu1 %v8461_v50  ;;  %v8518_v50 = vld [vmem:[%s9747_s1 + $0x178] sm:$0xff]  }
 0x7ec   : > { %7942 = vmatprep.subr.bf16.mxu1 %v8462_v51 }
 0x7ef   : > { %7943 = vmatpush3.bf16.msra.mxu1 %v8462_v51  ;;  %v8520_v51 = vld [vmem:[%s9747_s1 + $0x180] sm:$0xff]  }
 0x7f0   : > { %7948 = vmatprep.subr.bf16.mxu1 %v8466_v54 }
 0x7f2   : > { %7945 = vmatmul.mubr.msk.bf16.vlgmr.msra.gmra.mrb[20].mxu1 %vm524_vm0, %v6821_v55  ;;  %v8524_v55 = vld [vmem:[%s9747_s1 + $0x198] sm:$0xff]  }
 0x7f3   : > { %7949 = vmatpush3.bf16.msra.mxu1 %v8466_v54  ;;  %7960 = vmatprep.mubr.msk.bf16.mxu1 %vm524_vm0, %v6830_v56  ;;  %v8522_v54 = vld [vmem:[%s9747_s1 + $0x188] sm:$0xff]   ;;  %v8525_v56 = vld [vmem:[%s9747_s1 + $0x1a0] sm:$0xff]  }
 0x7f4   : > { %7950 = vmatprep.subr.bf16.mxu1 %v8467_v57 }
 0x7f7   : > { %7951 = vmatpush3.bf16.msra.mxu1 %v8467_v57  ;;  %v8526_v57 = vld [vmem:[%s9747_s1 + $0x1a8] sm:$0xff]  }
 0x7f8   : > { %7952 = vmatprep.subr.bf16.mxu1 %v8468_v58 }
 0x7fb   : > { %7953 = vmatpush3.bf16.msra.mxu1 %v8468_v58  ;;  %v9660_v58 = vld [vmem:[%s9755_s9] ss:$0 sm:$0xff] }
 0x7fc   : > { %7954 = vmatprep.subr.bf16.mxu1 %v8469_v46 }
 0x7ff   : > { %7955 = vmatpush3.bf16.msra.mxu1 %v8469_v46 }
 0x800   : > { %7956 = vmatprep.subr.bf16.mxu1 %v8470_v59 }
 0x803   : > { %7957 = vmatpush3.bf16.msra.mxu1 %v8470_v59  ;;  %v9665_v59 = vld [vmem:[%s9756_s10] ss:$0 sm:$0xff] }
 0x804   : > { %7958 = vmatprep.subr.bf16.mxu1 %v8471_v60 }
 0x807   : > { %7959 = vmatpush3.bf16.msra.mxu1 %v8471_v60 }
 0x808   : > { %7964 = vmatprep.subr.bf16.mxu1 %v8473_v61 }
 0x80a   : > { %7961 = vmatmul.mubr.msk.bf16.vlgmr.msra.gmra.mrb[20].mxu1 %vm524_vm0, %v6831_v62  ;;  %v8528_v62 = vld [vmem:[%s8629_s14 + $0x88] sm:$0xff]  }
 0x80b   : > { %7965 = vmatpush3.bf16.msra.mxu1 %v8473_v61  ;;  %7976 = vmatprep.mubr.msk.bf16.mxu1 %vm524_vm0, %v8479_v63 }
 0x80c   : > { %7966 = vmatprep.subr.bf16.mxu1 %v8474_v0 }
 0x80f   : > { %7967 = vmatpush3.bf16.msra.mxu1 %v8474_v0 }
 0x810   : > { %7968 = vmatprep.subr.bf16.mxu1 %v8475_v1 }
 0x813   : > { %7969 = vmatpush3.bf16.msra.mxu1 %v8475_v1 }
 0x814   : > { %7970 = vmatprep.subr.bf16.mxu1 %v8476_v3 }
 0x817   : > { %7971 = vmatpush3.bf16.msra.mxu1 %v8476_v3 }
 0x818   : > { %7972 = vmatprep.subr.bf16.mxu1 %v8477_v4 }
 0x81b   : > { %7973 = vmatpush3.bf16.msra.mxu1 %v8477_v4 }
 0x81c   : > { %7974 = vmatprep.subr.bf16.mxu1 %v8478_v5 }
 0x81f   : > { %7975 = vmatpush3.bf16.msra.mxu1 %v8478_v5 }
 0x820   : > { %7980 = vmatprep.subr.bf16.mxu1 %v8480_v7 }
 0x822   : > { %7977 = vmatmul.mubr.msk.bf16.vlgmr.msra.gmra.mrb[20].mxu1 %vm524_vm0, %v8481_v8 }
 0x823   : > { %7981 = vmatpush3.bf16.msra.mxu1 %v8480_v7  ;;  %7992 = vmatprep.mubr.msk.bf16.mxu1 %vm524_vm0, %v8487_v9 }
 0x824   : > { %7982 = vmatprep.subr.bf16.mxu1 %v8482_v10 }
 0x827   : > { %7983 = vmatpush3.bf16.msra.mxu1 %v8482_v10 }
 0x828   : > { %7984 = vmatprep.subr.bf16.mxu1 %v8483_v11 }
 0x82b   : > { %7985 = vmatpush3.bf16.msra.mxu1 %v8483_v11 }
 0x82c   : > { %7986 = vmatprep.subr.bf16.mxu1 %v8484_v12 }
 0x82f   : > { %7987 = vmatpush3.bf16.msra.mxu1 %v8484_v12 }
 0x830   : > { %7988 = vmatprep.subr.bf16.mxu1 %v8485_v13 }
 0x833   : > { %7989 = vmatpush3.bf16.msra.mxu1 %v8485_v13 }
 0x834   : > { %7990 = vmatprep.subr.bf16.mxu1 %v8486_v14 }
 0x837   : > { %7991 = vmatpush3.bf16.msra.mxu1 %v8486_v14 }
 0x838   : > { %7996 = vmatprep.subr.bf16.mxu1 %v8488_v16 }
 0x83a   : > { %7993 = vmatmul.mubr.msk.bf16.vlgmr.msra.gmra.mrb[20].mxu1 %vm524_vm0, %v8489_v18 }
 0x83b   : > { %7997 = vmatpush3.bf16.msra.mxu1 %v8488_v16  ;;  %8008 = vmatprep.mubr.msk.bf16.mxu1 %vm524_vm0, %v8495_v19 }
 0x83c   : > { %7998 = vmatprep.subr.bf16.mxu1 %v8490_v20 }
 0x83f   : > { %7999 = vmatpush3.bf16.msra.mxu1 %v8490_v20 }
 0x840   : > { %8000 = vmatprep.subr.bf16.mxu1 %v8491_v21 }
 0x843   : > { %8001 = vmatpush3.bf16.msra.mxu1 %v8491_v21 }
 0x844   : > { %8002 = vmatprep.subr.bf16.mxu1 %v8492_v22 }
 0x847   : > { %8003 = vmatpush3.bf16.msra.mxu1 %v8492_v22 }
 0x848   : > { %8004 = vmatprep.subr.bf16.mxu1 %v8493_v15 }
 0x84b   : > { %8005 = vmatpush3.bf16.msra.mxu1 %v8493_v15 }
 0x84c   : > { %8006 = vmatprep.subr.bf16.mxu1 %v8494_v17 }
 0x84f   : > { %8007 = vmatpush3.bf16.msra.mxu1 %v8494_v17  ;;  %v8529_v17 = vld [vmem:[%s9750_s4] sm:$0xff]  }
 0x850   : > { %8012 = vmatprep.subr.bf16.mxu1 %v8496_v23  ;;  %8076 = vmatprep.subr.bf16.mxu0 %v8529_v17 }
 0x851   : > { %8077 = vmatpush3.bf16.msra.mxu0 %v8529_v17 }
 0x852   : > { %8009 = vmatmul.mubr.msk.bf16.vlgmr.msra.gmra.mrb[20].mxu1 %vm524_vm0, %v8497_v24 }
 0x853   : > { %8013 = vmatpush3.bf16.msra.mxu1 %v8496_v23  ;;  %8024 = vmatprep.mubr.msk.bf16.mxu1 %vm524_vm0, %v8503_v25  ;;  %v8530_v23 = vld [vmem:[%s9750_s4 + $0x8] sm:$0xff]  }
 0x854   : > { %8014 = vmatprep.subr.bf16.mxu1 %v8498_v26  ;;  %8078 = vmatprep.subr.bf16.mxu0 %v8530_v23 }
 0x855   : > { %8079 = vmatpush3.bf16.msra.mxu0 %v8530_v23 }
 0x857   : > { %8015 = vmatpush3.bf16.msra.mxu1 %v8498_v26 }
 0x858   : > { %8016 = vmatprep.subr.bf16.mxu1 %v8499_v27 }
 0x85b   : > { %8017 = vmatpush3.bf16.msra.mxu1 %v8499_v27 }
 0x85c   : > { %8018 = vmatprep.subr.bf16.mxu1 %v8500_v28 }
 0x85f   : > { %8019 = vmatpush3.bf16.msra.mxu1 %v8500_v28 }
 0x860   : > { %8020 = vmatprep.subr.bf16.mxu1 %v8501_v29 }
 0x863   : > { %8021 = vmatpush3.bf16.msra.mxu1 %v8501_v29 }
 0x864   : > { %8022 = vmatprep.subr.bf16.mxu1 %v8502_v30 }
 0x867   : > { %8023 = vmatpush3.bf16.msra.mxu1 %v8502_v30 }
 0x868   : > { %8028 = vmatprep.subr.bf16.mxu1 %v8504_v33 }
 0x86a   : > { %8025 = vmatmul.mubr.msk.bf16.vlgmr.msra.gmra.mrb[20].mxu1 %vm524_vm0, %v8505_v31 }
 0x86b   : > { %8029 = vmatpush3.bf16.msra.mxu1 %v8504_v33  ;;  %8040 = vmatprep.mubr.msk.bf16.mxu1 %vm524_vm0, %v8511_v32 }
 0x86c   : > { %8030 = vmatprep.subr.bf16.mxu1 %v8506_v34 }
 0x86f   : > { %8031 = vmatpush3.bf16.msra.mxu1 %v8506_v34 }
 0x870   : > { %8032 = vmatprep.subr.bf16.mxu1 %v8507_v36 }
 0x873   : > { %8033 = vmatpush3.bf16.msra.mxu1 %v8507_v36 }
 0x874   : > { %8034 = vmatprep.subr.bf16.mxu1 %v8508_v37 }
 0x877   : > { %8035 = vmatpush3.bf16.msra.mxu1 %v8508_v37 }
 0x878   : > { %8036 = vmatprep.subr.bf16.mxu1 %v8509_v35 }
 0x87b   : > { %8037 = vmatpush3.bf16.msra.mxu1 %v8509_v35 }
 0x87c   : > { %8038 = vmatprep.subr.bf16.mxu1 %v8510_v38 }
 0x87f   : > { %8039 = vmatpush3.bf16.msra.mxu1 %v8510_v38 }
 0x880   : > { %8044 = vmatprep.subr.bf16.mxu1 %v8512_v40 }
 0x882   : > { %8041 = vmatmul.mubr.msk.bf16.vlgmr.msra.gmra.mrb[20].mxu1 %vm524_vm0, %v8513_v43 }
 0x883   : > { %8045 = vmatpush3.bf16.msra.mxu1 %v8512_v40  ;;  %8056 = vmatprep.mubr.msk.bf16.mxu1 %vm524_vm0, %v8519_v44 }
 0x884   : > { %8046 = vmatprep.subr.bf16.mxu1 %v8514_v45 }
 0x887   : > { %8047 = vmatpush3.bf16.msra.mxu1 %v8514_v45 }
 0x888   : > { %8048 = vmatprep.subr.bf16.mxu1 %v8515_v47 }
 0x88b   : > { %8049 = vmatpush3.bf16.msra.mxu1 %v8515_v47 }
 0x88c   : > { %8050 = vmatprep.subr.bf16.mxu1 %v8516_v48 }
 0x88f   : > { %8051 = vmatpush3.bf16.msra.mxu1 %v8516_v48 }
 0x890   : > { %8052 = vmatprep.subr.bf16.mxu1 %v8517_v49 }
 0x893   : > { %8053 = vmatpush3.bf16.msra.mxu1 %v8517_v49  ;;  %v8532_v49 = vld [vmem:[%s9754_s8 + $0x8] sm:$0xff]  }
 0x894   : > { %8054 = vmatprep.subr.bf16.mxu1 %v8518_v50 }
 0x897   : > { %8055 = vmatpush3.bf16.msra.mxu1 %v8518_v50  ;;  %v7131_v50 = vld [vmem:[%s8863_s13 + $0x38] sm:$0xff]  }
 0x898   : > { %8060 = vmatprep.subr.bf16.mxu1 %v8520_v51 }
 0x89a   : > { %8057 = vmatmul.mubr.msk.bf16.vlgmr.msra.gmra.mrb[20].mxu1 %vm524_vm0, %v8521_v52 }
 0x89b   : > { %8061 = vmatpush3.bf16.msra.mxu1 %v8520_v51  ;;  %8072 = vmatprep.mubr.msk.bf16.mxu1 %vm524_vm0, %v8527_v53  ;;  %v7130_v51 = vld [vmem:[%s8863_s13 + $0x30] sm:$0xff]  }
 0x89c   : > { %8062 = vmatprep.subr.bf16.mxu1 %v8522_v54 }
 0x89f   : > { %8063 = vmatpush3.bf16.msra.mxu1 %v8522_v54  ;;  %v7123_v54 = vunpack.c.l.bf16 %v7131_v50 }
 0x8a0   : > { %8064 = vmatprep.subr.bf16.mxu1 %v8523_v42 }
 0x8a3   : > { %8065 = vmatpush3.bf16.msra.mxu1 %v8523_v42 }
 0x8a4   : > { %8066 = vmatprep.subr.bf16.mxu1 %v8524_v55 }
 0x8a7   : > { %8067 = vmatpush3.bf16.msra.mxu1 %v8524_v55 }
 0x8a8   : > { %8068 = vmatprep.subr.bf16.mxu1 %v8525_v56 }
 0x8ab   : > { %8069 = vmatpush3.bf16.msra.mxu1 %v8525_v56  ;;  %v7119_v56 = vunpack.c.l.bf16 %v7130_v51 }
 0x8ac   : > { %8070 = vmatprep.subr.bf16.mxu1 %v8526_v57 }
 0x8ad   : > { %v7930_v46 = vpop.f32.mrb[16].mxu1 }
 0x8ae   : > { %v4533_v60 = vmul.f32 %v7930_v46, %v9660_v58  ;;  %v4509_v61 = vpop.f32.mrb[17].mxu1 }
 0x8af   : > { %v4531_v63 = vmul.f32 %v9660_v58, %v4509_v61  ;;  %8071 = vmatpush3.bf16.msra.mxu1 %v8526_v57  ;;  %v7931_v0 = vpop.f32.mrb[18].mxu1  ;;  %v7124_v61 = vunpack.c.h.bf16 %v7131_v50 }
 0x8b0   : > { %v4544_v1 = vadd.f32 %v9665_v59, %v4533_v60  ;;  %v4534_v3 = vmul.f32 %v7931_v0, %v9660_v58  ;;  %v4512_v4 = vpop.f32.mrb[19].mxu1 }
 0x8b1   : > { %v4542_v5 = vadd.f32 %v9665_v59, %v4531_v63  ;;  %v4532_v7 = vmul.f32 %v9660_v58, %v4512_v4 }
 0x8b2   : > { %vm4548_vm9 = vcmp.ge.f32.partialorder %v4544_v1, 0.0  ;;  %v4552_v8 = vmul.f32 0.01, %v4544_v1  ;;  %v4545_v9 = vadd.f32 %v9665_v59, %v4534_v3  ;;  %8073 = vmatmul.mubr.msk.bf16.vlgmr.msra.gmra.mrb[20].mxu1 %vm524_vm0, %v8528_v62 }
 0x8b3   : > { %vm4546_vm10 = vcmp.ge.f32.partialorder %v4542_v5, 0.0  ;;  %v4550_v10 = vmul.f32 0.01, %v4542_v5  ;;  %v4543_v11 = vadd.f32 %v9665_v59, %v4532_v7 }
 0x8b4   : > { %v4556_v12 = vsel %vm4548_vm9, %v4544_v1, %v4552_v8  ;;  %vm4549_vm11 = vcmp.ge.f32.partialorder %v4545_v9, 0.0  ;;  %v4553_v13 = vmul.f32 0.01, %v4545_v9  ;;  %v7120_v1 = vunpack.c.h.bf16 %v7130_v51 }
 0x8b5   : > { %v7083_v14 = vpack.c.bf16 %v4556_v12, %v4556_v12  ;;  %v4554_v16 = vsel %vm4546_vm10, %v4542_v5, %v4550_v10  ;;  %vm4547_vm12 = vcmp.ge.f32.partialorder %v4543_v11, 0.0  ;;  %v4551_v18 = vmul.f32 0.01, %v4543_v11 }
 0x8b6   : > { %v7081_v19 = vpack.c.bf16 %v4554_v16, %v4554_v16  ;;  %v4557_v20 = vsel %vm4549_vm11, %v4545_v9, %v4553_v13 }
 0x8b7   : > { %6801 = vst.msk [vmem:[%s9123_s16 + $0x28] sm:$0xf] %vm1701_vm8, %v7083_v14  ;;  %v7084_v21 = vpack.c.bf16 %v4557_v20, %v4557_v20  ;;  %v4555_v22 = vsel %vm4547_vm12, %v4543_v11, %v4551_v18 }
 0x8b8   : > { %6799 = vst.msk [vmem:[%s9123_s16 + $0x20] sm:$0xf] %vm1701_vm8, %v7081_v19  ;;  %v7082_v15 = vpack.c.bf16 %v4555_v22, %v4555_v22 }
 0x8b9   : > { %6802 = vst.msk [vmem:[%s9123_s16 + $0x2c] sm:$0xf] %vm1701_vm8, %v7084_v21 }
 0x8ba   : > { %6800 = vst.msk [vmem:[%s9123_s16 + $0x24] sm:$0xf] %vm1701_vm8, %v7082_v15 }
 0x985   : > { %v8074_v24 = vpop.f32.mrb[20].mxu1 }
 0x986   : > { %v5661_v25 = vmul.f32 %v8074_v24, %v9403_v39  ;;  %v5633_v26 = vpop.f32.mrb[21].mxu1 }
 0x987   : > { %v5659_v27 = vmul.f32 %v9403_v39, %v5633_v26  ;;  %v8075_v28 = vpop.f32.mrb[22].mxu1 }
 0x988   : > { %v5672_v29 = vadd.f32 %v9408_v41, %v5661_v25  ;;  %v5662_v30 = vmul.f32 %v8075_v28, %v9403_v39  ;;  %v5636_v33 = vpop.f32.mrb[23].mxu1 }
 0x989   : > { %v5670_v31 = vadd.f32 %v9408_v41, %v5659_v27  ;;  %v5660_v32 = vmul.f32 %v9403_v39, %v5636_v33 }
 0x98a   : > { %v5680_v34 = vmul.f32 0.01, %v5672_v29  ;;  %v5673_v36 = vadd.f32 %v9408_v41, %v5662_v30  ;;  %vm5676_vm0 = vcmp.ge.f32.partialorder %v5672_v29, 0.0 }
 0x98b   : > { %v5678_v37 = vmul.f32 0.01, %v5670_v31  ;;  %v5671_v35 = vadd.f32 %v9408_v41, %v5660_v32  ;;  %vm5674_vm13 = vcmp.ge.f32.partialorder %v5670_v31, 0.0  ;;  %v8531_v41 = vld [vmem:[%s9754_s8] sm:$0xff]  }
 0x98c   : > { %vm5677_vm14 = vcmp.ge.f32.partialorder %v5673_v36, 0.0  ;;  %v5681_v38 = vmul.f32 0.01, %v5673_v36  ;;  %v5684_v43 = vsel %vm5676_vm0, %v5672_v29, %v5680_v34  ;;  %8084 = vmatprep.subr.bf16.mxu0 %v8531_v41 }
 0x98d   : > { %vm5675_vm15 = vcmp.ge.f32.partialorder %v5671_v35, 0.0  ;;  %v5679_v40 = vmul.f32 0.01, %v5671_v35  ;;  %v5682_v45 = vsel %vm5674_vm13, %v5670_v31, %v5678_v37 }
 0x98e   : > { %v5685_v44 = vsel %vm5677_vm14, %v5673_v36, %v5681_v38 }
 0x98f   : > { %v5687_v47 = vpack.c.bf16 %v5685_v44, %v5684_v43  ;;  %v5683_v48 = vsel %vm5675_vm15, %v5671_v35, %v5679_v40 }
 0x990   : > { %v5686_v39 = vpack.c.bf16 %v5683_v48, %v5682_v45 }
 0x992   : > { %8080 = vmatprep.mubr.msk.bf16.mxu0 %vm1583_vm5, %v5686_v39 }
 0x993   : > { %8081 = vmatmul.mubr.msk.bf16.vlgmr.msra.gmra.mrb[16].mxu0 %vm1583_vm5, %v5687_v47 }
 0x994   : > { %8085 = vmatpush3.bf16.msra.mxu0 %v8531_v41 }
 0x995   : > { %8086 = vmatprep.subr.bf16.mxu0 %v8532_v49 }
 0x998   : > { %8087 = vmatpush3.bf16.msra.mxu0 %v8532_v49 }
 0xa66   : > { %v8082_v52 = vpop.f32.mrb[16].mxu0 }
 0xa67   : > { %v5768_v53 = vmul.f32 %v8082_v52, %v9432_v2  ;;  %v5744_v42 = vpop.f32.mrb[17].mxu0 }
 0xa68   : > { %v5766_v55 = vmul.f32 %v9432_v2, %v5744_v42  ;;  %v8083_v57 = vpop.f32.mrb[18].mxu0 }
 0xa69   : > { %v5779_v46 = vadd.f32 %v9439_v6, %v5768_v53  ;;  %v5769_v60 = vmul.f32 %v8083_v57, %v9432_v2  ;;  %v5747_v62 = vpop.f32.mrb[19].mxu0 }
 0xa6a   : > { %v5777_v63 = vadd.f32 %v9439_v6, %v5766_v55  ;;  %v5767_v0 = vmul.f32 %v9432_v2, %v5747_v62 }
 0xa6b   : > { %v5792_v3 = vadd.f32 %v7123_v54, %v5779_v46  ;;  %v5780_v4 = vadd.f32 %v9439_v6, %v5769_v60 }
 0xa6c   : > { %v5790_v5 = vadd.f32 %v7119_v56, %v5777_v63  ;;  %v5778_v7 = vadd.f32 %v9439_v6, %v5767_v0 }
 0xa6d   : > { %vm5796_vm1 = vcmp.ge.f32.partialorder %v5792_v3, 0.0  ;;  %v5800_v8 = vmul.f32 0.01, %v5792_v3  ;;  %v5793_v9 = vadd.f32 %v7124_v61, %v5780_v4 }
 0xa6e   : > { %vm5794_vm2 = vcmp.ge.f32.partialorder %v5790_v5, 0.0  ;;  %v5798_v10 = vmul.f32 0.01, %v5790_v5  ;;  %v5791_v11 = vadd.f32 %v7120_v1, %v5778_v7 }
 0xa6f   : > { %v5804_v12 = vsel %vm5796_vm1, %v5792_v3, %v5800_v8  ;;  %vm5797_vm3 = vcmp.ge.f32.partialorder %v5793_v9, 0.0  ;;  %v5801_v2 = vmul.f32 0.01, %v5793_v9 }
 0xa70   : > { %v7087_v13 = vpack.c.bf16 %v5804_v12, %v5804_v12  ;;  %vm5795_vm4 = vcmp.ge.f32.partialorder %v5791_v11, 0.0  ;;  %v5799_v14 = vmul.f32 0.01, %v5791_v11  ;;  %v5802_v16 = vsel %vm5794_vm2, %v5790_v5, %v5798_v10 }
 0xa71   : > { %v5805_v18 = vsel %vm5797_vm3, %v5793_v9, %v5801_v2  ;;  %v7085_v19 = vpack.c.bf16 %v5802_v16, %v5802_v16 }
 0xa72   : > { %7040 = vst.msk [vmem:[%s8889_s20 + $0x38] sm:$0xf] %vm1701_vm8, %v7087_v13  ;;  %v5807_v6 = vpack.c.bf16 %v5805_v18, %v5804_v12  ;;  %v7088_v20 = vpack.c.bf16 %v5805_v18, %v5805_v18  ;;  %v5803_v21 = vsel %vm5795_vm4, %v5791_v11, %v5799_v14 }
 0xa73   : > { %v5806_v22 = vpack.c.bf16 %v5803_v21, %v5802_v16  ;;  %v7086_v15 = vpack.c.bf16 %v5803_v21, %v5803_v21  ;;  %7038 = vst.msk [vmem:[%s8889_s20 + $0x30] sm:$0xf] %vm1701_vm8, %v7085_v19 }
 0xa74   : > { %7041 = vst.msk [vmem:[%s8889_s20 + $0x3c] sm:$0xf] %vm1701_vm8, %v7088_v20 }
 0xa75   : > { %7039 = vst.msk [vmem:[%s8889_s20 + $0x34] sm:$0xf] %vm1701_vm8, %v7086_v15  ;;  %8088 = vmatprep.mubr.msk.bf16.mxu0 %vm1583_vm5, %v5806_v22 }
 0xa76   : > { %8089 = vmatmul.mubr.msk.bf16.vlgmr.msra.gmra.mrb[20].mxu0 %vm1583_vm5, %v5807_v6 }
 0xb49   : > { %v8090_v17 = vpop.f32.mrb[20].mxu0 }
 0xb4a   : > { %v5907_v23 = vmul.f32 %v8090_v17, %v9660_v58  ;;  %v5883_v24 = vpop.f32.mrb[21].mxu0 }
 0xb4b   : > { %v5905_v25 = vmul.f32 %v9660_v58, %v5883_v24  ;;  %v8091_v26 = vpop.f32.mrb[22].mxu0 }
 0xb4c   : > { %v5918_v27 = vadd.f32 %v9665_v59, %v5907_v23  ;;  %v5908_v28 = vmul.f32 %v8091_v26, %v9660_v58  ;;  %v5886_v29 = vpop.f32.mrb[23].mxu0 }
 0xb4d   : > { %v5916_v30 = vadd.f32 %v9665_v59, %v5905_v25  ;;  %v5906_v33 = vmul.f32 %v9660_v58, %v5886_v29 }
 0xb4e   : > { %vm5922_vm6 = vcmp.ge.f32.partialorder %v5918_v27, 0.0  ;;  %v5926_v31 = vmul.f32 0.01, %v5918_v27  ;;  %v5919_v32 = vadd.f32 %v9665_v59, %v5908_v28 }
 0xb4f   : > { %vm5920_vm5 = vcmp.ge.f32.partialorder %v5916_v30, 0.0  ;;  %v5924_v34 = vmul.f32 0.01, %v5916_v30  ;;  %v5917_v36 = vadd.f32 %v9665_v59, %v5906_v33 }
 0xb50   : > { %v5930_v37 = vsel %vm5922_vm6, %v5918_v27, %v5926_v31  ;;  %vm5923_vm7 = vcmp.ge.f32.partialorder %v5919_v32, 0.0  ;;  %v5927_v35 = vmul.f32 0.01, %v5919_v32 }
 0xb51   : > { %v7091_v38 = vpack.c.bf16 %v5930_v37, %v5930_v37  ;;  %v5928_v40 = vsel %vm5920_vm5, %v5916_v30, %v5924_v34  ;;  %vm5921_vm9 = vcmp.ge.f32.partialorder %v5917_v36, 0.0  ;;  %v5925_v43 = vmul.f32 0.01, %v5917_v36 }
 0xb52   : > { %v7089_v58 = vpack.c.bf16 %v5928_v40, %v5928_v40  ;;  %v5931_v44 = vsel %vm5923_vm7, %v5919_v32, %v5927_v35 }
 0xb53   : > { %7054 = vst.msk [vmem:[%s9123_s16 + $0x38] sm:$0xf] %vm1701_vm8, %v7091_v38  ;;  %v7092_v45 = vpack.c.bf16 %v5931_v44, %v5931_v44  ;;  %v5929_v47 = vsel %vm5921_vm9, %v5917_v36, %v5925_v43 }
 0xb54   : > { %7052 = vst.msk [vmem:[%s9123_s16 + $0x30] sm:$0xf] %vm1701_vm8, %v7089_v58  ;;  %v7090_v48 = vpack.c.bf16 %v5929_v47, %v5929_v47 }
 0xb55   : > { %7055 = vst.msk [vmem:[%s9123_s16 + $0x3c] sm:$0xf] %vm1701_vm8, %v7092_v45 }
 0xb56   : > { %7053 = vst.msk [vmem:[%s9123_s16 + $0x34] sm:$0xf] %vm1701_vm8, %v7090_v48 }
 0xb57 PF: > { %s23_s21 = sadd.s32 1, %s8539_s21  }
 0xb58   : > { %p20_p4 = scmp.ge.s32.totalorder %s23_s21, 4  }
 0xb5a   :  { %22 = sbr.rel (!%p20_p4) target bundleno = 1 (0x1), region = 131 }

</bundles_post_ra>
